<compile_context>
chip_gen: v7x
topology: tpu7x:2x2x1
jax: 0.10.0
libtpu: 0.0.40
codegen_flags: <defaults>
</compile_context>

<pallas_src>
import functools

import jax
import jax.numpy as jnp
import numpy as np
from jax.experimental import pallas as pl
from jax.experimental.pallas import tpu as pltpu


# ------------------------------ fused kernel --------------------------------

def _net_kernel(x_ref, a1_ref, b1_ref, a2_ref, b2_ref, w3_ref, b3_ref,
                w4_ref, b4_ref, out_ref, *, block_b):
    f32 = jnp.float32
    bf16 = jnp.bfloat16

    # Exact 0/1 selection matrices for the 2x2 max-pool, built once per grid
    # step (hoisted out of the per-example loop).  left @ X picks even/odd rows,
    # X @ right picks even/odd lanes.
    def _left_sel(n):
        r = jax.lax.broadcasted_iota(jnp.int32, (n // 2, n), 0)
        c = jax.lax.broadcasted_iota(jnp.int32, (n // 2, n), 1)
        return (c == 2 * r).astype(f32), (c == 2 * r + 1).astype(f32)

    def _right_sel(n):
        r = jax.lax.broadcasted_iota(jnp.int32, (n, n // 2), 0)
        c = jax.lax.broadcasted_iota(jnp.int32, (n, n // 2), 1)
        return (r == 2 * c).astype(f32), (r == 2 * c + 1).astype(f32)

    r1e, r1o = _left_sel(24)      # (12, 24)
    c1e, c1o = _right_sel(240)    # (240, 120)
    r2e, r2o = _left_sel(8)       # (4, 8)
    c2e, c2o = _right_sel(160)    # (160, 80)

    a1 = a1_ref[...]              # (5, 28, 240)  bf16, output lanes = (c1, j1)
    a2 = a2_ref[...]              # (5, 120, 160) bf16, output lanes = (c2, j2)
    b1 = b1_ref[...]              # (1, 240) f32
    b2 = b2_ref[...]              # (1, 160) f32

    def dotf(a, b):
        return jnp.dot(a, b, preferred_element_type=f32)

    feats = []
    for b in range(block_b):
        xb = x_ref[b].astype(bf16)                       # (28, 28)

        # ---- conv1 as 5 banded matmuls + bias + ReLU; lanes = (c1, j1) ----
        h1 = dotf(xb[0:24, :], a1[0])
        for di in range(1, 5):
            h1 = h1 + dotf(xb[di:di + 24, :], a1[di])    # (24, 240)
        h1 = jnp.maximum(h1 + b1, 0.0)

        # ---- 2x2 max-pool via selection matmuls (rows, then lanes) ----
        y1 = jnp.maximum(dotf(r1e, h1), dotf(r1o, h1))   # (12, 240)
        p1 = jnp.maximum(dotf(y1, c1e), dotf(y1, c1o))   # (12, 120) lanes=(c1,jp1)

        # ---- conv2 + bias + ReLU; lanes = (c2, j2) ----
        p1b = p1.astype(bf16)
        h2 = dotf(p1b[0:8, :], a2[0])
        for di in range(1, 5):
            h2 = h2 + dotf(p1b[di:di + 8, :], a2[di])    # (8, 160)
        h2 = jnp.maximum(h2 + b2, 0.0)

        # ---- 2x2 max-pool ----
        y2 = jnp.maximum(dotf(r2e, h2), dotf(r2o, h2))   # (4, 160)
        p2 = jnp.maximum(dotf(y2, c2e), dotf(y2, c2o))   # (4, 80) lanes=(c2,jp2)

        # ---- flatten to the internal (ip2, c2, jp2) order (W3 is permuted to match) ----
        feats.append(jnp.concatenate([p2[k:k + 1, :] for k in range(4)],
                                     axis=-1))           # (1, 320)

    f = jnp.concatenate(feats, axis=0)                   # (block_b, 320) f32

    # ---- fc1 + ReLU ----
    z1 = dotf(f.astype(bf16), w3_ref[...]) + b3_ref[...]  # (block_b, 50)
    z1 = jnp.maximum(z1, 0.0)
    # TODO(synk): F.dropout is identity in inference mode; training-mode dropout omitted.

    # ---- fc2 ----
    z2 = dotf(z1.astype(bf16), w4_ref[...]) + b4_ref[...]  # (block_b, 10)

    # ---- log_softmax (numerically stable, f32) ----
    m = jnp.max(z2, axis=-1, keepdims=True)
    s = z2 - m
    lse = jnp.log(jnp.sum(jnp.exp(s), axis=-1, keepdims=True))
    out_ref[...] = (s - lse).astype(out_ref.dtype)


# ------------------------------ wrapper --------------------------------------

def net_forward(params, x, *, block_b=8):
    # x: (N, 1, 28, 28) float32, NCHW (same interface as the PyTorch module)
    n = x.shape[0]
    x = x.reshape(n, 28, 28)
    npad = ((n + block_b - 1) // block_b) * block_b
    if npad != n:
        x = jnp.pad(x, ((0, npad - n), (0, 0), (0, 0)))

    kernel = functools.partial(_net_kernel, block_b=block_b)
    out = pl.pallas_call(
        kernel,
        out_shape=jax.ShapeDtypeStruct((npad, 10), jnp.float32),
        grid_spec=pltpu.PrefetchScalarGridSpec(
            num_scalar_prefetch=0,
            grid=(npad // block_b,),
            in_specs=[
                pl.BlockSpec((block_b, 28, 28), lambda i: (i, 0, 0)),  # x tile
                pl.BlockSpec((5, 28, 240), lambda i: (0, 0, 0)),       # A1
                pl.BlockSpec((1, 240), lambda i: (0, 0)),              # b1e
                pl.BlockSpec((5, 120, 160), lambda i: (0, 0, 0)),      # A2
                pl.BlockSpec((1, 160), lambda i: (0, 0)),              # b2e
                pl.BlockSpec((320, 50), lambda i: (0, 0)),             # W3
                pl.BlockSpec((1, 50), lambda i: (0, 0)),               # b3
                pl.BlockSpec((50, 10), lambda i: (0, 0)),              # W4
                pl.BlockSpec((1, 10), lambda i: (0, 0)),               # b4
            ],
            out_specs=pl.BlockSpec((block_b, 10), lambda i: (i, 0)),
        ),
        compiler_params=pltpu.CompilerParams(
            dimension_semantics=("parallel",),
            vmem_limit_bytes=32 * 1024 * 1024,
        ),
    )(x, params["A1"], params["b1e"], params["A2"], params["b2e"],
      params["W3"], params["b3"], params["W4"], params["b4"])
    return out[:n]


# ------------------------------ parameters -----------------------------------

def init_params():
    # Raw weights in PyTorch layouts (Conv: OIHW, Linear: (out, in)).
    key = jax.random.PRNGKey(0)
    ks = jax.random.split(key, 8)

    def uniform(k, shape, fan_in):
        bound = 1.0 / (fan_in ** 0.5)
        return jax.random.uniform(k, shape, jnp.float32, -bound, bound)

    return {
        "conv1_w": uniform(ks[0], (10, 1, 5, 5), 1 * 5 * 5),
        "conv1_b": uniform(ks[1], (10,), 1 * 5 * 5),
        "conv2_w": uniform(ks[2], (20, 10, 5, 5), 10 * 5 * 5),
        "conv2_b": uniform(ks[3], (20,), 10 * 5 * 5),
        "fc1_w": uniform(ks[4], (50, 320), 320),
        "fc1_b": uniform(ks[5], (50,), 320),
        "fc2_w": uniform(ks[6], (10, 50), 50),
        "fc2_b": uniform(ks[7], (10,), 50),
    }


def _conv_band_matrices(w, win, wo):
    # w: (Cout, Cin, 5, 5) -> A: (5, Cin*Win, Cout*Wo) with
    #   A[di, ci*Win + jo + dj, co*Wo + jo] = w[co, ci, di, dj]
    # so that  conv_out[i, co*Wo + jo] = sum_di  input_row[i + di, :] @ A[di].
    cout, cin, k, _ = w.shape
    a = np.zeros((k, cin * win, cout * wo), np.float32)
    cols = np.arange(cout) * wo
    for di in range(k):
        for ci in range(cin):
            for dj in range(k):
                for jo in range(wo):
                    a[di, ci * win + jo + dj, cols + jo] = w[:, ci, di, dj]
    return a


def prepare_params(raw):
    # One-time (init) lowering of the PyTorch-layout weights into the kernel's
    # lane-dense, pre-transposed/pre-permuted forms.
    w1 = np.asarray(raw["conv1_w"], np.float32)
    b1 = np.asarray(raw["conv1_b"], np.float32)
    w2 = np.asarray(raw["conv2_w"], np.float32)
    b2 = np.asarray(raw["conv2_b"], np.float32)
    fc1_w = np.asarray(raw["fc1_w"], np.float32)
    fc1_b = np.asarray(raw["fc1_b"], np.float32)
    fc2_w = np.asarray(raw["fc2_w"], np.float32)
    fc2_b = np.asarray(raw["fc2_b"], np.float32)

    a1 = _conv_band_matrices(w1, win=28, wo=24)        # (5, 28, 240)
    a2 = _conv_band_matrices(w2, win=12, wo=8)         # (5, 120, 160)

    # fc1 rows permuted once so the kernel's internal (ip, c, jp) flatten order
    # reproduces PyTorch's (c, ip, jp) `view(-1, 320)` order.
    w3 = fc1_w.reshape(50, 20, 4, 4).transpose(2, 1, 3, 0).reshape(320, 50)
    w4 = fc2_w.T                                        # pre-transposed fc2

    return {
        "A1": jnp.asarray(a1, jnp.bfloat16),
        "b1e": jnp.asarray(np.repeat(b1, 24)[None, :], jnp.float32),
        "A2": jnp.asarray(a2, jnp.bfloat16),
        "b2e": jnp.asarray(np.repeat(b2, 8)[None, :], jnp.float32),
        "W3": jnp.asarray(w3, jnp.bfloat16),
        "b3": jnp.asarray(fc1_b[None, :], jnp.float32),
        "W4": jnp.asarray(w4, jnp.bfloat16),
        "b4": jnp.asarray(fc2_b[None, :], jnp.float32),
    }


# ------------------------------ pure-JAX reference ---------------------------

def _reference_forward(raw, x):
    # f32 XLA reference of the PyTorch module (used only as a sanity check).
    dn = ("NCHW", "OIHW", "NCHW")
    h = jax.lax.conv_general_dilated(x, raw["conv1_w"], (1, 1), "VALID",
                                     dimension_numbers=dn)
    h = h + raw["conv1_b"][None, :, None, None]
    h = jax.lax.reduce_window(h, -jnp.inf, jax.lax.max,
                              (1, 1, 2, 2), (1, 1, 2, 2), "VALID")
    h = jnp.maximum(h, 0.0)
    h = jax.lax.conv_general_dilated(h, raw["conv2_w"], (1, 1), "VALID",
                                     dimension_numbers=dn)
    h = h + raw["conv2_b"][None, :, None, None]
    h = jax.lax.reduce_window(h, -jnp.inf, jax.lax.max,
                              (1, 1, 2, 2), (1, 1, 2, 2), "VALID")
    h = jnp.maximum(h, 0.0)
    h = h.reshape(h.shape[0], -1)
    h = jnp.maximum(h @ raw["fc1_w"].T + raw["fc1_b"], 0.0)
    h = h @ raw["fc2_w"].T + raw["fc2_b"]
    return jax.nn.log_softmax(h, axis=1)


# ------------------------------ main ------------------------------------------

if __name__ == "__main__":
    raw = init_params()
    params = prepare_params(raw)

    x = jax.random.normal(jax.random.PRNGKey(0), (2, 1, 28, 28), jnp.float32)

    out = jax.jit(net_forward)(params, x)
    out = jax.block_until_ready(out)
    assert out.shape == (2, 10)
    assert bool(jnp.all(jnp.isfinite(out)))

    # Sanity check vs. the f32 reference (bf16 MXU operands -> loose tolerance).
    ref = _reference_forward(raw, x)
    err = float(jnp.max(jnp.abs(out - ref)))
    assert err < 1e-1, f"mismatch vs reference: {err}"

    print("KERNEL_OK")
</pallas_src>

<mosaic_0001>
module attributes {stable_mosaic.version = 11 : i64} {
  func.func @_net_kernel(%arg0: i32, %arg1: memref<8x28x28xf32, #tpu.memory_space<vmem>>, %arg2: memref<5x28x240xbf16, #tpu.memory_space<vmem>>, %arg3: memref<1x240xf32, #tpu.memory_space<vmem>>, %arg4: memref<5x120x160xbf16, #tpu.memory_space<vmem>>, %arg5: memref<1x160xf32, #tpu.memory_space<vmem>>, %arg6: memref<320x50xbf16, #tpu.memory_space<vmem>>, %arg7: memref<1x50xf32, #tpu.memory_space<vmem>>, %arg8: memref<50x10xbf16, #tpu.memory_space<vmem>>, %arg9: memref<1x10xf32, #tpu.memory_space<vmem>>, %arg10: memref<8x10xf32, #tpu.memory_space<vmem>>) attributes {dimension_semantics = [#tpu.dimension_semantics<parallel>], iteration_bounds = array<i64: 1>, scalar_prefetch = 0 : i64, scratch_operands = 0 : i64, tpu.core_type = #tpu.core_type<tc>, window_params = [{transform_indices = @transform_0, window_bounds = array<i64: 8, 28, 28>}, {pipeline_mode = #tpu.pipeline_mode<synchronous>, transform_indices = @transform_1, window_bounds = array<i64: 5, 28, 240>}, {pipeline_mode = #tpu.pipeline_mode<synchronous>, transform_indices = @transform_2, window_bounds = array<i64: 1, 240>}, {pipeline_mode = #tpu.pipeline_mode<synchronous>, transform_indices = @transform_3, window_bounds = array<i64: 5, 120, 160>}, {pipeline_mode = #tpu.pipeline_mode<synchronous>, transform_indices = @transform_4, window_bounds = array<i64: 1, 160>}, {pipeline_mode = #tpu.pipeline_mode<synchronous>, transform_indices = @transform_5, window_bounds = array<i64: 320, 50>}, {pipeline_mode = #tpu.pipeline_mode<synchronous>, transform_indices = @transform_6, window_bounds = array<i64: 1, 50>}, {pipeline_mode = #tpu.pipeline_mode<synchronous>, transform_indices = @transform_7, window_bounds = array<i64: 50, 10>}, {pipeline_mode = #tpu.pipeline_mode<synchronous>, transform_indices = @transform_8, window_bounds = array<i64: 1, 10>}, {transform_indices = @transform_9, window_bounds = array<i64: 8, 10>}]} {
    %0 = tpu.iota {dimensions = array<i32: 0>} : vector<12x24xi32>
    %1 = tpu.iota {dimensions = array<i32: 1>} : vector<12x24xi32>
    %c2_i32 = arith.constant 2 : i32
    %2 = vector.broadcast %c2_i32 : i32 to vector<12x24xi32>
    %3 = arith.muli %2, %0 : vector<12x24xi32>
    %4 = arith.cmpi eq, %1, %3 : vector<12x24xi32>
    %5 = arith.extui %4 : vector<12x24xi1> to vector<12x24xi32>
    %6 = arith.sitofp %5 : vector<12x24xi32> to vector<12x24xf32>
    %c2_i32_0 = arith.constant 2 : i32
    %7 = vector.broadcast %c2_i32_0 : i32 to vector<12x24xi32>
    %8 = arith.muli %7, %0 : vector<12x24xi32>
    %c1_i32 = arith.constant 1 : i32
    %9 = vector.broadcast %c1_i32 : i32 to vector<12x24xi32>
    %10 = arith.addi %8, %9 : vector<12x24xi32>
    %11 = arith.cmpi eq, %1, %10 : vector<12x24xi32>
    %12 = arith.extui %11 : vector<12x24xi1> to vector<12x24xi32>
    %13 = arith.sitofp %12 : vector<12x24xi32> to vector<12x24xf32>
    %14 = tpu.iota {dimensions = array<i32: 0>} : vector<240x120xi32>
    %15 = tpu.iota {dimensions = array<i32: 1>} : vector<240x120xi32>
    %c2_i32_1 = arith.constant 2 : i32
    %16 = vector.broadcast %c2_i32_1 : i32 to vector<240x120xi32>
    %17 = arith.muli %16, %15 : vector<240x120xi32>
    %18 = arith.cmpi eq, %14, %17 : vector<240x120xi32>
    %19 = arith.extui %18 : vector<240x120xi1> to vector<240x120xi32>
    %20 = arith.sitofp %19 : vector<240x120xi32> to vector<240x120xf32>
    %c2_i32_2 = arith.constant 2 : i32
    %21 = vector.broadcast %c2_i32_2 : i32 to vector<240x120xi32>
    %22 = arith.muli %21, %15 : vector<240x120xi32>
    %c1_i32_3 = arith.constant 1 : i32
    %23 = vector.broadcast %c1_i32_3 : i32 to vector<240x120xi32>
    %24 = arith.addi %22, %23 : vector<240x120xi32>
    %25 = arith.cmpi eq, %14, %24 : vector<240x120xi32>
    %26 = arith.extui %25 : vector<240x120xi1> to vector<240x120xi32>
    %27 = arith.sitofp %26 : vector<240x120xi32> to vector<240x120xf32>
    %28 = tpu.iota {dimensions = array<i32: 0>} : vector<4x8xi32>
    %29 = tpu.iota {dimensions = array<i32: 1>} : vector<4x8xi32>
    %c2_i32_4 = arith.constant 2 : i32
    %30 = vector.broadcast %c2_i32_4 : i32 to vector<4x8xi32>
    %31 = arith.muli %30, %28 : vector<4x8xi32>
    %32 = arith.cmpi eq, %29, %31 : vector<4x8xi32>
    %33 = arith.extui %32 : vector<4x8xi1> to vector<4x8xi32>
    %34 = arith.sitofp %33 : vector<4x8xi32> to vector<4x8xf32>
    %c2_i32_5 = arith.constant 2 : i32
    %35 = vector.broadcast %c2_i32_5 : i32 to vector<4x8xi32>
    %36 = arith.muli %35, %28 : vector<4x8xi32>
    %c1_i32_6 = arith.constant 1 : i32
    %37 = vector.broadcast %c1_i32_6 : i32 to vector<4x8xi32>
    %38 = arith.addi %36, %37 : vector<4x8xi32>
    %39 = arith.cmpi eq, %29, %38 : vector<4x8xi32>
    %40 = arith.extui %39 : vector<4x8xi1> to vector<4x8xi32>
    %41 = arith.sitofp %40 : vector<4x8xi32> to vector<4x8xf32>
    %42 = tpu.iota {dimensions = array<i32: 0>} : vector<160x80xi32>
    %43 = tpu.iota {dimensions = array<i32: 1>} : vector<160x80xi32>
    %c2_i32_7 = arith.constant 2 : i32
    %44 = vector.broadcast %c2_i32_7 : i32 to vector<160x80xi32>
    %45 = arith.muli %44, %43 : vector<160x80xi32>
    %46 = arith.cmpi eq, %42, %45 : vector<160x80xi32>
    %47 = arith.extui %46 : vector<160x80xi1> to vector<160x80xi32>
    %48 = arith.sitofp %47 : vector<160x80xi32> to vector<160x80xf32>
    %c2_i32_8 = arith.constant 2 : i32
    %49 = vector.broadcast %c2_i32_8 : i32 to vector<160x80xi32>
    %50 = arith.muli %49, %43 : vector<160x80xi32>
    %c1_i32_9 = arith.constant 1 : i32
    %51 = vector.broadcast %c1_i32_9 : i32 to vector<160x80xi32>
    %52 = arith.addi %50, %51 : vector<160x80xi32>
    %53 = arith.cmpi eq, %42, %52 : vector<160x80xi32>
    %54 = arith.extui %53 : vector<160x80xi1> to vector<160x80xi32>
    %55 = arith.sitofp %54 : vector<160x80xi32> to vector<160x80xf32>
    %c0 = arith.constant 0 : index
    %c0_10 = arith.constant 0 : index
    %c0_11 = arith.constant 0 : index
    %56 = vector.load %arg2[%c0, %c0_10, %c0_11] : memref<5x28x240xbf16, #tpu.memory_space<vmem>>, vector<5x28x240xbf16>
    %c0_12 = arith.constant 0 : index
    %c0_13 = arith.constant 0 : index
    %c0_14 = arith.constant 0 : index
    %57 = vector.load %arg4[%c0_12, %c0_13, %c0_14] : memref<5x120x160xbf16, #tpu.memory_space<vmem>>, vector<5x120x160xbf16>
    %c0_15 = arith.constant 0 : index
    %c0_16 = arith.constant 0 : index
    %58 = vector.load %arg3[%c0_15, %c0_16] : memref<1x240xf32, #tpu.memory_space<vmem>>, vector<1x240xf32>
    %c0_17 = arith.constant 0 : index
    %c0_18 = arith.constant 0 : index
    %59 = vector.load %arg5[%c0_17, %c0_18] : memref<1x160xf32, #tpu.memory_space<vmem>>, vector<1x160xf32>
    %c0_19 = arith.constant 0 : index
    %c0_20 = arith.constant 0 : index
    %c0_21 = arith.constant 0 : index
    %60 = vector.load %arg1[%c0_19, %c0_20, %c0_21] : memref<8x28x28xf32, #tpu.memory_space<vmem>>, vector<1x28x28xf32>
    %61 = vector.shape_cast %60 : vector<1x28x28xf32> to vector<28x28xf32>
    %62 = arith.truncf %61 : vector<28x28xf32> to vector<28x28xbf16>
    %63 = vector.extract_strided_slice %62 {offsets = [0, 0], sizes = [24, 28], strides = [1, 1]} : vector<28x28xbf16> to vector<24x28xbf16>
    %64 = vector.extract_strided_slice %56 {offsets = [0, 0, 0], sizes = [1, 28, 240], strides = [1, 1, 1]} : vector<5x28x240xbf16> to vector<1x28x240xbf16>
    %65 = vector.shape_cast %64 : vector<1x28x240xbf16> to vector<28x240xbf16>
    %cst = arith.constant dense<0.000000e+00> : vector<24x240xf32>
    %66 = tpu.matmul %63, %65, %cst {dimension_numbers = #tpu.dot_dimension_numbers<[1], [0], [0], [1], [0, 0, 1, 1], [], []>} : vector<24x28xbf16>, vector<28x240xbf16>, vector<24x240xf32> -> vector<24x240xf32>
    %67 = vector.extract_strided_slice %62 {offsets = [1, 0], sizes = [24, 28], strides = [1, 1]} : vector<28x28xbf16> to vector<24x28xbf16>
    %68 = vector.extract_strided_slice %56 {offsets = [1, 0, 0], sizes = [1, 28, 240], strides = [1, 1, 1]} : vector<5x28x240xbf16> to vector<1x28x240xbf16>
    %69 = vector.shape_cast %68 : vector<1x28x240xbf16> to vector<28x240xbf16>
    %cst_22 = arith.constant dense<0.000000e+00> : vector<24x240xf32>
    %70 = tpu.matmul %67, %69, %cst_22 {dimension_numbers = #tpu.dot_dimension_numbers<[1], [0], [0], [1], [0, 0, 1, 1], [], []>} : vector<24x28xbf16>, vector<28x240xbf16>, vector<24x240xf32> -> vector<24x240xf32>
    %71 = arith.addf %66, %70 : vector<24x240xf32>
    %72 = vector.extract_strided_slice %62 {offsets = [2, 0], sizes = [24, 28], strides = [1, 1]} : vector<28x28xbf16> to vector<24x28xbf16>
    %73 = vector.extract_strided_slice %56 {offsets = [2, 0, 0], sizes = [1, 28, 240], strides = [1, 1, 1]} : vector<5x28x240xbf16> to vector<1x28x240xbf16>
    %74 = vector.shape_cast %73 : vector<1x28x240xbf16> to vector<28x240xbf16>
    %cst_23 = arith.constant dense<0.000000e+00> : vector<24x240xf32>
    %75 = tpu.matmul %72, %74, %cst_23 {dimension_numbers = #tpu.dot_dimension_numbers<[1], [0], [0], [1], [0, 0, 1, 1], [], []>} : vector<24x28xbf16>, vector<28x240xbf16>, vector<24x240xf32> -> vector<24x240xf32>
    %76 = arith.addf %71, %75 : vector<24x240xf32>
    %77 = vector.extract_strided_slice %62 {offsets = [3, 0], sizes = [24, 28], strides = [1, 1]} : vector<28x28xbf16> to vector<24x28xbf16>
    %78 = vector.extract_strided_slice %56 {offsets = [3, 0, 0], sizes = [1, 28, 240], strides = [1, 1, 1]} : vector<5x28x240xbf16> to vector<1x28x240xbf16>
    %79 = vector.shape_cast %78 : vector<1x28x240xbf16> to vector<28x240xbf16>
    %cst_24 = arith.constant dense<0.000000e+00> : vector<24x240xf32>
    %80 = tpu.matmul %77, %79, %cst_24 {dimension_numbers = #tpu.dot_dimension_numbers<[1], [0], [0], [1], [0, 0, 1, 1], [], []>} : vector<24x28xbf16>, vector<28x240xbf16>, vector<24x240xf32> -> vector<24x240xf32>
    %81 = arith.addf %76, %80 : vector<24x240xf32>
    %82 = vector.extract_strided_slice %62 {offsets = [4, 0], sizes = [24, 28], strides = [1, 1]} : vector<28x28xbf16> to vector<24x28xbf16>
    %83 = vector.extract_strided_slice %56 {offsets = [4, 0, 0], sizes = [1, 28, 240], strides = [1, 1, 1]} : vector<5x28x240xbf16> to vector<1x28x240xbf16>
    %84 = vector.shape_cast %83 : vector<1x28x240xbf16> to vector<28x240xbf16>
    %cst_25 = arith.constant dense<0.000000e+00> : vector<24x240xf32>
    %85 = tpu.matmul %82, %84, %cst_25 {dimension_numbers = #tpu.dot_dimension_numbers<[1], [0], [0], [1], [0, 0, 1, 1], [], []>} : vector<24x28xbf16>, vector<28x240xbf16>, vector<24x240xf32> -> vector<24x240xf32>
    %86 = arith.addf %81, %85 : vector<24x240xf32>
    %87 = vector.broadcast %58 : vector<1x240xf32> to vector<24x240xf32>
    %88 = arith.addf %86, %87 : vector<24x240xf32>
    %cst_26 = arith.constant 0.000000e+00 : f32
    %89 = vector.broadcast %cst_26 : f32 to vector<24x240xf32>
    %90 = arith.maximumf %88, %89 : vector<24x240xf32>
    %cst_27 = arith.constant dense<0.000000e+00> : vector<12x240xf32>
    %91 = tpu.matmul %6, %90, %cst_27 {dimension_numbers = #tpu.dot_dimension_numbers<[1], [0], [0], [1], [0, 0, 1, 1], [], []>} : vector<12x24xf32>, vector<24x240xf32>, vector<12x240xf32> -> vector<12x240xf32>
    %cst_28 = arith.constant dense<0.000000e+00> : vector<12x240xf32>
    %92 = tpu.matmul %13, %90, %cst_28 {dimension_numbers = #tpu.dot_dimension_numbers<[1], [0], [0], [1], [0, 0, 1, 1], [], []>} : vector<12x24xf32>, vector<24x240xf32>, vector<12x240xf32> -> vector<12x240xf32>
    %93 = arith.maximumf %91, %92 : vector<12x240xf32>
    %cst_29 = arith.constant dense<0.000000e+00> : vector<12x120xf32>
    %94 = tpu.matmul %93, %20, %cst_29 {dimension_numbers = #tpu.dot_dimension_numbers<[1], [0], [0], [1], [0, 0, 1, 1], [], []>} : vector<12x240xf32>, vector<240x120xf32>, vector<12x120xf32> -> vector<12x120xf32>
    %cst_30 = arith.constant dense<0.000000e+00> : vector<12x120xf32>
    %95 = tpu.matmul %93, %27, %cst_30 {dimension_numbers = #tpu.dot_dimension_numbers<[1], [0], [0], [1], [0, 0, 1, 1], [], []>} : vector<12x240xf32>, vector<240x120xf32>, vector<12x120xf32> -> vector<12x120xf32>
    %96 = arith.maximumf %94, %95 : vector<12x120xf32>
    %97 = arith.truncf %96 : vector<12x120xf32> to vector<12x120xbf16>
    %98 = vector.extract_strided_slice %97 {offsets = [0, 0], sizes = [8, 120], strides = [1, 1]} : vector<12x120xbf16> to vector<8x120xbf16>
    %99 = vector.extract_strided_slice %57 {offsets = [0, 0, 0], sizes = [1, 120, 160], strides = [1, 1, 1]} : vector<5x120x160xbf16> to vector<1x120x160xbf16>
    %100 = vector.shape_cast %99 : vector<1x120x160xbf16> to vector<120x160xbf16>
    %cst_31 = arith.constant dense<0.000000e+00> : vector<8x160xf32>
    %101 = tpu.matmul %98, %100, %cst_31 {dimension_numbers = #tpu.dot_dimension_numbers<[1], [0], [0], [1], [0, 0, 1, 1], [], []>} : vector<8x120xbf16>, vector<120x160xbf16>, vector<8x160xf32> -> vector<8x160xf32>
    %102 = vector.extract_strided_slice %97 {offsets = [1, 0], sizes = [8, 120], strides = [1, 1]} : vector<12x120xbf16> to vector<8x120xbf16>
    %103 = vector.extract_strided_slice %57 {offsets = [1, 0, 0], sizes = [1, 120, 160], strides = [1, 1, 1]} : vector<5x120x160xbf16> to vector<1x120x160xbf16>
    %104 = vector.shape_cast %103 : vector<1x120x160xbf16> to vector<120x160xbf16>
    %cst_32 = arith.constant dense<0.000000e+00> : vector<8x160xf32>
    %105 = tpu.matmul %102, %104, %cst_32 {dimension_numbers = #tpu.dot_dimension_numbers<[1], [0], [0], [1], [0, 0, 1, 1], [], []>} : vector<8x120xbf16>, vector<120x160xbf16>, vector<8x160xf32> -> vector<8x160xf32>
    %106 = arith.addf %101, %105 : vector<8x160xf32>
    %107 = vector.extract_strided_slice %97 {offsets = [2, 0], sizes = [8, 120], strides = [1, 1]} : vector<12x120xbf16> to vector<8x120xbf16>
    %108 = vector.extract_strided_slice %57 {offsets = [2, 0, 0], sizes = [1, 120, 160], strides = [1, 1, 1]} : vector<5x120x160xbf16> to vector<1x120x160xbf16>
    %109 = vector.shape_cast %108 : vector<1x120x160xbf16> to vector<120x160xbf16>
    %cst_33 = arith.constant dense<0.000000e+00> : vector<8x160xf32>
    %110 = tpu.matmul %107, %109, %cst_33 {dimension_numbers = #tpu.dot_dimension_numbers<[1], [0], [0], [1], [0, 0, 1, 1], [], []>} : vector<8x120xbf16>, vector<120x160xbf16>, vector<8x160xf32> -> vector<8x160xf32>
    %111 = arith.addf %106, %110 : vector<8x160xf32>
    %112 = vector.extract_strided_slice %97 {offsets = [3, 0], sizes = [8, 120], strides = [1, 1]} : vector<12x120xbf16> to vector<8x120xbf16>
    %113 = vector.extract_strided_slice %57 {offsets = [3, 0, 0], sizes = [1, 120, 160], strides = [1, 1, 1]} : vector<5x120x160xbf16> to vector<1x120x160xbf16>
    %114 = vector.shape_cast %113 : vector<1x120x160xbf16> to vector<120x160xbf16>
    %cst_34 = arith.constant dense<0.000000e+00> : vector<8x160xf32>
    %115 = tpu.matmul %112, %114, %cst_34 {dimension_numbers = #tpu.dot_dimension_numbers<[1], [0], [0], [1], [0, 0, 1, 1], [], []>} : vector<8x120xbf16>, vector<120x160xbf16>, vector<8x160xf32> -> vector<8x160xf32>
    %116 = arith.addf %111, %115 : vector<8x160xf32>
    %117 = vector.extract_strided_slice %97 {offsets = [4, 0], sizes = [8, 120], strides = [1, 1]} : vector<12x120xbf16> to vector<8x120xbf16>
    %118 = vector.extract_strided_slice %57 {offsets = [4, 0, 0], sizes = [1, 120, 160], strides = [1, 1, 1]} : vector<5x120x160xbf16> to vector<1x120x160xbf16>
    %119 = vector.shape_cast %118 : vector<1x120x160xbf16> to vector<120x160xbf16>
    %cst_35 = arith.constant dense<0.000000e+00> : vector<8x160xf32>
    %120 = tpu.matmul %117, %119, %cst_35 {dimension_numbers = #tpu.dot_dimension_numbers<[1], [0], [0], [1], [0, 0, 1, 1], [], []>} : vector<8x120xbf16>, vector<120x160xbf16>, vector<8x160xf32> -> vector<8x160xf32>
    %121 = arith.addf %116, %120 : vector<8x160xf32>
    %122 = vector.broadcast %59 : vector<1x160xf32> to vector<8x160xf32>
    %123 = arith.addf %121, %122 : vector<8x160xf32>
    %cst_36 = arith.constant 0.000000e+00 : f32
    %124 = vector.broadcast %cst_36 : f32 to vector<8x160xf32>
    %125 = arith.maximumf %123, %124 : vector<8x160xf32>
    %cst_37 = arith.constant dense<0.000000e+00> : vector<4x160xf32>
    %126 = tpu.matmul %34, %125, %cst_37 {dimension_numbers = #tpu.dot_dimension_numbers<[1], [0], [0], [1], [0, 0, 1, 1], [], []>} : vector<4x8xf32>, vector<8x160xf32>, vector<4x160xf32> -> vector<4x160xf32>
    %cst_38 = arith.constant dense<0.000000e+00> : vector<4x160xf32>
    %127 = tpu.matmul %41, %125, %cst_38 {dimension_numbers = #tpu.dot_dimension_numbers<[1], [0], [0], [1], [0, 0, 1, 1], [], []>} : vector<4x8xf32>, vector<8x160xf32>, vector<4x160xf32> -> vector<4x160xf32>
    %128 = arith.maximumf %126, %127 : vector<4x160xf32>
    %cst_39 = arith.constant dense<0.000000e+00> : vector<4x80xf32>
    %129 = tpu.matmul %128, %48, %cst_39 {dimension_numbers = #tpu.dot_dimension_numbers<[1], [0], [0], [1], [0, 0, 1, 1], [], []>} : vector<4x160xf32>, vector<160x80xf32>, vector<4x80xf32> -> vector<4x80xf32>
    %cst_40 = arith.constant dense<0.000000e+00> : vector<4x80xf32>
    %130 = tpu.matmul %128, %55, %cst_40 {dimension_numbers = #tpu.dot_dimension_numbers<[1], [0], [0], [1], [0, 0, 1, 1], [], []>} : vector<4x160xf32>, vector<160x80xf32>, vector<4x80xf32> -> vector<4x80xf32>
    %131 = arith.maximumf %129, %130 : vector<4x80xf32>
    %132 = vector.extract_strided_slice %131 {offsets = [0, 0], sizes = [1, 80], strides = [1, 1]} : vector<4x80xf32> to vector<1x80xf32>
    %133 = vector.extract_strided_slice %131 {offsets = [1, 0], sizes = [1, 80], strides = [1, 1]} : vector<4x80xf32> to vector<1x80xf32>
    %134 = vector.extract_strided_slice %131 {offsets = [2, 0], sizes = [1, 80], strides = [1, 1]} : vector<4x80xf32> to vector<1x80xf32>
    %135 = vector.extract_strided_slice %131 {offsets = [3, 0], sizes = [1, 80], strides = [1, 1]} : vector<4x80xf32> to vector<1x80xf32>
    %136 = tpu.concatenate %132, %133, %134, %135 in 1 : vector<1x80xf32>, vector<1x80xf32>, vector<1x80xf32>, vector<1x80xf32> -> vector<1x320xf32>
    %c1 = arith.constant 1 : index
    %c0_41 = arith.constant 0 : index
    %c0_42 = arith.constant 0 : index
    %137 = vector.load %arg1[%c1, %c0_41, %c0_42] : memref<8x28x28xf32, #tpu.memory_space<vmem>>, vector<1x28x28xf32>
    %138 = vector.shape_cast %137 : vector<1x28x28xf32> to vector<28x28xf32>
    %139 = arith.truncf %138 : vector<28x28xf32> to vector<28x28xbf16>
    %140 = vector.extract_strided_slice %139 {offsets = [0, 0], sizes = [24, 28], strides = [1, 1]} : vector<28x28xbf16> to vector<24x28xbf16>
    %141 = vector.extract_strided_slice %56 {offsets = [0, 0, 0], sizes = [1, 28, 240], strides = [1, 1, 1]} : vector<5x28x240xbf16> to vector<1x28x240xbf16>
    %142 = vector.shape_cast %141 : vector<1x28x240xbf16> to vector<28x240xbf16>
    %cst_43 = arith.constant dense<0.000000e+00> : vector<24x240xf32>
    %143 = tpu.matmul %140, %142, %cst_43 {dimension_numbers = #tpu.dot_dimension_numbers<[1], [0], [0], [1], [0, 0, 1, 1], [], []>} : vector<24x28xbf16>, vector<28x240xbf16>, vector<24x240xf32> -> vector<24x240xf32>
    %144 = vector.extract_strided_slice %139 {offsets = [1, 0], sizes = [24, 28], strides = [1, 1]} : vector<28x28xbf16> to vector<24x28xbf16>
    %145 = vector.extract_strided_slice %56 {offsets = [1, 0, 0], sizes = [1, 28, 240], strides = [1, 1, 1]} : vector<5x28x240xbf16> to vector<1x28x240xbf16>
    %146 = vector.shape_cast %145 : vector<1x28x240xbf16> to vector<28x240xbf16>
    %cst_44 = arith.constant dense<0.000000e+00> : vector<24x240xf32>
    %147 = tpu.matmul %144, %146, %cst_44 {dimension_numbers = #tpu.dot_dimension_numbers<[1], [0], [0], [1], [0, 0, 1, 1], [], []>} : vector<24x28xbf16>, vector<28x240xbf16>, vector<24x240xf32> -> vector<24x240xf32>
    %148 = arith.addf %143, %147 : vector<24x240xf32>
    %149 = vector.extract_strided_slice %139 {offsets = [2, 0], sizes = [24, 28], strides = [1, 1]} : vector<28x28xbf16> to vector<24x28xbf16>
    %150 = vector.extract_strided_slice %56 {offsets = [2, 0, 0], sizes = [1, 28, 240], strides = [1, 1, 1]} : vector<5x28x240xbf16> to vector<1x28x240xbf16>
    %151 = vector.shape_cast %150 : vector<1x28x240xbf16> to vector<28x240xbf16>
    %cst_45 = arith.constant dense<0.000000e+00> : vector<24x240xf32>
    %152 = tpu.matmul %149, %151, %cst_45 {dimension_numbers = #tpu.dot_dimension_numbers<[1], [0], [0], [1], [0, 0, 1, 1], [], []>} : vector<24x28xbf16>, vector<28x240xbf16>, vector<24x240xf32> -> vector<24x240xf32>
    %153 = arith.addf %148, %152 : vector<24x240xf32>
    %154 = vector.extract_strided_slice %139 {offsets = [3, 0], sizes = [24, 28], strides = [1, 1]} : vector<28x28xbf16> to vector<24x28xbf16>
    %155 = vector.extract_strided_slice %56 {offsets = [3, 0, 0], sizes = [1, 28, 240], strides = [1, 1, 1]} : vector<5x28x240xbf16> to vector<1x28x240xbf16>
    %156 = vector.shape_cast %155 : vector<1x28x240xbf16> to vector<28x240xbf16>
    %cst_46 = arith.constant dense<0.000000e+00> : vector<24x240xf32>
    %157 = tpu.matmul %154, %156, %cst_46 {dimension_numbers = #tpu.dot_dimension_numbers<[1], [0], [0], [1], [0, 0, 1, 1], [], []>} : vector<24x28xbf16>, vector<28x240xbf16>, vector<24x240xf32> -> vector<24x240xf32>
    %158 = arith.addf %153, %157 : vector<24x240xf32>
    %159 = vector.extract_strided_slice %139 {offsets = [4, 0], sizes = [24, 28], strides = [1, 1]} : vector<28x28xbf16> to vector<24x28xbf16>
    %160 = vector.extract_strided_slice %56 {offsets = [4, 0, 0], sizes = [1, 28, 240], strides = [1, 1, 1]} : vector<5x28x240xbf16> to vector<1x28x240xbf16>
    %161 = vector.shape_cast %160 : vector<1x28x240xbf16> to vector<28x240xbf16>
    %cst_47 = arith.constant dense<0.000000e+00> : vector<24x240xf32>
    %162 = tpu.matmul %159, %161, %cst_47 {dimension_numbers = #tpu.dot_dimension_numbers<[1], [0], [0], [1], [0, 0, 1, 1], [], []>} : vector<24x28xbf16>, vector<28x240xbf16>, vector<24x240xf32> -> vector<24x240xf32>
    %163 = arith.addf %158, %162 : vector<24x240xf32>
    %164 = vector.broadcast %58 : vector<1x240xf32> to vector<24x240xf32>
    %165 = arith.addf %163, %164 : vector<24x240xf32>
    %cst_48 = arith.constant 0.000000e+00 : f32
    %166 = vector.broadcast %cst_48 : f32 to vector<24x240xf32>
    %167 = arith.maximumf %165, %166 : vector<24x240xf32>
    %cst_49 = arith.constant dense<0.000000e+00> : vector<12x240xf32>
    %168 = tpu.matmul %6, %167, %cst_49 {dimension_numbers = #tpu.dot_dimension_numbers<[1], [0], [0], [1], [0, 0, 1, 1], [], []>} : vector<12x24xf32>, vector<24x240xf32>, vector<12x240xf32> -> vector<12x240xf32>
    %cst_50 = arith.constant dense<0.000000e+00> : vector<12x240xf32>
    %169 = tpu.matmul %13, %167, %cst_50 {dimension_numbers = #tpu.dot_dimension_numbers<[1], [0], [0], [1], [0, 0, 1, 1], [], []>} : vector<12x24xf32>, vector<24x240xf32>, vector<12x240xf32> -> vector<12x240xf32>
    %170 = arith.maximumf %168, %169 : vector<12x240xf32>
    %cst_51 = arith.constant dense<0.000000e+00> : vector<12x120xf32>
    %171 = tpu.matmul %170, %20, %cst_51 {dimension_numbers = #tpu.dot_dimension_numbers<[1], [0], [0], [1], [0, 0, 1, 1], [], []>} : vector<12x240xf32>, vector<240x120xf32>, vector<12x120xf32> -> vector<12x120xf32>
    %cst_52 = arith.constant dense<0.000000e+00> : vector<12x120xf32>
    %172 = tpu.matmul %170, %27, %cst_52 {dimension_numbers = #tpu.dot_dimension_numbers<[1], [0], [0], [1], [0, 0, 1, 1], [], []>} : vector<12x240xf32>, vector<240x120xf32>, vector<12x120xf32> -> vector<12x120xf32>
    %173 = arith.maximumf %171, %172 : vector<12x120xf32>
    %174 = arith.truncf %173 : vector<12x120xf32> to vector<12x120xbf16>
    %175 = vector.extract_strided_slice %174 {offsets = [0, 0], sizes = [8, 120], strides = [1, 1]} : vector<12x120xbf16> to vector<8x120xbf16>
    %176 = vector.extract_strided_slice %57 {offsets = [0, 0, 0], sizes = [1, 120, 160], strides = [1, 1, 1]} : vector<5x120x160xbf16> to vector<1x120x160xbf16>
    %177 = vector.shape_cast %176 : vector<1x120x160xbf16> to vector<120x160xbf16>
    %cst_53 = arith.constant dense<0.000000e+00> : vector<8x160xf32>
    %178 = tpu.matmul %175, %177, %cst_53 {dimension_numbers = #tpu.dot_dimension_numbers<[1], [0], [0], [1], [0, 0, 1, 1], [], []>} : vector<8x120xbf16>, vector<120x160xbf16>, vector<8x160xf32> -> vector<8x160xf32>
    %179 = vector.extract_strided_slice %174 {offsets = [1, 0], sizes = [8, 120], strides = [1, 1]} : vector<12x120xbf16> to vector<8x120xbf16>
    %180 = vector.extract_strided_slice %57 {offsets = [1, 0, 0], sizes = [1, 120, 160], strides = [1, 1, 1]} : vector<5x120x160xbf16> to vector<1x120x160xbf16>
    %181 = vector.shape_cast %180 : vector<1x120x160xbf16> to vector<120x160xbf16>
    %cst_54 = arith.constant dense<0.000000e+00> : vector<8x160xf32>
    %182 = tpu.matmul %179, %181, %cst_54 {dimension_numbers = #tpu.dot_dimension_numbers<[1], [0], [0], [1], [0, 0, 1, 1], [], []>} : vector<8x120xbf16>, vector<120x160xbf16>, vector<8x160xf32> -> vector<8x160xf32>
    %183 = arith.addf %178, %182 : vector<8x160xf32>
    %184 = vector.extract_strided_slice %174 {offsets = [2, 0], sizes = [8, 120], strides = [1, 1]} : vector<12x120xbf16> to vector<8x120xbf16>
    %185 = vector.extract_strided_slice %57 {offsets = [2, 0, 0], sizes = [1, 120, 160], strides = [1, 1, 1]} : vector<5x120x160xbf16> to vector<1x120x160xbf16>
    %186 = vector.shape_cast %185 : vector<1x120x160xbf16> to vector<120x160xbf16>
    %cst_55 = arith.constant dense<0.000000e+00> : vector<8x160xf32>
    %187 = tpu.matmul %184, %186, %cst_55 {dimension_numbers = #tpu.dot_dimension_numbers<[1], [0], [0], [1], [0, 0, 1, 1], [], []>} : vector<8x120xbf16>, vector<120x160xbf16>, vector<8x160xf32> -> vector<8x160xf32>
    %188 = arith.addf %183, %187 : vector<8x160xf32>
    %189 = vector.extract_strided_slice %174 {offsets = [3, 0], sizes = [8, 120], strides = [1, 1]} : vector<12x120xbf16> to vector<8x120xbf16>
    %190 = vector.extract_strided_slice %57 {offsets = [3, 0, 0], sizes = [1, 120, 160], strides = [1, 1, 1]} : vector<5x120x160xbf16> to vector<1x120x160xbf16>
    %191 = vector.shape_cast %190 : vector<1x120x160xbf16> to vector<120x160xbf16>
    %cst_56 = arith.constant dense<0.000000e+00> : vector<8x160xf32>
    %192 = tpu.matmul %189, %191, %cst_56 {dimension_numbers = #tpu.dot_dimension_numbers<[1], [0], [0], [1], [0, 0, 1, 1], [], []>} : vector<8x120xbf16>, vector<120x160xbf16>, vector<8x160xf32> -> vector<8x160xf32>
    %193 = arith.addf %188, %192 : vector<8x160xf32>
    %194 = vector.extract_strided_slice %174 {offsets = [4, 0], sizes = [8, 120], strides = [1, 1]} : vector<12x120xbf16> to vector<8x120xbf16>
    %195 = vector.extract_strided_slice %57 {offsets = [4, 0, 0], sizes = [1, 120, 160], strides = [1, 1, 1]} : vector<5x120x160xbf16> to vector<1x120x160xbf16>
    %196 = vector.shape_cast %195 : vector<1x120x160xbf16> to vector<120x160xbf16>
    %cst_57 = arith.constant dense<0.000000e+00> : vector<8x160xf32>
    %197 = tpu.matmul %194, %196, %cst_57 {dimension_numbers = #tpu.dot_dimension_numbers<[1], [0], [0], [1], [0, 0, 1, 1], [], []>} : vector<8x120xbf16>, vector<120x160xbf16>, vector<8x160xf32> -> vector<8x160xf32>
    %198 = arith.addf %193, %197 : vector<8x160xf32>
    %199 = vector.broadcast %59 : vector<1x160xf32> to vector<8x160xf32>
    %200 = arith.addf %198, %199 : vector<8x160xf32>
    %cst_58 = arith.constant 0.000000e+00 : f32
    %201 = vector.broadcast %cst_58 : f32 to vector<8x160xf32>
    %202 = arith.maximumf %200, %201 : vector<8x160xf32>
    %cst_59 = arith.constant dense<0.000000e+00> : vector<4x160xf32>
    %203 = tpu.matmul %34, %202, %cst_59 {dimension_numbers = #tpu.dot_dimension_numbers<[1], [0], [0], [1], [0, 0, 1, 1], [], []>} : vector<4x8xf32>, vector<8x160xf32>, vector<4x160xf32> -> vector<4x160xf32>
    %cst_60 = arith.constant dense<0.000000e+00> : vector<4x160xf32>
    %204 = tpu.matmul %41, %202, %cst_60 {dimension_numbers = #tpu.dot_dimension_numbers<[1], [0], [0], [1], [0, 0, 1, 1], [], []>} : vector<4x8xf32>, vector<8x160xf32>, vector<4x160xf32> -> vector<4x160xf32>
    %205 = arith.maximumf %203, %204 : vector<4x160xf32>
    %cst_61 = arith.constant dense<0.000000e+00> : vector<4x80xf32>
    %206 = tpu.matmul %205, %48, %cst_61 {dimension_numbers = #tpu.dot_dimension_numbers<[1], [0], [0], [1], [0, 0, 1, 1], [], []>} : vector<4x160xf32>, vector<160x80xf32>, vector<4x80xf32> -> vector<4x80xf32>
    %cst_62 = arith.constant dense<0.000000e+00> : vector<4x80xf32>
    %207 = tpu.matmul %205, %55, %cst_62 {dimension_numbers = #tpu.dot_dimension_numbers<[1], [0], [0], [1], [0, 0, 1, 1], [], []>} : vector<4x160xf32>, vector<160x80xf32>, vector<4x80xf32> -> vector<4x80xf32>
    %208 = arith.maximumf %206, %207 : vector<4x80xf32>
    %209 = vector.extract_strided_slice %208 {offsets = [0, 0], sizes = [1, 80], strides = [1, 1]} : vector<4x80xf32> to vector<1x80xf32>
    %210 = vector.extract_strided_slice %208 {offsets = [1, 0], sizes = [1, 80], strides = [1, 1]} : vector<4x80xf32> to vector<1x80xf32>
    %211 = vector.extract_strided_slice %208 {offsets = [2, 0], sizes = [1, 80], strides = [1, 1]} : vector<4x80xf32> to vector<1x80xf32>
    %212 = vector.extract_strided_slice %208 {offsets = [3, 0], sizes = [1, 80], strides = [1, 1]} : vector<4x80xf32> to vector<1x80xf32>
    %213 = tpu.concatenate %209, %210, %211, %212 in 1 : vector<1x80xf32>, vector<1x80xf32>, vector<1x80xf32>, vector<1x80xf32> -> vector<1x320xf32>
    %c2 = arith.constant 2 : index
    %c0_63 = arith.constant 0 : index
    %c0_64 = arith.constant 0 : index
    %214 = vector.load %arg1[%c2, %c0_63, %c0_64] : memref<8x28x28xf32, #tpu.memory_space<vmem>>, vector<1x28x28xf32>
    %215 = vector.shape_cast %214 : vector<1x28x28xf32> to vector<28x28xf32>
    %216 = arith.truncf %215 : vector<28x28xf32> to vector<28x28xbf16>
    %217 = vector.extract_strided_slice %216 {offsets = [0, 0], sizes = [24, 28], strides = [1, 1]} : vector<28x28xbf16> to vector<24x28xbf16>
    %218 = vector.extract_strided_slice %56 {offsets = [0, 0, 0], sizes = [1, 28, 240], strides = [1, 1, 1]} : vector<5x28x240xbf16> to vector<1x28x240xbf16>
    %219 = vector.shape_cast %218 : vector<1x28x240xbf16> to vector<28x240xbf16>
    %cst_65 = arith.constant dense<0.000000e+00> : vector<24x240xf32>
    %220 = tpu.matmul %217, %219, %cst_65 {dimension_numbers = #tpu.dot_dimension_numbers<[1], [0], [0], [1], [0, 0, 1, 1], [], []>} : vector<24x28xbf16>, vector<28x240xbf16>, vector<24x240xf32> -> vector<24x240xf32>
    %221 = vector.extract_strided_slice %216 {offsets = [1, 0], sizes = [24, 28], strides = [1, 1]} : vector<28x28xbf16> to vector<24x28xbf16>
    %222 = vector.extract_strided_slice %56 {offsets = [1, 0, 0], sizes = [1, 28, 240], strides = [1, 1, 1]} : vector<5x28x240xbf16> to vector<1x28x240xbf16>
    %223 = vector.shape_cast %222 : vector<1x28x240xbf16> to vector<28x240xbf16>
    %cst_66 = arith.constant dense<0.000000e+00> : vector<24x240xf32>
    %224 = tpu.matmul %221, %223, %cst_66 {dimension_numbers = #tpu.dot_dimension_numbers<[1], [0], [0], [1], [0, 0, 1, 1], [], []>} : vector<24x28xbf16>, vector<28x240xbf16>, vector<24x240xf32> -> vector<24x240xf32>
    %225 = arith.addf %220, %224 : vector<24x240xf32>
    %226 = vector.extract_strided_slice %216 {offsets = [2, 0], sizes = [24, 28], strides = [1, 1]} : vector<28x28xbf16> to vector<24x28xbf16>
    %227 = vector.extract_strided_slice %56 {offsets = [2, 0, 0], sizes = [1, 28, 240], strides = [1, 1, 1]} : vector<5x28x240xbf16> to vector<1x28x240xbf16>
    %228 = vector.shape_cast %227 : vector<1x28x240xbf16> to vector<28x240xbf16>
    %cst_67 = arith.constant dense<0.000000e+00> : vector<24x240xf32>
    %229 = tpu.matmul %226, %228, %cst_67 {dimension_numbers = #tpu.dot_dimension_numbers<[1], [0], [0], [1], [0, 0, 1, 1], [], []>} : vector<24x28xbf16>, vector<28x240xbf16>, vector<24x240xf32> -> vector<24x240xf32>
    %230 = arith.addf %225, %229 : vector<24x240xf32>
    %231 = vector.extract_strided_slice %216 {offsets = [3, 0], sizes = [24, 28], strides = [1, 1]} : vector<28x28xbf16> to vector<24x28xbf16>
    %232 = vector.extract_strided_slice %56 {offsets = [3, 0, 0], sizes = [1, 28, 240], strides = [1, 1, 1]} : vector<5x28x240xbf16> to vector<1x28x240xbf16>
    %233 = vector.shape_cast %232 : vector<1x28x240xbf16> to vector<28x240xbf16>
    %cst_68 = arith.constant dense<0.000000e+00> : vector<24x240xf32>
    %234 = tpu.matmul %231, %233, %cst_68 {dimension_numbers = #tpu.dot_dimension_numbers<[1], [0], [0], [1], [0, 0, 1, 1], [], []>} : vector<24x28xbf16>, vector<28x240xbf16>, vector<24x240xf32> -> vector<24x240xf32>
    %235 = arith.addf %230, %234 : vector<24x240xf32>
    %236 = vector.extract_strided_slice %216 {offsets = [4, 0], sizes = [24, 28], strides = [1, 1]} : vector<28x28xbf16> to vector<24x28xbf16>
    %237 = vector.extract_strided_slice %56 {offsets = [4, 0, 0], sizes = [1, 28, 240], strides = [1, 1, 1]} : vector<5x28x240xbf16> to vector<1x28x240xbf16>
    %238 = vector.shape_cast %237 : vector<1x28x240xbf16> to vector<28x240xbf16>
    %cst_69 = arith.constant dense<0.000000e+00> : vector<24x240xf32>
    %239 = tpu.matmul %236, %238, %cst_69 {dimension_numbers = #tpu.dot_dimension_numbers<[1], [0], [0], [1], [0, 0, 1, 1], [], []>} : vector<24x28xbf16>, vector<28x240xbf16>, vector<24x240xf32> -> vector<24x240xf32>
    %240 = arith.addf %235, %239 : vector<24x240xf32>
    %241 = vector.broadcast %58 : vector<1x240xf32> to vector<24x240xf32>
    %242 = arith.addf %240, %241 : vector<24x240xf32>
    %cst_70 = arith.constant 0.000000e+00 : f32
    %243 = vector.broadcast %cst_70 : f32 to vector<24x240xf32>
    %244 = arith.maximumf %242, %243 : vector<24x240xf32>
    %cst_71 = arith.constant dense<0.000000e+00> : vector<12x240xf32>
    %245 = tpu.matmul %6, %244, %cst_71 {dimension_numbers = #tpu.dot_dimension_numbers<[1], [0], [0], [1], [0, 0, 1, 1], [], []>} : vector<12x24xf32>, vector<24x240xf32>, vector<12x240xf32> -> vector<12x240xf32>
    %cst_72 = arith.constant dense<0.000000e+00> : vector<12x240xf32>
    %246 = tpu.matmul %13, %244, %cst_72 {dimension_numbers = #tpu.dot_dimension_numbers<[1], [0], [0], [1], [0, 0, 1, 1], [], []>} : vector<12x24xf32>, vector<24x240xf32>, vector<12x240xf32> -> vector<12x240xf32>
    %247 = arith.maximumf %245, %246 : vector<12x240xf32>
    %cst_73 = arith.constant dense<0.000000e+00> : vector<12x120xf32>
    %248 = tpu.matmul %247, %20, %cst_73 {dimension_numbers = #tpu.dot_dimension_numbers<[1], [0], [0], [1], [0, 0, 1, 1], [], []>} : vector<12x240xf32>, vector<240x120xf32>, vector<12x120xf32> -> vector<12x120xf32>
    %cst_74 = arith.constant dense<0.000000e+00> : vector<12x120xf32>
    %249 = tpu.matmul %247, %27, %cst_74 {dimension_numbers = #tpu.dot_dimension_numbers<[1], [0], [0], [1], [0, 0, 1, 1], [], []>} : vector<12x240xf32>, vector<240x120xf32>, vector<12x120xf32> -> vector<12x120xf32>
    %250 = arith.maximumf %248, %249 : vector<12x120xf32>
    %251 = arith.truncf %250 : vector<12x120xf32> to vector<12x120xbf16>
    %252 = vector.extract_strided_slice %251 {offsets = [0, 0], sizes = [8, 120], strides = [1, 1]} : vector<12x120xbf16> to vector<8x120xbf16>
    %253 = vector.extract_strided_slice %57 {offsets = [0, 0, 0], sizes = [1, 120, 160], strides = [1, 1, 1]} : vector<5x120x160xbf16> to vector<1x120x160xbf16>
    %254 = vector.shape_cast %253 : vector<1x120x160xbf16> to vector<120x160xbf16>
    %cst_75 = arith.constant dense<0.000000e+00> : vector<8x160xf32>
    %255 = tpu.matmul %252, %254, %cst_75 {dimension_numbers = #tpu.dot_dimension_numbers<[1], [0], [0], [1], [0, 0, 1, 1], [], []>} : vector<8x120xbf16>, vector<120x160xbf16>, vector<8x160xf32> -> vector<8x160xf32>
    %256 = vector.extract_strided_slice %251 {offsets = [1, 0], sizes = [8, 120], strides = [1, 1]} : vector<12x120xbf16> to vector<8x120xbf16>
    %257 = vector.extract_strided_slice %57 {offsets = [1, 0, 0], sizes = [1, 120, 160], strides = [1, 1, 1]} : vector<5x120x160xbf16> to vector<1x120x160xbf16>
    %258 = vector.shape_cast %257 : vector<1x120x160xbf16> to vector<120x160xbf16>
    %cst_76 = arith.constant dense<0.000000e+00> : vector<8x160xf32>
    %259 = tpu.matmul %256, %258, %cst_76 {dimension_numbers = #tpu.dot_dimension_numbers<[1], [0], [0], [1], [0, 0, 1, 1], [], []>} : vector<8x120xbf16>, vector<120x160xbf16>, vector<8x160xf32> -> vector<8x160xf32>
    %260 = arith.addf %255, %259 : vector<8x160xf32>
    %261 = vector.extract_strided_slice %251 {offsets = [2, 0], sizes = [8, 120], strides = [1, 1]} : vector<12x120xbf16> to vector<8x120xbf16>
    %262 = vector.extract_strided_slice %57 {offsets = [2, 0, 0], sizes = [1, 120, 160], strides = [1, 1, 1]} : vector<5x120x160xbf16> to vector<1x120x160xbf16>
    %263 = vector.shape_cast %262 : vector<1x120x160xbf16> to vector<120x160xbf16>
    %cst_77 = arith.constant dense<0.000000e+00> : vector<8x160xf32>
    %264 = tpu.matmul %261, %263, %cst_77 {dimension_numbers = #tpu.dot_dimension_numbers<[1], [0], [0], [1], [0, 0, 1, 1], [], []>} : vector<8x120xbf16>, vector<120x160xbf16>, vector<8x160xf32> -> vector<8x160xf32>
    %265 = arith.addf %260, %264 : vector<8x160xf32>
    %266 = vector.extract_strided_slice %251 {offsets = [3, 0], sizes = [8, 120], strides = [1, 1]} : vector<12x120xbf16> to vector<8x120xbf16>
    %267 = vector.extract_strided_slice %57 {offsets = [3, 0, 0], sizes = [1, 120, 160], strides = [1, 1, 1]} : vector<5x120x160xbf16> to vector<1x120x160xbf16>
    %268 = vector.shape_cast %267 : vector<1x120x160xbf16> to vector<120x160xbf16>
    %cst_78 = arith.constant dense<0.000000e+00> : vector<8x160xf32>
    %269 = tpu.matmul %266, %268, %cst_78 {dimension_numbers = #tpu.dot_dimension_numbers<[1], [0], [0], [1], [0, 0, 1, 1], [], []>} : vector<8x120xbf16>, vector<120x160xbf16>, vector<8x160xf32> -> vector<8x160xf32>
    %270 = arith.addf %265, %269 : vector<8x160xf32>
    %271 = vector.extract_strided_slice %251 {offsets = [4, 0], sizes = [8, 120], strides = [1, 1]} : vector<12x120xbf16> to vector<8x120xbf16>
    %272 = vector.extract_strided_slice %57 {offsets = [4, 0, 0], sizes = [1, 120, 160], strides = [1, 1, 1]} : vector<5x120x160xbf16> to vector<1x120x160xbf16>
    %273 = vector.shape_cast %272 : vector<1x120x160xbf16> to vector<120x160xbf16>
    %cst_79 = arith.constant dense<0.000000e+00> : vector<8x160xf32>
    %274 = tpu.matmul %271, %273, %cst_79 {dimension_numbers = #tpu.dot_dimension_numbers<[1], [0], [0], [1], [0, 0, 1, 1], [], []>} : vector<8x120xbf16>, vector<120x160xbf16>, vector<8x160xf32> -> vector<8x160xf32>
    %275 = arith.addf %270, %274 : vector<8x160xf32>
    %276 = vector.broadcast %59 : vector<1x160xf32> to vector<8x160xf32>
    %277 = arith.addf %275, %276 : vector<8x160xf32>
    %cst_80 = arith.constant 0.000000e+00 : f32
    %278 = vector.broadcast %cst_80 : f32 to vector<8x160xf32>
    %279 = arith.maximumf %277, %278 : vector<8x160xf32>
    %cst_81 = arith.constant dense<0.000000e+00> : vector<4x160xf32>
    %280 = tpu.matmul %34, %279, %cst_81 {dimension_numbers = #tpu.dot_dimension_numbers<[1], [0], [0], [1], [0, 0, 1, 1], [], []>} : vector<4x8xf32>, vector<8x160xf32>, vector<4x160xf32> -> vector<4x160xf32>
    %cst_82 = arith.constant dense<0.000000e+00> : vector<4x160xf32>
    %281 = tpu.matmul %41, %279, %cst_82 {dimension_numbers = #tpu.dot_dimension_numbers<[1], [0], [0], [1], [0, 0, 1, 1], [], []>} : vector<4x8xf32>, vector<8x160xf32>, vector<4x160xf32> -> vector<4x160xf32>
    %282 = arith.maximumf %280, %281 : vector<4x160xf32>
    %cst_83 = arith.constant dense<0.000000e+00> : vector<4x80xf32>
    %283 = tpu.matmul %282, %48, %cst_83 {dimension_numbers = #tpu.dot_dimension_numbers<[1], [0], [0], [1], [0, 0, 1, 1], [], []>} : vector<4x160xf32>, vector<160x80xf32>, vector<4x80xf32> -> vector<4x80xf32>
    %cst_84 = arith.constant dense<0.000000e+00> : vector<4x80xf32>
    %284 = tpu.matmul %282, %55, %cst_84 {dimension_numbers = #tpu.dot_dimension_numbers<[1], [0], [0], [1], [0, 0, 1, 1], [], []>} : vector<4x160xf32>, vector<160x80xf32>, vector<4x80xf32> -> vector<4x80xf32>
    %285 = arith.maximumf %283, %284 : vector<4x80xf32>
    %286 = vector.extract_strided_slice %285 {offsets = [0, 0], sizes = [1, 80], strides = [1, 1]} : vector<4x80xf32> to vector<1x80xf32>
    %287 = vector.extract_strided_slice %285 {offsets = [1, 0], sizes = [1, 80], strides = [1, 1]} : vector<4x80xf32> to vector<1x80xf32>
    %288 = vector.extract_strided_slice %285 {offsets = [2, 0], sizes = [1, 80], strides = [1, 1]} : vector<4x80xf32> to vector<1x80xf32>
    %289 = vector.extract_strided_slice %285 {offsets = [3, 0], sizes = [1, 80], strides = [1, 1]} : vector<4x80xf32> to vector<1x80xf32>
    %290 = tpu.concatenate %286, %287, %288, %289 in 1 : vector<1x80xf32>, vector<1x80xf32>, vector<1x80xf32>, vector<1x80xf32> -> vector<1x320xf32>
    %c3 = arith.constant 3 : index
    %c0_85 = arith.constant 0 : index
    %c0_86 = arith.constant 0 : index
    %291 = vector.load %arg1[%c3, %c0_85, %c0_86] : memref<8x28x28xf32, #tpu.memory_space<vmem>>, vector<1x28x28xf32>
    %292 = vector.shape_cast %291 : vector<1x28x28xf32> to vector<28x28xf32>
    %293 = arith.truncf %292 : vector<28x28xf32> to vector<28x28xbf16>
    %294 = vector.extract_strided_slice %293 {offsets = [0, 0], sizes = [24, 28], strides = [1, 1]} : vector<28x28xbf16> to vector<24x28xbf16>
    %295 = vector.extract_strided_slice %56 {offsets = [0, 0, 0], sizes = [1, 28, 240], strides = [1, 1, 1]} : vector<5x28x240xbf16> to vector<1x28x240xbf16>
    %296 = vector.shape_cast %295 : vector<1x28x240xbf16> to vector<28x240xbf16>
    %cst_87 = arith.constant dense<0.000000e+00> : vector<24x240xf32>
    %297 = tpu.matmul %294, %296, %cst_87 {dimension_numbers = #tpu.dot_dimension_numbers<[1], [0], [0], [1], [0, 0, 1, 1], [], []>} : vector<24x28xbf16>, vector<28x240xbf16>, vector<24x240xf32> -> vector<24x240xf32>
    %298 = vector.extract_strided_slice %293 {offsets = [1, 0], sizes = [24, 28], strides = [1, 1]} : vector<28x28xbf16> to vector<24x28xbf16>
    %299 = vector.extract_strided_slice %56 {offsets = [1, 0, 0], sizes = [1, 28, 240], strides = [1, 1, 1]} : vector<5x28x240xbf16> to vector<1x28x240xbf16>
    %300 = vector.shape_cast %299 : vector<1x28x240xbf16> to vector<28x240xbf16>
    %cst_88 = arith.constant dense<0.000000e+00> : vector<24x240xf32>
    %301 = tpu.matmul %298, %300, %cst_88 {dimension_numbers = #tpu.dot_dimension_numbers<[1], [0], [0], [1], [0, 0, 1, 1], [], []>} : vector<24x28xbf16>, vector<28x240xbf16>, vector<24x240xf32> -> vector<24x240xf32>
    %302 = arith.addf %297, %301 : vector<24x240xf32>
    %303 = vector.extract_strided_slice %293 {offsets = [2, 0], sizes = [24, 28], strides = [1, 1]} : vector<28x28xbf16> to vector<24x28xbf16>
    %304 = vector.extract_strided_slice %56 {offsets = [2, 0, 0], sizes = [1, 28, 240], strides = [1, 1, 1]} : vector<5x28x240xbf16> to vector<1x28x240xbf16>
    %305 = vector.shape_cast %304 : vector<1x28x240xbf16> to vector<28x240xbf16>
    %cst_89 = arith.constant dense<0.000000e+00> : vector<24x240xf32>
    %306 = tpu.matmul %303, %305, %cst_89 {dimension_numbers = #tpu.dot_dimension_numbers<[1], [0], [0], [1], [0, 0, 1, 1], [], []>} : vector<24x28xbf16>, vector<28x240xbf16>, vector<24x240xf32> -> vector<24x240xf32>
    %307 = arith.addf %302, %306 : vector<24x240xf32>
    %308 = vector.extract_strided_slice %293 {offsets = [3, 0], sizes = [24, 28], strides = [1, 1]} : vector<28x28xbf16> to vector<24x28xbf16>
    %309 = vector.extract_strided_slice %56 {offsets = [3, 0, 0], sizes = [1, 28, 240], strides = [1, 1, 1]} : vector<5x28x240xbf16> to vector<1x28x240xbf16>
    %310 = vector.shape_cast %309 : vector<1x28x240xbf16> to vector<28x240xbf16>
    %cst_90 = arith.constant dense<0.000000e+00> : vector<24x240xf32>
    %311 = tpu.matmul %308, %310, %cst_90 {dimension_numbers = #tpu.dot_dimension_numbers<[1], [0], [0], [1], [0, 0, 1, 1], [], []>} : vector<24x28xbf16>, vector<28x240xbf16>, vector<24x240xf32> -> vector<24x240xf32>
    %312 = arith.addf %307, %311 : vector<24x240xf32>
    %313 = vector.extract_strided_slice %293 {offsets = [4, 0], sizes = [24, 28], strides = [1, 1]} : vector<28x28xbf16> to vector<24x28xbf16>
    %314 = vector.extract_strided_slice %56 {offsets = [4, 0, 0], sizes = [1, 28, 240], strides = [1, 1, 1]} : vector<5x28x240xbf16> to vector<1x28x240xbf16>
    %315 = vector.shape_cast %314 : vector<1x28x240xbf16> to vector<28x240xbf16>
    %cst_91 = arith.constant dense<0.000000e+00> : vector<24x240xf32>
    %316 = tpu.matmul %313, %315, %cst_91 {dimension_numbers = #tpu.dot_dimension_numbers<[1], [0], [0], [1], [0, 0, 1, 1], [], []>} : vector<24x28xbf16>, vector<28x240xbf16>, vector<24x240xf32> -> vector<24x240xf32>
    %317 = arith.addf %312, %316 : vector<24x240xf32>
    %318 = vector.broadcast %58 : vector<1x240xf32> to vector<24x240xf32>
    %319 = arith.addf %317, %318 : vector<24x240xf32>
    %cst_92 = arith.constant 0.000000e+00 : f32
    %320 = vector.broadcast %cst_92 : f32 to vector<24x240xf32>
    %321 = arith.maximumf %319, %320 : vector<24x240xf32>
    %cst_93 = arith.constant dense<0.000000e+00> : vector<12x240xf32>
    %322 = tpu.matmul %6, %321, %cst_93 {dimension_numbers = #tpu.dot_dimension_numbers<[1], [0], [0], [1], [0, 0, 1, 1], [], []>} : vector<12x24xf32>, vector<24x240xf32>, vector<12x240xf32> -> vector<12x240xf32>
    %cst_94 = arith.constant dense<0.000000e+00> : vector<12x240xf32>
    %323 = tpu.matmul %13, %321, %cst_94 {dimension_numbers = #tpu.dot_dimension_numbers<[1], [0], [0], [1], [0, 0, 1, 1], [], []>} : vector<12x24xf32>, vector<24x240xf32>, vector<12x240xf32> -> vector<12x240xf32>
    %324 = arith.maximumf %322, %323 : vector<12x240xf32>
    %cst_95 = arith.constant dense<0.000000e+00> : vector<12x120xf32>
    %325 = tpu.matmul %324, %20, %cst_95 {dimension_numbers = #tpu.dot_dimension_numbers<[1], [0], [0], [1], [0, 0, 1, 1], [], []>} : vector<12x240xf32>, vector<240x120xf32>, vector<12x120xf32> -> vector<12x120xf32>
    %cst_96 = arith.constant dense<0.000000e+00> : vector<12x120xf32>
    %326 = tpu.matmul %324, %27, %cst_96 {dimension_numbers = #tpu.dot_dimension_numbers<[1], [0], [0], [1], [0, 0, 1, 1], [], []>} : vector<12x240xf32>, vector<240x120xf32>, vector<12x120xf32> -> vector<12x120xf32>
    %327 = arith.maximumf %325, %326 : vector<12x120xf32>
    %328 = arith.truncf %327 : vector<12x120xf32> to vector<12x120xbf16>
    %329 = vector.extract_strided_slice %328 {offsets = [0, 0], sizes = [8, 120], strides = [1, 1]} : vector<12x120xbf16> to vector<8x120xbf16>
    %330 = vector.extract_strided_slice %57 {offsets = [0, 0, 0], sizes = [1, 120, 160], strides = [1, 1, 1]} : vector<5x120x160xbf16> to vector<1x120x160xbf16>
    %331 = vector.shape_cast %330 : vector<1x120x160xbf16> to vector<120x160xbf16>
    %cst_97 = arith.constant dense<0.000000e+00> : vector<8x160xf32>
    %332 = tpu.matmul %329, %331, %cst_97 {dimension_numbers = #tpu.dot_dimension_numbers<[1], [0], [0], [1], [0, 0, 1, 1], [], []>} : vector<8x120xbf16>, vector<120x160xbf16>, vector<8x160xf32> -> vector<8x160xf32>
    %333 = vector.extract_strided_slice %328 {offsets = [1, 0], sizes = [8, 120], strides = [1, 1]} : vector<12x120xbf16> to vector<8x120xbf16>
    %334 = vector.extract_strided_slice %57 {offsets = [1, 0, 0], sizes = [1, 120, 160], strides = [1, 1, 1]} : vector<5x120x160xbf16> to vector<1x120x160xbf16>
    %335 = vector.shape_cast %334 : vector<1x120x160xbf16> to vector<120x160xbf16>
    %cst_98 = arith.constant dense<0.000000e+00> : vector<8x160xf32>
    %336 = tpu.matmul %333, %335, %cst_98 {dimension_numbers = #tpu.dot_dimension_numbers<[1], [0], [0], [1], [0, 0, 1, 1], [], []>} : vector<8x120xbf16>, vector<120x160xbf16>, vector<8x160xf32> -> vector<8x160xf32>
    %337 = arith.addf %332, %336 : vector<8x160xf32>
    %338 = vector.extract_strided_slice %328 {offsets = [2, 0], sizes = [8, 120], strides = [1, 1]} : vector<12x120xbf16> to vector<8x120xbf16>
    %339 = vector.extract_strided_slice %57 {offsets = [2, 0, 0], sizes = [1, 120, 160], strides = [1, 1, 1]} : vector<5x120x160xbf16> to vector<1x120x160xbf16>
    %340 = vector.shape_cast %339 : vector<1x120x160xbf16> to vector<120x160xbf16>
    %cst_99 = arith.constant dense<0.000000e+00> : vector<8x160xf32>
    %341 = tpu.matmul %338, %340, %cst_99 {dimension_numbers = #tpu.dot_dimension_numbers<[1], [0], [0], [1], [0, 0, 1, 1], [], []>} : vector<8x120xbf16>, vector<120x160xbf16>, vector<8x160xf32> -> vector<8x160xf32>
    %342 = arith.addf %337, %341 : vector<8x160xf32>
    %343 = vector.extract_strided_slice %328 {offsets = [3, 0], sizes = [8, 120], strides = [1, 1]} : vector<12x120xbf16> to vector<8x120xbf16>
    %344 = vector.extract_strided_slice %57 {offsets = [3, 0, 0], sizes = [1, 120, 160], strides = [1, 1, 1]} : vector<5x120x160xbf16> to vector<1x120x160xbf16>
    %345 = vector.shape_cast %344 : vector<1x120x160xbf16> to vector<120x160xbf16>
    %cst_100 = arith.constant dense<0.000000e+00> : vector<8x160xf32>
    %346 = tpu.matmul %343, %345, %cst_100 {dimension_numbers = #tpu.dot_dimension_numbers<[1], [0], [0], [1], [0, 0, 1, 1], [], []>} : vector<8x120xbf16>, vector<120x160xbf16>, vector<8x160xf32> -> vector<8x160xf32>
    %347 = arith.addf %342, %346 : vector<8x160xf32>
    %348 = vector.extract_strided_slice %328 {offsets = [4, 0], sizes = [8, 120], strides = [1, 1]} : vector<12x120xbf16> to vector<8x120xbf16>
    %349 = vector.extract_strided_slice %57 {offsets = [4, 0, 0], sizes = [1, 120, 160], strides = [1, 1, 1]} : vector<5x120x160xbf16> to vector<1x120x160xbf16>
    %350 = vector.shape_cast %349 : vector<1x120x160xbf16> to vector<120x160xbf16>
    %cst_101 = arith.constant dense<0.000000e+00> : vector<8x160xf32>
    %351 = tpu.matmul %348, %350, %cst_101 {dimension_numbers = #tpu.dot_dimension_numbers<[1], [0], [0], [1], [0, 0, 1, 1], [], []>} : vector<8x120xbf16>, vector<120x160xbf16>, vector<8x160xf32> -> vector<8x160xf32>
    %352 = arith.addf %347, %351 : vector<8x160xf32>
    %353 = vector.broadcast %59 : vector<1x160xf32> to vector<8x160xf32>
    %354 = arith.addf %352, %353 : vector<8x160xf32>
    %cst_102 = arith.constant 0.000000e+00 : f32
    %355 = vector.broadcast %cst_102 : f32 to vector<8x160xf32>
    %356 = arith.maximumf %354, %355 : vector<8x160xf32>
    %cst_103 = arith.constant dense<0.000000e+00> : vector<4x160xf32>
    %357 = tpu.matmul %34, %356, %cst_103 {dimension_numbers = #tpu.dot_dimension_numbers<[1], [0], [0], [1], [0, 0, 1, 1], [], []>} : vector<4x8xf32>, vector<8x160xf32>, vector<4x160xf32> -> vector<4x160xf32>
    %cst_104 = arith.constant dense<0.000000e+00> : vector<4x160xf32>
    %358 = tpu.matmul %41, %356, %cst_104 {dimension_numbers = #tpu.dot_dimension_numbers<[1], [0], [0], [1], [0, 0, 1, 1], [], []>} : vector<4x8xf32>, vector<8x160xf32>, vector<4x160xf32> -> vector<4x160xf32>
    %359 = arith.maximumf %357, %358 : vector<4x160xf32>
    %cst_105 = arith.constant dense<0.000000e+00> : vector<4x80xf32>
    %360 = tpu.matmul %359, %48, %cst_105 {dimension_numbers = #tpu.dot_dimension_numbers<[1], [0], [0], [1], [0, 0, 1, 1], [], []>} : vector<4x160xf32>, vector<160x80xf32>, vector<4x80xf32> -> vector<4x80xf32>
    %cst_106 = arith.constant dense<0.000000e+00> : vector<4x80xf32>
    %361 = tpu.matmul %359, %55, %cst_106 {dimension_numbers = #tpu.dot_dimension_numbers<[1], [0], [0], [1], [0, 0, 1, 1], [], []>} : vector<4x160xf32>, vector<160x80xf32>, vector<4x80xf32> -> vector<4x80xf32>
    %362 = arith.maximumf %360, %361 : vector<4x80xf32>
    %363 = vector.extract_strided_slice %362 {offsets = [0, 0], sizes = [1, 80], strides = [1, 1]} : vector<4x80xf32> to vector<1x80xf32>
    %364 = vector.extract_strided_slice %362 {offsets = [1, 0], sizes = [1, 80], strides = [1, 1]} : vector<4x80xf32> to vector<1x80xf32>
    %365 = vector.extract_strided_slice %362 {offsets = [2, 0], sizes = [1, 80], strides = [1, 1]} : vector<4x80xf32> to vector<1x80xf32>
    %366 = vector.extract_strided_slice %362 {offsets = [3, 0], sizes = [1, 80], strides = [1, 1]} : vector<4x80xf32> to vector<1x80xf32>
    %367 = tpu.concatenate %363, %364, %365, %366 in 1 : vector<1x80xf32>, vector<1x80xf32>, vector<1x80xf32>, vector<1x80xf32> -> vector<1x320xf32>
    %c4 = arith.constant 4 : index
    %c0_107 = arith.constant 0 : index
    %c0_108 = arith.constant 0 : index
    %368 = vector.load %arg1[%c4, %c0_107, %c0_108] : memref<8x28x28xf32, #tpu.memory_space<vmem>>, vector<1x28x28xf32>
    %369 = vector.shape_cast %368 : vector<1x28x28xf32> to vector<28x28xf32>
    %370 = arith.truncf %369 : vector<28x28xf32> to vector<28x28xbf16>
    %371 = vector.extract_strided_slice %370 {offsets = [0, 0], sizes = [24, 28], strides = [1, 1]} : vector<28x28xbf16> to vector<24x28xbf16>
    %372 = vector.extract_strided_slice %56 {offsets = [0, 0, 0], sizes = [1, 28, 240], strides = [1, 1, 1]} : vector<5x28x240xbf16> to vector<1x28x240xbf16>
    %373 = vector.shape_cast %372 : vector<1x28x240xbf16> to vector<28x240xbf16>
    %cst_109 = arith.constant dense<0.000000e+00> : vector<24x240xf32>
    %374 = tpu.matmul %371, %373, %cst_109 {dimension_numbers = #tpu.dot_dimension_numbers<[1], [0], [0], [1], [0, 0, 1, 1], [], []>} : vector<24x28xbf16>, vector<28x240xbf16>, vector<24x240xf32> -> vector<24x240xf32>
    %375 = vector.extract_strided_slice %370 {offsets = [1, 0], sizes = [24, 28], strides = [1, 1]} : vector<28x28xbf16> to vector<24x28xbf16>
    %376 = vector.extract_strided_slice %56 {offsets = [1, 0, 0], sizes = [1, 28, 240], strides = [1, 1, 1]} : vector<5x28x240xbf16> to vector<1x28x240xbf16>
    %377 = vector.shape_cast %376 : vector<1x28x240xbf16> to vector<28x240xbf16>
    %cst_110 = arith.constant dense<0.000000e+00> : vector<24x240xf32>
    %378 = tpu.matmul %375, %377, %cst_110 {dimension_numbers = #tpu.dot_dimension_numbers<[1], [0], [0], [1], [0, 0, 1, 1], [], []>} : vector<24x28xbf16>, vector<28x240xbf16>, vector<24x240xf32> -> vector<24x240xf32>
    %379 = arith.addf %374, %378 : vector<24x240xf32>
    %380 = vector.extract_strided_slice %370 {offsets = [2, 0], sizes = [24, 28], strides = [1, 1]} : vector<28x28xbf16> to vector<24x28xbf16>
    %381 = vector.extract_strided_slice %56 {offsets = [2, 0, 0], sizes = [1, 28, 240], strides = [1, 1, 1]} : vector<5x28x240xbf16> to vector<1x28x240xbf16>
    %382 = vector.shape_cast %381 : vector<1x28x240xbf16> to vector<28x240xbf16>
    %cst_111 = arith.constant dense<0.000000e+00> : vector<24x240xf32>
    %383 = tpu.matmul %380, %382, %cst_111 {dimension_numbers = #tpu.dot_dimension_numbers<[1], [0], [0], [1], [0, 0, 1, 1], [], []>} : vector<24x28xbf16>, vector<28x240xbf16>, vector<24x240xf32> -> vector<24x240xf32>
    %384 = arith.addf %379, %383 : vector<24x240xf32>
    %385 = vector.extract_strided_slice %370 {offsets = [3, 0], sizes = [24, 28], strides = [1, 1]} : vector<28x28xbf16> to vector<24x28xbf16>
    %386 = vector.extract_strided_slice %56 {offsets = [3, 0, 0], sizes = [1, 28, 240], strides = [1, 1, 1]} : vector<5x28x240xbf16> to vector<1x28x240xbf16>
    %387 = vector.shape_cast %386 : vector<1x28x240xbf16> to vector<28x240xbf16>
    %cst_112 = arith.constant dense<0.000000e+00> : vector<24x240xf32>
    %388 = tpu.matmul %385, %387, %cst_112 {dimension_numbers = #tpu.dot_dimension_numbers<[1], [0], [0], [1], [0, 0, 1, 1], [], []>} : vector<24x28xbf16>, vector<28x240xbf16>, vector<24x240xf32> -> vector<24x240xf32>
    %389 = arith.addf %384, %388 : vector<24x240xf32>
    %390 = vector.extract_strided_slice %370 {offsets = [4, 0], sizes = [24, 28], strides = [1, 1]} : vector<28x28xbf16> to vector<24x28xbf16>
    %391 = vector.extract_strided_slice %56 {offsets = [4, 0, 0], sizes = [1, 28, 240], strides = [1, 1, 1]} : vector<5x28x240xbf16> to vector<1x28x240xbf16>
    %392 = vector.shape_cast %391 : vector<1x28x240xbf16> to vector<28x240xbf16>
    %cst_113 = arith.constant dense<0.000000e+00> : vector<24x240xf32>
    %393 = tpu.matmul %390, %392, %cst_113 {dimension_numbers = #tpu.dot_dimension_numbers<[1], [0], [0], [1], [0, 0, 1, 1], [], []>} : vector<24x28xbf16>, vector<28x240xbf16>, vector<24x240xf32> -> vector<24x240xf32>
    %394 = arith.addf %389, %393 : vector<24x240xf32>
    %395 = vector.broadcast %58 : vector<1x240xf32> to vector<24x240xf32>
    %396 = arith.addf %394, %395 : vector<24x240xf32>
    %cst_114 = arith.constant 0.000000e+00 : f32
    %397 = vector.broadcast %cst_114 : f32 to vector<24x240xf32>
    %398 = arith.maximumf %396, %397 : vector<24x240xf32>
    %cst_115 = arith.constant dense<0.000000e+00> : vector<12x240xf32>
    %399 = tpu.matmul %6, %398, %cst_115 {dimension_numbers = #tpu.dot_dimension_numbers<[1], [0], [0], [1], [0, 0, 1, 1], [], []>} : vector<12x24xf32>, vector<24x240xf32>, vector<12x240xf32> -> vector<12x240xf32>
    %cst_116 = arith.constant dense<0.000000e+00> : vector<12x240xf32>
    %400 = tpu.matmul %13, %398, %cst_116 {dimension_numbers = #tpu.dot_dimension_numbers<[1], [0], [0], [1], [0, 0, 1, 1], [], []>} : vector<12x24xf32>, vector<24x240xf32>, vector<12x240xf32> -> vector<12x240xf32>
    %401 = arith.maximumf %399, %400 : vector<12x240xf32>
    %cst_117 = arith.constant dense<0.000000e+00> : vector<12x120xf32>
    %402 = tpu.matmul %401, %20, %cst_117 {dimension_numbers = #tpu.dot_dimension_numbers<[1], [0], [0], [1], [0, 0, 1, 1], [], []>} : vector<12x240xf32>, vector<240x120xf32>, vector<12x120xf32> -> vector<12x120xf32>
    %cst_118 = arith.constant dense<0.000000e+00> : vector<12x120xf32>
    %403 = tpu.matmul %401, %27, %cst_118 {dimension_numbers = #tpu.dot_dimension_numbers<[1], [0], [0], [1], [0, 0, 1, 1], [], []>} : vector<12x240xf32>, vector<240x120xf32>, vector<12x120xf32> -> vector<12x120xf32>
    %404 = arith.maximumf %402, %403 : vector<12x120xf32>
    %405 = arith.truncf %404 : vector<12x120xf32> to vector<12x120xbf16>
    %406 = vector.extract_strided_slice %405 {offsets = [0, 0], sizes = [8, 120], strides = [1, 1]} : vector<12x120xbf16> to vector<8x120xbf16>
    %407 = vector.extract_strided_slice %57 {offsets = [0, 0, 0], sizes = [1, 120, 160], strides = [1, 1, 1]} : vector<5x120x160xbf16> to vector<1x120x160xbf16>
    %408 = vector.shape_cast %407 : vector<1x120x160xbf16> to vector<120x160xbf16>
    %cst_119 = arith.constant dense<0.000000e+00> : vector<8x160xf32>
    %409 = tpu.matmul %406, %408, %cst_119 {dimension_numbers = #tpu.dot_dimension_numbers<[1], [0], [0], [1], [0, 0, 1, 1], [], []>} : vector<8x120xbf16>, vector<120x160xbf16>, vector<8x160xf32> -> vector<8x160xf32>
    %410 = vector.extract_strided_slice %405 {offsets = [1, 0], sizes = [8, 120], strides = [1, 1]} : vector<12x120xbf16> to vector<8x120xbf16>
    %411 = vector.extract_strided_slice %57 {offsets = [1, 0, 0], sizes = [1, 120, 160], strides = [1, 1, 1]} : vector<5x120x160xbf16> to vector<1x120x160xbf16>
    %412 = vector.shape_cast %411 : vector<1x120x160xbf16> to vector<120x160xbf16>
    %cst_120 = arith.constant dense<0.000000e+00> : vector<8x160xf32>
    %413 = tpu.matmul %410, %412, %cst_120 {dimension_numbers = #tpu.dot_dimension_numbers<[1], [0], [0], [1], [0, 0, 1, 1], [], []>} : vector<8x120xbf16>, vector<120x160xbf16>, vector<8x160xf32> -> vector<8x160xf32>
    %414 = arith.addf %409, %413 : vector<8x160xf32>
    %415 = vector.extract_strided_slice %405 {offsets = [2, 0], sizes = [8, 120], strides = [1, 1]} : vector<12x120xbf16> to vector<8x120xbf16>
    %416 = vector.extract_strided_slice %57 {offsets = [2, 0, 0], sizes = [1, 120, 160], strides = [1, 1, 1]} : vector<5x120x160xbf16> to vector<1x120x160xbf16>
    %417 = vector.shape_cast %416 : vector<1x120x160xbf16> to vector<120x160xbf16>
    %cst_121 = arith.constant dense<0.000000e+00> : vector<8x160xf32>
    %418 = tpu.matmul %415, %417, %cst_121 {dimension_numbers = #tpu.dot_dimension_numbers<[1], [0], [0], [1], [0, 0, 1, 1], [], []>} : vector<8x120xbf16>, vector<120x160xbf16>, vector<8x160xf32> -> vector<8x160xf32>
    %419 = arith.addf %414, %418 : vector<8x160xf32>
    %420 = vector.extract_strided_slice %405 {offsets = [3, 0], sizes = [8, 120], strides = [1, 1]} : vector<12x120xbf16> to vector<8x120xbf16>
    %421 = vector.extract_strided_slice %57 {offsets = [3, 0, 0], sizes = [1, 120, 160], strides = [1, 1, 1]} : vector<5x120x160xbf16> to vector<1x120x160xbf16>
    %422 = vector.shape_cast %421 : vector<1x120x160xbf16> to vector<120x160xbf16>
    %cst_122 = arith.constant dense<0.000000e+00> : vector<8x160xf32>
    %423 = tpu.matmul %420, %422, %cst_122 {dimension_numbers = #tpu.dot_dimension_numbers<[1], [0], [0], [1], [0, 0, 1, 1], [], []>} : vector<8x120xbf16>, vector<120x160xbf16>, vector<8x160xf32> -> vector<8x160xf32>
    %424 = arith.addf %419, %423 : vector<8x160xf32>
    %425 = vector.extract_strided_slice %405 {offsets = [4, 0], sizes = [8, 120], strides = [1, 1]} : vector<12x120xbf16> to vector<8x120xbf16>
    %426 = vector.extract_strided_slice %57 {offsets = [4, 0, 0], sizes = [1, 120, 160], strides = [1, 1, 1]} : vector<5x120x160xbf16> to vector<1x120x160xbf16>
    %427 = vector.shape_cast %426 : vector<1x120x160xbf16> to vector<120x160xbf16>
    %cst_123 = arith.constant dense<0.000000e+00> : vector<8x160xf32>
    %428 = tpu.matmul %425, %427, %cst_123 {dimension_numbers = #tpu.dot_dimension_numbers<[1], [0], [0], [1], [0, 0, 1, 1], [], []>} : vector<8x120xbf16>, vector<120x160xbf16>, vector<8x160xf32> -> vector<8x160xf32>
    %429 = arith.addf %424, %428 : vector<8x160xf32>
    %430 = vector.broadcast %59 : vector<1x160xf32> to vector<8x160xf32>
    %431 = arith.addf %429, %430 : vector<8x160xf32>
    %cst_124 = arith.constant 0.000000e+00 : f32
    %432 = vector.broadcast %cst_124 : f32 to vector<8x160xf32>
    %433 = arith.maximumf %431, %432 : vector<8x160xf32>
    %cst_125 = arith.constant dense<0.000000e+00> : vector<4x160xf32>
    %434 = tpu.matmul %34, %433, %cst_125 {dimension_numbers = #tpu.dot_dimension_numbers<[1], [0], [0], [1], [0, 0, 1, 1], [], []>} : vector<4x8xf32>, vector<8x160xf32>, vector<4x160xf32> -> vector<4x160xf32>
    %cst_126 = arith.constant dense<0.000000e+00> : vector<4x160xf32>
    %435 = tpu.matmul %41, %433, %cst_126 {dimension_numbers = #tpu.dot_dimension_numbers<[1], [0], [0], [1], [0, 0, 1, 1], [], []>} : vector<4x8xf32>, vector<8x160xf32>, vector<4x160xf32> -> vector<4x160xf32>
    %436 = arith.maximumf %434, %435 : vector<4x160xf32>
    %cst_127 = arith.constant dense<0.000000e+00> : vector<4x80xf32>
    %437 = tpu.matmul %436, %48, %cst_127 {dimension_numbers = #tpu.dot_dimension_numbers<[1], [0], [0], [1], [0, 0, 1, 1], [], []>} : vector<4x160xf32>, vector<160x80xf32>, vector<4x80xf32> -> vector<4x80xf32>
    %cst_128 = arith.constant dense<0.000000e+00> : vector<4x80xf32>
    %438 = tpu.matmul %436, %55, %cst_128 {dimension_numbers = #tpu.dot_dimension_numbers<[1], [0], [0], [1], [0, 0, 1, 1], [], []>} : vector<4x160xf32>, vector<160x80xf32>, vector<4x80xf32> -> vector<4x80xf32>
    %439 = arith.maximumf %437, %438 : vector<4x80xf32>
    %440 = vector.extract_strided_slice %439 {offsets = [0, 0], sizes = [1, 80], strides = [1, 1]} : vector<4x80xf32> to vector<1x80xf32>
    %441 = vector.extract_strided_slice %439 {offsets = [1, 0], sizes = [1, 80], strides = [1, 1]} : vector<4x80xf32> to vector<1x80xf32>
    %442 = vector.extract_strided_slice %439 {offsets = [2, 0], sizes = [1, 80], strides = [1, 1]} : vector<4x80xf32> to vector<1x80xf32>
    %443 = vector.extract_strided_slice %439 {offsets = [3, 0], sizes = [1, 80], strides = [1, 1]} : vector<4x80xf32> to vector<1x80xf32>
    %444 = tpu.concatenate %440, %441, %442, %443 in 1 : vector<1x80xf32>, vector<1x80xf32>, vector<1x80xf32>, vector<1x80xf32> -> vector<1x320xf32>
    %c5 = arith.constant 5 : index
    %c0_129 = arith.constant 0 : index
    %c0_130 = arith.constant 0 : index
    %445 = vector.load %arg1[%c5, %c0_129, %c0_130] : memref<8x28x28xf32, #tpu.memory_space<vmem>>, vector<1x28x28xf32>
    %446 = vector.shape_cast %445 : vector<1x28x28xf32> to vector<28x28xf32>
    %447 = arith.truncf %446 : vector<28x28xf32> to vector<28x28xbf16>
    %448 = vector.extract_strided_slice %447 {offsets = [0, 0], sizes = [24, 28], strides = [1, 1]} : vector<28x28xbf16> to vector<24x28xbf16>
    %449 = vector.extract_strided_slice %56 {offsets = [0, 0, 0], sizes = [1, 28, 240], strides = [1, 1, 1]} : vector<5x28x240xbf16> to vector<1x28x240xbf16>
    %450 = vector.shape_cast %449 : vector<1x28x240xbf16> to vector<28x240xbf16>
    %cst_131 = arith.constant dense<0.000000e+00> : vector<24x240xf32>
    %451 = tpu.matmul %448, %450, %cst_131 {dimension_numbers = #tpu.dot_dimension_numbers<[1], [0], [0], [1], [0, 0, 1, 1], [], []>} : vector<24x28xbf16>, vector<28x240xbf16>, vector<24x240xf32> -> vector<24x240xf32>
    %452 = vector.extract_strided_slice %447 {offsets = [1, 0], sizes = [24, 28], strides = [1, 1]} : vector<28x28xbf16> to vector<24x28xbf16>
    %453 = vector.extract_strided_slice %56 {offsets = [1, 0, 0], sizes = [1, 28, 240], strides = [1, 1, 1]} : vector<5x28x240xbf16> to vector<1x28x240xbf16>
    %454 = vector.shape_cast %453 : vector<1x28x240xbf16> to vector<28x240xbf16>
    %cst_132 = arith.constant dense<0.000000e+00> : vector<24x240xf32>
    %455 = tpu.matmul %452, %454, %cst_132 {dimension_numbers = #tpu.dot_dimension_numbers<[1], [0], [0], [1], [0, 0, 1, 1], [], []>} : vector<24x28xbf16>, vector<28x240xbf16>, vector<24x240xf32> -> vector<24x240xf32>
    %456 = arith.addf %451, %455 : vector<24x240xf32>
    %457 = vector.extract_strided_slice %447 {offsets = [2, 0], sizes = [24, 28], strides = [1, 1]} : vector<28x28xbf16> to vector<24x28xbf16>
    %458 = vector.extract_strided_slice %56 {offsets = [2, 0, 0], sizes = [1, 28, 240], strides = [1, 1, 1]} : vector<5x28x240xbf16> to vector<1x28x240xbf16>
    %459 = vector.shape_cast %458 : vector<1x28x240xbf16> to vector<28x240xbf16>
    %cst_133 = arith.constant dense<0.000000e+00> : vector<24x240xf32>
    %460 = tpu.matmul %457, %459, %cst_133 {dimension_numbers = #tpu.dot_dimension_numbers<[1], [0], [0], [1], [0, 0, 1, 1], [], []>} : vector<24x28xbf16>, vector<28x240xbf16>, vector<24x240xf32> -> vector<24x240xf32>
    %461 = arith.addf %456, %460 : vector<24x240xf32>
    %462 = vector.extract_strided_slice %447 {offsets = [3, 0], sizes = [24, 28], strides = [1, 1]} : vector<28x28xbf16> to vector<24x28xbf16>
    %463 = vector.extract_strided_slice %56 {offsets = [3, 0, 0], sizes = [1, 28, 240], strides = [1, 1, 1]} : vector<5x28x240xbf16> to vector<1x28x240xbf16>
    %464 = vector.shape_cast %463 : vector<1x28x240xbf16> to vector<28x240xbf16>
    %cst_134 = arith.constant dense<0.000000e+00> : vector<24x240xf32>
    %465 = tpu.matmul %462, %464, %cst_134 {dimension_numbers = #tpu.dot_dimension_numbers<[1], [0], [0], [1], [0, 0, 1, 1], [], []>} : vector<24x28xbf16>, vector<28x240xbf16>, vector<24x240xf32> -> vector<24x240xf32>
    %466 = arith.addf %461, %465 : vector<24x240xf32>
    %467 = vector.extract_strided_slice %447 {offsets = [4, 0], sizes = [24, 28], strides = [1, 1]} : vector<28x28xbf16> to vector<24x28xbf16>
    %468 = vector.extract_strided_slice %56 {offsets = [4, 0, 0], sizes = [1, 28, 240], strides = [1, 1, 1]} : vector<5x28x240xbf16> to vector<1x28x240xbf16>
    %469 = vector.shape_cast %468 : vector<1x28x240xbf16> to vector<28x240xbf16>
    %cst_135 = arith.constant dense<0.000000e+00> : vector<24x240xf32>
    %470 = tpu.matmul %467, %469, %cst_135 {dimension_numbers = #tpu.dot_dimension_numbers<[1], [0], [0], [1], [0, 0, 1, 1], [], []>} : vector<24x28xbf16>, vector<28x240xbf16>, vector<24x240xf32> -> vector<24x240xf32>
    %471 = arith.addf %466, %470 : vector<24x240xf32>
    %472 = vector.broadcast %58 : vector<1x240xf32> to vector<24x240xf32>
    %473 = arith.addf %471, %472 : vector<24x240xf32>
    %cst_136 = arith.constant 0.000000e+00 : f32
    %474 = vector.broadcast %cst_136 : f32 to vector<24x240xf32>
    %475 = arith.maximumf %473, %474 : vector<24x240xf32>
    %cst_137 = arith.constant dense<0.000000e+00> : vector<12x240xf32>
    %476 = tpu.matmul %6, %475, %cst_137 {dimension_numbers = #tpu.dot_dimension_numbers<[1], [0], [0], [1], [0, 0, 1, 1], [], []>} : vector<12x24xf32>, vector<24x240xf32>, vector<12x240xf32> -> vector<12x240xf32>
    %cst_138 = arith.constant dense<0.000000e+00> : vector<12x240xf32>
    %477 = tpu.matmul %13, %475, %cst_138 {dimension_numbers = #tpu.dot_dimension_numbers<[1], [0], [0], [1], [0, 0, 1, 1], [], []>} : vector<12x24xf32>, vector<24x240xf32>, vector<12x240xf32> -> vector<12x240xf32>
    %478 = arith.maximumf %476, %477 : vector<12x240xf32>
    %cst_139 = arith.constant dense<0.000000e+00> : vector<12x120xf32>
    %479 = tpu.matmul %478, %20, %cst_139 {dimension_numbers = #tpu.dot_dimension_numbers<[1], [0], [0], [1], [0, 0, 1, 1], [], []>} : vector<12x240xf32>, vector<240x120xf32>, vector<12x120xf32> -> vector<12x120xf32>
    %cst_140 = arith.constant dense<0.000000e+00> : vector<12x120xf32>
    %480 = tpu.matmul %478, %27, %cst_140 {dimension_numbers = #tpu.dot_dimension_numbers<[1], [0], [0], [1], [0, 0, 1, 1], [], []>} : vector<12x240xf32>, vector<240x120xf32>, vector<12x120xf32> -> vector<12x120xf32>
    %481 = arith.maximumf %479, %480 : vector<12x120xf32>
    %482 = arith.truncf %481 : vector<12x120xf32> to vector<12x120xbf16>
    %483 = vector.extract_strided_slice %482 {offsets = [0, 0], sizes = [8, 120], strides = [1, 1]} : vector<12x120xbf16> to vector<8x120xbf16>
    %484 = vector.extract_strided_slice %57 {offsets = [0, 0, 0], sizes = [1, 120, 160], strides = [1, 1, 1]} : vector<5x120x160xbf16> to vector<1x120x160xbf16>
    %485 = vector.shape_cast %484 : vector<1x120x160xbf16> to vector<120x160xbf16>
    %cst_141 = arith.constant dense<0.000000e+00> : vector<8x160xf32>
    %486 = tpu.matmul %483, %485, %cst_141 {dimension_numbers = #tpu.dot_dimension_numbers<[1], [0], [0], [1], [0, 0, 1, 1], [], []>} : vector<8x120xbf16>, vector<120x160xbf16>, vector<8x160xf32> -> vector<8x160xf32>
    %487 = vector.extract_strided_slice %482 {offsets = [1, 0], sizes = [8, 120], strides = [1, 1]} : vector<12x120xbf16> to vector<8x120xbf16>
    %488 = vector.extract_strided_slice %57 {offsets = [1, 0, 0], sizes = [1, 120, 160], strides = [1, 1, 1]} : vector<5x120x160xbf16> to vector<1x120x160xbf16>
    %489 = vector.shape_cast %488 : vector<1x120x160xbf16> to vector<120x160xbf16>
    %cst_142 = arith.constant dense<0.000000e+00> : vector<8x160xf32>
    %490 = tpu.matmul %487, %489, %cst_142 {dimension_numbers = #tpu.dot_dimension_numbers<[1], [0], [0], [1], [0, 0, 1, 1], [], []>} : vector<8x120xbf16>, vector<120x160xbf16>, vector<8x160xf32> -> vector<8x160xf32>
    %491 = arith.addf %486, %490 : vector<8x160xf32>
    %492 = vector.extract_strided_slice %482 {offsets = [2, 0], sizes = [8, 120], strides = [1, 1]} : vector<12x120xbf16> to vector<8x120xbf16>
    %493 = vector.extract_strided_slice %57 {offsets = [2, 0, 0], sizes = [1, 120, 160], strides = [1, 1, 1]} : vector<5x120x160xbf16> to vector<1x120x160xbf16>
    %494 = vector.shape_cast %493 : vector<1x120x160xbf16> to vector<120x160xbf16>
    %cst_143 = arith.constant dense<0.000000e+00> : vector<8x160xf32>
    %495 = tpu.matmul %492, %494, %cst_143 {dimension_numbers = #tpu.dot_dimension_numbers<[1], [0], [0], [1], [0, 0, 1, 1], [], []>} : vector<8x120xbf16>, vector<120x160xbf16>, vector<8x160xf32> -> vector<8x160xf32>
    %496 = arith.addf %491, %495 : vector<8x160xf32>
    %497 = vector.extract_strided_slice %482 {offsets = [3, 0], sizes = [8, 120], strides = [1, 1]} : vector<12x120xbf16> to vector<8x120xbf16>
    %498 = vector.extract_strided_slice %57 {offsets = [3, 0, 0], sizes = [1, 120, 160], strides = [1, 1, 1]} : vector<5x120x160xbf16> to vector<1x120x160xbf16>
    %499 = vector.shape_cast %498 : vector<1x120x160xbf16> to vector<120x160xbf16>
    %cst_144 = arith.constant dense<0.000000e+00> : vector<8x160xf32>
    %500 = tpu.matmul %497, %499, %cst_144 {dimension_numbers = #tpu.dot_dimension_numbers<[1], [0], [0], [1], [0, 0, 1, 1], [], []>} : vector<8x120xbf16>, vector<120x160xbf16>, vector<8x160xf32> -> vector<8x160xf32>
    %501 = arith.addf %496, %500 : vector<8x160xf32>
    %502 = vector.extract_strided_slice %482 {offsets = [4, 0], sizes = [8, 120], strides = [1, 1]} : vector<12x120xbf16> to vector<8x120xbf16>
    %503 = vector.extract_strided_slice %57 {offsets = [4, 0, 0], sizes = [1, 120, 160], strides = [1, 1, 1]} : vector<5x120x160xbf16> to vector<1x120x160xbf16>
    %504 = vector.shape_cast %503 : vector<1x120x160xbf16> to vector<120x160xbf16>
    %cst_145 = arith.constant dense<0.000000e+00> : vector<8x160xf32>
    %505 = tpu.matmul %502, %504, %cst_145 {dimension_numbers = #tpu.dot_dimension_numbers<[1], [0], [0], [1], [0, 0, 1, 1], [], []>} : vector<8x120xbf16>, vector<120x160xbf16>, vector<8x160xf32> -> vector<8x160xf32>
    %506 = arith.addf %501, %505 : vector<8x160xf32>
    %507 = vector.broadcast %59 : vector<1x160xf32> to vector<8x160xf32>
    %508 = arith.addf %506, %507 : vector<8x160xf32>
    %cst_146 = arith.constant 0.000000e+00 : f32
    %509 = vector.broadcast %cst_146 : f32 to vector<8x160xf32>
    %510 = arith.maximumf %508, %509 : vector<8x160xf32>
    %cst_147 = arith.constant dense<0.000000e+00> : vector<4x160xf32>
    %511 = tpu.matmul %34, %510, %cst_147 {dimension_numbers = #tpu.dot_dimension_numbers<[1], [0], [0], [1], [0, 0, 1, 1], [], []>} : vector<4x8xf32>, vector<8x160xf32>, vector<4x160xf32> -> vector<4x160xf32>
    %cst_148 = arith.constant dense<0.000000e+00> : vector<4x160xf32>
    %512 = tpu.matmul %41, %510, %cst_148 {dimension_numbers = #tpu.dot_dimension_numbers<[1], [0], [0], [1], [0, 0, 1, 1], [], []>} : vector<4x8xf32>, vector<8x160xf32>, vector<4x160xf32> -> vector<4x160xf32>
    %513 = arith.maximumf %511, %512 : vector<4x160xf32>
    %cst_149 = arith.constant dense<0.000000e+00> : vector<4x80xf32>
    %514 = tpu.matmul %513, %48, %cst_149 {dimension_numbers = #tpu.dot_dimension_numbers<[1], [0], [0], [1], [0, 0, 1, 1], [], []>} : vector<4x160xf32>, vector<160x80xf32>, vector<4x80xf32> -> vector<4x80xf32>
    %cst_150 = arith.constant dense<0.000000e+00> : vector<4x80xf32>
    %515 = tpu.matmul %513, %55, %cst_150 {dimension_numbers = #tpu.dot_dimension_numbers<[1], [0], [0], [1], [0, 0, 1, 1], [], []>} : vector<4x160xf32>, vector<160x80xf32>, vector<4x80xf32> -> vector<4x80xf32>
    %516 = arith.maximumf %514, %515 : vector<4x80xf32>
    %517 = vector.extract_strided_slice %516 {offsets = [0, 0], sizes = [1, 80], strides = [1, 1]} : vector<4x80xf32> to vector<1x80xf32>
    %518 = vector.extract_strided_slice %516 {offsets = [1, 0], sizes = [1, 80], strides = [1, 1]} : vector<4x80xf32> to vector<1x80xf32>
    %519 = vector.extract_strided_slice %516 {offsets = [2, 0], sizes = [1, 80], strides = [1, 1]} : vector<4x80xf32> to vector<1x80xf32>
    %520 = vector.extract_strided_slice %516 {offsets = [3, 0], sizes = [1, 80], strides = [1, 1]} : vector<4x80xf32> to vector<1x80xf32>
    %521 = tpu.concatenate %517, %518, %519, %520 in 1 : vector<1x80xf32>, vector<1x80xf32>, vector<1x80xf32>, vector<1x80xf32> -> vector<1x320xf32>
    %c6 = arith.constant 6 : index
    %c0_151 = arith.constant 0 : index
    %c0_152 = arith.constant 0 : index
    %522 = vector.load %arg1[%c6, %c0_151, %c0_152] : memref<8x28x28xf32, #tpu.memory_space<vmem>>, vector<1x28x28xf32>
    %523 = vector.shape_cast %522 : vector<1x28x28xf32> to vector<28x28xf32>
    %524 = arith.truncf %523 : vector<28x28xf32> to vector<28x28xbf16>
    %525 = vector.extract_strided_slice %524 {offsets = [0, 0], sizes = [24, 28], strides = [1, 1]} : vector<28x28xbf16> to vector<24x28xbf16>
    %526 = vector.extract_strided_slice %56 {offsets = [0, 0, 0], sizes = [1, 28, 240], strides = [1, 1, 1]} : vector<5x28x240xbf16> to vector<1x28x240xbf16>
    %527 = vector.shape_cast %526 : vector<1x28x240xbf16> to vector<28x240xbf16>
    %cst_153 = arith.constant dense<0.000000e+00> : vector<24x240xf32>
    %528 = tpu.matmul %525, %527, %cst_153 {dimension_numbers = #tpu.dot_dimension_numbers<[1], [0], [0], [1], [0, 0, 1, 1], [], []>} : vector<24x28xbf16>, vector<28x240xbf16>, vector<24x240xf32> -> vector<24x240xf32>
    %529 = vector.extract_strided_slice %524 {offsets = [1, 0], sizes = [24, 28], strides = [1, 1]} : vector<28x28xbf16> to vector<24x28xbf16>
    %530 = vector.extract_strided_slice %56 {offsets = [1, 0, 0], sizes = [1, 28, 240], strides = [1, 1, 1]} : vector<5x28x240xbf16> to vector<1x28x240xbf16>
    %531 = vector.shape_cast %530 : vector<1x28x240xbf16> to vector<28x240xbf16>
    %cst_154 = arith.constant dense<0.000000e+00> : vector<24x240xf32>
    %532 = tpu.matmul %529, %531, %cst_154 {dimension_numbers = #tpu.dot_dimension_numbers<[1], [0], [0], [1], [0, 0, 1, 1], [], []>} : vector<24x28xbf16>, vector<28x240xbf16>, vector<24x240xf32> -> vector<24x240xf32>
    %533 = arith.addf %528, %532 : vector<24x240xf32>
    %534 = vector.extract_strided_slice %524 {offsets = [2, 0], sizes = [24, 28], strides = [1, 1]} : vector<28x28xbf16> to vector<24x28xbf16>
    %535 = vector.extract_strided_slice %56 {offsets = [2, 0, 0], sizes = [1, 28, 240], strides = [1, 1, 1]} : vector<5x28x240xbf16> to vector<1x28x240xbf16>
    %536 = vector.shape_cast %535 : vector<1x28x240xbf16> to vector<28x240xbf16>
    %cst_155 = arith.constant dense<0.000000e+00> : vector<24x240xf32>
    %537 = tpu.matmul %534, %536, %cst_155 {dimension_numbers = #tpu.dot_dimension_numbers<[1], [0], [0], [1], [0, 0, 1, 1], [], []>} : vector<24x28xbf16>, vector<28x240xbf16>, vector<24x240xf32> -> vector<24x240xf32>
    %538 = arith.addf %533, %537 : vector<24x240xf32>
    %539 = vector.extract_strided_slice %524 {offsets = [3, 0], sizes = [24, 28], strides = [1, 1]} : vector<28x28xbf16> to vector<24x28xbf16>
    %540 = vector.extract_strided_slice %56 {offsets = [3, 0, 0], sizes = [1, 28, 240], strides = [1, 1, 1]} : vector<5x28x240xbf16> to vector<1x28x240xbf16>
    %541 = vector.shape_cast %540 : vector<1x28x240xbf16> to vector<28x240xbf16>
    %cst_156 = arith.constant dense<0.000000e+00> : vector<24x240xf32>
    %542 = tpu.matmul %539, %541, %cst_156 {dimension_numbers = #tpu.dot_dimension_numbers<[1], [0], [0], [1], [0, 0, 1, 1], [], []>} : vector<24x28xbf16>, vector<28x240xbf16>, vector<24x240xf32> -> vector<24x240xf32>
    %543 = arith.addf %538, %542 : vector<24x240xf32>
    %544 = vector.extract_strided_slice %524 {offsets = [4, 0], sizes = [24, 28], strides = [1, 1]} : vector<28x28xbf16> to vector<24x28xbf16>
    %545 = vector.extract_strided_slice %56 {offsets = [4, 0, 0], sizes = [1, 28, 240], strides = [1, 1, 1]} : vector<5x28x240xbf16> to vector<1x28x240xbf16>
    %546 = vector.shape_cast %545 : vector<1x28x240xbf16> to vector<28x240xbf16>
    %cst_157 = arith.constant dense<0.000000e+00> : vector<24x240xf32>
    %547 = tpu.matmul %544, %546, %cst_157 {dimension_numbers = #tpu.dot_dimension_numbers<[1], [0], [0], [1], [0, 0, 1, 1], [], []>} : vector<24x28xbf16>, vector<28x240xbf16>, vector<24x240xf32> -> vector<24x240xf32>
    %548 = arith.addf %543, %547 : vector<24x240xf32>
    %549 = vector.broadcast %58 : vector<1x240xf32> to vector<24x240xf32>
    %550 = arith.addf %548, %549 : vector<24x240xf32>
    %cst_158 = arith.constant 0.000000e+00 : f32
    %551 = vector.broadcast %cst_158 : f32 to vector<24x240xf32>
    %552 = arith.maximumf %550, %551 : vector<24x240xf32>
    %cst_159 = arith.constant dense<0.000000e+00> : vector<12x240xf32>
    %553 = tpu.matmul %6, %552, %cst_159 {dimension_numbers = #tpu.dot_dimension_numbers<[1], [0], [0], [1], [0, 0, 1, 1], [], []>} : vector<12x24xf32>, vector<24x240xf32>, vector<12x240xf32> -> vector<12x240xf32>
    %cst_160 = arith.constant dense<0.000000e+00> : vector<12x240xf32>
    %554 = tpu.matmul %13, %552, %cst_160 {dimension_numbers = #tpu.dot_dimension_numbers<[1], [0], [0], [1], [0, 0, 1, 1], [], []>} : vector<12x24xf32>, vector<24x240xf32>, vector<12x240xf32> -> vector<12x240xf32>
    %555 = arith.maximumf %553, %554 : vector<12x240xf32>
    %cst_161 = arith.constant dense<0.000000e+00> : vector<12x120xf32>
    %556 = tpu.matmul %555, %20, %cst_161 {dimension_numbers = #tpu.dot_dimension_numbers<[1], [0], [0], [1], [0, 0, 1, 1], [], []>} : vector<12x240xf32>, vector<240x120xf32>, vector<12x120xf32> -> vector<12x120xf32>
    %cst_162 = arith.constant dense<0.000000e+00> : vector<12x120xf32>
    %557 = tpu.matmul %555, %27, %cst_162 {dimension_numbers = #tpu.dot_dimension_numbers<[1], [0], [0], [1], [0, 0, 1, 1], [], []>} : vector<12x240xf32>, vector<240x120xf32>, vector<12x120xf32> -> vector<12x120xf32>
    %558 = arith.maximumf %556, %557 : vector<12x120xf32>
    %559 = arith.truncf %558 : vector<12x120xf32> to vector<12x120xbf16>
    %560 = vector.extract_strided_slice %559 {offsets = [0, 0], sizes = [8, 120], strides = [1, 1]} : vector<12x120xbf16> to vector<8x120xbf16>
    %561 = vector.extract_strided_slice %57 {offsets = [0, 0, 0], sizes = [1, 120, 160], strides = [1, 1, 1]} : vector<5x120x160xbf16> to vector<1x120x160xbf16>
    %562 = vector.shape_cast %561 : vector<1x120x160xbf16> to vector<120x160xbf16>
    %cst_163 = arith.constant dense<0.000000e+00> : vector<8x160xf32>
    %563 = tpu.matmul %560, %562, %cst_163 {dimension_numbers = #tpu.dot_dimension_numbers<[1], [0], [0], [1], [0, 0, 1, 1], [], []>} : vector<8x120xbf16>, vector<120x160xbf16>, vector<8x160xf32> -> vector<8x160xf32>
    %564 = vector.extract_strided_slice %559 {offsets = [1, 0], sizes = [8, 120], strides = [1, 1]} : vector<12x120xbf16> to vector<8x120xbf16>
    %565 = vector.extract_strided_slice %57 {offsets = [1, 0, 0], sizes = [1, 120, 160], strides = [1, 1, 1]} : vector<5x120x160xbf16> to vector<1x120x160xbf16>
    %566 = vector.shape_cast %565 : vector<1x120x160xbf16> to vector<120x160xbf16>
    %cst_164 = arith.constant dense<0.000000e+00> : vector<8x160xf32>
    %567 = tpu.matmul %564, %566, %cst_164 {dimension_numbers = #tpu.dot_dimension_numbers<[1], [0], [0], [1], [0, 0, 1, 1], [], []>} : vector<8x120xbf16>, vector<120x160xbf16>, vector<8x160xf32> -> vector<8x160xf32>
    %568 = arith.addf %563, %567 : vector<8x160xf32>
    %569 = vector.extract_strided_slice %559 {offsets = [2, 0], sizes = [8, 120], strides = [1, 1]} : vector<12x120xbf16> to vector<8x120xbf16>
    %570 = vector.extract_strided_slice %57 {offsets = [2, 0, 0], sizes = [1, 120, 160], strides = [1, 1, 1]} : vector<5x120x160xbf16> to vector<1x120x160xbf16>
    %571 = vector.shape_cast %570 : vector<1x120x160xbf16> to vector<120x160xbf16>
    %cst_165 = arith.constant dense<0.000000e+00> : vector<8x160xf32>
    %572 = tpu.matmul %569, %571, %cst_165 {dimension_numbers = #tpu.dot_dimension_numbers<[1], [0], [0], [1], [0, 0, 1, 1], [], []>} : vector<8x120xbf16>, vector<120x160xbf16>, vector<8x160xf32> -> vector<8x160xf32>
    %573 = arith.addf %568, %572 : vector<8x160xf32>
    %574 = vector.extract_strided_slice %559 {offsets = [3, 0], sizes = [8, 120], strides = [1, 1]} : vector<12x120xbf16> to vector<8x120xbf16>
    %575 = vector.extract_strided_slice %57 {offsets = [3, 0, 0], sizes = [1, 120, 160], strides = [1, 1, 1]} : vector<5x120x160xbf16> to vector<1x120x160xbf16>
    %576 = vector.shape_cast %575 : vector<1x120x160xbf16> to vector<120x160xbf16>
    %cst_166 = arith.constant dense<0.000000e+00> : vector<8x160xf32>
    %577 = tpu.matmul %574, %576, %cst_166 {dimension_numbers = #tpu.dot_dimension_numbers<[1], [0], [0], [1], [0, 0, 1, 1], [], []>} : vector<8x120xbf16>, vector<120x160xbf16>, vector<8x160xf32> -> vector<8x160xf32>
    %578 = arith.addf %573, %577 : vector<8x160xf32>
    %579 = vector.extract_strided_slice %559 {offsets = [4, 0], sizes = [8, 120], strides = [1, 1]} : vector<12x120xbf16> to vector<8x120xbf16>
    %580 = vector.extract_strided_slice %57 {offsets = [4, 0, 0], sizes = [1, 120, 160], strides = [1, 1, 1]} : vector<5x120x160xbf16> to vector<1x120x160xbf16>
    %581 = vector.shape_cast %580 : vector<1x120x160xbf16> to vector<120x160xbf16>
    %cst_167 = arith.constant dense<0.000000e+00> : vector<8x160xf32>
    %582 = tpu.matmul %579, %581, %cst_167 {dimension_numbers = #tpu.dot_dimension_numbers<[1], [0], [0], [1], [0, 0, 1, 1], [], []>} : vector<8x120xbf16>, vector<120x160xbf16>, vector<8x160xf32> -> vector<8x160xf32>
    %583 = arith.addf %578, %582 : vector<8x160xf32>
    %584 = vector.broadcast %59 : vector<1x160xf32> to vector<8x160xf32>
    %585 = arith.addf %583, %584 : vector<8x160xf32>
    %cst_168 = arith.constant 0.000000e+00 : f32
    %586 = vector.broadcast %cst_168 : f32 to vector<8x160xf32>
    %587 = arith.maximumf %585, %586 : vector<8x160xf32>
    %cst_169 = arith.constant dense<0.000000e+00> : vector<4x160xf32>
    %588 = tpu.matmul %34, %587, %cst_169 {dimension_numbers = #tpu.dot_dimension_numbers<[1], [0], [0], [1], [0, 0, 1, 1], [], []>} : vector<4x8xf32>, vector<8x160xf32>, vector<4x160xf32> -> vector<4x160xf32>
    %cst_170 = arith.constant dense<0.000000e+00> : vector<4x160xf32>
    %589 = tpu.matmul %41, %587, %cst_170 {dimension_numbers = #tpu.dot_dimension_numbers<[1], [0], [0], [1], [0, 0, 1, 1], [], []>} : vector<4x8xf32>, vector<8x160xf32>, vector<4x160xf32> -> vector<4x160xf32>
    %590 = arith.maximumf %588, %589 : vector<4x160xf32>
    %cst_171 = arith.constant dense<0.000000e+00> : vector<4x80xf32>
    %591 = tpu.matmul %590, %48, %cst_171 {dimension_numbers = #tpu.dot_dimension_numbers<[1], [0], [0], [1], [0, 0, 1, 1], [], []>} : vector<4x160xf32>, vector<160x80xf32>, vector<4x80xf32> -> vector<4x80xf32>
    %cst_172 = arith.constant dense<0.000000e+00> : vector<4x80xf32>
    %592 = tpu.matmul %590, %55, %cst_172 {dimension_numbers = #tpu.dot_dimension_numbers<[1], [0], [0], [1], [0, 0, 1, 1], [], []>} : vector<4x160xf32>, vector<160x80xf32>, vector<4x80xf32> -> vector<4x80xf32>
    %593 = arith.maximumf %591, %592 : vector<4x80xf32>
    %594 = vector.extract_strided_slice %593 {offsets = [0, 0], sizes = [1, 80], strides = [1, 1]} : vector<4x80xf32> to vector<1x80xf32>
    %595 = vector.extract_strided_slice %593 {offsets = [1, 0], sizes = [1, 80], strides = [1, 1]} : vector<4x80xf32> to vector<1x80xf32>
    %596 = vector.extract_strided_slice %593 {offsets = [2, 0], sizes = [1, 80], strides = [1, 1]} : vector<4x80xf32> to vector<1x80xf32>
    %597 = vector.extract_strided_slice %593 {offsets = [3, 0], sizes = [1, 80], strides = [1, 1]} : vector<4x80xf32> to vector<1x80xf32>
    %598 = tpu.concatenate %594, %595, %596, %597 in 1 : vector<1x80xf32>, vector<1x80xf32>, vector<1x80xf32>, vector<1x80xf32> -> vector<1x320xf32>
    %c7 = arith.constant 7 : index
    %c0_173 = arith.constant 0 : index
    %c0_174 = arith.constant 0 : index
    %599 = vector.load %arg1[%c7, %c0_173, %c0_174] : memref<8x28x28xf32, #tpu.memory_space<vmem>>, vector<1x28x28xf32>
    %600 = vector.shape_cast %599 : vector<1x28x28xf32> to vector<28x28xf32>
    %601 = arith.truncf %600 : vector<28x28xf32> to vector<28x28xbf16>
    %602 = vector.extract_strided_slice %601 {offsets = [0, 0], sizes = [24, 28], strides = [1, 1]} : vector<28x28xbf16> to vector<24x28xbf16>
    %603 = vector.extract_strided_slice %56 {offsets = [0, 0, 0], sizes = [1, 28, 240], strides = [1, 1, 1]} : vector<5x28x240xbf16> to vector<1x28x240xbf16>
    %604 = vector.shape_cast %603 : vector<1x28x240xbf16> to vector<28x240xbf16>
    %cst_175 = arith.constant dense<0.000000e+00> : vector<24x240xf32>
    %605 = tpu.matmul %602, %604, %cst_175 {dimension_numbers = #tpu.dot_dimension_numbers<[1], [0], [0], [1], [0, 0, 1, 1], [], []>} : vector<24x28xbf16>, vector<28x240xbf16>, vector<24x240xf32> -> vector<24x240xf32>
    %606 = vector.extract_strided_slice %601 {offsets = [1, 0], sizes = [24, 28], strides = [1, 1]} : vector<28x28xbf16> to vector<24x28xbf16>
    %607 = vector.extract_strided_slice %56 {offsets = [1, 0, 0], sizes = [1, 28, 240], strides = [1, 1, 1]} : vector<5x28x240xbf16> to vector<1x28x240xbf16>
    %608 = vector.shape_cast %607 : vector<1x28x240xbf16> to vector<28x240xbf16>
    %cst_176 = arith.constant dense<0.000000e+00> : vector<24x240xf32>
    %609 = tpu.matmul %606, %608, %cst_176 {dimension_numbers = #tpu.dot_dimension_numbers<[1], [0], [0], [1], [0, 0, 1, 1], [], []>} : vector<24x28xbf16>, vector<28x240xbf16>, vector<24x240xf32> -> vector<24x240xf32>
    %610 = arith.addf %605, %609 : vector<24x240xf32>
    %611 = vector.extract_strided_slice %601 {offsets = [2, 0], sizes = [24, 28], strides = [1, 1]} : vector<28x28xbf16> to vector<24x28xbf16>
    %612 = vector.extract_strided_slice %56 {offsets = [2, 0, 0], sizes = [1, 28, 240], strides = [1, 1, 1]} : vector<5x28x240xbf16> to vector<1x28x240xbf16>
    %613 = vector.shape_cast %612 : vector<1x28x240xbf16> to vector<28x240xbf16>
    %cst_177 = arith.constant dense<0.000000e+00> : vector<24x240xf32>
    %614 = tpu.matmul %611, %613, %cst_177 {dimension_numbers = #tpu.dot_dimension_numbers<[1], [0], [0], [1], [0, 0, 1, 1], [], []>} : vector<24x28xbf16>, vector<28x240xbf16>, vector<24x240xf32> -> vector<24x240xf32>
    %615 = arith.addf %610, %614 : vector<24x240xf32>
    %616 = vector.extract_strided_slice %601 {offsets = [3, 0], sizes = [24, 28], strides = [1, 1]} : vector<28x28xbf16> to vector<24x28xbf16>
    %617 = vector.extract_strided_slice %56 {offsets = [3, 0, 0], sizes = [1, 28, 240], strides = [1, 1, 1]} : vector<5x28x240xbf16> to vector<1x28x240xbf16>
    %618 = vector.shape_cast %617 : vector<1x28x240xbf16> to vector<28x240xbf16>
    %cst_178 = arith.constant dense<0.000000e+00> : vector<24x240xf32>
    %619 = tpu.matmul %616, %618, %cst_178 {dimension_numbers = #tpu.dot_dimension_numbers<[1], [0], [0], [1], [0, 0, 1, 1], [], []>} : vector<24x28xbf16>, vector<28x240xbf16>, vector<24x240xf32> -> vector<24x240xf32>
    %620 = arith.addf %615, %619 : vector<24x240xf32>
    %621 = vector.extract_strided_slice %601 {offsets = [4, 0], sizes = [24, 28], strides = [1, 1]} : vector<28x28xbf16> to vector<24x28xbf16>
    %622 = vector.extract_strided_slice %56 {offsets = [4, 0, 0], sizes = [1, 28, 240], strides = [1, 1, 1]} : vector<5x28x240xbf16> to vector<1x28x240xbf16>
    %623 = vector.shape_cast %622 : vector<1x28x240xbf16> to vector<28x240xbf16>
    %cst_179 = arith.constant dense<0.000000e+00> : vector<24x240xf32>
    %624 = tpu.matmul %621, %623, %cst_179 {dimension_numbers = #tpu.dot_dimension_numbers<[1], [0], [0], [1], [0, 0, 1, 1], [], []>} : vector<24x28xbf16>, vector<28x240xbf16>, vector<24x240xf32> -> vector<24x240xf32>
    %625 = arith.addf %620, %624 : vector<24x240xf32>
    %626 = vector.broadcast %58 : vector<1x240xf32> to vector<24x240xf32>
    %627 = arith.addf %625, %626 : vector<24x240xf32>
    %cst_180 = arith.constant 0.000000e+00 : f32
    %628 = vector.broadcast %cst_180 : f32 to vector<24x240xf32>
    %629 = arith.maximumf %627, %628 : vector<24x240xf32>
    %cst_181 = arith.constant dense<0.000000e+00> : vector<12x240xf32>
    %630 = tpu.matmul %6, %629, %cst_181 {dimension_numbers = #tpu.dot_dimension_numbers<[1], [0], [0], [1], [0, 0, 1, 1], [], []>} : vector<12x24xf32>, vector<24x240xf32>, vector<12x240xf32> -> vector<12x240xf32>
    %cst_182 = arith.constant dense<0.000000e+00> : vector<12x240xf32>
    %631 = tpu.matmul %13, %629, %cst_182 {dimension_numbers = #tpu.dot_dimension_numbers<[1], [0], [0], [1], [0, 0, 1, 1], [], []>} : vector<12x24xf32>, vector<24x240xf32>, vector<12x240xf32> -> vector<12x240xf32>
    %632 = arith.maximumf %630, %631 : vector<12x240xf32>
    %cst_183 = arith.constant dense<0.000000e+00> : vector<12x120xf32>
    %633 = tpu.matmul %632, %20, %cst_183 {dimension_numbers = #tpu.dot_dimension_numbers<[1], [0], [0], [1], [0, 0, 1, 1], [], []>} : vector<12x240xf32>, vector<240x120xf32>, vector<12x120xf32> -> vector<12x120xf32>
    %cst_184 = arith.constant dense<0.000000e+00> : vector<12x120xf32>
    %634 = tpu.matmul %632, %27, %cst_184 {dimension_numbers = #tpu.dot_dimension_numbers<[1], [0], [0], [1], [0, 0, 1, 1], [], []>} : vector<12x240xf32>, vector<240x120xf32>, vector<12x120xf32> -> vector<12x120xf32>
    %635 = arith.maximumf %633, %634 : vector<12x120xf32>
    %636 = arith.truncf %635 : vector<12x120xf32> to vector<12x120xbf16>
    %637 = vector.extract_strided_slice %636 {offsets = [0, 0], sizes = [8, 120], strides = [1, 1]} : vector<12x120xbf16> to vector<8x120xbf16>
    %638 = vector.extract_strided_slice %57 {offsets = [0, 0, 0], sizes = [1, 120, 160], strides = [1, 1, 1]} : vector<5x120x160xbf16> to vector<1x120x160xbf16>
    %639 = vector.shape_cast %638 : vector<1x120x160xbf16> to vector<120x160xbf16>
    %cst_185 = arith.constant dense<0.000000e+00> : vector<8x160xf32>
    %640 = tpu.matmul %637, %639, %cst_185 {dimension_numbers = #tpu.dot_dimension_numbers<[1], [0], [0], [1], [0, 0, 1, 1], [], []>} : vector<8x120xbf16>, vector<120x160xbf16>, vector<8x160xf32> -> vector<8x160xf32>
    %641 = vector.extract_strided_slice %636 {offsets = [1, 0], sizes = [8, 120], strides = [1, 1]} : vector<12x120xbf16> to vector<8x120xbf16>
    %642 = vector.extract_strided_slice %57 {offsets = [1, 0, 0], sizes = [1, 120, 160], strides = [1, 1, 1]} : vector<5x120x160xbf16> to vector<1x120x160xbf16>
    %643 = vector.shape_cast %642 : vector<1x120x160xbf16> to vector<120x160xbf16>
    %cst_186 = arith.constant dense<0.000000e+00> : vector<8x160xf32>
    %644 = tpu.matmul %641, %643, %cst_186 {dimension_numbers = #tpu.dot_dimension_numbers<[1], [0], [0], [1], [0, 0, 1, 1], [], []>} : vector<8x120xbf16>, vector<120x160xbf16>, vector<8x160xf32> -> vector<8x160xf32>
    %645 = arith.addf %640, %644 : vector<8x160xf32>
    %646 = vector.extract_strided_slice %636 {offsets = [2, 0], sizes = [8, 120], strides = [1, 1]} : vector<12x120xbf16> to vector<8x120xbf16>
    %647 = vector.extract_strided_slice %57 {offsets = [2, 0, 0], sizes = [1, 120, 160], strides = [1, 1, 1]} : vector<5x120x160xbf16> to vector<1x120x160xbf16>
    %648 = vector.shape_cast %647 : vector<1x120x160xbf16> to vector<120x160xbf16>
    %cst_187 = arith.constant dense<0.000000e+00> : vector<8x160xf32>
    %649 = tpu.matmul %646, %648, %cst_187 {dimension_numbers = #tpu.dot_dimension_numbers<[1], [0], [0], [1], [0, 0, 1, 1], [], []>} : vector<8x120xbf16>, vector<120x160xbf16>, vector<8x160xf32> -> vector<8x160xf32>
    %650 = arith.addf %645, %649 : vector<8x160xf32>
    %651 = vector.extract_strided_slice %636 {offsets = [3, 0], sizes = [8, 120], strides = [1, 1]} : vector<12x120xbf16> to vector<8x120xbf16>
    %652 = vector.extract_strided_slice %57 {offsets = [3, 0, 0], sizes = [1, 120, 160], strides = [1, 1, 1]} : vector<5x120x160xbf16> to vector<1x120x160xbf16>
    %653 = vector.shape_cast %652 : vector<1x120x160xbf16> to vector<120x160xbf16>
    %cst_188 = arith.constant dense<0.000000e+00> : vector<8x160xf32>
    %654 = tpu.matmul %651, %653, %cst_188 {dimension_numbers = #tpu.dot_dimension_numbers<[1], [0], [0], [1], [0, 0, 1, 1], [], []>} : vector<8x120xbf16>, vector<120x160xbf16>, vector<8x160xf32> -> vector<8x160xf32>
    %655 = arith.addf %650, %654 : vector<8x160xf32>
    %656 = vector.extract_strided_slice %636 {offsets = [4, 0], sizes = [8, 120], strides = [1, 1]} : vector<12x120xbf16> to vector<8x120xbf16>
    %657 = vector.extract_strided_slice %57 {offsets = [4, 0, 0], sizes = [1, 120, 160], strides = [1, 1, 1]} : vector<5x120x160xbf16> to vector<1x120x160xbf16>
    %658 = vector.shape_cast %657 : vector<1x120x160xbf16> to vector<120x160xbf16>
    %cst_189 = arith.constant dense<0.000000e+00> : vector<8x160xf32>
    %659 = tpu.matmul %656, %658, %cst_189 {dimension_numbers = #tpu.dot_dimension_numbers<[1], [0], [0], [1], [0, 0, 1, 1], [], []>} : vector<8x120xbf16>, vector<120x160xbf16>, vector<8x160xf32> -> vector<8x160xf32>
    %660 = arith.addf %655, %659 : vector<8x160xf32>
    %661 = vector.broadcast %59 : vector<1x160xf32> to vector<8x160xf32>
    %662 = arith.addf %660, %661 : vector<8x160xf32>
    %cst_190 = arith.constant 0.000000e+00 : f32
    %663 = vector.broadcast %cst_190 : f32 to vector<8x160xf32>
    %664 = arith.maximumf %662, %663 : vector<8x160xf32>
    %cst_191 = arith.constant dense<0.000000e+00> : vector<4x160xf32>
    %665 = tpu.matmul %34, %664, %cst_191 {dimension_numbers = #tpu.dot_dimension_numbers<[1], [0], [0], [1], [0, 0, 1, 1], [], []>} : vector<4x8xf32>, vector<8x160xf32>, vector<4x160xf32> -> vector<4x160xf32>
    %cst_192 = arith.constant dense<0.000000e+00> : vector<4x160xf32>
    %666 = tpu.matmul %41, %664, %cst_192 {dimension_numbers = #tpu.dot_dimension_numbers<[1], [0], [0], [1], [0, 0, 1, 1], [], []>} : vector<4x8xf32>, vector<8x160xf32>, vector<4x160xf32> -> vector<4x160xf32>
    %667 = arith.maximumf %665, %666 : vector<4x160xf32>
    %cst_193 = arith.constant dense<0.000000e+00> : vector<4x80xf32>
    %668 = tpu.matmul %667, %48, %cst_193 {dimension_numbers = #tpu.dot_dimension_numbers<[1], [0], [0], [1], [0, 0, 1, 1], [], []>} : vector<4x160xf32>, vector<160x80xf32>, vector<4x80xf32> -> vector<4x80xf32>
    %cst_194 = arith.constant dense<0.000000e+00> : vector<4x80xf32>
    %669 = tpu.matmul %667, %55, %cst_194 {dimension_numbers = #tpu.dot_dimension_numbers<[1], [0], [0], [1], [0, 0, 1, 1], [], []>} : vector<4x160xf32>, vector<160x80xf32>, vector<4x80xf32> -> vector<4x80xf32>
    %670 = arith.maximumf %668, %669 : vector<4x80xf32>
    %671 = vector.extract_strided_slice %670 {offsets = [0, 0], sizes = [1, 80], strides = [1, 1]} : vector<4x80xf32> to vector<1x80xf32>
    %672 = vector.extract_strided_slice %670 {offsets = [1, 0], sizes = [1, 80], strides = [1, 1]} : vector<4x80xf32> to vector<1x80xf32>
    %673 = vector.extract_strided_slice %670 {offsets = [2, 0], sizes = [1, 80], strides = [1, 1]} : vector<4x80xf32> to vector<1x80xf32>
    %674 = vector.extract_strided_slice %670 {offsets = [3, 0], sizes = [1, 80], strides = [1, 1]} : vector<4x80xf32> to vector<1x80xf32>
    %675 = tpu.concatenate %671, %672, %673, %674 in 1 : vector<1x80xf32>, vector<1x80xf32>, vector<1x80xf32>, vector<1x80xf32> -> vector<1x320xf32>
    %676 = tpu.concatenate %136, %213, %290, %367, %444, %521, %598, %675 in 0 : vector<1x320xf32>, vector<1x320xf32>, vector<1x320xf32>, vector<1x320xf32>, vector<1x320xf32>, vector<1x320xf32>, vector<1x320xf32>, vector<1x320xf32> -> vector<8x320xf32>
    %677 = arith.truncf %676 : vector<8x320xf32> to vector<8x320xbf16>
    %c0_195 = arith.constant 0 : index
    %c0_196 = arith.constant 0 : index
    %678 = vector.load %arg6[%c0_195, %c0_196] : memref<320x50xbf16, #tpu.memory_space<vmem>>, vector<320x50xbf16>
    %cst_197 = arith.constant dense<0.000000e+00> : vector<8x50xf32>
    %679 = tpu.matmul %677, %678, %cst_197 {dimension_numbers = #tpu.dot_dimension_numbers<[1], [0], [0], [1], [0, 0, 1, 1], [], []>} : vector<8x320xbf16>, vector<320x50xbf16>, vector<8x50xf32> -> vector<8x50xf32>
    %c0_198 = arith.constant 0 : index
    %c0_199 = arith.constant 0 : index
    %680 = vector.load %arg7[%c0_198, %c0_199] : memref<1x50xf32, #tpu.memory_space<vmem>>, vector<1x50xf32>
    %681 = vector.broadcast %680 : vector<1x50xf32> to vector<8x50xf32>
    %682 = arith.addf %679, %681 : vector<8x50xf32>
    %cst_200 = arith.constant 0.000000e+00 : f32
    %683 = vector.broadcast %cst_200 : f32 to vector<8x50xf32>
    %684 = arith.maximumf %682, %683 : vector<8x50xf32>
    %685 = arith.truncf %684 : vector<8x50xf32> to vector<8x50xbf16>
    %c0_201 = arith.constant 0 : index
    %c0_202 = arith.constant 0 : index
    %686 = vector.load %arg8[%c0_201, %c0_202] : memref<50x10xbf16, #tpu.memory_space<vmem>>, vector<50x10xbf16>
    %cst_203 = arith.constant dense<0.000000e+00> : vector<8x10xf32>
    %687 = tpu.matmul %685, %686, %cst_203 {dimension_numbers = #tpu.dot_dimension_numbers<[1], [0], [0], [1], [0, 0, 1, 1], [], []>} : vector<8x50xbf16>, vector<50x10xbf16>, vector<8x10xf32> -> vector<8x10xf32>
    %c0_204 = arith.constant 0 : index
    %c0_205 = arith.constant 0 : index
    %688 = vector.load %arg9[%c0_204, %c0_205] : memref<1x10xf32, #tpu.memory_space<vmem>>, vector<1x10xf32>
    %689 = vector.broadcast %688 : vector<1x10xf32> to vector<8x10xf32>
    %690 = arith.addf %687, %689 : vector<8x10xf32>
    %cst_206 = arith.constant dense<0xFF800000> : vector<8xf32>
    %691 = vector.multi_reduction <maximumf>, %690, %cst_206 [1] : vector<8x10xf32> to vector<8xf32>
    %692 = vector.shape_cast %691 : vector<8xf32> to vector<8x1xf32>
    %693 = vector.broadcast %692 : vector<8x1xf32> to vector<8x10xf32>
    %694 = arith.subf %690, %693 : vector<8x10xf32>
    %695 = math.exp %694 : vector<8x10xf32>
    %cst_207 = arith.constant dense<0.000000e+00> : vector<8xf32>
    %696 = vector.multi_reduction <add>, %695, %cst_207 [1] : vector<8x10xf32> to vector<8xf32>
    %697 = vector.shape_cast %696 : vector<8xf32> to vector<8x1xf32>
    %698 = math.log %697 : vector<8x1xf32>
    %699 = vector.broadcast %698 : vector<8x1xf32> to vector<8x10xf32>
    %700 = arith.subf %694, %699 : vector<8x10xf32>
    %c0_208 = arith.constant 0 : index
    %c0_209 = arith.constant 0 : index
    %701 = vector.load %arg10[%c0_208, %c0_209] : memref<8x10xf32, #tpu.memory_space<vmem>>, vector<8x10xf32>
    tpu.vector_store %arg10[%c0_208, %c0_209], %700 {strides = array<i32>} : memref<8x10xf32, #tpu.memory_space<vmem>>, vector<8x10xf32>,
    return
  }
  func.func @transform_0(%arg0: i32) -> (i32, i32, i32) {
    %c0_i32 = arith.constant 0 : i32
    %c0_i32_0 = arith.constant 0 : i32
    %c0_i32_1 = arith.constant 0 : i32
    return %arg0, %c0_i32, %c0_i32_0 : i32, i32, i32
  }
  func.func @transform_1(%arg0: i32) -> (i32, i32, i32) {
    %c0_i32 = arith.constant 0 : i32
    %c0_i32_0 = arith.constant 0 : i32
    %c0_i32_1 = arith.constant 0 : i32
    %c0_i32_2 = arith.constant 0 : i32
    return %c0_i32, %c0_i32_0, %c0_i32_1 : i32, i32, i32
  }
  func.func @transform_2(%arg0: i32) -> (i32, i32) {
    %c0_i32 = arith.constant 0 : i32
    %c0_i32_0 = arith.constant 0 : i32
    %c0_i32_1 = arith.constant 0 : i32
    return %c0_i32, %c0_i32_0 : i32, i32
  }
  func.func @transform_3(%arg0: i32) -> (i32, i32, i32) {
    %c0_i32 = arith.constant 0 : i32
    %c0_i32_0 = arith.constant 0 : i32
    %c0_i32_1 = arith.constant 0 : i32
    %c0_i32_2 = arith.constant 0 : i32
    return %c0_i32, %c0_i32_0, %c0_i32_1 : i32, i32, i32
  }
  func.func @transform_4(%arg0: i32) -> (i32, i32) {
    %c0_i32 = arith.constant 0 : i32
    %c0_i32_0 = arith.constant 0 : i32
    %c0_i32_1 = arith.constant 0 : i32
    return %c0_i32, %c0_i32_0 : i32, i32
  }
  func.func @transform_5(%arg0: i32) -> (i32, i32) {
    %c0_i32 = arith.constant 0 : i32
    %c0_i32_0 = arith.constant 0 : i32
    %c0_i32_1 = arith.constant 0 : i32
    return %c0_i32, %c0_i32_0 : i32, i32
  }
  func.func @transform_6(%arg0: i32) -> (i32, i32) {
    %c0_i32 = arith.constant 0 : i32
    %c0_i32_0 = arith.constant 0 : i32
    %c0_i32_1 = arith.constant 0 : i32
    return %c0_i32, %c0_i32_0 : i32, i32
  }
  func.func @transform_7(%arg0: i32) -> (i32, i32) {
    %c0_i32 = arith.constant 0 : i32
    %c0_i32_0 = arith.constant 0 : i32
    %c0_i32_1 = arith.constant 0 : i32
    return %c0_i32, %c0_i32_0 : i32, i32
  }
  func.func @transform_8(%arg0: i32) -> (i32, i32) {
    %c0_i32 = arith.constant 0 : i32
    %c0_i32_0 = arith.constant 0 : i32
    %c0_i32_1 = arith.constant 0 : i32
    return %c0_i32, %c0_i32_0 : i32, i32
  }
  func.func @transform_9(%arg0: i32) -> (i32, i32) {
    %c0_i32 = arith.constant 0 : i32
    %c0_i32_0 = arith.constant 0 : i32
    return %arg0, %c0_i32 : i32, i32
  }
}

</mosaic_0001>

<bundles_post_ra>
// kernel: net_forward.1
= control target key start
LH: loop header
LB: loop body
LE: loop exit
PB: predicated region body
PF: predicated region fallthrough
CT: control target
= control target key end

     0   :  { %v20021_v1 = vmov 0   ;;  %vm19974_vm0 = vcmask 1045504   ;;  %vm19973_vm1 = vsmask.f32 7424  ;;  %vm19972_vm2 = vcmask 228352   ;;  %s14364_s30 = smov 112   ;;  %s19960_s1 = inlined_call_operand.vmem [shape: bf16[5,28,240], index: 1, kind: input, shape index: {}]   ;;  %s19961_s0 = inlined_call_operand.vmem [shape: f32[8,28,28], index: 0, kind: input, shape index: {}]   ;;  %s19962_s2 = inlined_call_operand.vmem [shape: f32[1,240], index: 2, kind: input, shape index: {}]   ;;  %s19963_s3 = inlined_call_operand.vmem [shape: bf16[5,120,160], index: 3, kind: input, shape index: {}]   ;;  %s19964_s4 = inlined_call_operand.vmem [shape: f32[1,160], index: 4, kind: input, shape index: {}]   ;;  %s19965_s5 = inlined_call_operand.vmem [shape: bf16[320,50], index: 5, kind: input, shape index: {}]   ;;  %s19966_s7 = inlined_call_operand.vmem [shape: bf16[50,10], index: 7, kind: input, shape index: {}]   ;;  %s19967_s6 = inlined_call_operand.vmem [shape: f32[1,50], index: 6, kind: input, shape index: {}]   ;;  %s19968_s8 = inlined_call_operand.vmem [shape: f32[1,10], index: 8, kind: input, shape index: {}]   ;;  %s19969_s9 = inlined_call_operand.vmem [shape: f32[8,10], index: 9, kind: output, shape index: {}]  }
   0x1   :  { %v13910_v0 = vld [vmem:[%s19960_s1 + $0x24] ss:$8 sps:$4 sm:$0xff]   ;;  %447 = vmatprep.mubr.bf16.mxu0 %v20021_v1  ;;  %v13912_v2 = vld [vmem:[%s19960_s1 + $0x20] ss:$8 sps:$4 sm:$0xff]   ;;  %v363_v7 = vld [vmem:[%s19961_s0 + $0x10] sm:$0xff]  ;;  %vm19971_vm3 = vcmask 1046528   ;;  %v33_v54 = vlaneseq }
   0x2   :  { %415 = vmatprep.subr.bf16.mxu0 %v13910_v0  ;;  %v13913_v3 = vld [vmem:[%s19960_s1 + $0x34] ss:$8 sps:$4 sm:$0x3f]   ;;  %v13915_v4 = vld [vmem:[%s19960_s1 + $0x30] ss:$8 sps:$4 sm:$0x3f]  }
   0x3   :  { %416 = vmatpush1.bf16.msra.mxu0 %v13912_v2  ;;  %v361_v5 = vld [vmem:[%s19961_s0] sm:$0xff]  ;;  %v362_v6 = vld [vmem:[%s19961_s0 + $0x8] sm:$0xff]  ;;  %v14442_v8 = vsel %vm19974_vm0, %v13915_v4, 0  ;;  %v364_v9 = vld [vmem:[%s19961_s0 + $0x18] sm:$0xf]  ;;  %v14550_v55 = vshrl.u32 %v33_v54, 7 }
   0x4   :  { %11146 = vmatprep.subr.msk.bf16.mxu0 %vm19974_vm0, %v13913_v3  ;;  %v365_v10 = vpack.c.bf16 %v362_v6, %v361_v5  ;;  %v14447_v11 = vpack.c.bf16 %v364_v9, %v363_v7  ;;  %v13916_v12 = vld [vmem:[%s19960_s1 + $0x4] ss:$8 sps:$4 sm:$0xff]   ;;  %v13918_v19 = vld [vmem:[%s19960_s1] ss:$8 sps:$4 sm:$0xff]   ;;  %vm19970_vm4 = vsmask.f32 6400 }
   0x5   :  { %v13919_v20 = vld [vmem:[%s19960_s1 + $0x14] ss:$8 sps:$4 sm:$0x3f]   ;;  %v13921_v21 = vld [vmem:[%s19960_s1 + $0x10] ss:$8 sps:$4 sm:$0x3f]  }
   0x6   :  { %v369_v13 = vshrl.u32 %v365_v10, 16  ;;  %v371_v14 = vshll.u32 %v365_v10, 16  ;;  %v376_v15 = vshll.u32 %v14447_v11, 16  ;;  %v734_v23 = vrot.slane %v365_v10, 2  ;;  %v13922_v28 = vld [vmem:[%s19960_s1 + $0x44] ss:$8 sps:$4 sm:$0xff]  }
   0x7   :  { %418 = vmatpush1.bf16.msra.mxu0 %v14442_v8  ;;  %v735_v24 = vrot.slane %v14447_v11, 2  ;;  %v380_v25 = vshrl.u32 %v14447_v11, 16  ;;  %v14473_v27 = vsel %vm19974_vm0, %v13921_v21, 0  ;;  %v13924_v30 = vld [vmem:[%s19960_s1 + $0x40] ss:$8 sps:$4 sm:$0xff]   ;;  %v548_v35 = vrot.slane %v365_v10, 1 }
   0x8   :  { %v373_v16 = vrot.slane %v371_v14, 1  ;;  %494 = vmatprep.subr.bf16.mxu0 %v13916_v12  ;;  %v378_v17 = vrot.slane %v376_v15, 1  ;;  %v13925_v31 = vld [vmem:[%s19960_s1 + $0x54] ss:$8 sps:$4 sm:$0x3f]   ;;  %v549_v36 = vrot.slane %v14447_v11, 1 }
   0x9   :  { %v736_v26 = vsel %vm19974_vm0, %v734_v23, %v735_v24  ;;  %v13927_v32 = vld [vmem:[%s19960_s1 + $0x50] ss:$8 sps:$4 sm:$0x3f]   ;;  %v13928_v34 = vld [vmem:[%s19960_s1 + $0x64] ss:$8 sps:$4 sm:$0xff]   ;;  %v639_v43 = vrot.slane %v369_v13, 1 }
   0xa   :  { %v374_v18 = vor.u32 %v373_v16, %v369_v13  ;;  %v382_v29 = vor.u32 %v380_v25, %v378_v17  ;;  %v14494_v33 = vsel %vm19974_vm0, %v13927_v32, 0  ;;  %v550_v37 = vsel %vm19971_vm3, %v548_v35, %v549_v36  ;;  %v13930_v38 = vld [vmem:[%s19960_s1 + $0x60] ss:$8 sps:$4 sm:$0xff]   ;;  %v13931_v39 = vld [vmem:[%s19960_s1 + $0x74] ss:$8 sps:$4 sm:$0x3f]  }
   0xb   :  { %20429 = vst [vmem:[#allocation2_spill] sm:$0xff] %v14494_v33  ;;  %v13933_v40 = vld [vmem:[%s19960_s1 + $0x70] ss:$8 sps:$4 sm:$0x3f]   ;;  %v13934_v42 = vld [vmem:[%s19960_s1 + $0x84] ss:$8 sps:$4 sm:$0xff]  }
   0xc   :  { %v379_v22 = vsel %vm19973_vm1, %v374_v18, %v378_v17  ;;  %v14518_v41 = vsel %vm19974_vm0, %v13933_v40, 0  ;;  %v640_v44 = vrot.slane %v371_v14, 2  ;;  %v643_v45 = vrot.slane %v376_v15, 2  ;;  %v13936_v50 = vld [vmem:[%s19960_s1 + $0x80] ss:$8 sps:$4 sm:$0xff]   ;;  %s14365_s10 = smov 80  }
   0xd   :  { %11147 = vmatmul.mubr.msk.bf16.vlgmr.msra.gmra.mrb[0].mxu0 %vm19972_vm2, %v379_v22  ;;  %20430 = vst [vmem:[#allocation3_spill] sm:$0xff] %v14518_v41  ;;  %v642_v46 = vrot.slane %v380_v25, 1  ;;  %v13937_v51 = vld [vmem:[%s19960_s1 + $0x94] ss:$8 sps:$4 sm:$0x3f]   ;;  %v14552_v56 = vand.u32 127, %v33_v54 }
   0xe   :  { %457 = vmatprep.mubr.bf16.mxu0 %v20021_v1  ;;  %495 = vmatpush1.bf16.msra.mxu0 %v13918_v19  ;;  %v641_v47 = vor.u32 %v640_v44, %v639_v43  ;;  %v13939_v52 = vld [vmem:[%s19960_s1 + $0x90] ss:$8 sps:$4 sm:$0x3f]   ;;  %v14555_v57 = vadd.s32 8, %v14550_v55  ;;  %v20015_v58 = vmov 0.0   ;;  %v20434_v0 = vmov 0 }
   0xf   :  { %11153 = vmatprep.subr.msk.bf16.mxu0 %vm19974_vm0, %v13919_v20  ;;  %v644_v48 = vor.u32 %v643_v45, %v642_v46  ;;  %v14540_v53 = vsel %vm19974_vm0, %v13939_v52, 0  ;;  %918 = vmatprep.mubr.f32.mxu1 %v20015_v58  ;;  %v14559_v59 = vmul.u32 2, %v14552_v56  ;;  %v54_v2 = vadd.s32 16, %v14550_v55  ;;  %s14366_s11 = smov 32   ;;  %v14060_v61 = vld [vmem:[%s19965_s5 + $0x10] sm:$0xff]  }
  0x10   :  { %20431 = vst [vmem:[#allocation4_spill] sm:$0xff] %v14540_v53  ;;  %v39_v60 = vmul.u32 2, %v14555_v57  ;;  %v55_v3 = vadd.s32 24, %v14550_v55  ;;  %v20019_v4 = vmov 0.0|0.0   ;;  %v20017_v5 = vmov 1.0|1.0  }
  0x11   :  { %v645_v49 = vsel %vm19970_vm4, %v641_v47, %v644_v48  ;;  %v14568_v62 = vadd.s32 1, %v14559_v59  ;;  %vm85_vm10 = vcmp.eq.s32.totalorder %v54_v2, %v14559_v59  ;;  %v56_v7 = vadd.s32 32, %v14550_v55 }
  0x12   :  { %497 = vmatpush1.bf16.msra.mxu0 %v14473_v27  ;;  %vm14563_vm5 = vcmp.eq.s32.totalorder %v14552_v56, %v39_v60  ;;  %v14574_v63 = vadd.s32 1, %v39_v60  ;;  %vm86_vm11 = vcmp.eq.s32.totalorder %v55_v3, %v14559_v59  ;;  %v57_v9 = vadd.s32 40, %v14550_v55 }
  0x13   :  { %581 = vmatprep.subr.bf16.mxu0 %v13922_v28  ;;  %vm174_vm6 = vcmp.eq.s32.totalorder %v14550_v55, %v14568_v62  ;;  %vm175_vm7 = vcmp.eq.s32.totalorder %v14555_v57, %v14568_v62  ;;  %vm176_vm12 = vcmp.eq.s32.totalorder %v54_v2, %v14568_v62  ;;  %vm177_vm13 = vcmp.eq.s32.totalorder %v55_v3, %v14568_v62  ;;  %vm14593_vm14 = vmpackc.low %vm86_vm11, %vm85_vm10 }
  0x14   :  { %vm14578_vm9 = vmpackc.low %vm175_vm7, %vm174_vm6  ;;  %vm87_vm6 = vcmp.eq.s32.totalorder %v56_v7, %v14559_v59  ;;  %vm88_vm7 = vcmp.eq.s32.totalorder %v57_v9, %v14559_v59  ;;  %vm178_vm4 = vcmp.eq.s32.totalorder %v56_v7, %v14568_v62  ;;  %vm179_vm3 = vcmp.eq.s32.totalorder %v57_v9, %v14568_v62 }
  0x15   :  { %11148 = vmatmul.mubr.msk.bf16.gmra.mrb[4].mxu0 %vm19972_vm2, %v382_v29  ;;  %v20435_v0 = vsel %vm14578_vm9, 4294967295, %v20434_v0  ;;  %vm14599_vm15 = vmpackc.low %vm177_vm13, %vm176_vm12  ;;  %v58_v12 = vadd.s32 48, %v14550_v55  ;;  %v59_v13 = vadd.s32 56, %v14550_v55  ;;  %v20442_v14 = vmov 0 }
  0x16   :  { %526 = vmatprep.mubr.bf16.mxu0 %v20021_v1  ;;  %vm14610_vm10 = vmpackc.low %vm88_vm7, %vm87_vm6  ;;  %v20444_v15 = vmov 0  ;;  %v60_v16 = vadd.s32 64, %v14550_v55  ;;  %v61_v17 = vadd.s32 72, %v14550_v55  ;;  %v20446_v18 = vmov 0 }
  0x17   :  { %vm14617_vm11 = vmpackc.low %vm179_vm3, %vm178_vm4  ;;  %vm89_vm12 = vcmp.eq.s32.totalorder %v58_v12, %v14559_v59  ;;  %vm90_vm13 = vcmp.eq.s32.totalorder %v59_v13, %v14559_v59  ;;  %vm180_vm6 = vcmp.eq.s32.totalorder %v58_v12, %v14568_v62  ;;  %vm181_vm7 = vcmp.eq.s32.totalorder %v59_v13, %v14568_v62 }
  0x18   :  { %v20443_v14 = vsel %vm14617_vm11, 4294967295, %v20442_v14  ;;  %vm14635_vm3 = vmpackc.low %vm181_vm7, %vm180_vm6  ;;  %vm91_vm4 = vcmp.eq.s32.totalorder %v60_v16, %v14559_v59  ;;  %v20448_v19 = vmov 0  ;;  %vm182_vm1 = vcmp.eq.s32.totalorder %v60_v16, %v14568_v62 }
  0x19   :  { %v20447_v18 = vsel %vm14635_vm3, 4294967295, %v20446_v18  ;;  %v62_v20 = vadd.s32 80, %v14550_v55  ;;  %v63_v21 = vadd.s32 88, %v14550_v55  ;;  %v20450_v22 = vmov 0 }
  0x1a   :  { %v20452_v23 = vmov 0  ;;  %v65_v25 = vadd.s32 104, %v14550_v55  ;;  %v20456_v28 = vmov 0  ;;  %v66_v29 = vadd.s32 112, %v14550_v55 }
  0x1b   :  { %vm93_vm7 = vcmp.eq.s32.totalorder %v62_v20, %v14559_v59  ;;  %vm184_vm8 = vcmp.eq.s32.totalorder %v62_v20, %v14568_v62  ;;  %v20460_v32 = vmov 0  ;;  %v69_v35 = vadd.s32 136, %v14550_v55 }
  0x1c   :  { %v20466_v40 = vmov 0  ;;  %v72_v43 = vadd.s32 160, %v14550_v55  ;;  %v73_v44 = vadd.s32 168, %v14550_v55  ;;  %v20470_v45 = vmov 0 }
  0x1d   :  { %11154 = vmatmul.mubr.msk.bf16.vlgmr.msra.gmra.mrb[0].mxu0 %vm19972_vm2, %v365_v10  ;;  %v20438_v10 = vmov 0  ;;  %v20473_v46 = vmov 0  ;;  %v74_v47 = vadd.s32 176, %v14550_v55  ;;  %v20482_v54 = vmov 0 }
  0x1e   :  { %536 = vmatprep.mubr.bf16.mxu0 %v20021_v1  ;;  %582 = vmatpush1.bf16.msra.mxu0 %v13924_v30  ;;  %v20439_v10 = vsel %vm14599_vm15, 4294967295, %v20438_v10  ;;  %v67_v30 = vadd.s32 120, %v14550_v55 }
  0x1f   :  { %11160 = vmatprep.subr.msk.bf16.mxu0 %vm19974_vm0, %v13925_v31  ;;  %v20458_v31 = vmov 0 }
  0x22   :  { %584 = vmatpush1.bf16.msra.mxu0 %v14494_v33 }
  0x23   :  { %676 = vmatprep.subr.bf16.mxu0 %v13928_v34  ;;  %v68_v34 = vadd.s32 128, %v14550_v55 }
  0x25   :  { %11155 = vmatmul.mubr.msk.bf16.gmra.mrb[8].mxu0 %vm19972_vm2, %v14447_v11  ;;  %v20440_v11 = vmov 0 }
  0x26   :  { %613 = vmatprep.mubr.bf16.mxu0 %v20021_v1  ;;  %v20441_v11 = vsel %vm14610_vm10, 4294967295, %v20440_v11 }
  0x2d   :  { %11161 = vmatmul.mubr.msk.bf16.vlgmr.msra.gmra.mrb[0].mxu0 %vm19972_vm2, %v550_v37  ;;  %v20464_v37 = vmov 0 }
  0x2e   :  { %623 = vmatprep.mubr.bf16.mxu0 %v20021_v1  ;;  %677 = vmatpush1.bf16.msra.mxu0 %v13930_v38  ;;  %v70_v38 = vadd.s32 144, %v14550_v55 }
  0x2f   :  { %11167 = vmatprep.subr.msk.bf16.mxu0 %vm19974_vm0, %v13931_v39  ;;  %v71_v39 = vadd.s32 152, %v14550_v55 }
  0x32   :  { %679 = vmatpush1.bf16.msra.mxu0 %v14518_v41 }
  0x33   :  { %767 = vmatprep.subr.bf16.mxu0 %v13934_v42  ;;  %v20468_v42 = vmov 0 }
  0x35   :  { %11162 = vmatmul.mubr.msk.bf16.gmra.mrb[12].mxu0 %vm19972_vm2, %v549_v36  ;;  %v20462_v36 = vmov 0 }
  0x36   :  { %708 = vmatprep.mubr.bf16.mxu0 %v20021_v1 }
  0x3d   :  { %11168 = vmatmul.mubr.msk.bf16.vlgmr.msra.gmra.mrb[0].mxu0 %vm19972_vm2, %v645_v49  ;;  %v20476_v49 = vmov 0 }
  0x3e   :  { %718 = vmatprep.mubr.bf16.mxu0 %v20021_v1  ;;  %768 = vmatpush1.bf16.msra.mxu0 %v13936_v50  ;;  %v20479_v50 = vmov 0 }
  0x3f   :  { %11174 = vmatprep.subr.msk.bf16.mxu0 %vm19974_vm0, %v13937_v51  ;;  %vm183_vm0 = vcmp.eq.s32.totalorder %v61_v17, %v14568_v62 }
  0x40   :  { %vm14653_vm6 = vmpackc.low %vm183_vm0, %vm182_vm1 }
  0x41   :  { %v20451_v22 = vsel %vm14653_vm6, 4294967295, %v20450_v22 }
  0x42   :  { %770 = vmatpush1.bf16.msra.mxu0 %v14540_v53 }
  0x43   :  { %12503 = vmatprep.subr.bf16.mxu0 %v20019_v4 }
  0x45   :  { %11169 = vmatmul.mubr.msk.bf16.gmra.mrb[16].mxu0 %vm19972_vm2, %v644_v48  ;;  %v75_v48 = vadd.s32 184, %v14550_v55 }
  0x46   :  { %799 = vmatprep.mubr.bf16.mxu0 %v20021_v1 }
  0x4d   :  { %11175 = vmatmul.mubr.msk.bf16.vlgmr.msra.gmra.mrb[0].mxu0 %vm19972_vm2, %v736_v26  ;;  %v20454_v26 = vmov 0 }
  0x4e   :  { %809 = vmatprep.mubr.bf16.mxu0 %v20021_v1  ;;  %12505 = vmatpush1.bf16.msk.msra.mxu0 %vm14578_vm9, %v20017_v5  ;;  %vm191_vm9 = vcmp.eq.s32.totalorder %v69_v35, %v14568_v62 }
  0x4f   :  { %12506 = vmatprep.subr.bf16.mxu0 %v20019_v4 }
  0x52   :  { %12508 = vmatpush1.bf16.msk.msra.mxu0 %vm14599_vm15, %v20017_v5  ;;  %vm189_vm15 = vcmp.eq.s32.totalorder %v67_v30, %v14568_v62 }
  0x53   :  { %12509 = vmatprep.subr.bf16.mxu0 %v20019_v4 }
  0x55   :  { %11176 = vmatmul.mubr.msk.bf16.gmra.mrb[20].mxu0 %vm19972_vm2, %v735_v24  ;;  %vm14623_vm2 = vmpackc.low %vm90_vm13, %vm89_vm12  ;;  %vm92_vm12 = vcmp.eq.s32.totalorder %v61_v17, %v14559_v59  ;;  %v64_v24 = vadd.s32 96, %v14550_v55 }
  0x56   :  { %v20445_v15 = vsel %vm14623_vm2, 4294967295, %v20444_v15  ;;  %12511 = vmatpush1.bf16.msk.msra.mxu0 %vm14617_vm11, %v20017_v5  ;;  %vm14641_vm13 = vmpackc.low %vm92_vm12, %vm91_vm4  ;;  %vm94_vm4 = vcmp.eq.s32.totalorder %v63_v21, %v14559_v59  ;;  %vm187_vm11 = vcmp.eq.s32.totalorder %v65_v25, %v14568_v62 }
  0x57   :  { %12512 = vmatprep.subr.bf16.mxu0 %v20019_v4  ;;  %v20449_v19 = vsel %vm14641_vm13, 4294967295, %v20448_v19  ;;  %vm14659_vm12 = vmpackc.low %vm94_vm4, %vm93_vm7  ;;  %vm95_vm1 = vcmp.eq.s32.totalorder %v64_v24, %v14559_v59  ;;  %vm96_vm7 = vcmp.eq.s32.totalorder %v65_v25, %v14559_v59 }
  0x58   :  { %v20453_v23 = vsel %vm14659_vm12, 4294967295, %v20452_v23  ;;  %vm14677_vm4 = vmpackc.low %vm96_vm7, %vm95_vm1  ;;  %vm98_vm1 = vcmp.eq.s32.totalorder %v67_v30, %v14559_v59 }
  0x59   :  { %v20457_v28 = vsel %vm14677_vm4, 4294967295, %v20456_v28 }
  0x5a   :  { %12514 = vmatpush1.bf16.msk.msra.mxu0 %vm14635_vm3, %v20017_v5  ;;  %vm185_vm3 = vcmp.eq.s32.totalorder %v63_v21, %v14568_v62 }
  0x5b   :  { %12515 = vmatprep.subr.bf16.mxu0 %v20019_v4  ;;  %vm14671_vm0 = vmpackc.low %vm185_vm3, %vm184_vm8  ;;  %vm97_vm3 = vcmp.eq.s32.totalorder %v66_v29, %v14559_v59 }
  0x5c   :  { %v20455_v26 = vsel %vm14671_vm0, 4294967295, %v20454_v26  ;;  %vm14695_vm7 = vmpackc.low %vm98_vm1, %vm97_vm3  ;;  %vm100_vm3 = vcmp.eq.s32.totalorder %v69_v35, %v14559_v59  ;;  %v20014_v35 = vsub.s32 0, %v14550_v55 }
  0x5d   :  { %v20461_v32 = vsel %vm14695_vm7, 4294967295, %v20460_v32 }
  0x5e   :  { %12517 = vmatpush1.bf16.msk.msra.mxu0 %vm14653_vm6, %v20017_v5  ;;  %vm186_vm6 = vcmp.eq.s32.totalorder %v64_v24, %v14568_v62 }
  0x5f   :  { %12518 = vmatprep.subr.bf16.mxu0 %v20019_v4  ;;  %vm14689_vm8 = vmpackc.low %vm187_vm11, %vm186_vm6  ;;  %vm99_vm6 = vcmp.eq.s32.totalorder %v68_v34, %v14559_v59 }
  0x60   :  { %v20459_v31 = vsel %vm14689_vm8, 4294967295, %v20458_v31  ;;  %vm14713_vm1 = vmpackc.low %vm100_vm3, %vm99_vm6  ;;  %vm102_vm6 = vcmp.eq.s32.totalorder %v71_v39, %v14559_v59 }
  0x61   :  { %v20465_v37 = vsel %vm14713_vm1, 4294967295, %v20464_v37  ;;  %vm193_vm1 = vcmp.eq.s32.totalorder %v71_v39, %v14568_v62 }
  0x62   :  { %12520 = vmatpush1.bf16.msk.msra.mxu0 %vm14671_vm0, %v20017_v5  ;;  %vm188_vm0 = vcmp.eq.s32.totalorder %v66_v29, %v14568_v62 }
  0x63   :  { %12521 = vmatprep.subr.bf16.mxu0 %v20019_v4  ;;  %vm14707_vm11 = vmpackc.low %vm189_vm15, %vm188_vm0  ;;  %vm101_vm0 = vcmp.eq.s32.totalorder %v70_v38, %v14559_v59 }
  0x64   :  { %v20463_v36 = vsel %vm14707_vm11, 4294967295, %v20462_v36  ;;  %vm14731_vm3 = vmpackc.low %vm102_vm6, %vm101_vm0  ;;  %vm104_vm0 = vcmp.eq.s32.totalorder %v73_v44, %v14559_v59 }
  0x65   :  { %v20469_v42 = vsel %vm14731_vm3, 4294967295, %v20468_v42  ;;  %vm195_vm3 = vcmp.eq.s32.totalorder %v73_v44, %v14568_v62  ;;  %v20013_v44 = vsub.s32 1, %v14550_v55 }
  0x66   :  { %12523 = vmatpush1.bf16.msk.msra.mxu0 %vm14689_vm8, %v20017_v5  ;;  %vm190_vm8 = vcmp.eq.s32.totalorder %v68_v34, %v14568_v62 }
  0x67   :  { %12524 = vmatprep.subr.bf16.mxu0 %v20019_v4  ;;  %vm14725_vm15 = vmpackc.low %vm191_vm9, %vm190_vm8  ;;  %vm103_vm8 = vcmp.eq.s32.totalorder %v72_v43, %v14559_v59 }
  0x68   :  { %v20467_v40 = vsel %vm14725_vm15, 4294967295, %v20466_v40  ;;  %vm14749_vm6 = vmpackc.low %vm104_vm0, %vm103_vm8  ;;  %vm106_vm8 = vcmp.eq.s32.totalorder %v75_v48, %v14559_v59 }
  0x69   :  { %v20474_v46 = vsel %vm14749_vm6, 4294967295, %v20473_v46  ;;  %vm197_vm6 = vcmp.eq.s32.totalorder %v75_v48, %v14568_v62 }
  0x6a   :  { %12526 = vmatpush1.bf16.msk.msra.mxu0 %vm14707_vm11, %v20017_v5  ;;  %vm192_vm11 = vcmp.eq.s32.totalorder %v70_v38, %v14568_v62  ;;  %20475 = vst [vmem:[#allocation6_spill] sm:$0xff] %v20474_v46 }
  0x6b   :  { %12527 = vmatprep.subr.bf16.mxu0 %v20019_v4  ;;  %vm14743_vm9 = vmpackc.low %vm193_vm1, %vm192_vm11  ;;  %vm105_vm1 = vcmp.eq.s32.totalorder %v74_v47, %v14559_v59 }
  0x6c   :  { %v20471_v45 = vsel %vm14743_vm9, 4294967295, %v20470_v45  ;;  %vm14767_vm0 = vmpackc.low %vm106_vm8, %vm105_vm1  ;;  %vm83_vm1 = vcmp.eq.s32.totalorder %v14550_v55, %v14559_v59  ;;  %vm84_vm8 = vcmp.eq.s32.totalorder %v14555_v57, %v14559_v59 }
  0x6d   :  { %20472 = vst [vmem:[#allocation5_spill] sm:$0xff] %v20471_v45  ;;  %v20480_v50 = vsel %vm14767_vm0, 4294967295, %v20479_v50 }
  0x6e   :  { %12529 = vmatpush1.bf16.msk.msra.mxu0 %vm14725_vm15, %v20017_v5  ;;  %vm194_vm15 = vcmp.eq.s32.totalorder %v72_v43, %v14568_v62  ;;  %20481 = vst [vmem:[#allocation8_spill] sm:$0xff] %v20480_v50  ;;  %v359_v43 = vld [vmem:[%s19962_s2] sm:$0x3] }
  0x6f   :  { %12530 = vmatprep.subr.bf16.mxu0 %v20019_v4  ;;  %vm14761_vm11 = vmpackc.low %vm195_vm3, %vm194_vm15 }
  0x70   :  { %v20477_v49 = vsel %vm14761_vm11, 4294967295, %v20476_v49 }
  0x71   :  { %20478 = vst [vmem:[#allocation7_spill] sm:$0xff] %v20477_v49 }
  0x72   :  { %12532 = vmatpush1.bf16.msk.msra.mxu0 %vm14743_vm9, %v20017_v5  ;;  %vm196_vm9 = vcmp.eq.s32.totalorder %v74_v47, %v14568_v62 }
  0x73   :  { %12533 = vmatprep.subr.bf16.mxu0 %v20019_v4  ;;  %vm14777_vm15 = vmpackc.low %vm197_vm6, %vm196_vm9  ;;  %vm19998_vm9 = vcmask 195584  }
  0x74   :  { %v20483_v54 = vsel %vm14777_vm15, 4294967295, %v20482_v54 }
  0x75   :  { %20484 = vst [vmem:[#allocation9_spill] sm:$0xff] %v20483_v54 }
  0x76   :  { %12535 = vmatpush1.bf16.msk.msra.mxu0 %vm14761_vm11, %v20017_v5 }
  0x77   :  { %12536 = vmatprep.subr.bf16.mxu0 %v20019_v4 }
  0x7a   :  { %12538 = vmatpush1.bf16.msk.msra.mxu0 %vm14777_vm15, %v20017_v5 }
  0x7b   :  { %12539 = vmatprep.subr.bf16.mxu0 %v20019_v4 }
  0xe8   :  { %v459_v51 = vpop.f32.mrb[4].mxu0 }
  0xe9   :  { %v461_v52 = vpop.f32.mrb[5].mxu0 }
  0xea   :  { %v463_v60 = vpop.f32.mrb[6].mxu0 }
  0xeb   :  { %v464_v2 = vpop.f32.mrb[7].mxu0 }
  0xf8   :  { %v538_v3 = vpop.f32.mrb[8].mxu0 }
  0xf9   :  { %v539_v7 = vadd.f32 %v538_v3, %v459_v51  ;;  %v540_v9 = vpop.f32.mrb[9].mxu0  ;;  %v14792_v51 = vrot.slane %v359_v43, %v20014_v35  ;;  %v15086_v35 = vld [vmem:[%s19963_s3 + $0xc8] ss:$8 sps:$4 sm:$0xff]  }
  0xfa   :  { %v541_v12 = vadd.f32 %v540_v9, %v461_v52  ;;  %v542_v13 = vpop.f32.mrb[10].mxu0  ;;  %v14796_v52 = vrot.slane %v359_v43, %v20013_v44  ;;  %v15081_v44 = vld [vmem:[%s19963_s3 + $0x154] ss:$8 sps:$4 sm:$0xff]   ;;  %20529 = vst [vmem:[#allocation36_spill] sm:$0xff] %v15086_v35 }
  0xfb   :  { %v543_v16 = vpop.f32.mrb[11].mxu0  ;;  %20485 = vst [vmem:[#allocation10_spill] sm:$0xff] %v14792_v51  ;;  %20528 = vst [vmem:[#allocation35_spill] sm:$0xff] %v15081_v44 }
  0xfc   :  { %20486 = vst [vmem:[#allocation11_spill] sm:$0xff] %v14796_v52 }
 0x108   :  { %v625_v17 = vpop.f32.mrb[12].mxu0 }
 0x109   :  { %v636_v20 = vadd.f32 %v625_v17, %v539_v7  ;;  %v627_v21 = vpop.f32.mrb[13].mxu0 }
 0x10a   :  { %v637_v24 = vadd.f32 %v627_v21, %v541_v12  ;;  %v629_v25 = vpop.f32.mrb[14].mxu0 }
 0x10b   :  { %v630_v29 = vpop.f32.mrb[15].mxu0 }
 0x118   :  { %v720_v30 = vpop.f32.mrb[16].mxu0 }
 0x119   :  { %v722_v34 = vpop.f32.mrb[17].mxu0  ;;  %v731_v38 = vadd.f32 %v720_v30, %v636_v20 }
 0x11a   :  { %v724_v39 = vpop.f32.mrb[18].mxu0  ;;  %v732_v47 = vadd.f32 %v722_v34, %v637_v24  ;;  %v38_v34 = vmul.u32 2, %v14550_v55 }
 0x11b   :  { %v725_v48 = vpop.f32.mrb[19].mxu0 }
 0x11c   :  { %vm40_vm3 = vcmp.eq.s32.totalorder %v14552_v56, %v38_v34 }
 0x120   :  { %v801_v60 = vpop.f32.mrb[0].mxu0 }
 0x121   :  { %v835_v2 = vadd.f32 %v14792_v51, %v801_v60  ;;  %v803_v3 = vpop.f32.mrb[1].mxu0 }
 0x122   :  { %v836_v7 = vadd.f32 %v14796_v52, %v803_v3  ;;  %v805_v9 = vpop.f32.mrb[2].mxu0 }
 0x123   :  { %v837_v12 = vadd.f32 %v14792_v51, %v805_v9  ;;  %v807_v13 = vpop.f32.mrb[3].mxu0  ;;  %v841_v17 = vmax.f32 %v835_v2, 0.0 }
 0x124   :  { %v838_v16 = vadd.f32 %v14796_v52, %v807_v13  ;;  %v842_v21 = vmax.f32 %v836_v7, 0.0 }
 0x125   :  { %v843_v20 = vmax.f32 %v837_v12, 0.0  ;;  %v14807_v12 = vsel %vm40_vm3, 1.0, %v20015_v58  ;;  %vm20490_vm3 = vcmp.eq.s32.totalorder %v14552_v56, %v14574_v63  ;;  %v77_v63 = vadd.s32 200, %v14550_v55 }
 0x126   :  { %v844_v24 = vmax.f32 %v838_v16, 0.0  ;;  %v14840_v57 = vsel %vm20490_vm3, 1.0, %v20015_v58 }
 0x127   :  { %v12452_v25 = vpack.c.bf16 %v843_v20, %v841_v17  ;;  %20491 = vst [vmem:[#allocation13_spill] sm:$0xff] %v14840_v57  ;;  %v20495_v17 = vmov 0  ;;  %v20498_v20 = vmov 0 }
 0x128   :  { %v811_v29 = vpop.f32.mrb[20].mxu0  ;;  %v12450_v30 = vpack.c.bf16 %v844_v24, %v842_v21  ;;  %v78_v21 = vadd.s32 208, %v14550_v55  ;;  %v79_v24 = vadd.s32 216, %v14550_v55 }
 0x129   :  { %v822_v39 = vadd.f32 %v811_v29, %v731_v38  ;;  %v813_v43 = vpop.f32.mrb[21].mxu0  ;;  %v46_v38 = vadd.s32 1, %v38_v34  ;;  %v20504_v29 = vmov 0  ;;  %v81_v34 = vadd.s32 232, %v14550_v55 }
 0x12a   :  { %v823_v48 = vadd.f32 %v813_v43, %v732_v47  ;;  %v815_v60 = vpop.f32.mrb[22].mxu0  ;;  %12451 = vmatprep.subr.bf16.mxu1 %v12450_v30  ;;  %v14815_v47 = vsel %vm14563_vm5, 1.0, %v20015_v58  ;;  %vm14828_vm5 = vmpackc.low %vm84_vm8, %vm83_vm1  ;;  %vm20493_vm1 = vnez %v20469_v42  ;;  %vm20494_vm8 = vnez %v20474_v46 }
 0x12b   :  { %v839_v3 = vadd.f32 %v14792_v51, %v822_v39  ;;  %v816_v9 = vpop.f32.mrb[23].mxu0  ;;  %12453 = vmatpush1.bf16.msra.mxu1 %v12452_v25  ;;  %20487 = vst [vmem:[#allocation12_spill] sm:$0xff] %v14815_v47  ;;  %vm48_vm6 = vcmp.eq.s32.totalorder %v14552_v56, %v46_v38  ;;  %v76_v56 = vadd.s32 192, %v14550_v55  ;;  %v20507_v39 = vmov 0 }
 0x12c   :  { %v840_v13 = vadd.f32 %v14796_v52, %v823_v48  ;;  %v14826_v16 = vsel %vm48_vm6, 1.0, %v20015_v58  ;;  %vm20492_vm6 = vnez %v20465_v37  ;;  %v20510_v43 = vmov 0 }
 0x12d   :  { %v845_v7 = vmax.f32 %v839_v3, 0.0  ;;  %vm107_vm3 = vcmp.eq.s32.totalorder %v76_v56, %v14559_v59  ;;  %vm198_vm15 = vcmp.eq.s32.totalorder %v76_v56, %v14568_v62  ;;  %v13942_v56 = vld [vmem:[%s19963_s3 + $0xf0] ss:$8 sps:$4 sm:$0xff]  }
 0x12e   :  { %v846_v2 = vmax.f32 %v840_v13, 0.0 }
 0x130   :  { %858 = vmatprep.subr.mxu1 %v846_v2 }
 0x131   :  { %859 = vmatpush1.msra.mxu1 %v845_v7 }
 0x132   :  { %11177 = vmatmul.mubr.msk.f32.vlgmr.msra.gmra.mrb[0].mxu1 %vm19998_vm9, %v14807_v12  ;;  %12455 = vmatprep.subr.bf16.mxu1 %v12450_v30  ;;  %v80_v30 = vadd.s32 224, %v14550_v55 }
 0x133   :  { %12457 = vmatpush1.bf16.msra.mxu1 %v12452_v25  ;;  %924 = vmatprep.mubr.f32.mxu1 %v20015_v58  ;;  %v20501_v25 = vmov 0 }
 0x134   :  { %941 = vmatprep.subr.mxu1 %v846_v2 }
 0x136   :  { %11178 = vmatmul.mubr.msk.f32.gmra.mrb[2].mxu1 %vm19998_vm9, %v14815_v47 }
 0x137   :  { %942 = vmatpush1.msra.mxu1 %v845_v7  ;;  %1001 = vmatprep.mubr.f32.mxu1 %v20015_v58 }
 0x138   :  { %12458 = vmatprep.subr.bf16.mxu1 %v20019_v4 }
 0x13a   :  { %11179 = vmatmul.mubr.msk.f32.vlgmr.msra.gmra.mrb[4].mxu1 %vm19998_vm9, %v14826_v16 }
 0x13b   :  { %1007 = vmatprep.mubr.f32.mxu1 %v20015_v58  ;;  %12460 = vmatpush1.bf16.msk.msra.mxu1 %vm14828_vm5, %v20017_v5  ;;  %v15091_v58 = vld [vmem:[%s19963_s3 + $0x150] ss:$8 sps:$4 sm:$0xff]  }
 0x13c   :  { %12461 = vmatprep.subr.bf16.mxu1 %v20019_v4  ;;  %20530 = vst [vmem:[#allocation37_spill] sm:$0xff] %v15091_v58 }
 0x13e   :  { %11180 = vmatmul.mubr.msk.f32.gmra.mrb[6].mxu1 %vm19998_vm9, %v14840_v57  ;;  %vm108_vm9 = vcmp.eq.s32.totalorder %v77_v63, %v14559_v59 }
 0x13f   :  { %12463 = vmatpush1.bf16.msk.msra.mxu1 %vm14593_vm14, %v20017_v5  ;;  %vm14898_vm11 = vmpackc.low %vm108_vm9, %vm107_vm3  ;;  %vm109_vm9 = vcmp.eq.s32.totalorder %v78_v21, %v14559_v59  ;;  %vm110_vm3 = vcmp.eq.s32.totalorder %v79_v24, %v14559_v59 }
 0x140   :  { %12464 = vmatprep.subr.bf16.mxu1 %v20019_v4  ;;  %v20496_v17 = vsel %vm14898_vm11, 4294967295, %v20495_v17 }
 0x141   :  { %20497 = vst [vmem:[#allocation14_spill] sm:$0xff] %v20496_v17 }
 0x143   :  { %12466 = vmatpush1.bf16.msk.msra.mxu1 %vm14610_vm10, %v20017_v5 }
 0x144   :  { %12467 = vmatprep.subr.bf16.mxu1 %v20019_v4 }
 0x147   :  { %12469 = vmatpush1.bf16.msk.msra.mxu1 %vm14623_vm2, %v20017_v5 }
 0x148   :  { %12470 = vmatprep.subr.bf16.mxu1 %v20019_v4 }
 0x14b   :  { %12472 = vmatpush1.bf16.msk.msra.mxu1 %vm14641_vm13, %v20017_v5 }
 0x14c   :  { %12473 = vmatprep.subr.bf16.mxu1 %v20019_v4 }
 0x14f   :  { %12475 = vmatpush1.bf16.msk.msra.mxu1 %vm14659_vm12, %v20017_v5 }
 0x150   :  { %12476 = vmatprep.subr.bf16.mxu1 %v20019_v4 }
 0x153   :  { %12478 = vmatpush1.bf16.msk.msra.mxu1 %vm14677_vm4, %v20017_v5 }
 0x154   :  { %12479 = vmatprep.subr.bf16.mxu1 %v20019_v4 }
 0x157   :  { %12481 = vmatpush1.bf16.msk.msra.mxu1 %vm14695_vm7, %v20017_v5 }
 0x158   :  { %12482 = vmatprep.subr.bf16.mxu1 %v20019_v4 }
 0x15b   :  { %12484 = vmatpush1.bf16.msk.msra.mxu1 %vm20492_vm6, %v20017_v5 }
 0x15c   :  { %12485 = vmatprep.subr.bf16.mxu1 %v20019_v4 }
 0x15f   :  { %12487 = vmatpush1.bf16.msk.msra.mxu1 %vm20493_vm1, %v20017_v5 }
 0x160   :  { %12488 = vmatprep.subr.bf16.mxu1 %v20019_v4 }
 0x163   :  { %12490 = vmatpush1.bf16.msk.msra.mxu1 %vm20494_vm8, %v20017_v5  ;;  %vm199_vm8 = vcmp.eq.s32.totalorder %v77_v63, %v14568_v62  ;;  %v13947_v63 = vld [vmem:[%s19963_s3 + $0x78] ss:$8 sps:$4 sm:$0xff]  }
 0x164   :  { %12491 = vmatprep.subr.bf16.mxu1 %v20019_v4 }
 0x167   :  { %12493 = vmatpush1.bf16.msk.msra.mxu1 %vm14767_vm0, %v20017_v5  ;;  %vm14905_vm0 = vmpackc.low %vm199_vm8, %vm198_vm15  ;;  %vm200_vm15 = vcmp.eq.s32.totalorder %v78_v21, %v14568_v62  ;;  %vm201_vm8 = vcmp.eq.s32.totalorder %v79_v24, %v14568_v62  ;;  %v13945_v21 = vld [vmem:[%s19963_s3 + $0x104] ss:$8 sps:$4 sm:$0xff]  }
 0x168   :  { %12494 = vmatprep.subr.bf16.mxu1 %v20019_v4  ;;  %v20499_v20 = vsel %vm14905_vm0, 4294967295, %v20498_v20  ;;  %12541 = vmatpush1.bf16.msk.msra.mxu0 %vm14905_vm0, %v20017_v5  ;;  %vm14927_vm0 = vmpackc.low %vm201_vm8, %vm200_vm15  ;;  %vm202_vm15 = vcmp.eq.s32.totalorder %v80_v30, %v14568_v62  ;;  %vm203_vm8 = vcmp.eq.s32.totalorder %v81_v34, %v14568_v62  ;;  %v13943_v62 = vld [vmem:[%s19963_s3 + $0x7c] ss:$8 sps:$4 sm:$0xff]   ;;  %v13949_v24 = vld [vmem:[%s19963_s3 + $0x8c] ss:$8 sps:$4 sm:$0xff]  }
 0x169   :  { %20500 = vst [vmem:[#allocation15_spill] sm:$0xff] %v20499_v20  ;;  %12542 = vmatprep.subr.bf16.mxu0 %v20019_v4  ;;  %v20505_v29 = vsel %vm14927_vm0, 4294967295, %v20504_v29 }
 0x16a   :  { %20506 = vst [vmem:[#allocation17_spill] sm:$0xff] %v20505_v29 }
 0x16b   :  { %12496 = vmatpush1.bf16.msk.msra.mxu1 %vm14898_vm11, %v20017_v5  ;;  %vm14920_vm11 = vmpackc.low %vm110_vm3, %vm109_vm9  ;;  %vm111_vm9 = vcmp.eq.s32.totalorder %v80_v30, %v14559_v59  ;;  %vm112_vm3 = vcmp.eq.s32.totalorder %v81_v34, %v14559_v59  ;;  %v14959_v59 = vld [vmem:[%s19963_s3 + $0xf4] ss:$8 sps:$4 sm:$0xff]  }
 0x16c   :  { %12497 = vmatprep.subr.bf16.mxu1 %v20019_v4  ;;  %v20502_v25 = vsel %vm14920_vm11, 4294967295, %v20501_v25  ;;  %12544 = vmatpush1.bf16.msk.msra.mxu0 %vm14927_vm0, %v20017_v5  ;;  %vm14949_vm0 = vmpackc.low %vm203_vm8, %vm202_vm15  ;;  %vm20077_vm15 = vcmask 982016   ;;  %vm20574_vm8 = vnez %v20435_v0 }
 0x16d   :  { %20503 = vst [vmem:[#allocation16_spill] sm:$0xff] %v20502_v25  ;;  %12545 = vmatprep.subr.bf16.mxu0 %v20019_v4  ;;  %v20511_v43 = vsel %vm14949_vm0, 4294967295, %v20510_v43 }
 0x16e   :  { %20512 = vst [vmem:[#allocation19_spill] sm:$0xff] %v20511_v43 }
 0x16f   :  { %12499 = vmatpush1.bf16.msk.msra.mxu1 %vm14920_vm11, %v20017_v5  ;;  %vm14942_vm11 = vmpackc.low %vm112_vm3, %vm111_vm9  ;;  %vm20075_vm9 = vcmask 916480   ;;  %vm20080_vm3 = vcmask 1043456  }
 0x170   :  { %12500 = vmatprep.subr.bf16.mxu1 %v20019_v4  ;;  %v20508_v39 = vsel %vm14942_vm11, 4294967295, %v20507_v39  ;;  %12547 = vmatpush1.bf16.msk.msra.mxu0 %vm14949_vm0, %v20017_v5  ;;  %v15103_v4 = vld [vmem:[%s19963_s3 + $0xdc] ss:$8 sps:$4 sm:$0xff]   ;;  %vm20590_vm0 = vnez %v20455_v26 }
 0x171   :  { %20509 = vst [vmem:[#allocation18_spill] sm:$0xff] %v20508_v39  ;;  %1522 = vmatprep.subr.bf16.mxu0 %v14959_v59  ;;  %20531 = vst [vmem:[#allocation38_spill] sm:$0xff] %v15103_v4 }
 0x173   :  { %12502 = vmatpush1.bf16.msk.msra.mxu1 %vm14942_vm11, %v20017_v5  ;;  %v328_v5 = vld [vmem:[%s19963_s3 + $0x160] sm:$0xff]  ;;  %vm20587_vm11 = vnez %v20451_v22 }
 0x174   :  { %1271 = vmatprep.subr.bf16.mxu1 %v13943_v62 }
 0x205   :  { %v920_v48 = vpop.f32.mrb[0].mxu1 }
 0x206   :  { %v922_v60 = vpop.f32.mrb[1].mxu1 }
 0x209   :  { %v926_v3 = vpop.f32.mrb[2].mxu1 }
 0x20a   :  { %v928_v9 = vpop.f32.mrb[3].mxu1 }
 0x20d   :  { %v1003_v13 = vpop.f32.mrb[4].mxu1 }
 0x20e   :  { %v1014_v2 = vmax.f32 %v920_v48, %v1003_v13  ;;  %v1005_v7 = vpop.f32.mrb[5].mxu1  ;;  %v13953_v13 = vld [vmem:[%s19963_s3 + $0x88] ss:$8 sps:$4 sm:$0xff]  }
 0x20f   :  { %v1015_v38 = vmax.f32 %v922_v60, %v1005_v7  ;;  %v13948_v60 = vld [vmem:[%s19963_s3 + $0x100] ss:$8 sps:$4 sm:$0xff]  }
 0x210   :  { %v15005_v7 = vld [vmem:[%s19963_s3 + $0x98] ss:$8 sps:$4 sm:$0xff]  }
 0x211   :  { %v1009_v30 = vpop.f32.mrb[6].mxu1  ;;  %11211 = vmatprep.mubr.msk.f32.mxu1 %vm20075_vm9, %v1015_v38  ;;  %11243 = vmatprep.mubr.msk.f32.mxu0 %vm20075_vm9, %v1015_v38  ;;  %20516 = vst [vmem:[#allocation23_spill] sm:$0xff] %v15005_v7  ;;  %v15012_v38 = vld [vmem:[%s19963_s3 + $0x124] ss:$8 sps:$4 sm:$0xff]  }
 0x212   :  { %v1016_v34 = vmax.f32 %v926_v3, %v1009_v30  ;;  %v1011_v62 = vpop.f32.mrb[7].mxu1  ;;  %1090 = vmatmul.mubr.f32.vlgmr.msra.gmra.mrb[8].mxu1 %v1014_v2  ;;  %1165 = vmatmul.mubr.f32.vlgmr.msra.gmra.mrb[24].mxu0 %v1014_v2  ;;  %v14988_v3 = vld [vmem:[%s19963_s3 + $0x114] ss:$8 sps:$4 sm:$0xff]   ;;  %v15000_v2 = vld [vmem:[%s19963_s3 + $0x110] ss:$8 sps:$4 sm:$0xff]   ;;  %20517 = vst [vmem:[#allocation24_spill] sm:$0xff] %v15012_v38 }
 0x213   :  { %v1017_v48 = vmax.f32 %v928_v9, %v1011_v62  ;;  %1523 = vmatpush1.bf16.msra.mxu0 %v13942_v56  ;;  %1272 = vmatpush1.bf16.msra.mxu1 %v13947_v63  ;;  %20513 = vst [vmem:[#allocation20_spill] sm:$0xff] %v14988_v3  ;;  %v14993_v9 = vld [vmem:[%s19963_s3 + $0x9c] ss:$8 sps:$4 sm:$0xff]   ;;  %20515 = vst [vmem:[#allocation22_spill] sm:$0xff] %v15000_v2  ;;  %v15017_v56 = vld [vmem:[%s19963_s3 + $0xac] ss:$8 sps:$4 sm:$0xff]  }
 0x214   :  { %1524 = vmatprep.subr.bf16.mxu0 %v13945_v21  ;;  %1273 = vmatprep.subr.bf16.mxu1 %v13949_v24  ;;  %20514 = vst [vmem:[#allocation21_spill] sm:$0xff] %v14993_v9  ;;  %20518 = vst [vmem:[#allocation25_spill] sm:$0xff] %v15017_v56  ;;  %v15026_v63 = vld [vmem:[%s19963_s3 + $0x120] ss:$8 sps:$4 sm:$0xff]   ;;  %v15038_v24 = vld [vmem:[%s19963_s3 + $0x134] ss:$8 sps:$4 sm:$0xff]  }
 0x215   :  { %11212 = vmatprep.mubr.msk.f32.mxu1 %vm20075_vm9, %v1017_v48  ;;  %11244 = vmatprep.mubr.msk.f32.mxu0 %vm20075_vm9, %v1017_v48  ;;  %20519 = vst [vmem:[#allocation26_spill] sm:$0xff] %v15026_v63  ;;  %v15031_v21 = vld [vmem:[%s19963_s3 + $0xa8] ss:$8 sps:$4 sm:$0xff]   ;;  %20521 = vst [vmem:[#allocation28_spill] sm:$0xff] %v15038_v24  ;;  %v15043_v30 = vld [vmem:[%s19963_s3 + $0xbc] ss:$8 sps:$4 sm:$0xff]   ;;  %vm20578_vm9 = vnez %v20439_v10 }
 0x216   :  { %1095 = vmatmul.mubr.f32.gmra.mrb[10].mxu1 %v1016_v34  ;;  %1170 = vmatmul.mubr.f32.gmra.mrb[26].mxu0 %v1016_v34  ;;  %20520 = vst [vmem:[#allocation27_spill] sm:$0xff] %v15031_v21  ;;  %20522 = vst [vmem:[#allocation29_spill] sm:$0xff] %v15043_v30  ;;  %v15050_v34 = vld [vmem:[%s19963_s3 + $0x130] ss:$8 sps:$4 sm:$0xff]   ;;  %v15062_v48 = vld [vmem:[%s19963_s3 + $0x144] ss:$8 sps:$4 sm:$0xff]  }
 0x217   :  { %1525 = vmatpush1.bf16.msra.mxu0 %v13948_v60  ;;  %1274 = vmatpush1.bf16.msra.mxu1 %v13953_v13  ;;  %20523 = vst [vmem:[#allocation30_spill] sm:$0xff] %v15050_v34  ;;  %v15055_v62 = vld [vmem:[%s19963_s3 + $0xb8] ss:$8 sps:$4 sm:$0xff]   ;;  %20525 = vst [vmem:[#allocation32_spill] sm:$0xff] %v15062_v48  ;;  %v15076_v13 = vld [vmem:[%s19963_s3 + $0xcc] ss:$8 sps:$4 sm:$0xff]  }
 0x218   :  { %1526 = vmatprep.subr.bf16.mxu0 %v14988_v3  ;;  %1275 = vmatprep.subr.bf16.mxu1 %v14993_v9  ;;  %20524 = vst [vmem:[#allocation31_spill] sm:$0xff] %v15055_v62  ;;  %v15069_v60 = vld [vmem:[%s19963_s3 + $0x140] ss:$8 sps:$4 sm:$0xff]   ;;  %20527 = vst [vmem:[#allocation34_spill] sm:$0xff] %v15076_v13 }
 0x219   :  { %1554 = vmatprep.mubr.bf16.mxu0 %v20021_v1  ;;  %1303 = vmatprep.mubr.bf16.mxu1 %v20021_v1  ;;  %20526 = vst [vmem:[#allocation33_spill] sm:$0xff] %v15069_v60  ;;  %v15105_v1 = vcombine.high %v328_v5, %v328_v5 }
 0x21b   :  { %1527 = vmatpush1.bf16.msra.mxu0 %v15000_v2  ;;  %1276 = vmatpush1.bf16.msra.mxu1 %v15005_v7  ;;  %20532 = vst [vmem:[#allocation39_spill] sm:$0xff] %v15105_v1 }
 0x21c   :  { %1528 = vmatprep.subr.bf16.mxu0 %v15012_v38  ;;  %1277 = vmatprep.subr.bf16.mxu1 %v15017_v56 }
 0x21f   :  { %1529 = vmatpush1.bf16.msra.mxu0 %v15026_v63  ;;  %1278 = vmatpush1.bf16.msra.mxu1 %v15031_v21 }
 0x220   :  { %1530 = vmatprep.subr.bf16.mxu0 %v15038_v24  ;;  %1279 = vmatprep.subr.bf16.mxu1 %v15043_v30 }
 0x223   :  { %1531 = vmatpush1.bf16.msra.mxu0 %v15050_v34  ;;  %1280 = vmatpush1.bf16.msra.mxu1 %v15055_v62 }
 0x224   :  { %1532 = vmatprep.subr.bf16.mxu0 %v15062_v48  ;;  %1281 = vmatprep.subr.bf16.mxu1 %v15076_v13 }
 0x227   :  { %1533 = vmatpush1.bf16.msra.mxu0 %v15069_v60  ;;  %1282 = vmatpush1.bf16.msra.mxu1 %v15086_v35  ;;  %v11295_v60 = vcombine.low %v328_v5, %v328_v5  ;;  %v313_v5 = vld [vmem:[%s19963_s3 + $0xe8] sm:$0xff] }
 0x228   :  { %1534 = vmatprep.subr.bf16.mxu0 %v15081_v44  ;;  %v15110_v44 = vld [vmem:[%s19963_s3 + $0xd8] ss:$8 sps:$4 sm:$0xff]   ;;  %1283 = vmatprep.subr.bf16.mxu1 %v15103_v4  ;;  %v15123_v35 = vcombine.high %v313_v5, %v313_v5  ;;  %v15128_v4 = vld [vmem:[%s19963_s3 + $0x1e4] ss:$8 sps:$4 sm:$0xff]   ;;  %v11259_v13 = vcombine.low %v313_v5, %v313_v5 }
 0x229   :  { %20533 = vst [vmem:[#allocation40_spill] sm:$0xff] %v15110_v44  ;;  %20536 = vst [vmem:[#allocation43_spill] sm:$0xff] %v15128_v4 }
 0x22a   :  { %20535 = vst [vmem:[#allocation42_spill] sm:$0xff] %v15123_v35 }
 0x22b   :  { %1535 = vmatpush1.bf16.msra.mxu0 %v15091_v58  ;;  %v15116_v58 = vsel %vm20080_vm3, %v11295_v60, 0  ;;  %1284 = vmatpush1.bf16.msra.mxu1 %v15110_v44  ;;  %v15134_v60 = vsel %vm20080_vm3, %v11259_v13, 0 }
 0x22c   :  { %11297 = vmatprep.subr.msk.bf16.mxu0 %vm20080_vm3, %v15105_v1  ;;  %20534 = vst [vmem:[#allocation41_spill] sm:$0xff] %v15116_v58  ;;  %11261 = vmatprep.subr.msk.bf16.mxu1 %vm20080_vm3, %v15123_v35  ;;  %20537 = vst [vmem:[#allocation44_spill] sm:$0xff] %v15134_v60 }
 0x22f   :  { %1537 = vmatpush1.bf16.msra.mxu0 %v15116_v58  ;;  %1286 = vmatpush1.bf16.msra.mxu1 %v15134_v60  ;;  %v15140_v58 = vld [vmem:[%s19963_s3 + $0x4] ss:$8 sps:$4 sm:$0xff]   ;;  %v15148_v60 = vld [vmem:[%s19963_s3 + $0x1e0] ss:$8 sps:$4 sm:$0xff]  }
 0x230   :  { %1780 = vmatprep.subr.bf16.mxu0 %v15128_v4  ;;  %20538 = vst [vmem:[#allocation45_spill] sm:$0xff] %v15140_v58  ;;  %1395 = vmatprep.subr.bf16.mxu1 %v15140_v58  ;;  %20539 = vst [vmem:[#allocation46_spill] sm:$0xff] %v15148_v60 }
 0x2e5   :  { %v1091_v1 = vpop.f32.mrb[8].mxu1  ;;  %v1166_v44 = vpop.f32.mrb[24].mxu0 }
 0x2e6   :  { %v1175_v5 = vmax.f32 %v1091_v1, %v1166_v44  ;;  %v1093_v48 = vpop.f32.mrb[9].mxu1  ;;  %v1168_v62 = vpop.f32.mrb[25].mxu0 }
 0x2e7   :  { %v15172_v62 = vld [vmem:[%s19963_s3 + $0x1f0] ss:$8 sps:$4 sm:$0xff]   ;;  %v20543_v48 = vmov 0  }
 0x2e8   :  { %20542 = vst [vmem:[#allocation49_spill] sm:$0xff] %v15172_v62 }
 0x2e9   :  { %v1096_v35 = vpop.f32.mrb[10].mxu1  ;;  %v1171_v34 = vpop.f32.mrb[26].mxu0 }
 0x2ea   :  { %v1176_v4 = vmax.f32 %v1096_v35, %v1171_v34  ;;  %v1098_v30 = vpop.f32.mrb[11].mxu1  ;;  %v1173_v13 = vpop.f32.mrb[27].mxu0  ;;  %v15156_v35 = vld [vmem:[%s19963_s3 + $0x1f4] ss:$8 sps:$4 sm:$0xff]   ;;  %v15167_v34 = vld [vmem:[%s19963_s3] ss:$8 sps:$4 sm:$0xff]  }
 0x2eb   :  { %20540 = vst [vmem:[#allocation47_spill] sm:$0xff] %v15156_v35  ;;  %20541 = vst [vmem:[#allocation48_spill] sm:$0xff] %v15167_v34  ;;  %v15184_v13 = vld [vmem:[%s19963_s3 + $0x204] ss:$8 sps:$4 sm:$0xff]  }
 0x2ec   :  { %v15143_v24 = vpack.c.bf16 %v1176_v4, %v1175_v5  ;;  %20545 = vst [vmem:[#allocation51_spill] sm:$0xff] %v15184_v13 }
 0x2ee   :  { %v1179_v58 = vshrl.u32 %v15143_v24, 16  ;;  %v1181_v21 = vshll.u32 %v15143_v24, 16  ;;  %v1437_v1 = vrot.slane %v15143_v24, 1 }
 0x2f0   :  { %v1183_v44 = vrot.slane %v1181_v21, 1  ;;  %11298 = vmatmul.mubr.msk.bf16.vlgmr.msra.gmra.mrb[28].mxu0 %vm20077_vm15, %v1437_v1  ;;  %v15159_v4 = vrot.slane %v1179_v58, 1  ;;  %v15161_v30 = vrot.slane %v1181_v21, 2  ;;  %v15179_v21 = vld [vmem:[%s19963_s3 + $0x14] ss:$8 sps:$4 sm:$0xff]  }
 0x2f1   :  { %1781 = vmatpush1.bf16.msra.mxu0 %v15148_v60  ;;  %1812 = vmatprep.mubr.bf16.mxu0 %v20543_v48  ;;  %20544 = vst [vmem:[#allocation50_spill] sm:$0xff] %v15179_v21  ;;  %v15211_v1 = vld [vmem:[%s19963_s3 + $0x214] ss:$8 sps:$4 sm:$0xff]  }
 0x2f2   :  { %v1184_v5 = vor.u32 %v1183_v44, %v1179_v58  ;;  %1782 = vmatprep.subr.bf16.mxu0 %v15156_v35  ;;  %v15194_v58 = vld [vmem:[%s19963_s3 + $0x10] ss:$8 sps:$4 sm:$0xff]   ;;  %v15199_v44 = vld [vmem:[%s19963_s3 + $0x200] ss:$8 sps:$4 sm:$0xff]   ;;  %20549 = vst [vmem:[#allocation55_spill] sm:$0xff] %v15211_v1 }
 0x2f3   :  { %20546 = vst [vmem:[#allocation52_spill] sm:$0xff] %v15194_v58  ;;  %20547 = vst [vmem:[#allocation53_spill] sm:$0xff] %v15199_v44  ;;  %v298_v35 = vld [vmem:[%s19963_s3 + $0x70] sm:$0xff] }
 0x2f4   :  { %11262 = vmatmul.mubr.msk.bf16.vlgmr.msra.gmra.mrb[12].mxu1 %vm20077_vm15, %v1184_v5  ;;  %v15206_v5 = vld [vmem:[%s19963_s3 + $0x24] ss:$8 sps:$4 sm:$0xff]   ;;  %v11277_v60 = vcombine.low %v298_v35, %v298_v35 }
 0x2f5   :  { %1396 = vmatpush1.bf16.msra.mxu1 %v15167_v34  ;;  %1783 = vmatpush1.bf16.msra.mxu0 %v15172_v62  ;;  %20548 = vst [vmem:[#allocation54_spill] sm:$0xff] %v15206_v5  ;;  %v358_v62 = vld [vmem:[%s19963_s3 + $0x250] sm:$0xff] }
 0x2f6   :  { %1397 = vmatprep.subr.bf16.mxu1 %v15179_v21  ;;  %1784 = vmatprep.subr.bf16.mxu0 %v15184_v13  ;;  %v15219_v13 = vld [vmem:[%s19963_s3 + $0x20] ss:$8 sps:$4 sm:$0xff]   ;;  %v15224_v21 = vld [vmem:[%s19963_s3 + $0x210] ss:$8 sps:$4 sm:$0xff]   ;;  %v11331_v34 = vcombine.low %v358_v62, %v358_v62 }
 0x2f7   :  { %1427 = vmatprep.mubr.bf16.mxu1 %v20543_v48  ;;  %20550 = vst [vmem:[#allocation56_spill] sm:$0xff] %v15219_v13  ;;  %20551 = vst [vmem:[#allocation57_spill] sm:$0xff] %v15224_v21 }
 0x2f9   :  { %1398 = vmatpush1.bf16.msra.mxu1 %v15194_v58  ;;  %1785 = vmatpush1.bf16.msra.mxu0 %v15199_v44  ;;  %v15231_v58 = vld [vmem:[%s19963_s3 + $0x34] ss:$8 sps:$4 sm:$0xff]   ;;  %v15236_v44 = vld [vmem:[%s19963_s3 + $0x224] ss:$8 sps:$4 sm:$0xff]  }
 0x2fa   :  { %1399 = vmatprep.subr.bf16.mxu1 %v15206_v5  ;;  %1786 = vmatprep.subr.bf16.mxu0 %v15211_v1  ;;  %20552 = vst [vmem:[#allocation58_spill] sm:$0xff] %v15231_v58  ;;  %20553 = vst [vmem:[#allocation59_spill] sm:$0xff] %v15236_v44  ;;  %v15243_v5 = vld [vmem:[%s19963_s3 + $0x30] ss:$8 sps:$4 sm:$0xff]   ;;  %v15248_v1 = vld [vmem:[%s19963_s3 + $0x220] ss:$8 sps:$4 sm:$0xff]  }
 0x2fb   :  { %20554 = vst [vmem:[#allocation60_spill] sm:$0xff] %v15243_v5  ;;  %20555 = vst [vmem:[#allocation61_spill] sm:$0xff] %v15248_v1 }
 0x2fd   :  { %1400 = vmatpush1.bf16.msra.mxu1 %v15219_v13  ;;  %1787 = vmatpush1.bf16.msra.mxu0 %v15224_v21  ;;  %v15255_v13 = vld [vmem:[%s19963_s3 + $0x44] ss:$8 sps:$4 sm:$0xff]   ;;  %v15260_v21 = vld [vmem:[%s19963_s3 + $0x234] ss:$8 sps:$4 sm:$0xff]  }
 0x2fe   :  { %1401 = vmatprep.subr.bf16.mxu1 %v15231_v58  ;;  %1788 = vmatprep.subr.bf16.mxu0 %v15236_v44  ;;  %20556 = vst [vmem:[#allocation62_spill] sm:$0xff] %v15255_v13  ;;  %20557 = vst [vmem:[#allocation63_spill] sm:$0xff] %v15260_v21  ;;  %v15267_v58 = vld [vmem:[%s19963_s3 + $0x40] ss:$8 sps:$4 sm:$0xff]   ;;  %v15272_v44 = vld [vmem:[%s19963_s3 + $0x230] ss:$8 sps:$4 sm:$0xff]  }
 0x2ff   :  { %20558 = vst [vmem:[#allocation64_spill] sm:$0xff] %v15267_v58  ;;  %20559 = vst [vmem:[#allocation65_spill] sm:$0xff] %v15272_v44 }
 0x301   :  { %1402 = vmatpush1.bf16.msra.mxu1 %v15243_v5  ;;  %1789 = vmatpush1.bf16.msra.mxu0 %v15248_v1  ;;  %v15279_v5 = vld [vmem:[%s19963_s3 + $0x54] ss:$8 sps:$4 sm:$0xff]   ;;  %v15284_v1 = vld [vmem:[%s19963_s3 + $0x244] ss:$8 sps:$4 sm:$0xff]  }
 0x302   :  { %1403 = vmatprep.subr.bf16.mxu1 %v15255_v13  ;;  %1790 = vmatprep.subr.bf16.mxu0 %v15260_v21  ;;  %20560 = vst [vmem:[#allocation66_spill] sm:$0xff] %v15279_v5  ;;  %20561 = vst [vmem:[#allocation67_spill] sm:$0xff] %v15284_v1  ;;  %v15294_v21 = vld [vmem:[%s19963_s3 + $0x50] ss:$8 sps:$4 sm:$0xff]   ;;  %v15299_v13 = vld [vmem:[%s19963_s3 + $0x240] ss:$8 sps:$4 sm:$0xff]  }
 0x303   :  { %20562 = vst [vmem:[#allocation68_spill] sm:$0xff] %v15294_v21  ;;  %20563 = vst [vmem:[#allocation69_spill] sm:$0xff] %v15299_v13 }
 0x305   :  { %1404 = vmatpush1.bf16.msra.mxu1 %v15267_v58  ;;  %1791 = vmatpush1.bf16.msra.mxu0 %v15272_v44  ;;  %v15306_v58 = vld [vmem:[%s19963_s3 + $0x64] ss:$8 sps:$4 sm:$0xff]   ;;  %v15308_v44 = vcombine.high %v358_v62, %v358_v62  ;;  %v15324_v62 = vsel %vm20080_vm3, %v11331_v34, 0 }
 0x306   :  { %1405 = vmatprep.subr.bf16.mxu1 %v15279_v5  ;;  %1792 = vmatprep.subr.bf16.mxu0 %v15284_v1  ;;  %20564 = vst [vmem:[#allocation70_spill] sm:$0xff] %v15306_v58  ;;  %v15318_v1 = vld [vmem:[%s19963_s3 + $0x60] ss:$8 sps:$4 sm:$0xff]   ;;  %20567 = vst [vmem:[#allocation73_spill] sm:$0xff] %v15324_v62  ;;  %v15326_v5 = vcombine.high %v298_v35, %v298_v35  ;;  %v15339_v34 = vld [vmem:[%s19963_s3 + $0x16c] ss:$8 sps:$4 sm:$0xff]  }
 0x307   :  { %20565 = vst [vmem:[#allocation71_spill] sm:$0xff] %v15308_v44  ;;  %20566 = vst [vmem:[#allocation72_spill] sm:$0xff] %v15318_v1  ;;  %v15347_v35 = vld [vmem:[%s19963_s3 + $0x168] ss:$8 sps:$4 sm:$0xff]  }
 0x308   :  { %20568 = vst [vmem:[#allocation74_spill] sm:$0xff] %v15326_v5  ;;  %20570 = vst [vmem:[#allocation76_spill] sm:$0xff] %v15339_v34 }
 0x309   :  { %1406 = vmatpush1.bf16.msra.mxu1 %v15294_v21  ;;  %1793 = vmatpush1.bf16.msra.mxu0 %v15299_v13  ;;  %v1695_v13 = vrot.slane %v15143_v24, 2  ;;  %20572 = vst [vmem:[#allocation77_spill] sm:$0xff] %v15347_v35 }
 0x30a   :  { %1407 = vmatprep.subr.bf16.mxu1 %v15306_v58  ;;  %11333 = vmatprep.subr.msk.bf16.mxu0 %vm20080_vm3, %v15308_v44  ;;  %v15334_v58 = vsel %vm20080_vm3, %v11277_v60, 0  ;;  %v20571_v44 = vmov 0.0|0.0   ;;  %v15356_v60 = vld [vmem:[%s19963_s3 + $0x17c] ss:$8 sps:$4 sm:$0xff]  }
 0x30b   :  { %20569 = vst [vmem:[#allocation75_spill] sm:$0xff] %v15334_v58  ;;  %20575 = vst [vmem:[#allocation78_spill] sm:$0xff] %v15356_v60 }
 0x30d   :  { %1408 = vmatpush1.bf16.msra.mxu1 %v15318_v1  ;;  %1795 = vmatpush1.bf16.msra.mxu0 %v15324_v62 }
 0x30e   :  { %11279 = vmatprep.subr.msk.bf16.mxu1 %vm20080_vm3, %v15326_v5  ;;  %12578 = vmatprep.subr.bf16.mxu0 %v20571_v44  ;;  %v20573_v5 = vmov 1.0|1.0   ;;  %vm20584_vm3 = vnez %v20447_v18 }
 0x310   :  { %11334 = vmatmul.mubr.msk.bf16.vlgmr.msra.gmra.mrb[32].mxu0 %vm20077_vm15, %v1695_v13  ;;  %v15365_v13 = vld [vmem:[%s19963_s3 + $0x178] ss:$8 sps:$4 sm:$0xff]  }
 0x311   :  { %1410 = vmatpush1.bf16.msra.mxu1 %v15334_v58  ;;  %12580 = vmatpush1.bf16.msk.msra.mxu0 %vm20574_vm8, %v20573_v5  ;;  %20576 = vst [vmem:[#allocation79_spill] sm:$0xff] %v15365_v13 }
 0x312   :  { %1652 = vmatprep.subr.bf16.mxu1 %v15339_v34  ;;  %12581 = vmatprep.subr.bf16.mxu0 %v20571_v44  ;;  %v15372_v34 = vld [vmem:[%s19963_s3 + $0x18c] ss:$8 sps:$4 sm:$0xff]  }
 0x313   :  { %20577 = vst [vmem:[#allocation80_spill] sm:$0xff] %v15372_v34 }
 0x314   :  { %11280 = vmatmul.mubr.msk.bf16.vlgmr.msra.gmra.mrb[16].mxu1 %vm20077_vm15, %v15143_v24  ;;  %v15382_v24 = vld [vmem:[%s19963_s3 + $0x188] ss:$8 sps:$4 sm:$0xff]   ;;  %vm20581_vm15 = vnez %v20443_v14 }
 0x315   :  { %1653 = vmatpush1.bf16.msra.mxu1 %v15347_v35  ;;  %1684 = vmatprep.mubr.bf16.mxu1 %v20543_v48  ;;  %20579 = vst [vmem:[#allocation81_spill] sm:$0xff] %v15382_v24 }
 0x316   :  { %1654 = vmatprep.subr.bf16.mxu1 %v15356_v60  ;;  %12583 = vmatpush1.bf16.msk.msra.mxu0 %vm20578_vm9, %v20573_v5  ;;  %v15388_v60 = vld [vmem:[%s19963_s3 + $0x19c] ss:$8 sps:$4 sm:$0xff]  }
 0x317   :  { %12584 = vmatprep.subr.bf16.mxu0 %v20571_v44  ;;  %20580 = vst [vmem:[#allocation82_spill] sm:$0xff] %v15388_v60 }
 0x319   :  { %1655 = vmatpush1.bf16.msra.mxu1 %v15365_v13  ;;  %v15398_v13 = vld [vmem:[%s19963_s3 + $0x198] ss:$8 sps:$4 sm:$0xff]  }
 0x31a   :  { %1656 = vmatprep.subr.bf16.mxu1 %v15372_v34  ;;  %12586 = vmatpush1.bf16.msk.msra.mxu0 %vm20581_vm15, %v20573_v5  ;;  %20582 = vst [vmem:[#allocation83_spill] sm:$0xff] %v15398_v13  ;;  %v15404_v34 = vld [vmem:[%s19963_s3 + $0x1ac] ss:$8 sps:$4 sm:$0xff]   ;;  %vm20597_vm15 = vnez %v20463_v36 }
 0x31b   :  { %12587 = vmatprep.subr.bf16.mxu0 %v20571_v44  ;;  %20583 = vst [vmem:[#allocation84_spill] sm:$0xff] %v15404_v34 }
 0x31d   :  { %1657 = vmatpush1.bf16.msra.mxu1 %v15382_v24  ;;  %v15414_v24 = vld [vmem:[%s19963_s3 + $0x1a8] ss:$8 sps:$4 sm:$0xff]  }
 0x31e   :  { %1658 = vmatprep.subr.bf16.mxu1 %v15388_v60  ;;  %12589 = vmatpush1.bf16.msk.msra.mxu0 %vm20584_vm3, %v20573_v5  ;;  %20585 = vst [vmem:[#allocation85_spill] sm:$0xff] %v15414_v24  ;;  %v15420_v60 = vld [vmem:[%s19963_s3 + $0x1bc] ss:$8 sps:$4 sm:$0xff]  }
 0x31f   :  { %12590 = vmatprep.subr.bf16.mxu0 %v20571_v44  ;;  %20586 = vst [vmem:[#allocation86_spill] sm:$0xff] %v15420_v60 }
 0x321   :  { %1659 = vmatpush1.bf16.msra.mxu1 %v15398_v13  ;;  %v15430_v13 = vld [vmem:[%s19963_s3 + $0x1b8] ss:$8 sps:$4 sm:$0xff]  }
 0x322   :  { %1660 = vmatprep.subr.bf16.mxu1 %v15404_v34  ;;  %12592 = vmatpush1.bf16.msk.msra.mxu0 %vm20587_vm11, %v20573_v5  ;;  %20588 = vst [vmem:[#allocation87_spill] sm:$0xff] %v15430_v13  ;;  %v15436_v34 = vld [vmem:[%s19963_s3 + $0x1cc] ss:$8 sps:$4 sm:$0xff]   ;;  %vm20594_vm11 = vcmask 1043456  }
 0x323   :  { %12593 = vmatprep.subr.bf16.mxu0 %v20571_v44  ;;  %20589 = vst [vmem:[#allocation88_spill] sm:$0xff] %v15436_v34  ;;  %vm20595_vm3 = vmmov %vm20594_vm11 }
 0x325   :  { %1661 = vmatpush1.bf16.msra.mxu1 %v15414_v24  ;;  %v343_v24 = vld [vmem:[%s19963_s3 + $0x1d8] sm:$0xff] }
 0x326   :  { %1662 = vmatprep.subr.bf16.mxu1 %v15420_v60  ;;  %12595 = vmatpush1.bf16.msk.msra.mxu0 %vm20590_vm0, %v20573_v5  ;;  %v15449_v60 = vld [vmem:[%s19963_s3 + $0x1c8] ss:$8 sps:$4 sm:$0xff]   ;;  %v15452_v35 = vcombine.high %v343_v24, %v343_v24  ;;  %v11313_v58 = vcombine.low %v343_v24, %v343_v24  ;;  %vm20593_vm0 = vnez %v20459_v31  ;;  %v20599_v24 = vor.u32 %v15161_v30, %v15159_v4 }
 0x327   :  { %12596 = vmatprep.subr.bf16.mxu0 %v20571_v44  ;;  %20591 = vst [vmem:[#allocation89_spill] sm:$0xff] %v15449_v60 }
 0x328   :  { %20592 = vst [vmem:[#allocation90_spill] sm:$0xff] %v15452_v35 }
 0x329   :  { %1663 = vmatpush1.bf16.msra.mxu1 %v15430_v13  ;;  %v15462_v13 = vsel %vm20595_vm3, %v11313_v58, 0  ;;  %v20601_v58 = vmov 0.0   ;;  %vm20602_vm3 = vnez %v20471_v45 }
 0x32a   :  { %1664 = vmatprep.subr.bf16.mxu1 %v15436_v34  ;;  %12598 = vmatpush1.bf16.msk.msra.mxu0 %vm20593_vm0, %v20573_v5  ;;  %20596 = vst [vmem:[#allocation91_spill] sm:$0xff] %v15462_v13  ;;  %vm20598_vm0 = vnez %v20467_v40 }
 0x32b   :  { %12599 = vmatprep.subr.bf16.mxu0 %v20571_v44 }
 0x32d   :  { %1665 = vmatpush1.bf16.msra.mxu1 %v15449_v60 }
 0x32e   :  { %11315 = vmatprep.subr.msk.bf16.mxu1 %vm20594_vm11, %v15452_v35  ;;  %12601 = vmatpush1.bf16.msk.msra.mxu0 %vm20597_vm15, %v20573_v5  ;;  %vm20600_vm11 = vcmask 982016  }
 0x32f   :  { %12602 = vmatprep.subr.bf16.mxu0 %v20571_v44 }
 0x331   :  { %1667 = vmatpush1.bf16.msra.mxu1 %v15462_v13 }
 0x332   :  { %12604 = vmatpush1.bf16.msk.msra.mxu0 %vm20598_vm0, %v20573_v5 }
 0x333   :  { %12605 = vmatprep.subr.bf16.mxu0 %v20571_v44 }
 0x334   :  { %11316 = vmatmul.mubr.msk.bf16.vlgmr.msra.gmra.mrb[20].mxu1 %vm20600_vm11, %v20599_v24  ;;  %vm20122_vm11 = vcmask 64512  }
 0x335   :  { %1905 = vmatprep.mubr.f32.mxu1 %v20601_v58 }
 0x336   :  { %12607 = vmatpush1.bf16.msk.msra.mxu0 %vm20602_vm3, %v20573_v5 }
 0x3c3   :  { %v1556_v35 = vpop.f32.mrb[28].mxu0 }
 0x3c4   :  { %v1558_v60 = vpop.f32.mrb[29].mxu0 }
 0x3c5   :  { %v1560_v13 = vpop.f32.mrb[30].mxu0 }
 0x3c6   :  { %v1561_v34 = vpop.f32.mrb[31].mxu0 }
 0x3c7   :  { %v1305_v62 = vpop.f32.mrb[12].mxu1  ;;  %v360_v34 = vld [vmem:[%s19964_s4] sm:$0x3] }
 0x3c8   :  { %v1307_v1 = vpop.f32.mrb[13].mxu1 }
 0x3c9   :  { %v1309_v21 = vpop.f32.mrb[14].mxu1 }
 0x3ca   :  { %v1310_v63 = vpop.f32.mrb[15].mxu1 }
 0x3cb   :  { %v20603_v63 = vsub.s32 0, %v14550_v55 }
 0x3cd   :  { %v15486_v21 = vrot.slane %v360_v34, %v20603_v63 }
 0x3e3   :  { %v1814_v56 = vpop.f32.mrb[32].mxu0 }
 0x3e4   :  { %v1816_v38 = vpop.f32.mrb[33].mxu0 }
 0x3e5   :  { %v1818_v7 = vpop.f32.mrb[34].mxu0 }
 0x3e6   :  { %v1819_v4 = vpop.f32.mrb[35].mxu0 }
 0x3e7   :  { %v1429_v30 = vpop.f32.mrb[16].mxu1 }
 0x3e8   :  { %v1430_v24 = vadd.f32 %v1429_v30, %v1305_v62  ;;  %v1431_v2 = vpop.f32.mrb[17].mxu1  ;;  %v20604_v62 = vsub.s32 1, %v14550_v55  ;;  %v15542_v55 = vld [vmem:[%s19960_s1 + $0x24] ss:$8 sps:$4 sm:$0xff]  }
 0x3e9   :  { %v1432_v9 = vadd.f32 %v1431_v2, %v1307_v1  ;;  %v1433_v3 = vpop.f32.mrb[18].mxu1 }
 0x3ea   :  { %v1434_v39 = vpop.f32.mrb[19].mxu1  ;;  %v1563_v25 = vadd.f32 %v1556_v35, %v1430_v24  ;;  %v15490_v2 = vrot.slane %v360_v34, %v20604_v62 }
 0x3eb   :  { %v1564_v17 = vadd.f32 %v1558_v60, %v1432_v9 }
 0x407   :  { %v1686_v13 = vpop.f32.mrb[20].mxu1 }
 0x408   :  { %v1693_v50 = vadd.f32 %v1686_v13, %v1563_v25  ;;  %v1688_v7 = vpop.f32.mrb[21].mxu1 }
 0x409   :  { %v1694_v4 = vadd.f32 %v1688_v7, %v1564_v17  ;;  %v1690_v46 = vpop.f32.mrb[22].mxu1 }
 0x40a   :  { %v1821_v39 = vadd.f32 %v1814_v56, %v1693_v50  ;;  %v1691_v3 = vpop.f32.mrb[23].mxu1  ;;  %v11379_v46 = vld [vmem:[%s19961_s0 + $0x20] sm:$0xff]  ;;  %v11380_v50 = vld [vmem:[%s19961_s0 + $0x28] sm:$0xff]  ;;  %v11382_v56 = vld [vmem:[%s19961_s0 + $0x38] sm:$0xf] }
 0x40b   :  { %v1822_v9 = vadd.f32 %v1816_v38, %v1694_v4  ;;  %v15551_v17 = vpack.c.bf16 %v11380_v50, %v11379_v46  ;;  %v11381_v38 = vld [vmem:[%s19961_s0 + $0x30] sm:$0xff]  ;;  %v15586_v50 = vld [vmem:[%s19960_s1 + $0x4] ss:$8 sps:$4 sm:$0xff]  }
 0x40c   :  { %v1834_v1 = vadd.f32 %v15486_v21, %v1821_v39  ;;  %v15559_v34 = vpack.c.bf16 %v11382_v56, %v11381_v38  ;;  %v15595_v56 = vld [vmem:[%s19960_s1] ss:$8 sps:$4 sm:$0xff]  }
 0x40d   :  { %v1835_v35 = vadd.f32 %v15490_v2, %v1822_v9  ;;  %v2159_v13 = vshll.u32 %v15551_v17, 16  ;;  %v2157_v39 = vshrl.u32 %v15551_v17, 16 }
 0x40e   :  { %v1836_v25 = vmax.f32 %v1834_v1, 0.0  ;;  %v2164_v9 = vshll.u32 %v15559_v34, 16  ;;  %v15569_v1 = vld [vmem:[%s19960_s1 + $0x20] ss:$8 sps:$4 sm:$0xff]   ;;  %v2168_v38 = vshrl.u32 %v15559_v34, 16 }
 0x40f   :  { %v1837_v60 = vmax.f32 %v1835_v35, 0.0  ;;  %v2161_v3 = vrot.slane %v2159_v13, 1 }
 0x411   :  { %1841 = vmatprep.subr.mxu1 %v1837_v60  ;;  %v2162_v35 = vor.u32 %v2161_v3, %v2157_v39  ;;  %v2285_v3 = vrot.slane %v15551_v17, 1 }
 0x412   :  { %1842 = vmatpush1.msra.mxu1 %v1836_v25 }
 0x413   :  { %11335 = vmatmul.mubr.msk.f32.vlgmr.msra.gmra.mrb[24].mxu1 %vm20122_vm11, %v14807_v12  ;;  %1914 = vmatprep.subr.mxu1 %v1837_v60  ;;  %v2166_v60 = vrot.slane %v2164_v9, 1 }
 0x414   :  { %1915 = vmatpush1.msra.mxu1 %v1836_v25  ;;  %1978 = vmatprep.mubr.f32.mxu1 %v20601_v58  ;;  %v15576_v25 = vld [vmem:[%s19960_s1 + $0x34] ss:$8 sps:$4 sm:$0x3f]  }
 0x415   :  { %12548 = vmatprep.subr.bf16.mxu1 %v20571_v44 }
 0x417   :  { %11336 = vmatmul.mubr.msk.f32.vlgmr.msra.gmra.mrb[26].mxu1 %vm20122_vm11, %v14826_v16  ;;  %vm20123_vm11 = vcmask 261120  }
 0x418   :  { %12550 = vmatpush1.bf16.msk.msra.mxu1 %vm14828_vm5, %v20573_v5 }
 0x419   :  { %12551 = vmatprep.subr.bf16.mxu1 %v20571_v44 }
 0x41c   :  { %12553 = vmatpush1.bf16.msk.msra.mxu1 %vm14593_vm14, %v20573_v5 }
 0x41d   :  { %12554 = vmatprep.subr.bf16.mxu1 %v20571_v44 }
 0x420   :  { %12556 = vmatpush1.bf16.msk.msra.mxu1 %vm14610_vm10, %v20573_v5 }
 0x421   :  { %12557 = vmatprep.subr.bf16.mxu1 %v20571_v44 }
 0x424   :  { %12559 = vmatpush1.bf16.msk.msra.mxu1 %vm14623_vm2, %v20573_v5 }
 0x425   :  { %12560 = vmatprep.subr.bf16.mxu1 %v20571_v44 }
 0x428   :  { %12562 = vmatpush1.bf16.msk.msra.mxu1 %vm14641_vm13, %v20573_v5 }
 0x429   :  { %12563 = vmatprep.subr.bf16.mxu1 %v20571_v44 }
 0x42c   :  { %12565 = vmatpush1.bf16.msk.msra.mxu1 %vm14659_vm12, %v20573_v5 }
 0x42d   :  { %12566 = vmatprep.subr.bf16.mxu1 %v20571_v44 }
 0x430   :  { %12568 = vmatpush1.bf16.msk.msra.mxu1 %vm14677_vm4, %v20573_v5 }
 0x431   :  { %12569 = vmatprep.subr.bf16.mxu1 %v20571_v44 }
 0x434   :  { %12571 = vmatpush1.bf16.msk.msra.mxu1 %vm14695_vm7, %v20573_v5 }
 0x435   :  { %12572 = vmatprep.subr.bf16.mxu1 %v20571_v44 }
 0x438   :  { %12574 = vmatpush1.bf16.msk.msra.mxu1 %vm20492_vm6, %v20573_v5  ;;  %vm20607_vm6 = vcmask 228352  }
 0x439   :  { %12575 = vmatprep.subr.bf16.mxu1 %v20571_v44 }
 0x43c   :  { %12577 = vmatpush1.bf16.msk.msra.mxu1 %vm20493_vm1, %v20573_v5  ;;  %vm20606_vm1 = vsmask.f32 7424 }
 0x43d   :  { %2177 = vmatprep.subr.bf16.mxu1 %v15542_v55  ;;  %v2167_v46 = vsel %vm20606_vm1, %v2162_v35, %v2166_v60  ;;  %v2286_v35 = vrot.slane %v15559_v34, 1 }
 0x4e6   :  { %v1907_v30 = vpop.f32.mrb[24].mxu1 }
 0x4e7   :  { %v1909_v24 = vpop.f32.mrb[25].mxu1 }
 0x4ea   :  { %v1980_v63 = vpop.f32.mrb[26].mxu1 }
 0x4eb   :  { %v1985_v7 = vmax.f32 %v1907_v30, %v1980_v63  ;;  %v1982_v4 = vpop.f32.mrb[27].mxu1  ;;  %v15601_v30 = vld [vmem:[%s19960_s1 + $0x14] ss:$8 sps:$4 sm:$0x3f]   ;;  %v15609_v63 = vld [vmem:[%s19960_s1 + $0x44] ss:$8 sps:$4 sm:$0xff]  }
 0x4ec   :  { %v1986_v62 = vmax.f32 %v1909_v24, %v1982_v4  ;;  %v2170_v24 = vor.u32 %v2168_v38, %v2166_v60  ;;  %v15626_v4 = vld [vmem:[%s19960_s1 + $0x54] ss:$8 sps:$4 sm:$0x3f]  }
 0x4ed   :  { %20611 = vst [vmem:[#allocation93_spill] sm:$0xff] %v15626_v4 }
 0x4ee   :  { %11357 = vmatprep.mubr.msk.f32.mxu1 %vm20123_vm11, %v1986_v62  ;;  %11378 = vmatprep.mubr.msk.f32.mxu0 %vm20123_vm11, %v1986_v62  ;;  %vm20605_vm11 = vcmask 1045504   ;;  %v15634_v62 = vld [vmem:[%s19960_s1 + $0x64] ss:$8 sps:$4 sm:$0xff]  }
 0x4ef   :  { %2056 = vmatmul.mubr.f32.vlgmr.msra.gmra.mrb[28].mxu1 %v1985_v7  ;;  %2126 = vmatmul.mubr.f32.vlgmr.msra.gmra.mrb[36].mxu0 %v1985_v7  ;;  %vm20608_vm1 = vmmov %vm20605_vm11  ;;  %v15620_v7 = vld [vmem:[%s19960_s1 + $0x40] ss:$8 sps:$4 sm:$0xff]   ;;  %20612 = vst [vmem:[#allocation94_spill] sm:$0xff] %v15634_v62 }
 0x4f0   :  { %2178 = vmatpush1.bf16.msra.mxu1 %v15569_v1  ;;  %2209 = vmatprep.mubr.bf16.mxu1 %v20543_v48  ;;  %20610 = vst [vmem:[#allocation92_spill] sm:$0xff] %v15620_v7 }
 0x4f1   :  { %11383 = vmatprep.subr.msk.bf16.mxu1 %vm20605_vm11, %v15576_v25  ;;  %2563 = vmatprep.mubr.f32.mxu0 %v20601_v58  ;;  %vm20609_vm11 = vmmov %vm20607_vm6 }
 0x4f4   :  { %2180 = vmatpush1.bf16.msra.mxu1 %v14442_v8 }
 0x4f5   :  { %2232 = vmatprep.subr.bf16.mxu1 %v15586_v50 }
 0x4f7   :  { %11384 = vmatmul.mubr.msk.bf16.vlgmr.msra.gmra.mrb[32].mxu1 %vm20607_vm6, %v2167_v46  ;;  %v15648_v46 = vld [vmem:[%s19960_s1 + $0x60] ss:$8 sps:$4 sm:$0xff]  }
 0x4f8   :  { %2219 = vmatprep.mubr.bf16.mxu1 %v20543_v48  ;;  %2233 = vmatpush1.bf16.msra.mxu1 %v15595_v56  ;;  %20615 = vst [vmem:[#allocation95_spill] sm:$0xff] %v15648_v46 }
 0x4f9   :  { %11386 = vmatprep.subr.msk.bf16.mxu1 %vm20608_vm1, %v15601_v30 }
 0x4fc   :  { %2235 = vmatpush1.bf16.msra.mxu1 %v14473_v27 }
 0x4fd   :  { %2294 = vmatprep.subr.bf16.mxu1 %v15609_v63 }
 0x4ff   :  { %11385 = vmatmul.mubr.msk.bf16.gmra.mrb[36].mxu1 %vm20607_vm6, %v2170_v24  ;;  %v15654_v24 = vld [vmem:[%s19960_s1 + $0x74] ss:$8 sps:$4 sm:$0x3f]  }
 0x500   :  { %2264 = vmatprep.mubr.bf16.mxu1 %v20543_v48 }
 0x507   :  { %11387 = vmatmul.mubr.msk.bf16.vlgmr.msra.gmra.mrb[32].mxu1 %vm20609_vm11, %v15551_v17  ;;  %vm20613_vm11 = vcmask 1046528  }
 0x508   :  { %2274 = vmatprep.mubr.bf16.mxu1 %v20543_v48  ;;  %2295 = vmatpush1.bf16.msra.mxu1 %v15620_v7  ;;  %v2287_v60 = vsel %vm20613_vm11, %v2285_v3, %v2286_v35  ;;  %v2351_v3 = vrot.slane %v2157_v39, 1 }
 0x509   :  { %11389 = vmatprep.subr.msk.bf16.mxu1 %vm20608_vm1, %v15626_v4  ;;  %vm20614_vm1 = vmmov %vm20607_vm6  ;;  %v15662_v4 = vld [vmem:[%s19960_s1 + $0x84] ss:$8 sps:$4 sm:$0xff]  }
 0x50a   :  { %20617 = vst [vmem:[#allocation96_spill] sm:$0xff] %v15662_v4  ;;  %vm20618_vm11 = vmmov %vm20614_vm1 }
 0x50c   :  { %2297 = vmatpush1.bf16.msra.mxu1 %v14494_v33  ;;  %v2352_v33 = vrot.slane %v2159_v13, 2  ;;  %v15673_v13 = vld [vmem:[%s19960_s1 + $0x80] ss:$8 sps:$4 sm:$0xff]  }
 0x50d   :  { %2364 = vmatprep.subr.bf16.mxu1 %v15634_v62  ;;  %v2355_v62 = vrot.slane %v2164_v9, 2  ;;  %20621 = vst [vmem:[#allocation97_spill] sm:$0xff] %v15673_v13  ;;  %v15679_v9 = vld [vmem:[%s19960_s1 + $0x94] ss:$8 sps:$4 sm:$0x3f]  }
 0x50e   :  { %20622 = vst [vmem:[#allocation98_spill] sm:$0xff] %v15679_v9 }
 0x50f   :  { %11388 = vmatmul.mubr.msk.bf16.gmra.mrb[40].mxu1 %vm20607_vm6, %v15559_v34  ;;  %vm20616_vm6 = vcmask 1045504  }
 0x510   :  { %2326 = vmatprep.mubr.bf16.mxu1 %v20543_v48 }
 0x517   :  { %11390 = vmatmul.mubr.msk.bf16.vlgmr.msra.gmra.mrb[32].mxu1 %vm20614_vm1, %v2287_v60  ;;  %v2354_v60 = vrot.slane %v2168_v38, 1  ;;  %vm20619_vm1 = vsmask.f32 6400  ;;  %v2422_v38 = vrot.slane %v15559_v34, 2 }
 0x518   :  { %2336 = vmatprep.mubr.bf16.mxu1 %v20543_v48  ;;  %2365 = vmatpush1.bf16.msra.mxu1 %v15648_v46  ;;  %v2353_v46 = vor.u32 %v2352_v33, %v2351_v3  ;;  %v2421_v33 = vrot.slane %v15551_v17, 2 }
 0x519   :  { %11392 = vmatprep.subr.msk.bf16.mxu1 %vm20616_vm6, %v15654_v24  ;;  %v2356_v7 = vor.u32 %v2355_v62, %v2354_v60  ;;  %vm20620_vm6 = vmmov %vm20618_vm11 }
 0x51b   :  { %v2357_v39 = vsel %vm20619_vm1, %v2353_v46, %v2356_v7  ;;  %vm20624_vm1 = vmmov %vm20620_vm6 }
 0x51c   :  { %2367 = vmatpush1.bf16.msra.mxu1 %v14518_v41  ;;  %vm20626_vm7 = vmmov %vm20624_vm1 }
 0x51d   :  { %2430 = vmatprep.subr.bf16.mxu1 %v15662_v4 }
 0x51f   :  { %11391 = vmatmul.mubr.msk.bf16.gmra.mrb[44].mxu1 %vm20618_vm11, %v2286_v35  ;;  %vm20623_vm11 = vcmask 1045504  }
 0x520   :  { %2396 = vmatprep.mubr.bf16.mxu1 %v20543_v48 }
 0x527   :  { %11393 = vmatmul.mubr.msk.bf16.vlgmr.msra.gmra.mrb[32].mxu1 %vm20620_vm6, %v2357_v39  ;;  %vm20625_vm6 = vmmov %vm20623_vm11 }
 0x528   :  { %2406 = vmatprep.mubr.bf16.mxu1 %v20543_v48  ;;  %2431 = vmatpush1.bf16.msra.mxu1 %v15673_v13  ;;  %v2423_v62 = vsel %vm20625_vm6, %v2421_v33, %v2422_v38  ;;  %vm20630_vm6 = vnez %v20451_v22 }
 0x529   :  { %11395 = vmatprep.subr.msk.bf16.mxu1 %vm20623_vm11, %v15679_v9  ;;  %vm20627_vm11 = vmmov %vm20624_vm1 }
 0x52c   :  { %2433 = vmatpush1.bf16.msra.mxu1 %v14540_v53 }
 0x52d   :  { %12661 = vmatprep.subr.bf16.mxu1 %v20571_v44 }
 0x52f   :  { %11394 = vmatmul.mubr.msk.bf16.gmra.mrb[48].mxu1 %vm20624_vm1, %v2356_v7  ;;  %vm20628_vm1 = vnez %v20443_v14 }
 0x530   :  { %2462 = vmatprep.mubr.bf16.mxu1 %v20543_v48 }
 0x537   :  { %11396 = vmatmul.mubr.msk.bf16.vlgmr.msra.gmra.mrb[32].mxu1 %vm20626_vm7, %v2423_v62  ;;  %vm20629_vm7 = vnez %v20447_v18 }
 0x538   :  { %2472 = vmatprep.mubr.bf16.mxu1 %v20543_v48  ;;  %12663 = vmatpush1.bf16.msk.msra.mxu1 %vm20574_vm8, %v20573_v5 }
 0x539   :  { %12664 = vmatprep.subr.bf16.mxu1 %v20571_v44 }
 0x53c   :  { %12666 = vmatpush1.bf16.msk.msra.mxu1 %vm20578_vm9, %v20573_v5 }
 0x53d   :  { %12667 = vmatprep.subr.bf16.mxu1 %v20571_v44 }
 0x53f   :  { %11397 = vmatmul.mubr.msk.bf16.gmra.mrb[52].mxu1 %vm20627_vm11, %v2422_v38  ;;  %vm20631_vm11 = vnez %v20455_v26 }
 0x540   :  { %12669 = vmatpush1.bf16.msk.msra.mxu1 %vm20628_vm1, %v20573_v5  ;;  %vm20632_vm1 = vnez %v20459_v31 }
 0x541   :  { %12670 = vmatprep.subr.bf16.mxu1 %v20571_v44 }
 0x544   :  { %12672 = vmatpush1.bf16.msk.msra.mxu1 %vm20629_vm7, %v20573_v5 }
 0x545   :  { %12673 = vmatprep.subr.bf16.mxu1 %v20571_v44 }
 0x548   :  { %12675 = vmatpush1.bf16.msk.msra.mxu1 %vm20630_vm6, %v20573_v5 }
 0x549   :  { %12676 = vmatprep.subr.bf16.mxu1 %v20571_v44 }
 0x54c   :  { %12678 = vmatpush1.bf16.msk.msra.mxu1 %vm20631_vm11, %v20573_v5 }
 0x54d   :  { %12679 = vmatprep.subr.bf16.mxu1 %v20571_v44 }
 0x550   :  { %12681 = vmatpush1.bf16.msk.msra.mxu1 %vm20632_vm1, %v20573_v5  ;;  %vm20633_vm1 = vnez %v20477_v49 }
 0x551   :  { %12682 = vmatprep.subr.bf16.mxu1 %v20571_v44 }
 0x554   :  { %12684 = vmatpush1.bf16.msk.msra.mxu1 %vm20597_vm15, %v20573_v5  ;;  %vm20634_vm15 = vnez %v20483_v54 }
 0x555   :  { %12685 = vmatprep.subr.bf16.mxu1 %v20571_v44 }
 0x558   :  { %12687 = vmatpush1.bf16.msk.msra.mxu1 %vm20598_vm0, %v20573_v5  ;;  %vm20635_vm0 = vnez %v20499_v20 }
 0x559   :  { %12688 = vmatprep.subr.bf16.mxu1 %v20571_v44 }
 0x55c   :  { %12690 = vmatpush1.bf16.msk.msra.mxu1 %vm20602_vm3, %v20573_v5  ;;  %vm20636_vm3 = vnez %v20505_v29 }
 0x55d   :  { %12691 = vmatprep.subr.bf16.mxu1 %v20571_v44 }
 0x560   :  { %12693 = vmatpush1.bf16.msk.msra.mxu1 %vm20633_vm1, %v20573_v5  ;;  %vm20637_vm1 = vnez %v20511_v43 }
 0x561   :  { %12694 = vmatprep.subr.bf16.mxu1 %v20571_v44 }
 0x564   :  { %12696 = vmatpush1.bf16.msk.msra.mxu1 %vm20634_vm15, %v20573_v5 }
 0x565   :  { %12697 = vmatprep.subr.bf16.mxu1 %v20571_v44 }
 0x568   :  { %12699 = vmatpush1.bf16.msk.msra.mxu1 %vm20635_vm0, %v20573_v5 }
 0x569   :  { %12700 = vmatprep.subr.bf16.mxu1 %v20571_v44 }
 0x56c   :  { %12702 = vmatpush1.bf16.msk.msra.mxu1 %vm20636_vm3, %v20573_v5 }
 0x56d   :  { %12703 = vmatprep.subr.bf16.mxu1 %v20571_v44 }
 0x570   :  { %12705 = vmatpush1.bf16.msk.msra.mxu1 %vm20637_vm1, %v20573_v5  ;;  %vm20639_vm1 = vcmask 195584  }
 0x571   :  { %2915 = vmatprep.subr.bf16.mxu1 %v14959_v59  ;;  %vm20640_vm3 = vmmov %vm20639_vm1 }
 0x572   :  { %vm20641_vm0 = vmmov %vm20639_vm1 }
 0x5c2   :  { %v2057_v17 = vpop.f32.mrb[28].mxu1  ;;  %v2127_v34 = vpop.f32.mrb[36].mxu0 }
 0x5c3   :  { %v15753_v7 = vmax.f32 %v2057_v17, %v2127_v34  ;;  %v2059_v35 = vpop.f32.mrb[29].mxu1  ;;  %v2129_v46 = vpop.f32.mrb[37].mxu0 }
 0x5c5   :  { %20638 = vst [vmem:[#allocation99_spill] sm:$0xff] %v15753_v7 }
 0x5d2   :  { %v2221_v3 = vpop.f32.mrb[36].mxu1 }
 0x5d3   :  { %v2223_v60 = vpop.f32.mrb[37].mxu1 }
 0x5d4   :  { %v2225_v39 = vpop.f32.mrb[38].mxu1 }
 0x5d5   :  { %v2226_v33 = vpop.f32.mrb[39].mxu1 }
 0x5e2   :  { %v2276_v38 = vpop.f32.mrb[40].mxu1 }
 0x5e3   :  { %v2277_v62 = vadd.f32 %v2276_v38, %v2221_v3  ;;  %v2278_v29 = vpop.f32.mrb[41].mxu1 }
 0x5e4   :  { %v2279_v20 = vadd.f32 %v2278_v29, %v2223_v60  ;;  %v2280_v54 = vpop.f32.mrb[42].mxu1 }
 0x5e5   :  { %v2281_v49 = vpop.f32.mrb[43].mxu1 }
 0x5f2   :  { %v2338_v43 = vpop.f32.mrb[44].mxu1 }
 0x5f3   :  { %v2349_v53 = vadd.f32 %v2338_v43, %v2277_v62  ;;  %v2340_v9 = vpop.f32.mrb[45].mxu1 }
 0x5f4   :  { %v2350_v59 = vadd.f32 %v2340_v9, %v2279_v20  ;;  %v2342_v13 = vpop.f32.mrb[46].mxu1 }
 0x5f5   :  { %v2343_v4 = vpop.f32.mrb[47].mxu1 }
 0x602   :  { %v2408_v17 = vpop.f32.mrb[48].mxu1 }
 0x603   :  { %v2419_v34 = vadd.f32 %v2408_v17, %v2349_v53  ;;  %v2410_v35 = vpop.f32.mrb[49].mxu1 }
 0x604   :  { %v2420_v46 = vadd.f32 %v2410_v35, %v2350_v59  ;;  %v2412_v7 = vpop.f32.mrb[50].mxu1 }
 0x605   :  { %v2413_v41 = vpop.f32.mrb[51].mxu1 }
 0x60a   :  { %v2464_v39 = vpop.f32.mrb[32].mxu1 }
 0x60b   :  { %v2487_v33 = vadd.f32 %v2464_v39, %v14792_v51  ;;  %v2466_v3 = vpop.f32.mrb[33].mxu1 }
 0x60c   :  { %v2488_v29 = vadd.f32 %v2466_v3, %v14796_v52  ;;  %v2468_v54 = vpop.f32.mrb[34].mxu1 }
 0x60d   :  { %v2489_v49 = vadd.f32 %v2468_v54, %v14792_v51  ;;  %v2470_v43 = vpop.f32.mrb[35].mxu1  ;;  %v2493_v13 = vmax.f32 %v2487_v33, 0.0  ;;  %v20650_v33 = vld [vmem:[#allocation14_spill] sm:$0xff] }
 0x60e   :  { %v2490_v20 = vadd.f32 %v2470_v43, %v14796_v52  ;;  %v2494_v9 = vmax.f32 %v2488_v29, 0.0  ;;  %v20652_v29 = vld [vmem:[#allocation16_spill] sm:$0xff] }
 0x60f   :  { %v2495_v4 = vmax.f32 %v2489_v49, 0.0  ;;  %v20654_v49 = vld [vmem:[#allocation18_spill] sm:$0xff] }
 0x610   :  { %v2496_v53 = vmax.f32 %v2490_v20, 0.0  ;;  %v15835_v20 = vld [vmem:[%s19963_s3 + $0x7c] ss:$8 sps:$4 sm:$0xff]  }
 0x611   :  { %v12610_v60 = vpack.c.bf16 %v2495_v4, %v2493_v13  ;;  %20656 = vst [vmem:[#allocation100_spill] sm:$0xff] %v15835_v20 }
 0x612   :  { %v12608_v38 = vpack.c.bf16 %v2496_v53, %v2494_v9  ;;  %v2474_v7 = vpop.f32.mrb[52].mxu1 }
 0x613   :  { %v2485_v41 = vadd.f32 %v2474_v7, %v2419_v34  ;;  %v2476_v62 = vpop.f32.mrb[53].mxu1  ;;  %v20646_v34 = vld [vmem:[#allocation6_spill] sm:$0xff] }
 0x614   :  { %v2486_v59 = vadd.f32 %v2476_v62, %v2420_v46  ;;  %v2478_v17 = vpop.f32.mrb[54].mxu1  ;;  %12609 = vmatprep.subr.bf16.mxu0 %v12608_v38  ;;  %vm20647_vm15 = vnez %v20646_v34  ;;  %v20648_v46 = vld [vmem:[#allocation8_spill] sm:$0xff] }
 0x615   :  { %v2491_v35 = vadd.f32 %v2485_v41, %v14792_v51  ;;  %v2479_v39 = vpop.f32.mrb[55].mxu1  ;;  %12611 = vmatpush1.bf16.msra.mxu0 %v12610_v60 }
 0x616   :  { %v2492_v3 = vadd.f32 %v2486_v59, %v14796_v52  ;;  %v15843_v39 = vld [vmem:[%s19963_s3 + $0xf0] ss:$8 sps:$4 sm:$0xff]  }
 0x617   :  { %v2497_v43 = vmax.f32 %v2491_v35, 0.0  ;;  %20659 = vst [vmem:[#allocation101_spill] sm:$0xff] %v15843_v39 }
 0x618   :  { %v2498_v54 = vmax.f32 %v2492_v3, 0.0  ;;  %v15849_v3 = vld [vmem:[%s19963_s3 + $0x78] ss:$8 sps:$4 sm:$0xff]  }
 0x619   :  { %20660 = vst [vmem:[#allocation102_spill] sm:$0xff] %v15849_v3 }
 0x61a   :  { %2503 = vmatprep.subr.mxu0 %v2498_v54 }
 0x61b   :  { %2504 = vmatpush1.msra.mxu0 %v2497_v43 }
 0x61c   :  { %11398 = vmatmul.mubr.msk.f32.vlgmr.msra.gmra.mrb[38].mxu0 %vm20639_vm1, %v14807_v12  ;;  %12613 = vmatprep.subr.bf16.mxu0 %v12608_v38  ;;  %vm20642_vm1 = vmmov %vm20641_vm0 }
 0x61d   :  { %12615 = vmatpush1.bf16.msra.mxu0 %v12610_v60  ;;  %2569 = vmatprep.mubr.f32.mxu0 %v20601_v58 }
 0x61e   :  { %2580 = vmatprep.subr.mxu0 %v2498_v54  ;;  %v15855_v54 = vld [vmem:[%s19963_s3 + $0x104] ss:$8 sps:$4 sm:$0xff]  }
 0x61f   :  { %20661 = vst [vmem:[#allocation103_spill] sm:$0xff] %v15855_v54 }
 0x620   :  { %11399 = vmatmul.mubr.msk.f32.gmra.mrb[40].mxu0 %vm20640_vm3, %v14815_v47  ;;  %vm20644_vm3 = vnez %v20465_v37 }
 0x621   :  { %2581 = vmatpush1.msra.mxu0 %v2497_v43  ;;  %2640 = vmatprep.mubr.f32.mxu0 %v20601_v58  ;;  %v15861_v43 = vld [vmem:[%s19963_s3 + $0x8c] ss:$8 sps:$4 sm:$0xff]  }
 0x622   :  { %12616 = vmatprep.subr.bf16.mxu0 %v20571_v44  ;;  %20662 = vst [vmem:[#allocation104_spill] sm:$0xff] %v15861_v43 }
 0x624   :  { %11400 = vmatmul.mubr.msk.f32.vlgmr.msra.gmra.mrb[42].mxu0 %vm20641_vm0, %v14826_v16  ;;  %vm20643_vm0 = vnez %v20461_v32 }
 0x625   :  { %2646 = vmatprep.mubr.f32.mxu0 %v20601_v58  ;;  %12618 = vmatpush1.bf16.msk.msra.mxu0 %vm14828_vm5, %v20573_v5 }
 0x626   :  { %12619 = vmatprep.subr.bf16.mxu0 %v20571_v44 }
 0x628   :  { %11401 = vmatmul.mubr.msk.f32.gmra.mrb[44].mxu0 %vm20642_vm1, %v14840_v57  ;;  %vm20645_vm1 = vnez %v20469_v42 }
 0x629   :  { %12621 = vmatpush1.bf16.msk.msra.mxu0 %vm14593_vm14, %v20573_v5 }
 0x62a   :  { %12622 = vmatprep.subr.bf16.mxu0 %v20571_v44 }
 0x62d   :  { %12624 = vmatpush1.bf16.msk.msra.mxu0 %vm14610_vm10, %v20573_v5 }
 0x62e   :  { %12625 = vmatprep.subr.bf16.mxu0 %v20571_v44 }
 0x631   :  { %12627 = vmatpush1.bf16.msk.msra.mxu0 %vm14623_vm2, %v20573_v5 }
 0x632   :  { %12628 = vmatprep.subr.bf16.mxu0 %v20571_v44 }
 0x635   :  { %12630 = vmatpush1.bf16.msk.msra.mxu0 %vm14641_vm13, %v20573_v5 }
 0x636   :  { %12631 = vmatprep.subr.bf16.mxu0 %v20571_v44 }
 0x639   :  { %12633 = vmatpush1.bf16.msk.msra.mxu0 %vm14659_vm12, %v20573_v5 }
 0x63a   :  { %12634 = vmatprep.subr.bf16.mxu0 %v20571_v44 }
 0x63d   :  { %12636 = vmatpush1.bf16.msk.msra.mxu0 %vm14677_vm4, %v20573_v5 }
 0x63e   :  { %12637 = vmatprep.subr.bf16.mxu0 %v20571_v44 }
 0x641   :  { %12639 = vmatpush1.bf16.msk.msra.mxu0 %vm20643_vm0, %v20573_v5  ;;  %vm20649_vm0 = vnez %v20648_v46 }
 0x642   :  { %12640 = vmatprep.subr.bf16.mxu0 %v20571_v44 }
 0x645   :  { %12642 = vmatpush1.bf16.msk.msra.mxu0 %vm20644_vm3, %v20573_v5  ;;  %vm20651_vm3 = vnez %v20650_v33 }
 0x646   :  { %12643 = vmatprep.subr.bf16.mxu0 %v20571_v44 }
 0x649   :  { %12645 = vmatpush1.bf16.msk.msra.mxu0 %vm20645_vm1, %v20573_v5  ;;  %vm20653_vm1 = vnez %v20652_v29 }
 0x64a   :  { %12646 = vmatprep.subr.bf16.mxu0 %v20571_v44 }
 0x64d   :  { %12648 = vmatpush1.bf16.msk.msra.mxu0 %vm20647_vm15, %v20573_v5  ;;  %vm20655_vm15 = vnez %v20654_v49 }
 0x64e   :  { %12649 = vmatprep.subr.bf16.mxu0 %v20571_v44 }
 0x651   :  { %12651 = vmatpush1.bf16.msk.msra.mxu0 %vm20649_vm0, %v20573_v5  ;;  %vm20748_vm0 = vnez %v20463_v36 }
 0x652   :  { %12652 = vmatprep.subr.bf16.mxu0 %v20571_v44 }
 0x655   :  { %12654 = vmatpush1.bf16.msk.msra.mxu0 %vm20651_vm3, %v20573_v5 }
 0x656   :  { %12655 = vmatprep.subr.bf16.mxu0 %v20571_v44 }
 0x659   :  { %12657 = vmatpush1.bf16.msk.msra.mxu0 %vm20653_vm1, %v20573_v5  ;;  %vm20657_vm1 = vcmask 916480  }
 0x65a   :  { %12658 = vmatprep.subr.bf16.mxu0 %v20571_v44  ;;  %vm20658_vm3 = vmmov %vm20657_vm1 }
 0x65d   :  { %12660 = vmatpush1.bf16.msk.msra.mxu0 %vm20655_vm15, %v20573_v5  ;;  %vm20727_vm15 = vcmask 982016  }
 0x65e   :  { %2826 = vmatprep.subr.bf16.mxu0 %v15835_v20 }
 0x6ef   :  { %v2565_v13 = vpop.f32.mrb[38].mxu0 }
 0x6f0   :  { %v2567_v4 = vpop.f32.mrb[39].mxu0 }
 0x6f3   :  { %v2571_v9 = vpop.f32.mrb[40].mxu0 }
 0x6f4   :  { %v2573_v53 = vpop.f32.mrb[41].mxu0 }
 0x6f7   :  { %v2642_v60 = vpop.f32.mrb[42].mxu0 }
 0x6f8   :  { %v2653_v38 = vmax.f32 %v2565_v13, %v2642_v60  ;;  %v2644_v7 = vpop.f32.mrb[43].mxu0  ;;  %v15869_v13 = vld [vmem:[%s19963_s3 + $0x100] ss:$8 sps:$4 sm:$0xff]  }
 0x6f9   :  { %v2654_v41 = vmax.f32 %v2567_v4, %v2644_v7  ;;  %20664 = vst [vmem:[#allocation105_spill] sm:$0xff] %v15869_v13  ;;  %v15875_v4 = vld [vmem:[%s19963_s3 + $0x88] ss:$8 sps:$4 sm:$0xff]   ;;  %v20668_v60 = vld [vmem:[#allocation22_spill] sm:$0xff] }
 0x6fa   :  { %20665 = vst [vmem:[#allocation106_spill] sm:$0xff] %v15875_v4  ;;  %v20670_v7 = vld [vmem:[#allocation24_spill] sm:$0xff] }
 0x6fb   :  { %v2648_v62 = vpop.f32.mrb[44].mxu0  ;;  %11432 = vmatprep.mubr.msk.f32.mxu0 %vm20657_vm1, %v2654_v41  ;;  %11464 = vmatprep.mubr.msk.f32.mxu1 %vm20658_vm3, %v2654_v41  ;;  %vm20663_vm3 = vmmov %vm20657_vm1  ;;  %v20671_v41 = vld [vmem:[#allocation25_spill] sm:$0xff] }
 0x6fc   :  { %v2655_v59 = vmax.f32 %v2571_v9, %v2648_v62  ;;  %v2650_v17 = vpop.f32.mrb[45].mxu0  ;;  %2728 = vmatmul.mubr.f32.vlgmr.msra.gmra.mrb[46].mxu0 %v2653_v38  ;;  %2803 = vmatmul.mubr.f32.vlgmr.msra.gmra.mrb[30].mxu1 %v2653_v38  ;;  %v20666_v9 = vld [vmem:[#allocation20_spill] sm:$0xff]  ;;  %v20669_v38 = vld [vmem:[#allocation23_spill] sm:$0xff]  ;;  %v20672_v62 = vld [vmem:[#allocation26_spill] sm:$0xff] }
 0x6fd   :  { %v2656_v35 = vmax.f32 %v2573_v53, %v2650_v17  ;;  %2916 = vmatpush1.bf16.msra.mxu1 %v15843_v39  ;;  %2827 = vmatpush1.bf16.msra.mxu0 %v15849_v3  ;;  %v20667_v53 = vld [vmem:[#allocation21_spill] sm:$0xff]  ;;  %v20674_v17 = vld [vmem:[#allocation28_spill] sm:$0xff] }
 0x6fe   :  { %2917 = vmatprep.subr.bf16.mxu1 %v15855_v54  ;;  %2828 = vmatprep.subr.bf16.mxu0 %v15861_v43 }
 0x6ff   :  { %11433 = vmatprep.mubr.msk.f32.mxu0 %vm20663_vm3, %v2656_v35  ;;  %11465 = vmatprep.mubr.msk.f32.mxu1 %vm20657_vm1, %v2656_v35  ;;  %v20675_v35 = vld [vmem:[#allocation29_spill] sm:$0xff]  ;;  %vm20687_vm3 = vcmask 1043456  }
 0x700   :  { %2733 = vmatmul.mubr.f32.gmra.mrb[48].mxu0 %v2655_v59  ;;  %2808 = vmatmul.mubr.f32.gmra.mrb[56].mxu1 %v2655_v59  ;;  %v20673_v59 = vld [vmem:[#allocation27_spill] sm:$0xff]  ;;  %vm20689_vm1 = vmmov %vm20687_vm3 }
 0x701   :  { %2918 = vmatpush1.bf16.msra.mxu1 %v15869_v13  ;;  %2829 = vmatpush1.bf16.msra.mxu0 %v15875_v4  ;;  %v20678_v4 = vld [vmem:[#allocation32_spill] sm:$0xff] }
 0x702   :  { %2919 = vmatprep.subr.bf16.mxu1 %v20666_v9  ;;  %2830 = vmatprep.subr.bf16.mxu0 %v20667_v53  ;;  %v20676_v9 = vld [vmem:[#allocation30_spill] sm:$0xff]  ;;  %v20677_v53 = vld [vmem:[#allocation31_spill] sm:$0xff] }
 0x703   :  { %2947 = vmatprep.mubr.bf16.mxu1 %v20543_v48  ;;  %2858 = vmatprep.mubr.bf16.mxu0 %v20543_v48 }
 0x705   :  { %2920 = vmatpush1.bf16.msra.mxu1 %v20668_v60  ;;  %2831 = vmatpush1.bf16.msra.mxu0 %v20669_v38  ;;  %v20679_v60 = vld [vmem:[#allocation34_spill] sm:$0xff]  ;;  %v20680_v38 = vld [vmem:[#allocation33_spill] sm:$0xff] }
 0x706   :  { %2921 = vmatprep.subr.bf16.mxu1 %v20670_v7  ;;  %2832 = vmatprep.subr.bf16.mxu0 %v20671_v41  ;;  %v20681_v7 = vld [vmem:[#allocation36_spill] sm:$0xff]  ;;  %v20682_v41 = vld [vmem:[#allocation35_spill] sm:$0xff] }
 0x709   :  { %2922 = vmatpush1.bf16.msra.mxu1 %v20672_v62  ;;  %2833 = vmatpush1.bf16.msra.mxu0 %v20673_v59  ;;  %v20683_v62 = vld [vmem:[#allocation38_spill] sm:$0xff]  ;;  %v20684_v59 = vld [vmem:[#allocation37_spill] sm:$0xff] }
 0x70a   :  { %2923 = vmatprep.subr.bf16.mxu1 %v20674_v17  ;;  %2834 = vmatprep.subr.bf16.mxu0 %v20675_v35  ;;  %v20685_v17 = vld [vmem:[#allocation40_spill] sm:$0xff]  ;;  %v20686_v35 = vld [vmem:[#allocation39_spill] sm:$0xff] }
 0x70d   :  { %2924 = vmatpush1.bf16.msra.mxu1 %v20676_v9  ;;  %2835 = vmatpush1.bf16.msra.mxu0 %v20677_v53  ;;  %v20688_v9 = vld [vmem:[#allocation42_spill] sm:$0xff]  ;;  %v20691_v53 = vld [vmem:[#allocation44_spill] sm:$0xff] }
 0x70e   :  { %2925 = vmatprep.subr.bf16.mxu1 %v20678_v4  ;;  %2836 = vmatprep.subr.bf16.mxu0 %v20679_v60  ;;  %v20690_v4 = vld [vmem:[#allocation41_spill] sm:$0xff]  ;;  %v20692_v60 = vld [vmem:[#allocation43_spill] sm:$0xff] }
 0x711   :  { %2926 = vmatpush1.bf16.msra.mxu1 %v20680_v38  ;;  %2837 = vmatpush1.bf16.msra.mxu0 %v20681_v7  ;;  %v20693_v38 = vld [vmem:[#allocation45_spill] sm:$0xff] }
 0x712   :  { %2927 = vmatprep.subr.bf16.mxu1 %v20682_v41  ;;  %2838 = vmatprep.subr.bf16.mxu0 %v20683_v62 }
 0x715   :  { %2928 = vmatpush1.bf16.msra.mxu1 %v20684_v59  ;;  %2839 = vmatpush1.bf16.msra.mxu0 %v20685_v17 }
 0x716   :  { %11470 = vmatprep.subr.msk.bf16.mxu1 %vm20687_vm3, %v20686_v35  ;;  %11466 = vmatprep.subr.msk.bf16.mxu0 %vm20689_vm1, %v20688_v9  ;;  %vm20694_vm3 = vcmask 982016  }
 0x717   :  { %vm20697_vm1 = vmmov %vm20694_vm3 }
 0x719   :  { %2930 = vmatpush1.bf16.msra.mxu1 %v20690_v4  ;;  %2841 = vmatpush1.bf16.msra.mxu0 %v20691_v53  ;;  %v20695_v53 = vld [vmem:[#allocation46_spill] sm:$0xff] }
 0x71a   :  { %3011 = vmatprep.subr.bf16.mxu1 %v20692_v60  ;;  %2869 = vmatprep.subr.bf16.mxu0 %v20693_v38 }
 0x7cf   :  { %v2729_v7 = vpop.f32.mrb[46].mxu0  ;;  %v2804_v41 = vpop.f32.mrb[30].mxu1 }
 0x7d0   :  { %v2813_v62 = vmax.f32 %v2729_v7, %v2804_v41  ;;  %v2731_v59 = vpop.f32.mrb[47].mxu0  ;;  %v2806_v13 = vpop.f32.mrb[31].mxu1  ;;  %v20696_v7 = vld [vmem:[#allocation47_spill] sm:$0xff]  ;;  %v20706_v41 = vld [vmem:[#allocation56_spill] sm:$0xff] }
 0x7d1   :  { %v20708_v59 = vld [vmem:[#allocation58_spill] sm:$0xff] }
 0x7d3   :  { %v2734_v17 = vpop.f32.mrb[48].mxu0  ;;  %v2809_v43 = vpop.f32.mrb[56].mxu1 }
 0x7d4   :  { %v2814_v54 = vmax.f32 %v2734_v17, %v2809_v43  ;;  %v2736_v35 = vpop.f32.mrb[49].mxu0  ;;  %v2811_v3 = vpop.f32.mrb[57].mxu1  ;;  %v20699_v43 = vld [vmem:[#allocation49_spill] sm:$0xff]  ;;  %v20709_v17 = vld [vmem:[#allocation59_spill] sm:$0xff] }
 0x7d5   :  { %v20700_v35 = vld [vmem:[#allocation50_spill] sm:$0xff] }
 0x7d6   :  { %v2815_v39 = vpack.c.bf16 %v2814_v54, %v2813_v62  ;;  %v20698_v54 = vld [vmem:[#allocation48_spill] sm:$0xff]  ;;  %v20707_v62 = vld [vmem:[#allocation57_spill] sm:$0xff] }
 0x7d8   :  { %v2817_v9 = vshrl.u32 %v2815_v39, 16  ;;  %v2819_v20 = vshll.u32 %v2815_v39, 16  ;;  %v2911_v4 = vrot.slane %v2815_v39, 1 }
 0x7da   :  { %v2821_v49 = vrot.slane %v2819_v20, 1  ;;  %11471 = vmatmul.mubr.msk.bf16.vlgmr.msra.gmra.mrb[60].mxu1 %vm20694_vm3, %v2911_v4  ;;  %v15909_v60 = vrot.slane %v2817_v9, 1  ;;  %v15911_v38 = vrot.slane %v2819_v20, 2  ;;  %v20701_v20 = vld [vmem:[#allocation51_spill] sm:$0xff]  ;;  %v20702_v4 = vld [vmem:[#allocation52_spill] sm:$0xff]  ;;  %vm20722_vm3 = vcmask 1043456  }
 0x7db   :  { %3012 = vmatpush1.bf16.msra.mxu1 %v20695_v53  ;;  %3043 = vmatprep.mubr.bf16.mxu1 %v20543_v48  ;;  %v20705_v53 = vld [vmem:[#allocation55_spill] sm:$0xff] }
 0x7dc   :  { %v2822_v13 = vor.u32 %v2821_v49, %v2817_v9  ;;  %3013 = vmatprep.subr.bf16.mxu1 %v20696_v7  ;;  %v2960_v3 = vor.u32 %v15911_v38, %v15909_v60  ;;  %v20703_v49 = vld [vmem:[#allocation53_spill] sm:$0xff]  ;;  %v20704_v9 = vld [vmem:[#allocation54_spill] sm:$0xff] }
 0x7dd   :  { %v20711_v7 = vld [vmem:[#allocation61_spill] sm:$0xff] }
 0x7de   :  { %11467 = vmatmul.mubr.msk.bf16.vlgmr.msra.gmra.mrb[52].mxu0 %vm20697_vm1, %v2822_v13  ;;  %v20710_v13 = vld [vmem:[#allocation60_spill] sm:$0xff]  ;;  %vm20726_vm1 = vmmov %vm20722_vm3 }
 0x7df   :  { %2870 = vmatpush1.bf16.msra.mxu0 %v20698_v54  ;;  %3014 = vmatpush1.bf16.msra.mxu1 %v20699_v43  ;;  %v20712_v54 = vld [vmem:[#allocation62_spill] sm:$0xff]  ;;  %v20713_v43 = vld [vmem:[#allocation63_spill] sm:$0xff] }
 0x7e0   :  { %2871 = vmatprep.subr.bf16.mxu0 %v20700_v35  ;;  %3015 = vmatprep.subr.bf16.mxu1 %v20701_v20  ;;  %v20714_v35 = vld [vmem:[#allocation64_spill] sm:$0xff]  ;;  %v20715_v20 = vld [vmem:[#allocation65_spill] sm:$0xff] }
 0x7e1   :  { %2901 = vmatprep.mubr.bf16.mxu0 %v20543_v48 }
 0x7e3   :  { %2872 = vmatpush1.bf16.msra.mxu0 %v20702_v4  ;;  %3016 = vmatpush1.bf16.msra.mxu1 %v20703_v49  ;;  %v20716_v4 = vld [vmem:[#allocation66_spill] sm:$0xff]  ;;  %v20717_v49 = vld [vmem:[#allocation67_spill] sm:$0xff] }
 0x7e4   :  { %2873 = vmatprep.subr.bf16.mxu0 %v20704_v9  ;;  %3017 = vmatprep.subr.bf16.mxu1 %v20705_v53  ;;  %v20718_v9 = vld [vmem:[#allocation68_spill] sm:$0xff]  ;;  %v20719_v53 = vld [vmem:[#allocation69_spill] sm:$0xff] }
 0x7e7   :  { %2874 = vmatpush1.bf16.msra.mxu0 %v20706_v41  ;;  %3018 = vmatpush1.bf16.msra.mxu1 %v20707_v62  ;;  %v20720_v41 = vld [vmem:[#allocation70_spill] sm:$0xff]  ;;  %v20721_v62 = vld [vmem:[#allocation71_spill] sm:$0xff] }
 0x7e8   :  { %2875 = vmatprep.subr.bf16.mxu0 %v20708_v59  ;;  %3019 = vmatprep.subr.bf16.mxu1 %v20709_v17  ;;  %v20723_v59 = vld [vmem:[#allocation72_spill] sm:$0xff]  ;;  %v20724_v17 = vld [vmem:[#allocation73_spill] sm:$0xff] }
 0x7eb   :  { %2876 = vmatpush1.bf16.msra.mxu0 %v20710_v13  ;;  %3020 = vmatpush1.bf16.msra.mxu1 %v20711_v7  ;;  %v20725_v13 = vld [vmem:[#allocation74_spill] sm:$0xff]  ;;  %v3007_v7 = vrot.slane %v2815_v39, 2 }
 0x7ec   :  { %2877 = vmatprep.subr.bf16.mxu0 %v20712_v54  ;;  %3021 = vmatprep.subr.bf16.mxu1 %v20713_v43  ;;  %v20728_v54 = vld [vmem:[#allocation75_spill] sm:$0xff]  ;;  %v20729_v43 = vld [vmem:[#allocation76_spill] sm:$0xff] }
 0x7ef   :  { %2878 = vmatpush1.bf16.msra.mxu0 %v20714_v35  ;;  %3022 = vmatpush1.bf16.msra.mxu1 %v20715_v20  ;;  %v20731_v35 = vld [vmem:[#allocation77_spill] sm:$0xff]  ;;  %v20732_v20 = vld [vmem:[#allocation78_spill] sm:$0xff] }
 0x7f0   :  { %2879 = vmatprep.subr.bf16.mxu0 %v20716_v4  ;;  %3023 = vmatprep.subr.bf16.mxu1 %v20717_v49  ;;  %v20733_v4 = vld [vmem:[#allocation79_spill] sm:$0xff]  ;;  %v20734_v49 = vld [vmem:[#allocation80_spill] sm:$0xff] }
 0x7f3   :  { %2880 = vmatpush1.bf16.msra.mxu0 %v20718_v9  ;;  %3024 = vmatpush1.bf16.msra.mxu1 %v20719_v53  ;;  %v20737_v9 = vld [vmem:[#allocation82_spill] sm:$0xff]  ;;  %v20738_v53 = vld [vmem:[#allocation83_spill] sm:$0xff] }
 0x7f4   :  { %2881 = vmatprep.subr.bf16.mxu0 %v20720_v41  ;;  %11474 = vmatprep.subr.msk.bf16.mxu1 %vm20722_vm3, %v20721_v62  ;;  %vm20730_vm3 = vmmov %vm20727_vm15  ;;  %v20739_v41 = vld [vmem:[#allocation84_spill] sm:$0xff] }
 0x7f7   :  { %2882 = vmatpush1.bf16.msra.mxu0 %v20723_v59  ;;  %3026 = vmatpush1.bf16.msra.mxu1 %v20724_v17  ;;  %v20740_v59 = vld [vmem:[#allocation85_spill] sm:$0xff] }
 0x7f8   :  { %11468 = vmatprep.subr.msk.bf16.mxu0 %vm20726_vm1, %v20725_v13  ;;  %12736 = vmatprep.subr.bf16.mxu1 %v20571_v44  ;;  %vm20744_vm1 = vnez %v20459_v31 }
 0x7fa   :  { %11475 = vmatmul.mubr.msk.bf16.vlgmr.msra.gmra.mrb[64].mxu1 %vm20727_vm15, %v3007_v7  ;;  %vm20735_vm15 = vnez %v20443_v14  ;;  %v20741_v7 = vld [vmem:[#allocation86_spill] sm:$0xff] }
 0x7fb   :  { %2884 = vmatpush1.bf16.msra.mxu0 %v20728_v54  ;;  %12738 = vmatpush1.bf16.msk.msra.mxu1 %vm20574_vm8, %v20573_v5 }
 0x7fc   :  { %2964 = vmatprep.subr.bf16.mxu0 %v20729_v43  ;;  %12739 = vmatprep.subr.bf16.mxu1 %v20571_v44  ;;  %v20742_v43 = vld [vmem:[#allocation87_spill] sm:$0xff] }
 0x7fe   :  { %11469 = vmatmul.mubr.msk.bf16.vlgmr.msra.gmra.mrb[56].mxu0 %vm20730_vm3, %v2815_v39  ;;  %v20736_v39 = vld [vmem:[#allocation81_spill] sm:$0xff]  ;;  %vm20747_vm3 = vcmask 1043456  }
 0x7ff   :  { %2965 = vmatpush1.bf16.msra.mxu0 %v20731_v35  ;;  %2996 = vmatprep.mubr.bf16.mxu0 %v20543_v48  ;;  %v20743_v35 = vld [vmem:[#allocation88_spill] sm:$0xff] }
 0x800   :  { %2966 = vmatprep.subr.bf16.mxu0 %v20732_v20  ;;  %12741 = vmatpush1.bf16.msk.msra.mxu1 %vm20578_vm9, %v20573_v5  ;;  %v20745_v20 = vld [vmem:[#allocation89_spill] sm:$0xff] }
 0x801   :  { %12742 = vmatprep.subr.bf16.mxu1 %v20571_v44 }
 0x803   :  { %2967 = vmatpush1.bf16.msra.mxu0 %v20733_v4  ;;  %v20746_v4 = vld [vmem:[#allocation90_spill] sm:$0xff] }
 0x804   :  { %2968 = vmatprep.subr.bf16.mxu0 %v20734_v49  ;;  %12744 = vmatpush1.bf16.msk.msra.mxu1 %vm20735_vm15, %v20573_v5  ;;  %v20749_v49 = vld [vmem:[#allocation91_spill] sm:$0xff] }
 0x805   :  { %12745 = vmatprep.subr.bf16.mxu1 %v20571_v44 }
 0x807   :  { %2969 = vmatpush1.bf16.msra.mxu0 %v20736_v39 }
 0x808   :  { %2970 = vmatprep.subr.bf16.mxu0 %v20737_v9  ;;  %12747 = vmatpush1.bf16.msk.msra.mxu1 %vm20629_vm7, %v20573_v5 }
 0x809   :  { %12748 = vmatprep.subr.bf16.mxu1 %v20571_v44 }
 0x80b   :  { %2971 = vmatpush1.bf16.msra.mxu0 %v20738_v53 }
 0x80c   :  { %2972 = vmatprep.subr.bf16.mxu0 %v20739_v41  ;;  %12750 = vmatpush1.bf16.msk.msra.mxu1 %vm20630_vm6, %v20573_v5 }
 0x80d   :  { %12751 = vmatprep.subr.bf16.mxu1 %v20571_v44 }
 0x80f   :  { %2973 = vmatpush1.bf16.msra.mxu0 %v20740_v59 }
 0x810   :  { %2974 = vmatprep.subr.bf16.mxu0 %v20741_v7  ;;  %12753 = vmatpush1.bf16.msk.msra.mxu1 %vm20631_vm11, %v20573_v5  ;;  %vm20750_vm11 = vnez %v20467_v40 }
 0x811   :  { %12754 = vmatprep.subr.bf16.mxu1 %v20571_v44 }
 0x813   :  { %2975 = vmatpush1.bf16.msra.mxu0 %v20742_v43 }
 0x814   :  { %2976 = vmatprep.subr.bf16.mxu0 %v20743_v35  ;;  %12756 = vmatpush1.bf16.msk.msra.mxu1 %vm20744_vm1, %v20573_v5  ;;  %vm20751_vm1 = vcmask 982016  }
 0x815   :  { %12757 = vmatprep.subr.bf16.mxu1 %v20571_v44 }
 0x817   :  { %2977 = vmatpush1.bf16.msra.mxu0 %v20745_v20 }
 0x818   :  { %11472 = vmatprep.subr.msk.bf16.mxu0 %vm20747_vm3, %v20746_v4  ;;  %12759 = vmatpush1.bf16.msk.msra.mxu1 %vm20748_vm0, %v20573_v5  ;;  %vm20752_vm3 = vnez %v20471_v45 }
 0x819   :  { %12760 = vmatprep.subr.bf16.mxu1 %v20571_v44 }
 0x81b   :  { %2979 = vmatpush1.bf16.msra.mxu0 %v20749_v49 }
 0x81c   :  { %12762 = vmatpush1.bf16.msk.msra.mxu1 %vm20750_vm11, %v20573_v5 }
 0x81d   :  { %12763 = vmatprep.subr.bf16.mxu1 %v20571_v44 }
 0x81e   :  { %11473 = vmatmul.mubr.msk.bf16.vlgmr.msra.gmra.mrb[60].mxu0 %vm20751_vm1, %v2960_v3  ;;  %vm20753_vm1 = vcmask 64512  }
 0x81f   :  { %3122 = vmatprep.mubr.f32.mxu0 %v20601_v58 }
 0x820   :  { %12765 = vmatpush1.bf16.msk.msra.mxu1 %vm20752_vm3, %v20573_v5  ;;  %vm20754_vm3 = vmmov %vm20753_vm1 }
 0x8ad   :  { %v2949_v39 = vpop.f32.mrb[60].mxu1 }
 0x8ae   :  { %v2951_v9 = vpop.f32.mrb[61].mxu1 }
 0x8af   :  { %v2953_v53 = vpop.f32.mrb[62].mxu1 }
 0x8b0   :  { %v2954_v41 = vpop.f32.mrb[63].mxu1 }
 0x8b1   :  { %v2860_v59 = vpop.f32.mrb[52].mxu0 }
 0x8b2   :  { %v2862_v7 = vpop.f32.mrb[53].mxu0 }
 0x8b3   :  { %v2864_v43 = vpop.f32.mrb[54].mxu0 }
 0x8b4   :  { %v2865_v35 = vpop.f32.mrb[55].mxu0 }
 0x8cd   :  { %v3045_v20 = vpop.f32.mrb[64].mxu1 }
 0x8ce   :  { %v3047_v49 = vpop.f32.mrb[65].mxu1 }
 0x8cf   :  { %v3049_v4 = vpop.f32.mrb[66].mxu1 }
 0x8d0   :  { %v3050_v60 = vpop.f32.mrb[67].mxu1 }
 0x8d1   :  { %v2903_v38 = vpop.f32.mrb[56].mxu0 }
 0x8d2   :  { %v2904_v3 = vadd.f32 %v2903_v38, %v2860_v59  ;;  %v2905_v54 = vpop.f32.mrb[57].mxu0 }
 0x8d3   :  { %v2906_v13 = vadd.f32 %v2905_v54, %v2862_v7  ;;  %v2907_v17 = vpop.f32.mrb[58].mxu0 }
 0x8d4   :  { %v2908_v62 = vpop.f32.mrb[59].mxu0  ;;  %v2956_v29 = vadd.f32 %v2949_v39, %v2904_v3 }
 0x8d5   :  { %v2957_v33 = vadd.f32 %v2951_v9, %v2906_v13 }
 0x8f1   :  { %v2998_v46 = vpop.f32.mrb[60].mxu0 }
 0x8f2   :  { %v3005_v34 = vadd.f32 %v2998_v46, %v2956_v29  ;;  %v3000_v53 = vpop.f32.mrb[61].mxu0  ;;  %v11523_v46 = vld [vmem:[%s19961_s0 + $0x58] sm:$0xf] }
 0x8f3   :  { %v3006_v41 = vadd.f32 %v3000_v53, %v2957_v33  ;;  %v3002_v57 = vpop.f32.mrb[62].mxu0 }
 0x8f4   :  { %v3052_v47 = vadd.f32 %v3045_v20, %v3005_v34  ;;  %v3003_v43 = vpop.f32.mrb[63].mxu0  ;;  %v11522_v34 = vld [vmem:[%s19961_s0 + $0x50] sm:$0xff] }
 0x8f5   :  { %v3053_v35 = vadd.f32 %v3047_v49, %v3006_v41  ;;  %v16077_v29 = vpack.c.bf16 %v11523_v46, %v11522_v34  ;;  %v20776_v34 = vld [vmem:[#allocation96_spill] sm:$0xff] }
 0x8f6   :  { %v3054_v52 = vadd.f32 %v3052_v47, %v15486_v21  ;;  %v11521_v47 = vld [vmem:[%s19961_s0 + $0x48] sm:$0xff] }
 0x8f7   :  { %v3055_v4 = vadd.f32 %v3053_v35, %v15490_v2  ;;  %v3377_v7 = vshll.u32 %v16077_v29, 16  ;;  %v3381_v53 = vshrl.u32 %v16077_v29, 16  ;;  %v3499_v41 = vrot.slane %v16077_v29, 1  ;;  %v20774_v35 = vld [vmem:[#allocation95_spill] sm:$0xff] }
 0x8f8   :  { %v3056_v59 = vmax.f32 %v3054_v52, 0.0  ;;  %v11520_v52 = vld [vmem:[%s19961_s0 + $0x40] sm:$0xff] }
 0x8f9   :  { %v3057_v60 = vmax.f32 %v3055_v4, 0.0  ;;  %v16069_v57 = vpack.c.bf16 %v11521_v47, %v11520_v52  ;;  %v3379_v38 = vrot.slane %v3377_v7, 1  ;;  %v20775_v52 = vld [vmem:[#allocation3_spill] sm:$0xff] }
 0x8fb   :  { %3058 = vmatprep.subr.mxu0 %v3057_v60  ;;  %v3372_v62 = vshll.u32 %v16069_v57, 16  ;;  %v3370_v39 = vshrl.u32 %v16069_v57, 16 }
 0x8fc   :  { %3059 = vmatpush1.msra.mxu0 %v3056_v59 }
 0x8fd   :  { %11476 = vmatmul.mubr.msk.f32.vlgmr.msra.gmra.mrb[50].mxu0 %vm20753_vm1, %v14807_v12  ;;  %3129 = vmatprep.subr.mxu0 %v3057_v60  ;;  %vm20756_vm1 = vnez %v20465_v37  ;;  %v3374_v9 = vrot.slane %v3372_v62, 1  ;;  %v3564_v4 = vrot.slane %v3370_v39, 1  ;;  %v3568_v60 = vrot.slane %v3377_v7, 2  ;;  %v20796_v7 = vld [vmem:[#allocation19_spill] sm:$0xff] }
 0x8fe   :  { %3130 = vmatpush1.msra.mxu0 %v3056_v59  ;;  %3193 = vmatprep.mubr.f32.mxu0 %v20601_v58  ;;  %v3567_v59 = vrot.slane %v3381_v53, 1  ;;  %v3565_v47 = vrot.slane %v3372_v62, 2  ;;  %v20781_v62 = vld [vmem:[#allocation4_spill] sm:$0xff] }
 0x8ff   :  { %12706 = vmatprep.subr.bf16.mxu0 %v20571_v44  ;;  %v3375_v20 = vor.u32 %v3374_v9, %v3370_v39  ;;  %v20792_v39 = vld [vmem:[#allocation15_spill] sm:$0xff]  ;;  %v20794_v9 = vld [vmem:[#allocation17_spill] sm:$0xff] }
 0x900   :  { %v3566_v46 = vor.u32 %v3565_v47, %v3564_v4 }
 0x901   :  { %11477 = vmatmul.mubr.msk.f32.vlgmr.msra.gmra.mrb[64].mxu0 %vm20754_vm3, %v14826_v16  ;;  %vm20755_vm3 = vnez %v20461_v32 }
 0x902   :  { %12708 = vmatpush1.bf16.msk.msra.mxu0 %vm14828_vm5, %v20573_v5 }
 0x903   :  { %12709 = vmatprep.subr.bf16.mxu0 %v20571_v44 }
 0x906   :  { %12711 = vmatpush1.bf16.msk.msra.mxu0 %vm14593_vm14, %v20573_v5 }
 0x907   :  { %12712 = vmatprep.subr.bf16.mxu0 %v20571_v44 }
 0x90a   :  { %12714 = vmatpush1.bf16.msk.msra.mxu0 %vm14610_vm10, %v20573_v5 }
 0x90b   :  { %12715 = vmatprep.subr.bf16.mxu0 %v20571_v44 }
 0x90e   :  { %12717 = vmatpush1.bf16.msk.msra.mxu0 %vm14623_vm2, %v20573_v5 }
 0x90f   :  { %12718 = vmatprep.subr.bf16.mxu0 %v20571_v44 }
 0x912   :  { %12720 = vmatpush1.bf16.msk.msra.mxu0 %vm14641_vm13, %v20573_v5 }
 0x913   :  { %12721 = vmatprep.subr.bf16.mxu0 %v20571_v44 }
 0x916   :  { %12723 = vmatpush1.bf16.msk.msra.mxu0 %vm14659_vm12, %v20573_v5  ;;  %vm20757_vm12 = vnez %v20469_v42 }
 0x917   :  { %12724 = vmatprep.subr.bf16.mxu0 %v20571_v44 }
 0x91a   :  { %12726 = vmatpush1.bf16.msk.msra.mxu0 %vm14677_vm4, %v20573_v5  ;;  %vm20761_vm4 = vsmask.f32 7424 }
 0x91b   :  { %12727 = vmatprep.subr.bf16.mxu0 %v20571_v44  ;;  %v3380_v3 = vsel %vm20761_vm4, %v3375_v20, %v3379_v38  ;;  %v16203_v20 = vld [vmem:[%s19963_s3 + $0xf4] ss:$8 sps:$4 sm:$0xff]  }
 0x91e   :  { %12729 = vmatpush1.bf16.msk.msra.mxu0 %vm20755_vm3, %v20573_v5  ;;  %vm20760_vm3 = vcmask 1045504  }
 0x91f   :  { %12730 = vmatprep.subr.bf16.mxu0 %v20571_v44 }
 0x922   :  { %12732 = vmatpush1.bf16.msk.msra.mxu0 %vm20756_vm1, %v20573_v5 }
 0x923   :  { %12733 = vmatprep.subr.bf16.mxu0 %v20571_v44 }
 0x926   :  { %12735 = vmatpush1.bf16.msk.msra.mxu0 %vm20757_vm12, %v20573_v5  ;;  %vm20758_vm12 = vcmask 261120  }
 0x927   :  { %3390 = vmatprep.subr.bf16.mxu0 %v15542_v55  ;;  %vm20759_vm1 = vmmov %vm20758_vm12 }
 0x9d0   :  { %v3124_v33 = vpop.f32.mrb[50].mxu0 }
 0x9d1   :  { %v3126_v55 = vpop.f32.mrb[51].mxu0 }
 0x9d4   :  { %v3195_v17 = vpop.f32.mrb[64].mxu0 }
 0x9d5   :  { %v3200_v13 = vmax.f32 %v3124_v33, %v3195_v17  ;;  %v3197_v54 = vpop.f32.mrb[65].mxu0  ;;  %v3569_v33 = vor.u32 %v3568_v60, %v3567_v59  ;;  %v20780_v17 = vld [vmem:[#allocation98_spill] sm:$0xff] }
 0x9d6   :  { %v3201_v49 = vmax.f32 %v3126_v55, %v3197_v54  ;;  %v3635_v54 = vrot.slane %v16077_v29, 2 }
 0x9d8   :  { %11498 = vmatprep.mubr.msk.f32.mxu0 %vm20758_vm12, %v3201_v49  ;;  %11519 = vmatprep.mubr.msk.f32.mxu1 %vm20759_vm1, %v3201_v49  ;;  %vm20762_vm12 = vcmask 228352   ;;  %vm20763_vm1 = vmmov %vm20760_vm3 }
 0x9d9   :  { %3270 = vmatmul.mubr.f32.vlgmr.msra.gmra.mrb[66].mxu0 %v3200_v13  ;;  %3340 = vmatmul.mubr.f32.vlgmr.msra.gmra.mrb[58].mxu1 %v3200_v13  ;;  %v3634_v13 = vrot.slane %v16069_v57, 2 }
 0x9da   :  { %3391 = vmatpush1.bf16.msra.mxu0 %v15569_v1  ;;  %3422 = vmatprep.mubr.bf16.mxu0 %v20543_v48  ;;  %v3383_v1 = vor.u32 %v3381_v53, %v3379_v38 }
 0x9db   :  { %11524 = vmatprep.subr.msk.bf16.mxu0 %vm20760_vm3, %v15576_v25  ;;  %3776 = vmatprep.mubr.f32.mxu1 %v20601_v58  ;;  %vm20764_vm3 = vmmov %vm20762_vm12  ;;  %v20766_v25 = vld [vmem:[#allocation92_spill] sm:$0xff] }
 0x9dc   :  { %vm20765_vm4 = vmmov %vm20764_vm3 }
 0x9de   :  { %3393 = vmatpush1.bf16.msra.mxu0 %v14442_v8 }
 0x9df   :  { %3445 = vmatprep.subr.bf16.mxu0 %v15586_v50  ;;  %v20767_v50 = vld [vmem:[#allocation93_spill] sm:$0xff] }
 0x9e1   :  { %11525 = vmatmul.mubr.msk.bf16.vlgmr.msra.gmra.mrb[68].mxu0 %vm20762_vm12, %v3380_v3  ;;  %vm20768_vm12 = vmmov %vm20763_vm1 }
 0x9e2   :  { %3432 = vmatprep.mubr.bf16.mxu0 %v20543_v48  ;;  %3446 = vmatpush1.bf16.msra.mxu0 %v15595_v56  ;;  %v20769_v56 = vld [vmem:[#allocation2_spill] sm:$0xff] }
 0x9e3   :  { %11527 = vmatprep.subr.msk.bf16.mxu0 %vm20763_vm1, %v15601_v30  ;;  %v20770_v30 = vld [vmem:[#allocation94_spill] sm:$0xff]  ;;  %vm20771_vm1 = vmmov %vm20764_vm3 }
 0x9e6   :  { %3448 = vmatpush1.bf16.msra.mxu0 %v14473_v27 }
 0x9e7   :  { %3507 = vmatprep.subr.bf16.mxu0 %v15609_v63  ;;  %v3498_v63 = vrot.slane %v16069_v57, 1 }
 0x9e9   :  { %11526 = vmatmul.mubr.msk.bf16.gmra.mrb[72].mxu0 %vm20764_vm3, %v3383_v1  ;;  %vm20772_vm3 = vcmask 1046528  }
 0x9ea   :  { %3477 = vmatprep.mubr.bf16.mxu0 %v20543_v48  ;;  %v3500_v43 = vsel %vm20772_vm3, %v3498_v63, %v3499_v41  ;;  %vm20777_vm3 = vsmask.f32 6400 }
 0x9eb   :  { %v3570_v55 = vsel %vm20777_vm3, %v3566_v46, %v3569_v33  ;;  %vm20782_vm3 = vmmov %vm20768_vm12 }
 0x9ec   :  { %v3636_v49 = vsel %vm20782_vm3, %v3634_v13, %v3635_v54  ;;  %vm20786_vm3 = vnez %v20459_v31 }
 0x9f1   :  { %11528 = vmatmul.mubr.msk.bf16.vlgmr.msra.gmra.mrb[68].mxu0 %vm20765_vm4, %v16069_v57  ;;  %vm20773_vm4 = vmmov %vm20771_vm1  ;;  %v20788_v57 = vld [vmem:[#allocation7_spill] sm:$0xff] }
 0x9f2   :  { %3487 = vmatprep.mubr.bf16.mxu0 %v20543_v48  ;;  %3508 = vmatpush1.bf16.msra.mxu0 %v20766_v25 }
 0x9f3   :  { %11530 = vmatprep.subr.msk.bf16.mxu0 %vm20768_vm12, %v20767_v50 }
 0x9f6   :  { %3510 = vmatpush1.bf16.msra.mxu0 %v20769_v56 }
 0x9f7   :  { %3577 = vmatprep.subr.bf16.mxu0 %v20770_v30 }
 0x9f9   :  { %11529 = vmatmul.mubr.msk.bf16.gmra.mrb[76].mxu0 %vm20771_vm1, %v16077_v29  ;;  %v20790_v29 = vld [vmem:[#allocation9_spill] sm:$0xff] }
 0x9fa   :  { %3539 = vmatprep.mubr.bf16.mxu0 %v20543_v48 }
 0xa01   :  { %11531 = vmatmul.mubr.msk.bf16.vlgmr.msra.gmra.mrb[68].mxu0 %vm20773_vm4, %v3500_v43  ;;  %vm20778_vm4 = vmmov %vm20771_vm1 }
 0xa02   :  { %3549 = vmatprep.mubr.bf16.mxu0 %v20543_v48  ;;  %3578 = vmatpush1.bf16.msra.mxu0 %v20774_v35 }
 0xa03   :  { %11533 = vmatprep.subr.msk.bf16.mxu0 %vm20768_vm12, %v15654_v24  ;;  %v20779_v24 = vld [vmem:[#allocation97_spill] sm:$0xff] }
 0xa06   :  { %3580 = vmatpush1.bf16.msra.mxu0 %v20775_v52 }
 0xa07   :  { %3643 = vmatprep.subr.bf16.mxu0 %v20776_v34 }
 0xa09   :  { %11532 = vmatmul.mubr.msk.bf16.gmra.mrb[80].mxu0 %vm20771_vm1, %v3499_v41 }
 0xa0a   :  { %3609 = vmatprep.mubr.bf16.mxu0 %v20543_v48 }
 0xa11   :  { %11534 = vmatmul.mubr.msk.bf16.vlgmr.msra.gmra.mrb[68].mxu0 %vm20778_vm4, %v3570_v55  ;;  %vm20783_vm4 = vmmov %vm20771_vm1 }
 0xa12   :  { %3619 = vmatprep.mubr.bf16.mxu0 %v20543_v48  ;;  %3644 = vmatpush1.bf16.msra.mxu0 %v20779_v24 }
 0xa13   :  { %11536 = vmatprep.subr.msk.bf16.mxu0 %vm20768_vm12, %v20780_v17  ;;  %vm20784_vm12 = vmmov %vm20771_vm1 }
 0xa16   :  { %3646 = vmatpush1.bf16.msra.mxu0 %v20781_v62 }
 0xa17   :  { %12819 = vmatprep.subr.bf16.mxu0 %v20571_v44 }
 0xa19   :  { %11535 = vmatmul.mubr.msk.bf16.gmra.mrb[84].mxu0 %vm20771_vm1, %v3569_v33  ;;  %vm20785_vm1 = vnez %v20455_v26  ;;  %v21692_v26 = vld [vmem:[#allocation91_spill] sm:$0xff] }
 0xa1a   :  { %3675 = vmatprep.mubr.bf16.mxu0 %v20543_v48 }
 0xa21   :  { %11537 = vmatmul.mubr.msk.bf16.vlgmr.msra.gmra.mrb[68].mxu0 %vm20783_vm4, %v3636_v49  ;;  %vm20787_vm4 = vnez %v20471_v45 }
 0xa22   :  { %3685 = vmatprep.mubr.bf16.mxu0 %v20543_v48  ;;  %12821 = vmatpush1.bf16.msk.msra.mxu0 %vm20574_vm8, %v20573_v5 }
 0xa23   :  { %12822 = vmatprep.subr.bf16.mxu0 %v20571_v44 }
 0xa26   :  { %12824 = vmatpush1.bf16.msk.msra.mxu0 %vm20578_vm9, %v20573_v5 }
 0xa27   :  { %12825 = vmatprep.subr.bf16.mxu0 %v20571_v44 }
 0xa29   :  { %11538 = vmatmul.mubr.msk.bf16.gmra.mrb[88].mxu0 %vm20784_vm12, %v3635_v54  ;;  %vm20789_vm12 = vnez %v20788_v57 }
 0xa2a   :  { %12827 = vmatpush1.bf16.msk.msra.mxu0 %vm20735_vm15, %v20573_v5 }
 0xa2b   :  { %12828 = vmatprep.subr.bf16.mxu0 %v20571_v44 }
 0xa2e   :  { %12830 = vmatpush1.bf16.msk.msra.mxu0 %vm20629_vm7, %v20573_v5 }
 0xa2f   :  { %12831 = vmatprep.subr.bf16.mxu0 %v20571_v44 }
 0xa32   :  { %12833 = vmatpush1.bf16.msk.msra.mxu0 %vm20630_vm6, %v20573_v5 }
 0xa33   :  { %12834 = vmatprep.subr.bf16.mxu0 %v20571_v44 }
 0xa36   :  { %12836 = vmatpush1.bf16.msk.msra.mxu0 %vm20785_vm1, %v20573_v5 }
 0xa37   :  { %12837 = vmatprep.subr.bf16.mxu0 %v20571_v44 }
 0xa3a   :  { %12839 = vmatpush1.bf16.msk.msra.mxu0 %vm20786_vm3, %v20573_v5 }
 0xa3b   :  { %12840 = vmatprep.subr.bf16.mxu0 %v20571_v44 }
 0xa3e   :  { %12842 = vmatpush1.bf16.msk.msra.mxu0 %vm20748_vm0, %v20573_v5  ;;  %vm20791_vm0 = vnez %v20790_v29 }
 0xa3f   :  { %12843 = vmatprep.subr.bf16.mxu0 %v20571_v44 }
 0xa42   :  { %12845 = vmatpush1.bf16.msk.msra.mxu0 %vm20750_vm11, %v20573_v5  ;;  %vm20793_vm11 = vnez %v20792_v39 }
 0xa43   :  { %12846 = vmatprep.subr.bf16.mxu0 %v20571_v44 }
 0xa46   :  { %12848 = vmatpush1.bf16.msk.msra.mxu0 %vm20787_vm4, %v20573_v5  ;;  %vm20795_vm4 = vnez %v20794_v9 }
 0xa47   :  { %12849 = vmatprep.subr.bf16.mxu0 %v20571_v44 }
 0xa4a   :  { %12851 = vmatpush1.bf16.msk.msra.mxu0 %vm20789_vm12, %v20573_v5  ;;  %vm20797_vm12 = vnez %v20796_v7 }
 0xa4b   :  { %12852 = vmatprep.subr.bf16.mxu0 %v20571_v44 }
 0xa4e   :  { %12854 = vmatpush1.bf16.msk.msra.mxu0 %vm20791_vm0, %v20573_v5  ;;  %vm20809_vm0 = vnez %v20465_v37 }
 0xa4f   :  { %12855 = vmatprep.subr.bf16.mxu0 %v20571_v44 }
 0xa52   :  { %12857 = vmatpush1.bf16.msk.msra.mxu0 %vm20793_vm11, %v20573_v5 }
 0xa53   :  { %12858 = vmatprep.subr.bf16.mxu0 %v20571_v44 }
 0xa56   :  { %12860 = vmatpush1.bf16.msk.msra.mxu0 %vm20795_vm4, %v20573_v5 }
 0xa57   :  { %12861 = vmatprep.subr.bf16.mxu0 %v20571_v44 }
 0xa5a   :  { %12863 = vmatpush1.bf16.msk.msra.mxu0 %vm20797_vm12, %v20573_v5  ;;  %vm20800_vm12 = vcmask 195584  }
 0xa5b   :  { %4128 = vmatprep.subr.bf16.mxu0 %v16203_v20  ;;  %vm20802_vm4 = vmmov %vm20800_vm12 }
 0xa5c   :  { %vm20803_vm11 = vmmov %vm20802_vm4 }
 0xaac   :  { %v3271_v38 = vpop.f32.mrb[66].mxu0  ;;  %v3341_v3 = vpop.f32.mrb[58].mxu1 }
 0xaad   :  { %v16206_v53 = vmax.f32 %v3271_v38, %v3341_v3  ;;  %v3273_v1 = vpop.f32.mrb[67].mxu0  ;;  %v3343_v25 = vpop.f32.mrb[59].mxu1 }
 0xaaf   :  { %20798 = vst [vmem:[#allocation20_spill] sm:$0xff] %v16206_v53 }
 0xabc   :  { %v3434_v50 = vpop.f32.mrb[72].mxu0 }
 0xabd   :  { %v3436_v30 = vpop.f32.mrb[73].mxu0 }
 0xabe   :  { %v3438_v63 = vpop.f32.mrb[74].mxu0 }
 0xabf   :  { %v3439_v41 = vpop.f32.mrb[75].mxu0 }
 0xac0   :  { %v20799_v41 = vld [vmem:[#allocation11_spill] sm:$0xff] }
 0xacc   :  { %v3489_v43 = vpop.f32.mrb[76].mxu0 }
 0xacd   :  { %v3490_v35 = vadd.f32 %v3489_v43, %v3434_v50  ;;  %v3491_v4 = vpop.f32.mrb[77].mxu0 }
 0xace   :  { %v3492_v60 = vadd.f32 %v3491_v4, %v3436_v30  ;;  %v3493_v59 = vpop.f32.mrb[78].mxu0 }
 0xacf   :  { %v3494_v47 = vpop.f32.mrb[79].mxu0 }
 0xadc   :  { %v3551_v34 = vpop.f32.mrb[80].mxu0 }
 0xadd   :  { %v3562_v46 = vadd.f32 %v3551_v34, %v3490_v35  ;;  %v3553_v33 = vpop.f32.mrb[81].mxu0 }
 0xade   :  { %v3563_v55 = vadd.f32 %v3553_v33, %v3492_v60  ;;  %v3555_v24 = vpop.f32.mrb[82].mxu0 }
 0xadf   :  { %v3556_v17 = vpop.f32.mrb[83].mxu0 }
 0xaec   :  { %v3621_v13 = vpop.f32.mrb[84].mxu0 }
 0xaed   :  { %v3632_v54 = vadd.f32 %v3621_v13, %v3562_v46  ;;  %v3623_v49 = vpop.f32.mrb[85].mxu0 }
 0xaee   :  { %v3633_v38 = vadd.f32 %v3623_v49, %v3563_v55  ;;  %v3625_v3 = vpop.f32.mrb[86].mxu0 }
 0xaef   :  { %v3626_v1 = vpop.f32.mrb[87].mxu0 }
 0xaf4   :  { %v3677_v25 = vpop.f32.mrb[68].mxu0 }
 0xaf5   :  { %v3700_v63 = vadd.f32 %v3677_v25, %v14792_v51  ;;  %v3679_v50 = vpop.f32.mrb[69].mxu0 }
 0xaf6   :  { %v3701_v30 = vadd.f32 %v3679_v50, %v20799_v41  ;;  %v3681_v43 = vpop.f32.mrb[70].mxu0 }
 0xaf7   :  { %v3702_v4 = vadd.f32 %v3681_v43, %v14792_v51  ;;  %v3683_v35 = vpop.f32.mrb[71].mxu0  ;;  %v3706_v59 = vmax.f32 %v3700_v63, 0.0  ;;  %v20811_v63 = vld [vmem:[#allocation6_spill] sm:$0xff] }
 0xaf8   :  { %v3703_v60 = vadd.f32 %v3683_v35, %v20799_v41  ;;  %v3707_v34 = vmax.f32 %v3701_v30, 0.0  ;;  %v20813_v30 = vld [vmem:[#allocation8_spill] sm:$0xff] }
 0xaf9   :  { %v3708_v47 = vmax.f32 %v3702_v4, 0.0  ;;  %v20815_v4 = vld [vmem:[#allocation14_spill] sm:$0xff] }
 0xafa   :  { %v3709_v46 = vmax.f32 %v3703_v60, 0.0  ;;  %v20817_v60 = vld [vmem:[#allocation16_spill] sm:$0xff] }
 0xafb   :  { %v12768_v33 = vpack.c.bf16 %v3708_v47, %v3706_v59  ;;  %v20819_v59 = vld [vmem:[#allocation18_spill] sm:$0xff]  ;;  %v20821_v47 = vld [vmem:[#allocation100_spill] sm:$0xff] }
 0xafc   :  { %v12766_v55 = vpack.c.bf16 %v3709_v46, %v3707_v34  ;;  %v3687_v24 = vpop.f32.mrb[88].mxu0 }
 0xafd   :  { %v3698_v17 = vadd.f32 %v3687_v24, %v3632_v54  ;;  %v3689_v13 = vpop.f32.mrb[89].mxu0  ;;  %v20801_v54 = vld [vmem:[#allocation12_spill] sm:$0xff] }
 0xafe   :  { %v3699_v49 = vadd.f32 %v3689_v13, %v3633_v38  ;;  %v3691_v3 = vpop.f32.mrb[90].mxu0  ;;  %12767 = vmatprep.subr.bf16.mxu1 %v12766_v55  ;;  %v20804_v38 = vld [vmem:[#allocation13_spill] sm:$0xff] }
 0xaff   :  { %v3704_v1 = vadd.f32 %v3698_v17, %v14792_v51  ;;  %v3692_v25 = vpop.f32.mrb[91].mxu0  ;;  %12769 = vmatpush1.bf16.msra.mxu1 %v12768_v33 }
 0xb00   :  { %v3705_v50 = vadd.f32 %v3699_v49, %v20799_v41 }
 0xb01   :  { %v3710_v35 = vmax.f32 %v3704_v1, 0.0 }
 0xb02   :  { %v3711_v43 = vmax.f32 %v3705_v50, 0.0 }
 0xb04   :  { %3716 = vmatprep.subr.mxu1 %v3711_v43 }
 0xb05   :  { %3717 = vmatpush1.msra.mxu1 %v3710_v35 }
 0xb06   :  { %11539 = vmatmul.mubr.msk.f32.vlgmr.msra.gmra.mrb[68].mxu1 %vm20800_vm12, %v14807_v12  ;;  %12771 = vmatprep.subr.bf16.mxu1 %v12766_v55  ;;  %vm20805_vm12 = vmmov %vm20802_vm4 }
 0xb07   :  { %12773 = vmatpush1.bf16.msra.mxu1 %v12768_v33  ;;  %3782 = vmatprep.mubr.f32.mxu1 %v20601_v58 }
 0xb08   :  { %3793 = vmatprep.subr.mxu1 %v3711_v43  ;;  %v20824_v43 = vld [vmem:[#allocation101_spill] sm:$0xff] }
 0xb0a   :  { %11540 = vmatmul.mubr.msk.f32.gmra.mrb[70].mxu1 %vm20802_vm4, %v20801_v54  ;;  %vm20807_vm4 = vnez %v20457_v28 }
 0xb0b   :  { %3794 = vmatpush1.msra.mxu1 %v3710_v35  ;;  %3853 = vmatprep.mubr.f32.mxu1 %v20601_v58  ;;  %v20825_v35 = vld [vmem:[#allocation102_spill] sm:$0xff] }
 0xb0c   :  { %12774 = vmatprep.subr.bf16.mxu1 %v20571_v44 }
 0xb0e   :  { %11541 = vmatmul.mubr.msk.f32.vlgmr.msra.gmra.mrb[72].mxu1 %vm20803_vm11, %v14826_v16  ;;  %vm20806_vm11 = vnez %v20453_v23 }
 0xb0f   :  { %3859 = vmatprep.mubr.f32.mxu1 %v20601_v58  ;;  %12776 = vmatpush1.bf16.msk.msra.mxu1 %vm14828_vm5, %v20573_v5 }
 0xb10   :  { %12777 = vmatprep.subr.bf16.mxu1 %v20571_v44 }
 0xb12   :  { %11542 = vmatmul.mubr.msk.f32.gmra.mrb[74].mxu1 %vm20805_vm12, %v20804_v38  ;;  %vm20808_vm12 = vnez %v20461_v32 }
 0xb13   :  { %12779 = vmatpush1.bf16.msk.msra.mxu1 %vm14593_vm14, %v20573_v5 }
 0xb14   :  { %12780 = vmatprep.subr.bf16.mxu1 %v20571_v44 }
 0xb17   :  { %12782 = vmatpush1.bf16.msk.msra.mxu1 %vm14610_vm10, %v20573_v5 }
 0xb18   :  { %12783 = vmatprep.subr.bf16.mxu1 %v20571_v44 }
 0xb1b   :  { %12785 = vmatpush1.bf16.msk.msra.mxu1 %vm14623_vm2, %v20573_v5 }
 0xb1c   :  { %12786 = vmatprep.subr.bf16.mxu1 %v20571_v44 }
 0xb1f   :  { %12788 = vmatpush1.bf16.msk.msra.mxu1 %vm14641_vm13, %v20573_v5 }
 0xb20   :  { %12789 = vmatprep.subr.bf16.mxu1 %v20571_v44 }
 0xb23   :  { %12791 = vmatpush1.bf16.msk.msra.mxu1 %vm20806_vm11, %v20573_v5  ;;  %vm20810_vm11 = vnez %v20469_v42 }
 0xb24   :  { %12792 = vmatprep.subr.bf16.mxu1 %v20571_v44 }
 0xb27   :  { %12794 = vmatpush1.bf16.msk.msra.mxu1 %vm20807_vm4, %v20573_v5  ;;  %vm20812_vm4 = vnez %v20811_v63 }
 0xb28   :  { %12795 = vmatprep.subr.bf16.mxu1 %v20571_v44 }
 0xb2b   :  { %12797 = vmatpush1.bf16.msk.msra.mxu1 %vm20808_vm12, %v20573_v5  ;;  %vm20814_vm12 = vnez %v20813_v30 }
 0xb2c   :  { %12798 = vmatprep.subr.bf16.mxu1 %v20571_v44 }
 0xb2f   :  { %12800 = vmatpush1.bf16.msk.msra.mxu1 %vm20809_vm0, %v20573_v5  ;;  %vm20816_vm0 = vnez %v20815_v4 }
 0xb30   :  { %12801 = vmatprep.subr.bf16.mxu1 %v20571_v44 }
 0xb33   :  { %12803 = vmatpush1.bf16.msk.msra.mxu1 %vm20810_vm11, %v20573_v5  ;;  %vm20818_vm11 = vnez %v20817_v60 }
 0xb34   :  { %12804 = vmatprep.subr.bf16.mxu1 %v20571_v44 }
 0xb37   :  { %12806 = vmatpush1.bf16.msk.msra.mxu1 %vm20812_vm4, %v20573_v5  ;;  %vm20820_vm4 = vnez %v20819_v59  ;;  %v20827_v59 = vld [vmem:[#allocation104_spill] sm:$0xff] }
 0xb38   :  { %12807 = vmatprep.subr.bf16.mxu1 %v20571_v44 }
 0xb3b   :  { %12809 = vmatpush1.bf16.msk.msra.mxu1 %vm20814_vm12, %v20573_v5 }
 0xb3c   :  { %12810 = vmatprep.subr.bf16.mxu1 %v20571_v44 }
 0xb3f   :  { %12812 = vmatpush1.bf16.msk.msra.mxu1 %vm20816_vm0, %v20573_v5  ;;  %vm20822_vm0 = vcmask 916480  }
 0xb40   :  { %12813 = vmatprep.subr.bf16.mxu1 %v20571_v44  ;;  %vm20829_vm12 = vmmov %vm20822_vm0 }
 0xb43   :  { %12815 = vmatpush1.bf16.msk.msra.mxu1 %vm20818_vm11, %v20573_v5  ;;  %vm20823_vm11 = vmmov %vm20822_vm0 }
 0xb44   :  { %12816 = vmatprep.subr.bf16.mxu1 %v20571_v44 }
 0xb47   :  { %12818 = vmatpush1.bf16.msk.msra.mxu1 %vm20820_vm4, %v20573_v5  ;;  %vm20828_vm4 = vmmov %vm20822_vm0 }
 0xb48   :  { %4039 = vmatprep.subr.bf16.mxu1 %v20821_v47  ;;  %v20826_v47 = vld [vmem:[#allocation103_spill] sm:$0xff] }
 0xbd9   :  { %v3778_v34 = vpop.f32.mrb[68].mxu1 }
 0xbda   :  { %v3780_v46 = vpop.f32.mrb[69].mxu1 }
 0xbdd   :  { %v3784_v33 = vpop.f32.mrb[70].mxu1 }
 0xbde   :  { %v3786_v55 = vpop.f32.mrb[71].mxu1 }
 0xbe1   :  { %v3855_v24 = vpop.f32.mrb[72].mxu1 }
 0xbe2   :  { %v3866_v17 = vmax.f32 %v3778_v34, %v3855_v24  ;;  %v3857_v13 = vpop.f32.mrb[73].mxu1  ;;  %v20830_v34 = vld [vmem:[#allocation105_spill] sm:$0xff] }
 0xbe3   :  { %v3867_v49 = vmax.f32 %v3780_v46, %v3857_v13  ;;  %v20831_v46 = vld [vmem:[#allocation106_spill] sm:$0xff]  ;;  %v16331_v13 = vld [vmem:[%s19963_s3 + $0xac] ss:$8 sps:$4 sm:$0xff]  }
 0xbe4   :  { %v16319_v24 = vld [vmem:[%s19963_s3 + $0x98] ss:$8 sps:$4 sm:$0xff]   ;;  %20837 = vst [vmem:[#allocation26_spill] sm:$0xff] %v16331_v13 }
 0xbe5   :  { %v3861_v3 = vpop.f32.mrb[74].mxu1  ;;  %11573 = vmatprep.mubr.msk.f32.mxu1 %vm20822_vm0, %v3867_v49  ;;  %11605 = vmatprep.mubr.msk.f32.mxu0 %vm20823_vm11, %v3867_v49  ;;  %20835 = vst [vmem:[#allocation24_spill] sm:$0xff] %v16319_v24  ;;  %v16337_v49 = vld [vmem:[%s19963_s3 + $0x120] ss:$8 sps:$4 sm:$0xff]   ;;  %vm20853_vm0 = vcmask 1043456  }
 0xbe6   :  { %v3868_v1 = vmax.f32 %v3784_v33, %v3861_v3  ;;  %v3863_v25 = vpop.f32.mrb[75].mxu1  ;;  %3941 = vmatmul.mubr.f32.vlgmr.msra.gmra.mrb[76].mxu1 %v3866_v17  ;;  %4016 = vmatmul.mubr.f32.vlgmr.msra.gmra.mrb[92].mxu0 %v3866_v17  ;;  %v16299_v33 = vld [vmem:[%s19963_s3 + $0x114] ss:$8 sps:$4 sm:$0xff]   ;;  %v16325_v17 = vld [vmem:[%s19963_s3 + $0x124] ss:$8 sps:$4 sm:$0xff]   ;;  %20838 = vst [vmem:[#allocation27_spill] sm:$0xff] %v16337_v49  ;;  %vm20855_vm11 = vmmov %vm20853_vm0 }
 0xbe7   :  { %v3869_v50 = vmax.f32 %v3786_v55, %v3863_v25  ;;  %4129 = vmatpush1.bf16.msra.mxu0 %v20824_v43  ;;  %4040 = vmatpush1.bf16.msra.mxu1 %v20825_v35  ;;  %20832 = vst [vmem:[#allocation21_spill] sm:$0xff] %v16299_v33  ;;  %v16313_v55 = vld [vmem:[%s19963_s3 + $0x110] ss:$8 sps:$4 sm:$0xff]   ;;  %20836 = vst [vmem:[#allocation25_spill] sm:$0xff] %v16325_v17  ;;  %v16355_v25 = vld [vmem:[%s19963_s3 + $0xbc] ss:$8 sps:$4 sm:$0xff]  }
 0xbe8   :  { %4130 = vmatprep.subr.bf16.mxu0 %v20826_v47  ;;  %4041 = vmatprep.subr.bf16.mxu1 %v20827_v59  ;;  %v16305_v59 = vld [vmem:[%s19963_s3 + $0x9c] ss:$8 sps:$4 sm:$0xff]   ;;  %20834 = vst [vmem:[#allocation23_spill] sm:$0xff] %v16313_v55  ;;  %v16343_v3 = vld [vmem:[%s19963_s3 + $0xa8] ss:$8 sps:$4 sm:$0xff]   ;;  %20841 = vst [vmem:[#allocation30_spill] sm:$0xff] %v16355_v25 }
 0xbe9   :  { %11574 = vmatprep.mubr.msk.f32.mxu1 %vm20828_vm4, %v3869_v50  ;;  %11606 = vmatprep.mubr.msk.f32.mxu0 %vm20829_vm12, %v3869_v50  ;;  %20833 = vst [vmem:[#allocation22_spill] sm:$0xff] %v16305_v59  ;;  %20839 = vst [vmem:[#allocation28_spill] sm:$0xff] %v16343_v3  ;;  %v16361_v50 = vld [vmem:[%s19963_s3 + $0x130] ss:$8 sps:$4 sm:$0xff]   ;;  %v16373_v35 = vld [vmem:[%s19963_s3 + $0x144] ss:$8 sps:$4 sm:$0xff]  }
 0xbea   :  { %3946 = vmatmul.mubr.f32.gmra.mrb[78].mxu1 %v3868_v1  ;;  %4021 = vmatmul.mubr.f32.gmra.mrb[94].mxu0 %v3868_v1  ;;  %v16349_v1 = vld [vmem:[%s19963_s3 + $0x134] ss:$8 sps:$4 sm:$0xff]   ;;  %20842 = vst [vmem:[#allocation31_spill] sm:$0xff] %v16361_v50  ;;  %v16367_v43 = vld [vmem:[%s19963_s3 + $0xb8] ss:$8 sps:$4 sm:$0xff]   ;;  %20844 = vst [vmem:[#allocation34_spill] sm:$0xff] %v16373_v35 }
 0xbeb   :  { %4131 = vmatpush1.bf16.msra.mxu0 %v20830_v34  ;;  %4042 = vmatpush1.bf16.msra.mxu1 %v20831_v46  ;;  %20840 = vst [vmem:[#allocation29_spill] sm:$0xff] %v16349_v1  ;;  %20843 = vst [vmem:[#allocation32_spill] sm:$0xff] %v16367_v43  ;;  %v16379_v47 = vld [vmem:[%s19963_s3 + $0xcc] ss:$8 sps:$4 sm:$0xff]   ;;  %v16385_v34 = vld [vmem:[%s19963_s3 + $0x140] ss:$8 sps:$4 sm:$0xff]  }
 0xbec   :  { %4132 = vmatprep.subr.bf16.mxu0 %v16299_v33  ;;  %4043 = vmatprep.subr.bf16.mxu1 %v16305_v59  ;;  %20845 = vst [vmem:[#allocation33_spill] sm:$0xff] %v16379_v47  ;;  %20846 = vst [vmem:[#allocation36_spill] sm:$0xff] %v16385_v34  ;;  %v16391_v46 = vld [vmem:[%s19963_s3 + $0xc8] ss:$8 sps:$4 sm:$0xff]   ;;  %vm20860_vm4 = vcmask 982016  }
 0xbed   :  { %4160 = vmatprep.mubr.bf16.mxu0 %v20543_v48  ;;  %4071 = vmatprep.mubr.bf16.mxu1 %v20543_v48  ;;  %20847 = vst [vmem:[#allocation35_spill] sm:$0xff] %v16391_v46  ;;  %vm20863_vm12 = vmmov %vm20860_vm4 }
 0xbef   :  { %4133 = vmatpush1.bf16.msra.mxu0 %v16313_v55  ;;  %4044 = vmatpush1.bf16.msra.mxu1 %v16319_v24 }
 0xbf0   :  { %4134 = vmatprep.subr.bf16.mxu0 %v16325_v17  ;;  %4045 = vmatprep.subr.bf16.mxu1 %v16331_v13 }
 0xbf3   :  { %4135 = vmatpush1.bf16.msra.mxu0 %v16337_v49  ;;  %4046 = vmatpush1.bf16.msra.mxu1 %v16343_v3 }
 0xbf4   :  { %4136 = vmatprep.subr.bf16.mxu0 %v16349_v1  ;;  %4047 = vmatprep.subr.bf16.mxu1 %v16355_v25 }
 0xbf7   :  { %4137 = vmatpush1.bf16.msra.mxu0 %v16361_v50  ;;  %4048 = vmatpush1.bf16.msra.mxu1 %v16367_v43  ;;  %v20854_v43 = vld [vmem:[#allocation42_spill] sm:$0xff]  ;;  %v20857_v50 = vld [vmem:[#allocation44_spill] sm:$0xff] }
 0xbf8   :  { %4138 = vmatprep.subr.bf16.mxu0 %v16373_v35  ;;  %4049 = vmatprep.subr.bf16.mxu1 %v16379_v47  ;;  %v16397_v35 = vld [vmem:[%s19963_s3 + $0x154] ss:$8 sps:$4 sm:$0xff]  }
 0xbf9   :  { %20848 = vst [vmem:[#allocation38_spill] sm:$0xff] %v16397_v35  ;;  %v16403_v47 = vld [vmem:[%s19963_s3 + $0xdc] ss:$8 sps:$4 sm:$0xff]  }
 0xbfa   :  { %20849 = vst [vmem:[#allocation37_spill] sm:$0xff] %v16403_v47 }
 0xbfb   :  { %4139 = vmatpush1.bf16.msra.mxu0 %v16385_v34  ;;  %4050 = vmatpush1.bf16.msra.mxu1 %v16391_v46  ;;  %v16409_v34 = vld [vmem:[%s19963_s3 + $0x150] ss:$8 sps:$4 sm:$0xff]  }
 0xbfc   :  { %4140 = vmatprep.subr.bf16.mxu0 %v16397_v35  ;;  %4051 = vmatprep.subr.bf16.mxu1 %v16403_v47  ;;  %20850 = vst [vmem:[#allocation40_spill] sm:$0xff] %v16409_v34  ;;  %v16415_v46 = vld [vmem:[%s19963_s3 + $0xd8] ss:$8 sps:$4 sm:$0xff]   ;;  %v20852_v35 = vld [vmem:[#allocation39_spill] sm:$0xff] }
 0xbfd   :  { %20851 = vst [vmem:[#allocation43_spill] sm:$0xff] %v16415_v46  ;;  %v20856_v47 = vld [vmem:[#allocation41_spill] sm:$0xff] }
 0xbff   :  { %4141 = vmatpush1.bf16.msra.mxu0 %v16409_v34  ;;  %4052 = vmatpush1.bf16.msra.mxu1 %v16415_v46  ;;  %v16427_v34 = vld [vmem:[%s19963_s3 + $0x1e4] ss:$8 sps:$4 sm:$0xff]  }
 0xc00   :  { %11611 = vmatprep.subr.msk.bf16.mxu0 %vm20853_vm0, %v20852_v35  ;;  %11607 = vmatprep.subr.msk.bf16.mxu1 %vm20855_vm11, %v20854_v43  ;;  %20858 = vst [vmem:[#allocation45_spill] sm:$0xff] %v16427_v34  ;;  %v16433_v46 = vld [vmem:[%s19963_s3 + $0x4] ss:$8 sps:$4 sm:$0xff]   ;;  %vm20891_vm11 = vmmov %vm20853_vm0 }
 0xc01   :  { %20859 = vst [vmem:[#allocation46_spill] sm:$0xff] %v16433_v46 }
 0xc03   :  { %4143 = vmatpush1.bf16.msra.mxu0 %v20856_v47  ;;  %4054 = vmatpush1.bf16.msra.mxu1 %v20857_v50 }
 0xc04   :  { %4224 = vmatprep.subr.bf16.mxu0 %v16427_v34  ;;  %4082 = vmatprep.subr.bf16.mxu1 %v16433_v46 }
 0xcb9   :  { %v3942_v35 = vpop.f32.mrb[76].mxu1  ;;  %v4017_v43 = vpop.f32.mrb[92].mxu0 }
 0xcba   :  { %v4026_v25 = vmax.f32 %v3942_v35, %v4017_v43  ;;  %v3944_v47 = vpop.f32.mrb[77].mxu1  ;;  %v4019_v1 = vpop.f32.mrb[93].mxu0  ;;  %v16502_v35 = vld [vmem:[%s19963_s3 + $0x24] ss:$8 sps:$4 sm:$0xff]  }
 0xcbb   :  { %v16483_v1 = vld [vmem:[%s19963_s3 + $0x204] ss:$8 sps:$4 sm:$0xff]   ;;  %20870 = vst [vmem:[#allocation55_spill] sm:$0xff] %v16502_v35  ;;  %v16508_v47 = vld [vmem:[%s19963_s3 + $0x214] ss:$8 sps:$4 sm:$0xff]  }
 0xcbc   :  { %20867 = vst [vmem:[#allocation52_spill] sm:$0xff] %v16483_v1  ;;  %20871 = vst [vmem:[#allocation56_spill] sm:$0xff] %v16508_v47 }
 0xcbd   :  { %v3947_v50 = vpop.f32.mrb[78].mxu1  ;;  %v4022_v3 = vpop.f32.mrb[94].mxu0 }
 0xcbe   :  { %v4027_v49 = vmax.f32 %v3947_v50, %v4022_v3  ;;  %v3949_v13 = vpop.f32.mrb[79].mxu1  ;;  %v4024_v17 = vpop.f32.mrb[95].mxu0  ;;  %v16477_v3 = vld [vmem:[%s19963_s3 + $0x14] ss:$8 sps:$4 sm:$0xff]   ;;  %v16496_v50 = vld [vmem:[%s19963_s3 + $0x200] ss:$8 sps:$4 sm:$0xff]  }
 0xcbf   :  { %v16449_v13 = vld [vmem:[%s19963_s3 + $0x1e0] ss:$8 sps:$4 sm:$0xff]   ;;  %20866 = vst [vmem:[#allocation51_spill] sm:$0xff] %v16477_v3  ;;  %20869 = vst [vmem:[#allocation54_spill] sm:$0xff] %v16496_v50 }
 0xcc0   :  { %v16436_v24 = vpack.c.bf16 %v4027_v49, %v4026_v25  ;;  %20861 = vst [vmem:[#allocation47_spill] sm:$0xff] %v16449_v13  ;;  %v16456_v49 = vld [vmem:[%s19963_s3 + $0x1f4] ss:$8 sps:$4 sm:$0xff]   ;;  %v16490_v25 = vld [vmem:[%s19963_s3 + $0x10] ss:$8 sps:$4 sm:$0xff]  }
 0xcc1   :  { %20862 = vst [vmem:[#allocation48_spill] sm:$0xff] %v16456_v49  ;;  %20868 = vst [vmem:[#allocation53_spill] sm:$0xff] %v16490_v25 }
 0xcc2   :  { %v4030_v34 = vshrl.u32 %v16436_v24, 16  ;;  %v4032_v55 = vshll.u32 %v16436_v24, 16  ;;  %v4124_v59 = vrot.slane %v16436_v24, 1 }
 0xcc4   :  { %v4034_v33 = vrot.slane %v4032_v55, 1  ;;  %11612 = vmatmul.mubr.msk.bf16.vlgmr.msra.gmra.mrb[96].mxu0 %vm20860_vm4, %v4124_v59  ;;  %v16442_v46 = vrot.slane %v4030_v34, 1  ;;  %v16444_v43 = vrot.slane %v4032_v55, 2  ;;  %v16465_v55 = vld [vmem:[%s19963_s3] ss:$8 sps:$4 sm:$0xff]  }
 0xcc5   :  { %4225 = vmatpush1.bf16.msra.mxu0 %v16449_v13  ;;  %4256 = vmatprep.mubr.bf16.mxu0 %v20543_v48  ;;  %20864 = vst [vmem:[#allocation49_spill] sm:$0xff] %v16465_v55  ;;  %v16526_v59 = vld [vmem:[%s19963_s3 + $0x34] ss:$8 sps:$4 sm:$0xff]  }
 0xcc6   :  { %v4035_v17 = vor.u32 %v4034_v33, %v4030_v34  ;;  %4226 = vmatprep.subr.bf16.mxu0 %v16456_v49  ;;  %v16471_v33 = vld [vmem:[%s19963_s3 + $0x1f0] ss:$8 sps:$4 sm:$0xff]   ;;  %v16514_v34 = vld [vmem:[%s19963_s3 + $0x20] ss:$8 sps:$4 sm:$0xff]   ;;  %20874 = vst [vmem:[#allocation59_spill] sm:$0xff] %v16526_v59 }
 0xcc7   :  { %20865 = vst [vmem:[#allocation50_spill] sm:$0xff] %v16471_v33  ;;  %20872 = vst [vmem:[#allocation57_spill] sm:$0xff] %v16514_v34 }
 0xcc8   :  { %11608 = vmatmul.mubr.msk.bf16.vlgmr.msra.gmra.mrb[80].mxu1 %vm20863_vm12, %v4035_v17  ;;  %v16520_v17 = vld [vmem:[%s19963_s3 + $0x210] ss:$8 sps:$4 sm:$0xff]   ;;  %vm20894_vm12 = vmmov %vm20860_vm4 }
 0xcc9   :  { %4083 = vmatpush1.bf16.msra.mxu1 %v16465_v55  ;;  %4227 = vmatpush1.bf16.msra.mxu0 %v16471_v33  ;;  %20873 = vst [vmem:[#allocation58_spill] sm:$0xff] %v16520_v17 }
 0xcca   :  { %4084 = vmatprep.subr.bf16.mxu1 %v16477_v3  ;;  %4228 = vmatprep.subr.bf16.mxu0 %v16483_v1 }
 0xccb   :  { %4114 = vmatprep.mubr.bf16.mxu1 %v20543_v48 }
 0xccd   :  { %4085 = vmatpush1.bf16.msra.mxu1 %v16490_v25  ;;  %4229 = vmatpush1.bf16.msra.mxu0 %v16496_v50  ;;  %v4220_v50 = vrot.slane %v16436_v24, 2 }
 0xcce   :  { %4086 = vmatprep.subr.bf16.mxu1 %v16502_v35  ;;  %4230 = vmatprep.subr.bf16.mxu0 %v16508_v47  ;;  %v16532_v47 = vld [vmem:[%s19963_s3 + $0x224] ss:$8 sps:$4 sm:$0xff]   ;;  %v20889_v35 = vld [vmem:[#allocation73_spill] sm:$0xff] }
 0xccf   :  { %20875 = vst [vmem:[#allocation60_spill] sm:$0xff] %v16532_v47 }
 0xcd1   :  { %4087 = vmatpush1.bf16.msra.mxu1 %v16514_v34  ;;  %4231 = vmatpush1.bf16.msra.mxu0 %v16520_v17  ;;  %v16538_v34 = vld [vmem:[%s19963_s3 + $0x30] ss:$8 sps:$4 sm:$0xff]   ;;  %v16544_v17 = vld [vmem:[%s19963_s3 + $0x220] ss:$8 sps:$4 sm:$0xff]  }
 0xcd2   :  { %4088 = vmatprep.subr.bf16.mxu1 %v16526_v59  ;;  %4232 = vmatprep.subr.bf16.mxu0 %v16532_v47  ;;  %20876 = vst [vmem:[#allocation61_spill] sm:$0xff] %v16538_v34  ;;  %20877 = vst [vmem:[#allocation62_spill] sm:$0xff] %v16544_v17  ;;  %v16550_v59 = vld [vmem:[%s19963_s3 + $0x44] ss:$8 sps:$4 sm:$0xff]   ;;  %v16556_v47 = vld [vmem:[%s19963_s3 + $0x234] ss:$8 sps:$4 sm:$0xff]  }
 0xcd3   :  { %20878 = vst [vmem:[#allocation63_spill] sm:$0xff] %v16550_v59  ;;  %20879 = vst [vmem:[#allocation64_spill] sm:$0xff] %v16556_v47 }
 0xcd5   :  { %4089 = vmatpush1.bf16.msra.mxu1 %v16538_v34  ;;  %4233 = vmatpush1.bf16.msra.mxu0 %v16544_v17  ;;  %v16562_v34 = vld [vmem:[%s19963_s3 + $0x40] ss:$8 sps:$4 sm:$0xff]   ;;  %v16568_v17 = vld [vmem:[%s19963_s3 + $0x230] ss:$8 sps:$4 sm:$0xff]  }
 0xcd6   :  { %4090 = vmatprep.subr.bf16.mxu1 %v16550_v59  ;;  %4234 = vmatprep.subr.bf16.mxu0 %v16556_v47  ;;  %20880 = vst [vmem:[#allocation65_spill] sm:$0xff] %v16562_v34  ;;  %20881 = vst [vmem:[#allocation66_spill] sm:$0xff] %v16568_v17  ;;  %v16574_v59 = vld [vmem:[%s19963_s3 + $0x54] ss:$8 sps:$4 sm:$0xff]   ;;  %v16580_v47 = vld [vmem:[%s19963_s3 + $0x244] ss:$8 sps:$4 sm:$0xff]  }
 0xcd7   :  { %20882 = vst [vmem:[#allocation67_spill] sm:$0xff] %v16574_v59  ;;  %20883 = vst [vmem:[#allocation68_spill] sm:$0xff] %v16580_v47 }
 0xcd9   :  { %4091 = vmatpush1.bf16.msra.mxu1 %v16562_v34  ;;  %4235 = vmatpush1.bf16.msra.mxu0 %v16568_v17  ;;  %v16586_v34 = vld [vmem:[%s19963_s3 + $0x50] ss:$8 sps:$4 sm:$0xff]   ;;  %v16592_v17 = vld [vmem:[%s19963_s3 + $0x240] ss:$8 sps:$4 sm:$0xff]  }
 0xcda   :  { %4092 = vmatprep.subr.bf16.mxu1 %v16574_v59  ;;  %4236 = vmatprep.subr.bf16.mxu0 %v16580_v47  ;;  %20884 = vst [vmem:[#allocation69_spill] sm:$0xff] %v16586_v34  ;;  %20885 = vst [vmem:[#allocation70_spill] sm:$0xff] %v16592_v17  ;;  %v16598_v59 = vld [vmem:[%s19963_s3 + $0x64] ss:$8 sps:$4 sm:$0xff]  }
 0xcdb   :  { %20886 = vst [vmem:[#allocation72_spill] sm:$0xff] %v16598_v59  ;;  %v20887_v47 = vld [vmem:[#allocation71_spill] sm:$0xff] }
 0xcdd   :  { %4093 = vmatpush1.bf16.msra.mxu1 %v16586_v34  ;;  %4237 = vmatpush1.bf16.msra.mxu0 %v16592_v17  ;;  %v16606_v34 = vld [vmem:[%s19963_s3 + $0x60] ss:$8 sps:$4 sm:$0xff]  }
 0xcde   :  { %4094 = vmatprep.subr.bf16.mxu1 %v16598_v59  ;;  %11615 = vmatprep.subr.msk.bf16.mxu0 %vm20853_vm0, %v20887_v47  ;;  %20888 = vst [vmem:[#allocation76_spill] sm:$0xff] %v16606_v34  ;;  %v20890_v17 = vld [vmem:[#allocation74_spill] sm:$0xff]  ;;  %v20892_v59 = vld [vmem:[#allocation75_spill] sm:$0xff] }
 0xce1   :  { %4095 = vmatpush1.bf16.msra.mxu1 %v16606_v34  ;;  %4239 = vmatpush1.bf16.msra.mxu0 %v20889_v35  ;;  %v16622_v34 = vld [vmem:[%s19963_s3 + $0x16c] ss:$8 sps:$4 sm:$0xff]  }
 0xce2   :  { %11609 = vmatprep.subr.msk.bf16.mxu1 %vm20891_vm11, %v20890_v17  ;;  %12894 = vmatprep.subr.bf16.mxu0 %v20571_v44  ;;  %20893 = vst [vmem:[#allocation77_spill] sm:$0xff] %v16622_v34  ;;  %vm20909_vm11 = vnez %v20463_v36 }
 0xce4   :  { %11616 = vmatmul.mubr.msk.bf16.vlgmr.msra.gmra.mrb[100].mxu0 %vm20860_vm4, %v4220_v50  ;;  %v16631_v50 = vld [vmem:[%s19963_s3 + $0x168] ss:$8 sps:$4 sm:$0xff]   ;;  %vm20911_vm4 = vnez %v20467_v40 }
 0xce5   :  { %4097 = vmatpush1.bf16.msra.mxu1 %v20892_v59  ;;  %12896 = vmatpush1.bf16.msk.msra.mxu0 %vm20574_vm8, %v20573_v5  ;;  %20895 = vst [vmem:[#allocation78_spill] sm:$0xff] %v16631_v50  ;;  %v16638_v59 = vld [vmem:[%s19963_s3 + $0x17c] ss:$8 sps:$4 sm:$0xff]  }
 0xce6   :  { %4177 = vmatprep.subr.bf16.mxu1 %v16622_v34  ;;  %12897 = vmatprep.subr.bf16.mxu0 %v20571_v44  ;;  %20896 = vst [vmem:[#allocation79_spill] sm:$0xff] %v16638_v59 }
 0xce8   :  { %11610 = vmatmul.mubr.msk.bf16.vlgmr.msra.gmra.mrb[84].mxu1 %vm20894_vm12, %v16436_v24  ;;  %v16648_v24 = vld [vmem:[%s19963_s3 + $0x178] ss:$8 sps:$4 sm:$0xff]  }
 0xce9   :  { %4178 = vmatpush1.bf16.msra.mxu1 %v16631_v50  ;;  %4209 = vmatprep.mubr.bf16.mxu1 %v20543_v48  ;;  %20897 = vst [vmem:[#allocation80_spill] sm:$0xff] %v16648_v24  ;;  %v16654_v50 = vld [vmem:[%s19963_s3 + $0x18c] ss:$8 sps:$4 sm:$0xff]  }
 0xcea   :  { %4179 = vmatprep.subr.bf16.mxu1 %v16638_v59  ;;  %12899 = vmatpush1.bf16.msk.msra.mxu0 %vm20578_vm9, %v20573_v5  ;;  %20898 = vst [vmem:[#allocation81_spill] sm:$0xff] %v16654_v50  ;;  %v16664_v59 = vld [vmem:[%s19963_s3 + $0x188] ss:$8 sps:$4 sm:$0xff]  }
 0xceb   :  { %12900 = vmatprep.subr.bf16.mxu0 %v20571_v44  ;;  %20899 = vst [vmem:[#allocation82_spill] sm:$0xff] %v16664_v59 }
 0xced   :  { %4180 = vmatpush1.bf16.msra.mxu1 %v16648_v24  ;;  %v16670_v24 = vld [vmem:[%s19963_s3 + $0x19c] ss:$8 sps:$4 sm:$0xff]  }
 0xcee   :  { %4181 = vmatprep.subr.bf16.mxu1 %v16654_v50  ;;  %12902 = vmatpush1.bf16.msk.msra.mxu0 %vm20735_vm15, %v20573_v5  ;;  %20900 = vst [vmem:[#allocation83_spill] sm:$0xff] %v16670_v24  ;;  %v16680_v50 = vld [vmem:[%s19963_s3 + $0x198] ss:$8 sps:$4 sm:$0xff]  }
 0xcef   :  { %12903 = vmatprep.subr.bf16.mxu0 %v20571_v44  ;;  %20901 = vst [vmem:[#allocation84_spill] sm:$0xff] %v16680_v50 }
 0xcf1   :  { %4182 = vmatpush1.bf16.msra.mxu1 %v16664_v59  ;;  %v16686_v59 = vld [vmem:[%s19963_s3 + $0x1ac] ss:$8 sps:$4 sm:$0xff]  }
 0xcf2   :  { %4183 = vmatprep.subr.bf16.mxu1 %v16670_v24  ;;  %12905 = vmatpush1.bf16.msk.msra.mxu0 %vm20629_vm7, %v20573_v5  ;;  %20902 = vst [vmem:[#allocation85_spill] sm:$0xff] %v16686_v59  ;;  %v16696_v24 = vld [vmem:[%s19963_s3 + $0x1a8] ss:$8 sps:$4 sm:$0xff]  }
 0xcf3   :  { %12906 = vmatprep.subr.bf16.mxu0 %v20571_v44  ;;  %20903 = vst [vmem:[#allocation86_spill] sm:$0xff] %v16696_v24 }
 0xcf5   :  { %4184 = vmatpush1.bf16.msra.mxu1 %v16680_v50  ;;  %v16702_v50 = vld [vmem:[%s19963_s3 + $0x1bc] ss:$8 sps:$4 sm:$0xff]  }
 0xcf6   :  { %4185 = vmatprep.subr.bf16.mxu1 %v16686_v59  ;;  %12908 = vmatpush1.bf16.msk.msra.mxu0 %vm20630_vm6, %v20573_v5  ;;  %20904 = vst [vmem:[#allocation87_spill] sm:$0xff] %v16702_v50  ;;  %v16712_v59 = vld [vmem:[%s19963_s3 + $0x1b8] ss:$8 sps:$4 sm:$0xff]  }
 0xcf7   :  { %12909 = vmatprep.subr.bf16.mxu0 %v20571_v44  ;;  %20905 = vst [vmem:[#allocation88_spill] sm:$0xff] %v16712_v59 }
 0xcf9   :  { %4186 = vmatpush1.bf16.msra.mxu1 %v16696_v24  ;;  %v16718_v24 = vld [vmem:[%s19963_s3 + $0x1cc] ss:$8 sps:$4 sm:$0xff]  }
 0xcfa   :  { %4187 = vmatprep.subr.bf16.mxu1 %v16702_v50  ;;  %12911 = vmatpush1.bf16.msk.msra.mxu0 %vm20785_vm1, %v20573_v5  ;;  %20906 = vst [vmem:[#allocation89_spill] sm:$0xff] %v16718_v24  ;;  %v16728_v50 = vld [vmem:[%s19963_s3 + $0x1c8] ss:$8 sps:$4 sm:$0xff]  }
 0xcfb   :  { %12912 = vmatprep.subr.bf16.mxu0 %v20571_v44  ;;  %20907 = vst [vmem:[#allocation92_spill] sm:$0xff] %v16728_v50 }
 0xcfd   :  { %4188 = vmatpush1.bf16.msra.mxu1 %v16712_v59  ;;  %v20908_v59 = vld [vmem:[#allocation90_spill] sm:$0xff] }
 0xcfe   :  { %4189 = vmatprep.subr.bf16.mxu1 %v16718_v24  ;;  %12914 = vmatpush1.bf16.msk.msra.mxu0 %vm20786_vm3, %v20573_v5  ;;  %v20910_v24 = vld [vmem:[#allocation91_spill] sm:$0xff] }
 0xcff   :  { %12915 = vmatprep.subr.bf16.mxu0 %v20571_v44 }
 0xd01   :  { %4190 = vmatpush1.bf16.msra.mxu1 %v16728_v50  ;;  %v20912_v50 = vor.u32 %v16444_v43, %v16442_v46 }
 0xd02   :  { %11613 = vmatprep.subr.msk.bf16.mxu1 %vm20853_vm0, %v20908_v59  ;;  %12917 = vmatpush1.bf16.msk.msra.mxu0 %vm20909_vm11, %v20573_v5  ;;  %vm20913_vm0 = vnez %v20471_v45 }
 0xd03   :  { %12918 = vmatprep.subr.bf16.mxu0 %v20571_v44 }
 0xd05   :  { %4192 = vmatpush1.bf16.msra.mxu1 %v20910_v24 }
 0xd06   :  { %12920 = vmatpush1.bf16.msk.msra.mxu0 %vm20911_vm4, %v20573_v5 }
 0xd07   :  { %12921 = vmatprep.subr.bf16.mxu0 %v20571_v44 }
 0xd08   :  { %11614 = vmatmul.mubr.msk.bf16.vlgmr.msra.gmra.mrb[88].mxu1 %vm20894_vm12, %v20912_v50  ;;  %vm20914_vm12 = vcmask 64512  }
 0xd09   :  { %4335 = vmatprep.mubr.f32.mxu1 %v20601_v58 }
 0xd0a   :  { %12923 = vmatpush1.bf16.msk.msra.mxu0 %vm20913_vm0, %v20573_v5  ;;  %vm20915_vm0 = vmmov %vm20914_vm12 }
 0xd97   :  { %v4162_v59 = vpop.f32.mrb[96].mxu0 }
 0xd98   :  { %v4164_v34 = vpop.f32.mrb[97].mxu0 }
 0xd99   :  { %v4166_v24 = vpop.f32.mrb[98].mxu0 }
 0xd9a   :  { %v4167_v17 = vpop.f32.mrb[99].mxu0 }
 0xd9b   :  { %v4073_v35 = vpop.f32.mrb[80].mxu1 }
 0xd9c   :  { %v4075_v47 = vpop.f32.mrb[81].mxu1 }
 0xd9d   :  { %v4077_v25 = vpop.f32.mrb[82].mxu1 }
 0xd9e   :  { %v4078_v1 = vpop.f32.mrb[83].mxu1 }
 0xdb7   :  { %v4258_v3 = vpop.f32.mrb[100].mxu0 }
 0xdb8   :  { %v4260_v33 = vpop.f32.mrb[101].mxu0 }
 0xdb9   :  { %v4262_v55 = vpop.f32.mrb[102].mxu0 }
 0xdba   :  { %v4263_v46 = vpop.f32.mrb[103].mxu0 }
 0xdbb   :  { %v4116_v43 = vpop.f32.mrb[84].mxu1 }
 0xdbc   :  { %v4117_v50 = vadd.f32 %v4116_v43, %v4073_v35  ;;  %v4118_v49 = vpop.f32.mrb[85].mxu1 }
 0xdbd   :  { %v4119_v13 = vadd.f32 %v4118_v49, %v4075_v47  ;;  %v4120_v60 = vpop.f32.mrb[86].mxu1 }
 0xdbe   :  { %v4121_v4 = vpop.f32.mrb[87].mxu1  ;;  %v4169_v30 = vadd.f32 %v4162_v59, %v4117_v50  ;;  %v16827_v50 = vld [vmem:[%s19960_s1 + $0x20] ss:$8 sps:$4 sm:$0xff]  }
 0xdbf   :  { %v4170_v63 = vadd.f32 %v4164_v34, %v4119_v13 }
 0xddb   :  { %v4211_v38 = vpop.f32.mrb[88].mxu1 }
 0xddc   :  { %v4218_v54 = vadd.f32 %v4211_v38, %v4169_v30  ;;  %v4213_v24 = vpop.f32.mrb[89].mxu1  ;;  %v11663_v38 = vld [vmem:[%s19961_s0 + $0x70] sm:$0xff] }
 0xddd   :  { %v4219_v17 = vadd.f32 %v4213_v24, %v4170_v63  ;;  %v4215_v41 = vpop.f32.mrb[90].mxu1  ;;  %v11664_v63 = vld [vmem:[%s19961_s0 + $0x78] sm:$0xf] }
 0xdde   :  { %v4265_v51 = vadd.f32 %v4258_v3, %v4218_v54  ;;  %v4216_v25 = vpop.f32.mrb[91].mxu1  ;;  %v11662_v41 = vld [vmem:[%s19961_s0 + $0x68] sm:$0xff]  ;;  %v16817_v60 = vpack.c.bf16 %v11664_v63, %v11663_v38 }
 0xddf   :  { %v4266_v1 = vadd.f32 %v4260_v33, %v4219_v17  ;;  %v16834_v25 = vld [vmem:[%s19960_s1 + $0x34] ss:$8 sps:$4 sm:$0x3f]   ;;  %v16867_v38 = vld [vmem:[%s19960_s1 + $0x44] ss:$8 sps:$4 sm:$0xff]  }
 0xde0   :  { %v4267_v53 = vadd.f32 %v4265_v51, %v15486_v21  ;;  %v16800_v51 = vld [vmem:[%s19960_s1 + $0x24] ss:$8 sps:$4 sm:$0xff]   ;;  %v4590_v43 = vshll.u32 %v16817_v60, 16  ;;  %v16878_v63 = vld [vmem:[%s19960_s1 + $0x40] ss:$8 sps:$4 sm:$0xff]  }
 0xde1   :  { %v4268_v55 = vadd.f32 %v4266_v1, %v15490_v2 }
 0xde2   :  { %v4269_v35 = vmax.f32 %v4267_v53, 0.0  ;;  %v11661_v53 = vld [vmem:[%s19961_s0 + $0x60] sm:$0xff]  ;;  %v4592_v17 = vrot.slane %v4590_v43, 1 }
 0xde3   :  { %v4270_v46 = vmax.f32 %v4268_v55, 0.0  ;;  %v16809_v54 = vpack.c.bf16 %v11662_v41, %v11661_v53  ;;  %v16844_v55 = vld [vmem:[%s19960_s1 + $0x4] ss:$8 sps:$4 sm:$0xff]   ;;  %v16859_v53 = vld [vmem:[%s19960_s1 + $0x14] ss:$8 sps:$4 sm:$0x3f]  }
 0xde5   :  { %4271 = vmatprep.subr.mxu1 %v4270_v46  ;;  %v4585_v13 = vshll.u32 %v16809_v54, 16  ;;  %v4583_v47 = vshrl.u32 %v16809_v54, 16 }
 0xde6   :  { %4272 = vmatpush1.msra.mxu1 %v4269_v35 }
 0xde7   :  { %11617 = vmatmul.mubr.msk.f32.vlgmr.msra.gmra.mrb[92].mxu1 %vm20914_vm12, %v14807_v12  ;;  %4342 = vmatprep.subr.mxu1 %v4270_v46  ;;  %vm20917_vm12 = vnez %v20457_v28  ;;  %v4587_v34 = vrot.slane %v4585_v13, 1  ;;  %v4594_v46 = vshrl.u32 %v16817_v60, 16 }
 0xde8   :  { %4343 = vmatpush1.msra.mxu1 %v4269_v35  ;;  %4406 = vmatprep.mubr.f32.mxu1 %v20601_v58  ;;  %v16853_v35 = vld [vmem:[%s19960_s1] ss:$8 sps:$4 sm:$0xff]  }
 0xde9   :  { %12864 = vmatprep.subr.bf16.mxu1 %v20571_v44  ;;  %v4588_v24 = vor.u32 %v4587_v34, %v4583_v47  ;;  %v4596_v41 = vor.u32 %v4594_v46, %v4592_v17  ;;  %v16912_v34 = vld [vmem:[%s19960_s1 + $0x74] ss:$8 sps:$4 sm:$0x3f]  }
 0xdea   :  { %20932 = vst [vmem:[#allocation94_spill] sm:$0xff] %v16912_v34 }
 0xdeb   :  { %11618 = vmatmul.mubr.msk.f32.vlgmr.msra.gmra.mrb[94].mxu1 %vm20915_vm0, %v14826_v16  ;;  %vm20916_vm0 = vnez %v20453_v23 }
 0xdec   :  { %12866 = vmatpush1.bf16.msk.msra.mxu1 %vm14828_vm5, %v20573_v5 }
 0xded   :  { %12867 = vmatprep.subr.bf16.mxu1 %v20571_v44 }
 0xdf0   :  { %12869 = vmatpush1.bf16.msk.msra.mxu1 %vm14593_vm14, %v20573_v5 }
 0xdf1   :  { %12870 = vmatprep.subr.bf16.mxu1 %v20571_v44 }
 0xdf4   :  { %12872 = vmatpush1.bf16.msk.msra.mxu1 %vm14610_vm10, %v20573_v5 }
 0xdf5   :  { %12873 = vmatprep.subr.bf16.mxu1 %v20571_v44 }
 0xdf8   :  { %12875 = vmatpush1.bf16.msk.msra.mxu1 %vm14623_vm2, %v20573_v5  ;;  %vm20918_vm2 = vnez %v20461_v32 }
 0xdf9   :  { %12876 = vmatprep.subr.bf16.mxu1 %v20571_v44 }
 0xdfc   :  { %12878 = vmatpush1.bf16.msk.msra.mxu1 %vm14641_vm13, %v20573_v5  ;;  %vm20919_vm13 = vnez %v20465_v37 }
 0xdfd   :  { %12879 = vmatprep.subr.bf16.mxu1 %v20571_v44 }
 0xe00   :  { %12881 = vmatpush1.bf16.msk.msra.mxu1 %vm20916_vm0, %v20573_v5  ;;  %vm20920_vm0 = vnez %v20469_v42 }
 0xe01   :  { %12882 = vmatprep.subr.bf16.mxu1 %v20571_v44 }
 0xe04   :  { %12884 = vmatpush1.bf16.msk.msra.mxu1 %vm20917_vm12, %v20573_v5 }
 0xe05   :  { %12885 = vmatprep.subr.bf16.mxu1 %v20571_v44 }
 0xe08   :  { %12887 = vmatpush1.bf16.msk.msra.mxu1 %vm20918_vm2, %v20573_v5  ;;  %vm20925_vm2 = vcmask 228352  }
 0xe09   :  { %12888 = vmatprep.subr.bf16.mxu1 %v20571_v44 }
 0xe0c   :  { %12890 = vmatpush1.bf16.msk.msra.mxu1 %vm20919_vm13, %v20573_v5 }
 0xe0d   :  { %12891 = vmatprep.subr.bf16.mxu1 %v20571_v44 }
 0xe10   :  { %12893 = vmatpush1.bf16.msk.msra.mxu1 %vm20920_vm0, %v20573_v5  ;;  %vm20921_vm0 = vcmask 261120  }
 0xe11   :  { %4603 = vmatprep.subr.bf16.mxu1 %v16800_v51  ;;  %vm20922_vm13 = vmmov %vm20921_vm0 }
 0xeba   :  { %v4337_v30 = vpop.f32.mrb[92].mxu1 }
 0xebb   :  { %v4339_v4 = vpop.f32.mrb[93].mxu1 }
 0xebe   :  { %v4408_v49 = vpop.f32.mrb[94].mxu1 }
 0xebf   :  { %v4413_v59 = vmax.f32 %v4337_v30, %v4408_v49  ;;  %v4410_v33 = vpop.f32.mrb[95].mxu1  ;;  %v16884_v30 = vld [vmem:[%s19960_s1 + $0x54] ss:$8 sps:$4 sm:$0x3f]   ;;  %v4711_v49 = vrot.slane %v16809_v54, 1 }
 0xec0   :  { %v4414_v3 = vmax.f32 %v4339_v4, %v4410_v33  ;;  %v16892_v4 = vld [vmem:[%s19960_s1 + $0x64] ss:$8 sps:$4 sm:$0xff]  }
 0xec1   :  { %20927 = vst [vmem:[#allocation93_spill] sm:$0xff] %v16892_v4 }
 0xec2   :  { %11639 = vmatprep.mubr.msk.f32.mxu1 %vm20921_vm0, %v4414_v3  ;;  %11660 = vmatprep.mubr.msk.f32.mxu0 %vm20922_vm13, %v4414_v3  ;;  %vm20923_vm13 = vcmask 1045504   ;;  %vm20924_vm0 = vsmask.f32 7424  ;;  %v16906_v3 = vld [vmem:[%s19960_s1 + $0x60] ss:$8 sps:$4 sm:$0xff]  }
 0xec3   :  { %4483 = vmatmul.mubr.f32.vlgmr.msra.gmra.mrb[96].mxu1 %v4413_v59  ;;  %4553 = vmatmul.mubr.f32.vlgmr.msra.gmra.mrb[104].mxu0 %v4413_v59  ;;  %v4593_v1 = vsel %vm20924_vm0, %v4588_v24, %v4592_v17  ;;  %vm20926_vm0 = vmmov %vm20925_vm2  ;;  %v4712_v59 = vrot.slane %v16817_v60, 1  ;;  %20931 = vst [vmem:[#allocation2_spill] sm:$0xff] %v16906_v3  ;;  %v4777_v24 = vrot.slane %v4583_v47, 1  ;;  %v4781_v17 = vrot.slane %v4590_v43, 2 }
 0xec4   :  { %4604 = vmatpush1.bf16.msra.mxu1 %v16827_v50  ;;  %4635 = vmatprep.mubr.bf16.mxu1 %v20543_v48  ;;  %v16937_v43 = vld [vmem:[%s19960_s1 + $0x94] ss:$8 sps:$4 sm:$0x3f]  }
 0xec5   :  { %11665 = vmatprep.subr.msk.bf16.mxu1 %vm20923_vm13, %v16834_v25  ;;  %4989 = vmatprep.mubr.f32.mxu0 %v20601_v58  ;;  %20939 = vst [vmem:[#allocation97_spill] sm:$0xff] %v16937_v43 }
 0xec8   :  { %4606 = vmatpush1.bf16.msra.mxu1 %v14442_v8 }
 0xec9   :  { %4658 = vmatprep.subr.bf16.mxu1 %v16844_v55 }
 0xecb   :  { %11666 = vmatmul.mubr.msk.bf16.vlgmr.msra.gmra.mrb[100].mxu1 %vm20925_vm2, %v4593_v1  ;;  %v4780_v1 = vrot.slane %v4594_v46, 1  ;;  %v4847_v46 = vrot.slane %v16809_v54, 2 }
 0xecc   :  { %4645 = vmatprep.mubr.bf16.mxu1 %v20543_v48  ;;  %4659 = vmatpush1.bf16.msra.mxu1 %v16853_v35 }
 0xecd   :  { %11668 = vmatprep.subr.msk.bf16.mxu1 %vm20923_vm13, %v16859_v53 }
 0xed0   :  { %4661 = vmatpush1.bf16.msra.mxu1 %v14473_v27 }
 0xed1   :  { %4720 = vmatprep.subr.bf16.mxu1 %v16867_v38 }
 0xed3   :  { %11667 = vmatmul.mubr.msk.bf16.gmra.mrb[104].mxu1 %vm20925_vm2, %v4596_v41  ;;  %vm20928_vm2 = vmmov %vm20926_vm0  ;;  %v4778_v41 = vrot.slane %v4585_v13, 2  ;;  %v16931_v13 = vld [vmem:[%s19960_s1 + $0x80] ss:$8 sps:$4 sm:$0xff]  }
 0xed4   :  { %4690 = vmatprep.mubr.bf16.mxu1 %v20543_v48  ;;  %20938 = vst [vmem:[#allocation96_spill] sm:$0xff] %v16931_v13 }
 0xedb   :  { %11669 = vmatmul.mubr.msk.bf16.vlgmr.msra.gmra.mrb[100].mxu1 %vm20926_vm0, %v16809_v54  ;;  %vm20929_vm0 = vcmask 1046528  }
 0xedc   :  { %4700 = vmatprep.mubr.bf16.mxu1 %v20543_v48  ;;  %4721 = vmatpush1.bf16.msra.mxu1 %v16878_v63  ;;  %v4713_v33 = vsel %vm20929_vm0, %v4711_v49, %v4712_v59  ;;  %v16920_v49 = vld [vmem:[%s19960_s1 + $0x84] ss:$8 sps:$4 sm:$0xff]  }
 0xedd   :  { %11671 = vmatprep.subr.msk.bf16.mxu1 %vm20923_vm13, %v16884_v30  ;;  %vm20930_vm13 = vmmov %vm20928_vm2  ;;  %20934 = vst [vmem:[#allocation95_spill] sm:$0xff] %v16920_v49 }
 0xede   :  { %vm20935_vm0 = vmmov %vm20930_vm13 }
 0xee0   :  { %4723 = vmatpush1.bf16.msra.mxu1 %v20769_v56 }
 0xee1   :  { %4790 = vmatprep.subr.bf16.mxu1 %v16892_v4 }
 0xee3   :  { %11670 = vmatmul.mubr.msk.bf16.gmra.mrb[108].mxu1 %vm20928_vm2, %v16817_v60  ;;  %vm20933_vm2 = vcmask 1045504  }
 0xee4   :  { %4752 = vmatprep.mubr.bf16.mxu1 %v20543_v48 }
 0xeeb   :  { %11672 = vmatmul.mubr.msk.bf16.vlgmr.msra.gmra.mrb[100].mxu1 %vm20930_vm13, %v4713_v33  ;;  %v4779_v33 = vor.u32 %v4778_v41, %v4777_v24  ;;  %vm20936_vm13 = vsmask.f32 6400  ;;  %v20952_v41 = vld [vmem:[#allocation20_spill] sm:$0xff] }
 0xeec   :  { %4762 = vmatprep.mubr.bf16.mxu1 %v20543_v48  ;;  %4791 = vmatpush1.bf16.msra.mxu1 %v16906_v3  ;;  %v4782_v3 = vor.u32 %v4781_v17, %v4780_v1 }
 0xeed   :  { %11674 = vmatprep.subr.msk.bf16.mxu1 %vm20933_vm2, %v16912_v34  ;;  %vm20937_vm2 = vmmov %vm20935_vm0 }
 0xeee   :  { %v4783_v47 = vsel %vm20936_vm13, %v4779_v33, %v4782_v3  ;;  %vm20941_vm13 = vmmov %vm20937_vm2  ;;  %v3355_v33 = vrot.slane %v20952_v41, 3 }
 0xeef   :  { %vm20943_vm12 = vmmov %vm20941_vm13 }
 0xef0   :  { %4793 = vmatpush1.bf16.msra.mxu1 %v20775_v52 }
 0xef1   :  { %4856 = vmatprep.subr.bf16.mxu1 %v16920_v49 }
 0xef3   :  { %11673 = vmatmul.mubr.msk.bf16.gmra.mrb[112].mxu1 %vm20935_vm0, %v4712_v59  ;;  %vm20940_vm0 = vcmask 1045504   ;;  %v4848_v59 = vrot.slane %v16817_v60, 2 }
 0xef4   :  { %4822 = vmatprep.mubr.bf16.mxu1 %v20543_v48 }
 0xefb   :  { %11675 = vmatmul.mubr.msk.bf16.vlgmr.msra.gmra.mrb[100].mxu1 %vm20937_vm2, %v4783_v47  ;;  %vm20942_vm2 = vmmov %vm20940_vm0 }
 0xefc   :  { %4832 = vmatprep.mubr.bf16.mxu1 %v20543_v48  ;;  %4857 = vmatpush1.bf16.msra.mxu1 %v16931_v13  ;;  %v4849_v24 = vsel %vm20942_vm2, %v4847_v46, %v4848_v59  ;;  %vm20947_vm2 = vnez %v20790_v29  ;;  %v3347_v46 = vrot.slane %v20952_v41, 1 }
 0xefd   :  { %11677 = vmatprep.subr.msk.bf16.mxu1 %vm20940_vm0, %v16937_v43  ;;  %vm20944_vm0 = vmmov %vm20943_vm12 }
 0xf00   :  { %4859 = vmatpush1.bf16.msra.mxu1 %v20781_v62 }
 0xf01   :  { %12977 = vmatprep.subr.bf16.mxu1 %v20571_v44 }
 0xf03   :  { %11676 = vmatmul.mubr.msk.bf16.gmra.mrb[116].mxu1 %vm20941_vm13, %v4782_v3  ;;  %vm20946_vm13 = vnez %v20788_v57 }
 0xf04   :  { %4888 = vmatprep.mubr.bf16.mxu1 %v20543_v48 }
 0xf0b   :  { %11678 = vmatmul.mubr.msk.bf16.vlgmr.msra.gmra.mrb[100].mxu1 %vm20943_vm12, %v4849_v24  ;;  %vm20945_vm12 = vnez %v20471_v45 }
 0xf0c   :  { %4898 = vmatprep.mubr.bf16.mxu1 %v20543_v48  ;;  %12979 = vmatpush1.bf16.msk.msra.mxu1 %vm20574_vm8, %v20573_v5 }
 0xf0d   :  { %12980 = vmatprep.subr.bf16.mxu1 %v20571_v44 }
 0xf10   :  { %12982 = vmatpush1.bf16.msk.msra.mxu1 %vm20578_vm9, %v20573_v5 }
 0xf11   :  { %12983 = vmatprep.subr.bf16.mxu1 %v20571_v44 }
 0xf13   :  { %11679 = vmatmul.mubr.msk.bf16.gmra.mrb[120].mxu1 %vm20944_vm0, %v4848_v59  ;;  %vm20948_vm0 = vnez %v20792_v39 }
 0xf14   :  { %12985 = vmatpush1.bf16.msk.msra.mxu1 %vm20735_vm15, %v20573_v5 }
 0xf15   :  { %12986 = vmatprep.subr.bf16.mxu1 %v20571_v44 }
 0xf18   :  { %12988 = vmatpush1.bf16.msk.msra.mxu1 %vm20629_vm7, %v20573_v5 }
 0xf19   :  { %12989 = vmatprep.subr.bf16.mxu1 %v20571_v44 }
 0xf1c   :  { %12991 = vmatpush1.bf16.msk.msra.mxu1 %vm20630_vm6, %v20573_v5 }
 0xf1d   :  { %12992 = vmatprep.subr.bf16.mxu1 %v20571_v44 }
 0xf20   :  { %12994 = vmatpush1.bf16.msk.msra.mxu1 %vm20785_vm1, %v20573_v5 }
 0xf21   :  { %12995 = vmatprep.subr.bf16.mxu1 %v20571_v44 }
 0xf24   :  { %12997 = vmatpush1.bf16.msk.msra.mxu1 %vm20786_vm3, %v20573_v5 }
 0xf25   :  { %12998 = vmatprep.subr.bf16.mxu1 %v20571_v44 }
 0xf28   :  { %13000 = vmatpush1.bf16.msk.msra.mxu1 %vm20909_vm11, %v20573_v5 }
 0xf29   :  { %13001 = vmatprep.subr.bf16.mxu1 %v20571_v44 }
 0xf2c   :  { %13003 = vmatpush1.bf16.msk.msra.mxu1 %vm20911_vm4, %v20573_v5 }
 0xf2d   :  { %13004 = vmatprep.subr.bf16.mxu1 %v20571_v44 }
 0xf30   :  { %13006 = vmatpush1.bf16.msk.msra.mxu1 %vm20945_vm12, %v20573_v5  ;;  %vm20949_vm12 = vnez %v20794_v9 }
 0xf31   :  { %13007 = vmatprep.subr.bf16.mxu1 %v20571_v44 }
 0xf34   :  { %13009 = vmatpush1.bf16.msk.msra.mxu1 %vm20946_vm13, %v20573_v5  ;;  %vm20950_vm13 = vnez %v20796_v7 }
 0xf35   :  { %13010 = vmatprep.subr.bf16.mxu1 %v20571_v44 }
 0xf38   :  { %13012 = vmatpush1.bf16.msk.msra.mxu1 %vm20947_vm2, %v20573_v5  ;;  %vm20964_vm2 = vnez %v20457_v28 }
 0xf39   :  { %13013 = vmatprep.subr.bf16.mxu1 %v20571_v44 }
 0xf3c   :  { %13015 = vmatpush1.bf16.msk.msra.mxu1 %vm20948_vm0, %v20573_v5 }
 0xf3d   :  { %13016 = vmatprep.subr.bf16.mxu1 %v20571_v44 }
 0xf40   :  { %13018 = vmatpush1.bf16.msk.msra.mxu1 %vm20949_vm12, %v20573_v5 }
 0xf41   :  { %13019 = vmatprep.subr.bf16.mxu1 %v20571_v44 }
 0xf44   :  { %13021 = vmatpush1.bf16.msk.msra.mxu1 %vm20950_vm13, %v20573_v5  ;;  %vm20955_vm13 = vcmask 195584  }
 0xf45   :  { %5341 = vmatprep.subr.bf16.mxu1 %v16203_v20  ;;  %v3351_v20 = vrot.slane %v20952_v41, 2  ;;  %vm20957_vm12 = vmmov %vm20955_vm13 }
 0xf46   :  { %vm20958_vm0 = vmmov %vm20957_vm12 }
 0xf96   :  { %v4484_v54 = vpop.f32.mrb[96].mxu1  ;;  %v4554_v60 = vpop.f32.mrb[104].mxu0 }
 0xf97   :  { %v17011_v3 = vmax.f32 %v4484_v54, %v4554_v60  ;;  %v4486_v17 = vpop.f32.mrb[97].mxu1  ;;  %v4556_v1 = vpop.f32.mrb[105].mxu0 }
 0xf99   :  { %20951 = vst [vmem:[#allocation98_spill] sm:$0xff] %v17011_v3  ;;  %v4568_v47 = vrot.slane %v17011_v3, 3  ;;  %v4560_v59 = vrot.slane %v17011_v3, 1  ;;  %v4564_v7 = vrot.slane %v17011_v3, 2 }
 0xf9b   :  { %v13860_v24 = vpack.i.bf16 %v4568_v47, %v3355_v33  ;;  %v13850_v9 = vpack.i.bf16 %v4560_v59, %v3347_v46  ;;  %v13855_v54 = vpack.i.bf16 %v4564_v7, %v3351_v20 }
 0xf9d   :  { %13861 = vrot.lane.b32.xlu1 %v13860_v24, %s14364_s30  ;;  %13851 = vrot.lane.b32.xlu0 %v13850_v9, %s14365_s10 }
 0xfa1   :  { %13856 = vrot.lane.b32.xlu0 %v13855_v54, %s14366_s11 }
 0xfa6   :  { %v4647_v60 = vpop.f32.mrb[104].mxu1 }
 0xfa7   :  { %v4649_v17 = vpop.f32.mrb[105].mxu1 }
 0xfa8   :  { %v4651_v1 = vpop.f32.mrb[106].mxu1 }
 0xfa9   :  { %v4652_v39 = vpop.f32.mrb[107].mxu1 }
 0xfaa   :  { %v20953_v39 = vld [vmem:[#allocation10_spill] sm:$0xff] }
 0xfb6   :  { %v4702_v33 = vpop.f32.mrb[108].mxu1 }
 0xfb7   :  { %v4703_v47 = vadd.f32 %v4702_v33, %v4647_v60  ;;  %v4704_v46 = vpop.f32.mrb[109].mxu1  ;;  %v20954_v33 = vld [vmem:[#allocation11_spill] sm:$0xff] }
 0xfb8   :  { %v4705_v59 = vadd.f32 %v4704_v46, %v4649_v17  ;;  %v4706_v3 = vpop.f32.mrb[110].mxu1 }
 0xfb9   :  { %v4707_v29 = vpop.f32.mrb[111].mxu1 }
 0xfc6   :  { %v4764_v24 = vpop.f32.mrb[112].mxu1 }
 0xfc7   :  { %v4775_v57 = vadd.f32 %v4764_v24, %v4703_v47  ;;  %v4766_v62 = vpop.f32.mrb[113].mxu1 }
 0xfc8   :  { %v4776_v9 = vadd.f32 %v4766_v62, %v4705_v59  ;;  %v4768_v43 = vpop.f32.mrb[114].mxu1 }
 0xfc9   :  { %v4769_v41 = vpop.f32.mrb[115].mxu1 }
 0xfd6   :  { %v4834_v7 = vpop.f32.mrb[116].mxu1 }
 0xfd7   :  { %v4845_v20 = vadd.f32 %v4834_v7, %v4775_v57  ;;  %v4836_v13 = vpop.f32.mrb[117].mxu1 }
 0xfd8   :  { %v4846_v54 = vadd.f32 %v4836_v13, %v4776_v9  ;;  %v4838_v49 = vpop.f32.mrb[118].mxu1 }
 0xfd9   :  { %v4839_v52 = vpop.f32.mrb[119].mxu1 }
 0xfde   :  { %v4890_v1 = vpop.f32.mrb[100].mxu1 }
 0xfdf   :  { %v4913_v34 = vadd.f32 %v4890_v1, %v20953_v39  ;;  %v4892_v60 = vpop.f32.mrb[101].mxu1 }
 0xfe0   :  { %v4914_v17 = vadd.f32 %v4892_v60, %v20954_v33  ;;  %v4894_v3 = vpop.f32.mrb[102].mxu1 }
 0xfe1   :  { %v4915_v29 = vadd.f32 %v4894_v3, %v20953_v39  ;;  %v4896_v47 = vpop.f32.mrb[103].mxu1  ;;  %v4919_v43 = vmax.f32 %v4913_v34, 0.0  ;;  %v20956_v34 = vld [vmem:[#allocation12_spill] sm:$0xff] }
 0xfe2   :  { %v4916_v62 = vadd.f32 %v4896_v47, %v20954_v33  ;;  %v4920_v46 = vmax.f32 %v4914_v17, 0.0  ;;  %v20972_v17 = vld [vmem:[#allocation14_spill] sm:$0xff] }
 0xfe3   :  { %v4921_v41 = vmax.f32 %v4915_v29, 0.0  ;;  %v20974_v29 = vld [vmem:[#allocation16_spill] sm:$0xff] }
 0xfe4   :  { %v4922_v57 = vmax.f32 %v4916_v62, 0.0  ;;  %v20976_v62 = vld [vmem:[#allocation18_spill] sm:$0xff] }
 0xfe5   :  { %v12926_v59 = vpack.c.bf16 %v4921_v41, %v4919_v43  ;;  %v17102_v43 = vld [vmem:[%s19963_s3 + $0x7c] ss:$8 sps:$4 sm:$0xff]  }
 0xfe6   :  { %v12924_v13 = vpack.c.bf16 %v4922_v57, %v4920_v46  ;;  %v4900_v49 = vpop.f32.mrb[120].mxu1  ;;  %20978 = vst [vmem:[#allocation100_spill] sm:$0xff] %v17102_v43 }
 0xfe7   :  { %v4911_v52 = vadd.f32 %v4900_v49, %v4845_v20  ;;  %v4902_v24 = vpop.f32.mrb[121].mxu1  ;;  %v20968_v20 = vld [vmem:[#allocation6_spill] sm:$0xff] }
 0xfe8   :  { %v4912_v9 = vadd.f32 %v4902_v24, %v4846_v54  ;;  %v4904_v7 = vpop.f32.mrb[122].mxu1  ;;  %12925 = vmatprep.subr.bf16.mxu0 %v12924_v13  ;;  %v20970_v54 = vld [vmem:[#allocation8_spill] sm:$0xff] }
 0xfe9   :  { %v4917_v1 = vadd.f32 %v4911_v52, %v20953_v39  ;;  %v4905_v60 = vpop.f32.mrb[123].mxu1  ;;  %12927 = vmatpush1.bf16.msra.mxu0 %v12926_v59 }
 0xfea   :  { %v4918_v3 = vadd.f32 %v4912_v9, %v20954_v33 }
 0xfeb   :  { %v4923_v47 = vmax.f32 %v4917_v1, 0.0 }
 0xfec   :  { %v4924_v4 = vmax.f32 %v4918_v3, 0.0  ;;  %v17110_v3 = vld [vmem:[%s19963_s3 + $0xf0] ss:$8 sps:$4 sm:$0xff]  }
 0xfed   :  { %20981 = vst [vmem:[#allocation101_spill] sm:$0xff] %v17110_v3 }
 0xfee   :  { %4929 = vmatprep.subr.mxu0 %v4924_v4 }
 0xfef   :  { %4930 = vmatpush1.msra.mxu0 %v4923_v47 }
 0xff0   :  { %11680 = vmatmul.mubr.msk.f32.vlgmr.msra.gmra.mrb[106].mxu0 %vm20955_vm13, %v14807_v12  ;;  %12929 = vmatprep.subr.bf16.mxu0 %v12924_v13  ;;  %vm20960_vm13 = vmmov %vm20958_vm0 }
 0xff1   :  { %12931 = vmatpush1.bf16.msra.mxu0 %v12926_v59  ;;  %4995 = vmatprep.mubr.f32.mxu0 %v20601_v58 }
 0xff2   :  { %5006 = vmatprep.subr.mxu0 %v4924_v4  ;;  %v20959_v4 = vld [vmem:[#allocation13_spill] sm:$0xff] }
 0xff4   :  { %11681 = vmatmul.mubr.msk.f32.gmra.mrb[108].mxu0 %vm20957_vm12, %v20956_v34  ;;  %vm20961_vm12 = vnez %v20445_v15 }
 0xff5   :  { %5007 = vmatpush1.msra.mxu0 %v4923_v47  ;;  %5066 = vmatprep.mubr.f32.mxu0 %v20601_v58  ;;  %v17116_v47 = vld [vmem:[%s19963_s3 + $0x78] ss:$8 sps:$4 sm:$0xff]  }
 0xff6   :  { %12932 = vmatprep.subr.bf16.mxu0 %v20571_v44  ;;  %20982 = vst [vmem:[#allocation102_spill] sm:$0xff] %v17116_v47 }
 0xff8   :  { %11682 = vmatmul.mubr.msk.f32.vlgmr.msra.gmra.mrb[110].mxu0 %vm20958_vm0, %v14826_v16  ;;  %vm20962_vm0 = vnez %v20449_v19 }
 0xff9   :  { %5072 = vmatprep.mubr.f32.mxu0 %v20601_v58  ;;  %12934 = vmatpush1.bf16.msk.msra.mxu0 %vm14828_vm5, %v20573_v5 }
 0xffa   :  { %12935 = vmatprep.subr.bf16.mxu0 %v20571_v44 }
 0xffc   :  { %11683 = vmatmul.mubr.msk.f32.gmra.mrb[112].mxu0 %vm20960_vm13, %v20959_v4  ;;  %vm20963_vm13 = vnez %v20453_v23 }
 0xffd   :  { %12937 = vmatpush1.bf16.msk.msra.mxu0 %vm14593_vm14, %v20573_v5 }
 0xffe   :  { %12938 = vmatprep.subr.bf16.mxu0 %v20571_v44 }
0x1001   :  { %12940 = vmatpush1.bf16.msk.msra.mxu0 %vm14610_vm10, %v20573_v5 }
0x1002   :  { %12941 = vmatprep.subr.bf16.mxu0 %v20571_v44 }
0x1005   :  { %12943 = vmatpush1.bf16.msk.msra.mxu0 %vm20961_vm12, %v20573_v5  ;;  %vm20965_vm12 = vnez %v20461_v32 }
0x1006   :  { %12944 = vmatprep.subr.bf16.mxu0 %v20571_v44 }
0x1009   :  { %12946 = vmatpush1.bf16.msk.msra.mxu0 %vm20962_vm0, %v20573_v5  ;;  %vm20966_vm0 = vnez %v20465_v37 }
0x100a   :  { %12947 = vmatprep.subr.bf16.mxu0 %v20571_v44 }
0x100d   :  { %12949 = vmatpush1.bf16.msk.msra.mxu0 %vm20963_vm13, %v20573_v5  ;;  %vm20967_vm13 = vnez %v20469_v42 }
0x100e   :  { %12950 = vmatprep.subr.bf16.mxu0 %v20571_v44 }
0x1011   :  { %12952 = vmatpush1.bf16.msk.msra.mxu0 %vm20964_vm2, %v20573_v5  ;;  %vm20969_vm2 = vnez %v20968_v20 }
0x1012   :  { %12953 = vmatprep.subr.bf16.mxu0 %v20571_v44 }
0x1015   :  { %12955 = vmatpush1.bf16.msk.msra.mxu0 %vm20965_vm12, %v20573_v5  ;;  %vm20971_vm12 = vnez %v20970_v54 }
0x1016   :  { %12956 = vmatprep.subr.bf16.mxu0 %v20571_v44 }
0x1019   :  { %12958 = vmatpush1.bf16.msk.msra.mxu0 %vm20966_vm0, %v20573_v5  ;;  %vm20973_vm0 = vnez %v20972_v17 }
0x101a   :  { %12959 = vmatprep.subr.bf16.mxu0 %v20571_v44 }
0x101d   :  { %12961 = vmatpush1.bf16.msk.msra.mxu0 %vm20967_vm13, %v20573_v5  ;;  %vm20975_vm13 = vnez %v20974_v29 }
0x101e   :  { %12962 = vmatprep.subr.bf16.mxu0 %v20571_v44 }
0x1021   :  { %12964 = vmatpush1.bf16.msk.msra.mxu0 %vm20969_vm2, %v20573_v5  ;;  %vm20977_vm2 = vnez %v20976_v62 }
0x1022   :  { %12965 = vmatprep.subr.bf16.mxu0 %v20571_v44 }
0x1025   :  { %12967 = vmatpush1.bf16.msk.msra.mxu0 %vm20971_vm12, %v20573_v5  ;;  %vm21075_vm12 = vnez %v20453_v23 }
0x1026   :  { %12968 = vmatprep.subr.bf16.mxu0 %v20571_v44 }
0x1029   :  { %12970 = vmatpush1.bf16.msk.msra.mxu0 %vm20973_vm0, %v20573_v5 }
0x102a   :  { %12971 = vmatprep.subr.bf16.mxu0 %v20571_v44 }
0x102d   :  { %12973 = vmatpush1.bf16.msk.msra.mxu0 %vm20975_vm13, %v20573_v5  ;;  %vm20979_vm13 = vcmask 916480  }
0x102e   :  { %12974 = vmatprep.subr.bf16.mxu0 %v20571_v44  ;;  %vm20980_vm0 = vmmov %vm20979_vm13 }
0x1031   :  { %12976 = vmatpush1.bf16.msk.msra.mxu0 %vm20977_vm2, %v20573_v5  ;;  %vm21049_vm2 = vcmask 982016  }
0x1032   :  { %5252 = vmatprep.subr.bf16.mxu0 %v17102_v43 }
0x10c3   :  { %v4991_v41 = vpop.f32.mrb[106].mxu0 }
0x10c4   :  { %v4993_v46 = vpop.f32.mrb[107].mxu0 }
0x10c7   :  { %v4997_v57 = vpop.f32.mrb[108].mxu0 }
0x10c8   :  { %v4999_v59 = vpop.f32.mrb[109].mxu0 }
0x10cb   :  { %v5068_v13 = vpop.f32.mrb[110].mxu0 }
0x10cc   :  { %v5079_v49 = vmax.f32 %v4991_v41, %v5068_v13  ;;  %v5070_v52 = vpop.f32.mrb[111].mxu0  ;;  %v17122_v41 = vld [vmem:[%s19963_s3 + $0x104] ss:$8 sps:$4 sm:$0xff]   ;;  %v20988_v13 = vld [vmem:[#allocation21_spill] sm:$0xff] }
0x10cd   :  { %v5080_v24 = vmax.f32 %v4993_v46, %v5070_v52  ;;  %20983 = vst [vmem:[#allocation103_spill] sm:$0xff] %v17122_v41  ;;  %v17128_v46 = vld [vmem:[%s19963_s3 + $0x8c] ss:$8 sps:$4 sm:$0xff]  }
0x10ce   :  { %20984 = vst [vmem:[#allocation104_spill] sm:$0xff] %v17128_v46  ;;  %v20990_v52 = vld [vmem:[#allocation23_spill] sm:$0xff] }
0x10cf   :  { %v5074_v9 = vpop.f32.mrb[112].mxu0  ;;  %11714 = vmatprep.mubr.msk.f32.mxu0 %vm20979_vm13, %v5080_v24  ;;  %11746 = vmatprep.mubr.msk.f32.mxu1 %vm20980_vm0, %v5080_v24  ;;  %vm20985_vm13 = vmmov %vm20980_vm0  ;;  %v20991_v24 = vld [vmem:[#allocation24_spill] sm:$0xff] }
0x10d0   :  { %v5081_v7 = vmax.f32 %v4997_v57, %v5074_v9  ;;  %v5076_v1 = vpop.f32.mrb[113].mxu0  ;;  %5154 = vmatmul.mubr.f32.vlgmr.msra.gmra.mrb[114].mxu0 %v5079_v49  ;;  %5229 = vmatmul.mubr.f32.vlgmr.msra.gmra.mrb[98].mxu1 %v5079_v49  ;;  %v17136_v57 = vld [vmem:[%s19963_s3 + $0x100] ss:$8 sps:$4 sm:$0xff]   ;;  %v20992_v9 = vld [vmem:[#allocation25_spill] sm:$0xff] }
0x10d1   :  { %v5082_v60 = vmax.f32 %v4999_v59, %v5076_v1  ;;  %5342 = vmatpush1.bf16.msra.mxu1 %v17110_v3  ;;  %5253 = vmatpush1.bf16.msra.mxu0 %v17116_v47  ;;  %20986 = vst [vmem:[#allocation105_spill] sm:$0xff] %v17136_v57  ;;  %v17142_v59 = vld [vmem:[%s19963_s3 + $0x88] ss:$8 sps:$4 sm:$0xff]   ;;  %v20989_v49 = vld [vmem:[#allocation22_spill] sm:$0xff] }
0x10d2   :  { %5343 = vmatprep.subr.bf16.mxu1 %v17122_v41  ;;  %5254 = vmatprep.subr.bf16.mxu0 %v17128_v46  ;;  %20987 = vst [vmem:[#allocation106_spill] sm:$0xff] %v17142_v59  ;;  %v20994_v1 = vld [vmem:[#allocation27_spill] sm:$0xff]  ;;  %v21000_v46 = vld [vmem:[#allocation34_spill] sm:$0xff] }
0x10d3   :  { %11715 = vmatprep.mubr.msk.f32.mxu0 %vm20980_vm0, %v5082_v60  ;;  %11747 = vmatprep.mubr.msk.f32.mxu1 %vm20985_vm13, %v5082_v60  ;;  %v20995_v60 = vld [vmem:[#allocation28_spill] sm:$0xff]  ;;  %vm21009_vm0 = vcmask 1043456  }
0x10d4   :  { %5159 = vmatmul.mubr.f32.gmra.mrb[116].mxu0 %v5081_v7  ;;  %5234 = vmatmul.mubr.f32.gmra.mrb[124].mxu1 %v5081_v7  ;;  %v20993_v7 = vld [vmem:[#allocation26_spill] sm:$0xff]  ;;  %vm21011_vm13 = vmmov %vm21009_vm0 }
0x10d5   :  { %5344 = vmatpush1.bf16.msra.mxu1 %v17136_v57  ;;  %5255 = vmatpush1.bf16.msra.mxu0 %v17142_v59  ;;  %v20996_v59 = vld [vmem:[#allocation29_spill] sm:$0xff]  ;;  %v20999_v57 = vld [vmem:[#allocation32_spill] sm:$0xff] }
0x10d6   :  { %5345 = vmatprep.subr.bf16.mxu1 %v20988_v13  ;;  %5256 = vmatprep.subr.bf16.mxu0 %v20989_v49  ;;  %v20997_v13 = vld [vmem:[#allocation30_spill] sm:$0xff]  ;;  %v20998_v49 = vld [vmem:[#allocation31_spill] sm:$0xff] }
0x10d7   :  { %5373 = vmatprep.mubr.bf16.mxu1 %v20543_v48  ;;  %5284 = vmatprep.mubr.bf16.mxu0 %v20543_v48 }
0x10d9   :  { %5346 = vmatpush1.bf16.msra.mxu1 %v20990_v52  ;;  %5257 = vmatpush1.bf16.msra.mxu0 %v20991_v24  ;;  %v21001_v52 = vld [vmem:[#allocation33_spill] sm:$0xff]  ;;  %v21002_v24 = vld [vmem:[#allocation36_spill] sm:$0xff] }
0x10da   :  { %5347 = vmatprep.subr.bf16.mxu1 %v20992_v9  ;;  %5258 = vmatprep.subr.bf16.mxu0 %v20993_v7  ;;  %v21003_v9 = vld [vmem:[#allocation35_spill] sm:$0xff]  ;;  %v21004_v7 = vld [vmem:[#allocation38_spill] sm:$0xff] }
0x10dd   :  { %5348 = vmatpush1.bf16.msra.mxu1 %v20994_v1  ;;  %5259 = vmatpush1.bf16.msra.mxu0 %v20995_v60  ;;  %v21005_v1 = vld [vmem:[#allocation37_spill] sm:$0xff]  ;;  %v21006_v60 = vld [vmem:[#allocation40_spill] sm:$0xff] }
0x10de   :  { %5349 = vmatprep.subr.bf16.mxu1 %v20996_v59  ;;  %5260 = vmatprep.subr.bf16.mxu0 %v20997_v13  ;;  %v21007_v59 = vld [vmem:[#allocation43_spill] sm:$0xff] }
0x10df   :  { %v21008_v13 = vld [vmem:[#allocation39_spill] sm:$0xff] }
0x10e1   :  { %5350 = vmatpush1.bf16.msra.mxu1 %v20998_v49  ;;  %5261 = vmatpush1.bf16.msra.mxu0 %v20999_v57  ;;  %v21010_v57 = vld [vmem:[#allocation42_spill] sm:$0xff]  ;;  %v21013_v49 = vld [vmem:[#allocation44_spill] sm:$0xff] }
0x10e2   :  { %5351 = vmatprep.subr.bf16.mxu1 %v21000_v46  ;;  %5262 = vmatprep.subr.bf16.mxu0 %v21001_v52  ;;  %v21012_v46 = vld [vmem:[#allocation41_spill] sm:$0xff] }
0x10e3   :  { %v21014_v52 = vld [vmem:[#allocation45_spill] sm:$0xff] }
0x10e5   :  { %5352 = vmatpush1.bf16.msra.mxu1 %v21002_v24  ;;  %5263 = vmatpush1.bf16.msra.mxu0 %v21003_v9  ;;  %v21015_v24 = vld [vmem:[#allocation46_spill] sm:$0xff] }
0x10e6   :  { %5353 = vmatprep.subr.bf16.mxu1 %v21004_v7  ;;  %5264 = vmatprep.subr.bf16.mxu0 %v21005_v1 }
0x10e9   :  { %5354 = vmatpush1.bf16.msra.mxu1 %v21006_v60  ;;  %5265 = vmatpush1.bf16.msra.mxu0 %v21007_v59 }
0x10ea   :  { %11752 = vmatprep.subr.msk.bf16.mxu1 %vm21009_vm0, %v21008_v13  ;;  %11748 = vmatprep.subr.msk.bf16.mxu0 %vm21011_vm13, %v21010_v57  ;;  %vm21016_vm0 = vcmask 982016  }
0x10eb   :  { %vm21019_vm13 = vmmov %vm21016_vm0 }
0x10ed   :  { %5356 = vmatpush1.bf16.msra.mxu1 %v21012_v46  ;;  %5267 = vmatpush1.bf16.msra.mxu0 %v21013_v49  ;;  %v21017_v49 = vld [vmem:[#allocation47_spill] sm:$0xff] }
0x10ee   :  { %5437 = vmatprep.subr.bf16.mxu1 %v21014_v52  ;;  %5295 = vmatprep.subr.bf16.mxu0 %v21015_v24 }
0x11a3   :  { %v5155_v9 = vpop.f32.mrb[114].mxu0  ;;  %v5230_v7 = vpop.f32.mrb[98].mxu1 }
0x11a4   :  { %v5239_v1 = vmax.f32 %v5155_v9, %v5230_v7  ;;  %v5157_v60 = vpop.f32.mrb[115].mxu0  ;;  %v5232_v41 = vpop.f32.mrb[99].mxu1  ;;  %v21018_v9 = vld [vmem:[#allocation48_spill] sm:$0xff]  ;;  %v21028_v7 = vld [vmem:[#allocation57_spill] sm:$0xff] }
0x11a5   :  { %v21030_v60 = vld [vmem:[#allocation59_spill] sm:$0xff] }
0x11a7   :  { %v5160_v59 = vpop.f32.mrb[116].mxu0  ;;  %v5235_v47 = vpop.f32.mrb[124].mxu1 }
0x11a8   :  { %v5240_v3 = vmax.f32 %v5160_v59, %v5235_v47  ;;  %v5162_v13 = vpop.f32.mrb[117].mxu0  ;;  %v5237_v43 = vpop.f32.mrb[125].mxu1  ;;  %v21021_v47 = vld [vmem:[#allocation50_spill] sm:$0xff]  ;;  %v21031_v59 = vld [vmem:[#allocation60_spill] sm:$0xff] }
0x11a9   :  { %v21022_v13 = vld [vmem:[#allocation51_spill] sm:$0xff] }
0x11aa   :  { %v5241_v62 = vpack.c.bf16 %v5240_v3, %v5239_v1  ;;  %v21020_v3 = vld [vmem:[#allocation49_spill] sm:$0xff]  ;;  %v21029_v1 = vld [vmem:[#allocation58_spill] sm:$0xff] }
0x11ac   :  { %v5243_v57 = vshrl.u32 %v5241_v62, 16  ;;  %v5245_v29 = vshll.u32 %v5241_v62, 16  ;;  %v5337_v46 = vrot.slane %v5241_v62, 1 }
0x11ae   :  { %v5247_v17 = vrot.slane %v5245_v29, 1  ;;  %11753 = vmatmul.mubr.msk.bf16.vlgmr.msra.gmra.mrb[128].mxu1 %vm21016_vm0, %v5337_v46  ;;  %v17176_v52 = vrot.slane %v5243_v57, 1  ;;  %v17178_v24 = vrot.slane %v5245_v29, 2  ;;  %v21023_v29 = vld [vmem:[#allocation52_spill] sm:$0xff]  ;;  %v21024_v46 = vld [vmem:[#allocation53_spill] sm:$0xff]  ;;  %vm21044_vm0 = vcmask 1043456  }
0x11af   :  { %5438 = vmatpush1.bf16.msra.mxu1 %v21017_v49  ;;  %5469 = vmatprep.mubr.bf16.mxu1 %v20543_v48  ;;  %v21027_v49 = vld [vmem:[#allocation56_spill] sm:$0xff] }
0x11b0   :  { %v5248_v41 = vor.u32 %v5247_v17, %v5243_v57  ;;  %5439 = vmatprep.subr.bf16.mxu1 %v21018_v9  ;;  %v5386_v43 = vor.u32 %v17178_v24, %v17176_v52  ;;  %v21025_v17 = vld [vmem:[#allocation54_spill] sm:$0xff]  ;;  %v21026_v57 = vld [vmem:[#allocation55_spill] sm:$0xff] }
0x11b1   :  { %v21033_v9 = vld [vmem:[#allocation62_spill] sm:$0xff] }
0x11b2   :  { %11749 = vmatmul.mubr.msk.bf16.vlgmr.msra.gmra.mrb[120].mxu0 %vm21019_vm13, %v5248_v41  ;;  %v21032_v41 = vld [vmem:[#allocation61_spill] sm:$0xff]  ;;  %vm21048_vm13 = vmmov %vm21044_vm0 }
0x11b3   :  { %5296 = vmatpush1.bf16.msra.mxu0 %v21020_v3  ;;  %5440 = vmatpush1.bf16.msra.mxu1 %v21021_v47  ;;  %v21034_v3 = vld [vmem:[#allocation63_spill] sm:$0xff]  ;;  %v21035_v47 = vld [vmem:[#allocation64_spill] sm:$0xff] }
0x11b4   :  { %5297 = vmatprep.subr.bf16.mxu0 %v21022_v13  ;;  %5441 = vmatprep.subr.bf16.mxu1 %v21023_v29  ;;  %v21036_v13 = vld [vmem:[#allocation65_spill] sm:$0xff]  ;;  %v21037_v29 = vld [vmem:[#allocation66_spill] sm:$0xff] }
0x11b5   :  { %5327 = vmatprep.mubr.bf16.mxu0 %v20543_v48 }
0x11b7   :  { %5298 = vmatpush1.bf16.msra.mxu0 %v21024_v46  ;;  %5442 = vmatpush1.bf16.msra.mxu1 %v21025_v17  ;;  %v21038_v46 = vld [vmem:[#allocation67_spill] sm:$0xff]  ;;  %v21039_v17 = vld [vmem:[#allocation68_spill] sm:$0xff] }
0x11b8   :  { %5299 = vmatprep.subr.bf16.mxu0 %v21026_v57  ;;  %5443 = vmatprep.subr.bf16.mxu1 %v21027_v49  ;;  %v21040_v57 = vld [vmem:[#allocation69_spill] sm:$0xff]  ;;  %v21041_v49 = vld [vmem:[#allocation70_spill] sm:$0xff] }
0x11bb   :  { %5300 = vmatpush1.bf16.msra.mxu0 %v21028_v7  ;;  %5444 = vmatpush1.bf16.msra.mxu1 %v21029_v1  ;;  %v21042_v7 = vld [vmem:[#allocation72_spill] sm:$0xff]  ;;  %v21043_v1 = vld [vmem:[#allocation71_spill] sm:$0xff] }
0x11bc   :  { %5301 = vmatprep.subr.bf16.mxu0 %v21030_v60  ;;  %5445 = vmatprep.subr.bf16.mxu1 %v21031_v59  ;;  %v21045_v60 = vld [vmem:[#allocation76_spill] sm:$0xff]  ;;  %v21046_v59 = vld [vmem:[#allocation73_spill] sm:$0xff] }
0x11bf   :  { %5302 = vmatpush1.bf16.msra.mxu0 %v21032_v41  ;;  %5446 = vmatpush1.bf16.msra.mxu1 %v21033_v9  ;;  %v21047_v41 = vld [vmem:[#allocation74_spill] sm:$0xff]  ;;  %v5433_v9 = vrot.slane %v5241_v62, 2 }
0x11c0   :  { %5303 = vmatprep.subr.bf16.mxu0 %v21034_v3  ;;  %5447 = vmatprep.subr.bf16.mxu1 %v21035_v47  ;;  %v21050_v3 = vld [vmem:[#allocation75_spill] sm:$0xff]  ;;  %v21051_v47 = vld [vmem:[#allocation77_spill] sm:$0xff] }
0x11c3   :  { %5304 = vmatpush1.bf16.msra.mxu0 %v21036_v13  ;;  %5448 = vmatpush1.bf16.msra.mxu1 %v21037_v29  ;;  %v21053_v13 = vld [vmem:[#allocation78_spill] sm:$0xff]  ;;  %v21054_v29 = vld [vmem:[#allocation79_spill] sm:$0xff] }
0x11c4   :  { %5305 = vmatprep.subr.bf16.mxu0 %v21038_v46  ;;  %5449 = vmatprep.subr.bf16.mxu1 %v21039_v17  ;;  %v21055_v46 = vld [vmem:[#allocation80_spill] sm:$0xff]  ;;  %v21056_v17 = vld [vmem:[#allocation81_spill] sm:$0xff] }
0x11c7   :  { %5306 = vmatpush1.bf16.msra.mxu0 %v21040_v57  ;;  %5450 = vmatpush1.bf16.msra.mxu1 %v21041_v49  ;;  %v21058_v57 = vld [vmem:[#allocation83_spill] sm:$0xff]  ;;  %v21059_v49 = vld [vmem:[#allocation84_spill] sm:$0xff] }
0x11c8   :  { %5307 = vmatprep.subr.bf16.mxu0 %v21042_v7  ;;  %11756 = vmatprep.subr.msk.bf16.mxu1 %vm21044_vm0, %v21043_v1  ;;  %vm21052_vm0 = vmmov %vm21049_vm2  ;;  %v21060_v7 = vld [vmem:[#allocation85_spill] sm:$0xff] }
0x11cb   :  { %5308 = vmatpush1.bf16.msra.mxu0 %v21045_v60  ;;  %5452 = vmatpush1.bf16.msra.mxu1 %v21046_v59  ;;  %v21061_v60 = vld [vmem:[#allocation86_spill] sm:$0xff] }
0x11cc   :  { %11750 = vmatprep.subr.msk.bf16.mxu0 %vm21048_vm13, %v21047_v41  ;;  %13052 = vmatprep.subr.bf16.mxu1 %v20571_v44 }
0x11ce   :  { %11757 = vmatmul.mubr.msk.bf16.vlgmr.msra.gmra.mrb[132].mxu1 %vm21049_vm2, %v5433_v9  ;;  %v21062_v9 = vld [vmem:[#allocation87_spill] sm:$0xff]  ;;  %vm21067_vm2 = vmmov %vm21048_vm13 }
0x11cf   :  { %5310 = vmatpush1.bf16.msra.mxu0 %v21050_v3  ;;  %13054 = vmatpush1.bf16.msk.msra.mxu1 %vm20574_vm8, %v20573_v5  ;;  %vm21069_vm13 = vmmov %vm21052_vm0 }
0x11d0   :  { %5390 = vmatprep.subr.bf16.mxu0 %v21051_v47  ;;  %13055 = vmatprep.subr.bf16.mxu1 %v20571_v44  ;;  %v21063_v47 = vld [vmem:[#allocation88_spill] sm:$0xff] }
0x11d2   :  { %11751 = vmatmul.mubr.msk.bf16.vlgmr.msra.gmra.mrb[124].mxu0 %vm21052_vm0, %v5241_v62  ;;  %v21057_v62 = vld [vmem:[#allocation82_spill] sm:$0xff]  ;;  %vm21070_vm0 = vnez %v20471_v45 }
0x11d3   :  { %5391 = vmatpush1.bf16.msra.mxu0 %v21053_v13  ;;  %5422 = vmatprep.mubr.bf16.mxu0 %v20543_v48  ;;  %v21064_v13 = vld [vmem:[#allocation89_spill] sm:$0xff] }
0x11d4   :  { %5392 = vmatprep.subr.bf16.mxu0 %v21054_v29  ;;  %13057 = vmatpush1.bf16.msk.msra.mxu1 %vm20578_vm9, %v20573_v5  ;;  %v21065_v29 = vld [vmem:[#allocation92_spill] sm:$0xff] }
0x11d5   :  { %13058 = vmatprep.subr.bf16.mxu1 %v20571_v44 }
0x11d7   :  { %5393 = vmatpush1.bf16.msra.mxu0 %v21055_v46  ;;  %v21066_v46 = vld [vmem:[#allocation90_spill] sm:$0xff] }
0x11d8   :  { %5394 = vmatprep.subr.bf16.mxu0 %v21056_v17  ;;  %13060 = vmatpush1.bf16.msk.msra.mxu1 %vm20735_vm15, %v20573_v5  ;;  %v21068_v17 = vld [vmem:[#allocation91_spill] sm:$0xff] }
0x11d9   :  { %13061 = vmatprep.subr.bf16.mxu1 %v20571_v44 }
0x11db   :  { %5395 = vmatpush1.bf16.msra.mxu0 %v21057_v62 }
0x11dc   :  { %5396 = vmatprep.subr.bf16.mxu0 %v21058_v57  ;;  %13063 = vmatpush1.bf16.msk.msra.mxu1 %vm20629_vm7, %v20573_v5 }
0x11dd   :  { %13064 = vmatprep.subr.bf16.mxu1 %v20571_v44 }
0x11df   :  { %5397 = vmatpush1.bf16.msra.mxu0 %v21059_v49 }
0x11e0   :  { %5398 = vmatprep.subr.bf16.mxu0 %v21060_v7  ;;  %13066 = vmatpush1.bf16.msk.msra.mxu1 %vm20630_vm6, %v20573_v5 }
0x11e1   :  { %13067 = vmatprep.subr.bf16.mxu1 %v20571_v44 }
0x11e3   :  { %5399 = vmatpush1.bf16.msra.mxu0 %v21061_v60 }
0x11e4   :  { %5400 = vmatprep.subr.bf16.mxu0 %v21062_v9  ;;  %13069 = vmatpush1.bf16.msk.msra.mxu1 %vm20785_vm1, %v20573_v5 }
0x11e5   :  { %13070 = vmatprep.subr.bf16.mxu1 %v20571_v44 }
0x11e7   :  { %5401 = vmatpush1.bf16.msra.mxu0 %v21063_v47 }
0x11e8   :  { %5402 = vmatprep.subr.bf16.mxu0 %v21064_v13  ;;  %13072 = vmatpush1.bf16.msk.msra.mxu1 %vm20786_vm3, %v20573_v5 }
0x11e9   :  { %13073 = vmatprep.subr.bf16.mxu1 %v20571_v44 }
0x11eb   :  { %5403 = vmatpush1.bf16.msra.mxu0 %v21065_v29 }
0x11ec   :  { %11754 = vmatprep.subr.msk.bf16.mxu0 %vm21067_vm2, %v21066_v46  ;;  %13075 = vmatpush1.bf16.msk.msra.mxu1 %vm20909_vm11, %v20573_v5  ;;  %vm21071_vm2 = vcmask 64512  }
0x11ed   :  { %13076 = vmatprep.subr.bf16.mxu1 %v20571_v44 }
0x11ef   :  { %5405 = vmatpush1.bf16.msra.mxu0 %v21068_v17 }
0x11f0   :  { %13078 = vmatpush1.bf16.msk.msra.mxu1 %vm20911_vm4, %v20573_v5 }
0x11f1   :  { %13079 = vmatprep.subr.bf16.mxu1 %v20571_v44 }
0x11f2   :  { %11755 = vmatmul.mubr.msk.bf16.vlgmr.msra.gmra.mrb[128].mxu0 %vm21069_vm13, %v5386_v43  ;;  %vm21072_vm13 = vmmov %vm21071_vm2 }
0x11f3   :  { %5548 = vmatprep.mubr.f32.mxu0 %v20601_v58 }
0x11f4   :  { %13081 = vmatpush1.bf16.msk.msra.mxu1 %vm21070_vm0, %v20573_v5 }
0x1281   :  { %v5375_v62 = vpop.f32.mrb[128].mxu1 }
0x1282   :  { %v5377_v57 = vpop.f32.mrb[129].mxu1 }
0x1283   :  { %v5379_v49 = vpop.f32.mrb[130].mxu1 }
0x1284   :  { %v5380_v7 = vpop.f32.mrb[131].mxu1 }
0x1285   :  { %v5286_v60 = vpop.f32.mrb[120].mxu0 }
0x1286   :  { %v5288_v9 = vpop.f32.mrb[121].mxu0 }
0x1287   :  { %v5290_v47 = vpop.f32.mrb[122].mxu0 }
0x1288   :  { %v5291_v13 = vpop.f32.mrb[123].mxu0 }
0x12a1   :  { %v5471_v29 = vpop.f32.mrb[132].mxu1 }
0x12a2   :  { %v5473_v17 = vpop.f32.mrb[133].mxu1 }
0x12a3   :  { %v5475_v46 = vpop.f32.mrb[134].mxu1 }
0x12a4   :  { %v5476_v52 = vpop.f32.mrb[135].mxu1 }
0x12a5   :  { %v5329_v24 = vpop.f32.mrb[124].mxu0 }
0x12a6   :  { %v5330_v43 = vadd.f32 %v5329_v24, %v5286_v60  ;;  %v5331_v3 = vpop.f32.mrb[125].mxu0 }
0x12a7   :  { %v5332_v41 = vadd.f32 %v5331_v3, %v5288_v9  ;;  %v5333_v59 = vpop.f32.mrb[126].mxu0 }
0x12a8   :  { %v5334_v1 = vpop.f32.mrb[127].mxu0  ;;  %v5382_v54 = vadd.f32 %v5375_v62, %v5330_v43 }
0x12a9   :  { %v5383_v20 = vadd.f32 %v5377_v57, %v5332_v41 }
0x12c5   :  { %v5424_v4 = vpop.f32.mrb[128].mxu0 }
0x12c6   :  { %v5431_v34 = vadd.f32 %v5424_v4, %v5382_v54  ;;  %v5426_v49 = vpop.f32.mrb[129].mxu0  ;;  %v11805_v4 = vld [vmem:[%s19961_s0 + $0x98] sm:$0xf] }
0x12c7   :  { %v5432_v7 = vadd.f32 %v5426_v49, %v5383_v20  ;;  %v5428_v33 = vpop.f32.mrb[130].mxu0 }
0x12c8   :  { %v5478_v39 = vadd.f32 %v5471_v29, %v5431_v34  ;;  %v5429_v47 = vpop.f32.mrb[131].mxu0  ;;  %v11804_v34 = vld [vmem:[%s19961_s0 + $0x90] sm:$0xff] }
0x12c9   :  { %v5479_v13 = vadd.f32 %v5473_v17, %v5432_v7  ;;  %v17344_v54 = vpack.c.bf16 %v11805_v4, %v11804_v34  ;;  %v21098_v34 = vld [vmem:[#allocation96_spill] sm:$0xff]  ;;  %v21099_v4 = vld [vmem:[#allocation97_spill] sm:$0xff] }
0x12ca   :  { %v5480_v45 = vadd.f32 %v5478_v39, %v15486_v21  ;;  %v11803_v39 = vld [vmem:[%s19961_s0 + $0x88] sm:$0xff] }
0x12cb   :  { %v5481_v46 = vadd.f32 %v5479_v13, %v15490_v2  ;;  %v5803_v9 = vshll.u32 %v17344_v54, 16  ;;  %v5807_v49 = vshrl.u32 %v17344_v54, 16  ;;  %v21094_v13 = vld [vmem:[#allocation3_spill] sm:$0xff] }
0x12cc   :  { %v5482_v60 = vmax.f32 %v5480_v45, 0.0  ;;  %v11802_v45 = vld [vmem:[%s19961_s0 + $0x80] sm:$0xff] }
0x12cd   :  { %v5483_v52 = vmax.f32 %v5481_v46, 0.0  ;;  %v17336_v33 = vpack.c.bf16 %v11803_v39, %v11802_v45  ;;  %v5805_v24 = vrot.slane %v5803_v9, 1  ;;  %v5994_v7 = vrot.slane %v5803_v9, 2 }
0x12ce   :  { %v5993_v47 = vrot.slane %v5807_v49, 1 }
0x12cf   :  { %5484 = vmatprep.subr.mxu0 %v5483_v52  ;;  %v5798_v1 = vshll.u32 %v17336_v33, 16  ;;  %v5796_v62 = vshrl.u32 %v17336_v33, 16 }
0x12d0   :  { %5485 = vmatpush1.msra.mxu0 %v5482_v60  ;;  %v5995_v45 = vor.u32 %v5994_v7, %v5993_v47 }
0x12d1   :  { %11758 = vmatmul.mubr.msk.f32.vlgmr.msra.gmra.mrb[118].mxu0 %vm21071_vm2, %v14807_v12  ;;  %5555 = vmatprep.subr.mxu0 %v5483_v52  ;;  %vm21073_vm2 = vnez %v20445_v15  ;;  %v5800_v57 = vrot.slane %v5798_v1, 1  ;;  %v5991_v46 = vrot.slane %v5798_v1, 2  ;;  %v21095_v52 = vld [vmem:[#allocation95_spill] sm:$0xff]  ;;  %v6061_v1 = vrot.slane %v17344_v54, 2 }
0x12d2   :  { %5556 = vmatpush1.msra.mxu0 %v5482_v60  ;;  %5619 = vmatprep.mubr.f32.mxu0 %v20601_v58 }
0x12d3   :  { %13022 = vmatprep.subr.bf16.mxu0 %v20571_v44  ;;  %v5801_v29 = vor.u32 %v5800_v57, %v5796_v62  ;;  %v17470_v57 = vld [vmem:[%s19963_s3 + $0xf4] ss:$8 sps:$4 sm:$0xff]  }
0x12d5   :  { %11759 = vmatmul.mubr.msk.f32.vlgmr.msra.gmra.mrb[132].mxu0 %vm21072_vm13, %v14826_v16  ;;  %vm21074_vm13 = vnez %v20449_v19 }
0x12d6   :  { %13024 = vmatpush1.bf16.msk.msra.mxu0 %vm14828_vm5, %v20573_v5 }
0x12d7   :  { %13025 = vmatprep.subr.bf16.mxu0 %v20571_v44 }
0x12da   :  { %13027 = vmatpush1.bf16.msk.msra.mxu0 %vm14593_vm14, %v20573_v5 }
0x12db   :  { %13028 = vmatprep.subr.bf16.mxu0 %v20571_v44 }
0x12de   :  { %13030 = vmatpush1.bf16.msk.msra.mxu0 %vm14610_vm10, %v20573_v5  ;;  %vm21076_vm10 = vnez %v20457_v28 }
0x12df   :  { %13031 = vmatprep.subr.bf16.mxu0 %v20571_v44 }
0x12e2   :  { %13033 = vmatpush1.bf16.msk.msra.mxu0 %vm21073_vm2, %v20573_v5  ;;  %vm21077_vm2 = vnez %v20461_v32 }
0x12e3   :  { %13034 = vmatprep.subr.bf16.mxu0 %v20571_v44 }
0x12e6   :  { %13036 = vmatpush1.bf16.msk.msra.mxu0 %vm21074_vm13, %v20573_v5  ;;  %vm21078_vm13 = vnez %v20465_v37 }
0x12e7   :  { %13037 = vmatprep.subr.bf16.mxu0 %v20571_v44 }
0x12ea   :  { %13039 = vmatpush1.bf16.msk.msra.mxu0 %vm21075_vm12, %v20573_v5  ;;  %vm21079_vm12 = vnez %v20469_v42 }
0x12eb   :  { %13040 = vmatprep.subr.bf16.mxu0 %v20571_v44 }
0x12ee   :  { %13042 = vmatpush1.bf16.msk.msra.mxu0 %vm21076_vm10, %v20573_v5  ;;  %vm21083_vm10 = vsmask.f32 7424 }
0x12ef   :  { %13043 = vmatprep.subr.bf16.mxu0 %v20571_v44  ;;  %v5806_v43 = vsel %vm21083_vm10, %v5801_v29, %v5805_v24 }
0x12f2   :  { %13045 = vmatpush1.bf16.msk.msra.mxu0 %vm21077_vm2, %v20573_v5  ;;  %vm21082_vm2 = vcmask 1045504  }
0x12f3   :  { %13046 = vmatprep.subr.bf16.mxu0 %v20571_v44 }
0x12f6   :  { %13048 = vmatpush1.bf16.msk.msra.mxu0 %vm21078_vm13, %v20573_v5 }
0x12f7   :  { %13049 = vmatprep.subr.bf16.mxu0 %v20571_v44 }
0x12fa   :  { %13051 = vmatpush1.bf16.msk.msra.mxu0 %vm21079_vm12, %v20573_v5  ;;  %vm21080_vm12 = vcmask 261120  }
0x12fb   :  { %5816 = vmatprep.subr.bf16.mxu0 %v16800_v51  ;;  %vm21081_vm13 = vmmov %vm21080_vm12 }
0x13a4   :  { %v5550_v20 = vpop.f32.mrb[118].mxu0 }
0x13a5   :  { %v5552_v51 = vpop.f32.mrb[119].mxu0 }
0x13a8   :  { %v5621_v59 = vpop.f32.mrb[132].mxu0 }
0x13a9   :  { %v5626_v41 = vmax.f32 %v5550_v20, %v5621_v59  ;;  %v5623_v3 = vpop.f32.mrb[133].mxu0  ;;  %v21100_v20 = vld [vmem:[#allocation4_spill] sm:$0xff] }
0x13aa   :  { %v5627_v17 = vmax.f32 %v5552_v51, %v5623_v3  ;;  %v6060_v51 = vrot.slane %v17336_v33, 2  ;;  %v21109_v3 = vld [vmem:[#allocation15_spill] sm:$0xff] }
0x13ac   :  { %11780 = vmatprep.mubr.msk.f32.mxu0 %vm21080_vm12, %v5627_v17  ;;  %11801 = vmatprep.mubr.msk.f32.mxu1 %vm21081_vm13, %v5627_v17  ;;  %vm21084_vm12 = vcmask 228352   ;;  %vm21085_vm13 = vmmov %vm21082_vm2  ;;  %v21111_v17 = vld [vmem:[#allocation17_spill] sm:$0xff] }
0x13ad   :  { %5696 = vmatmul.mubr.f32.vlgmr.msra.gmra.mrb[134].mxu0 %v5626_v41  ;;  %5766 = vmatmul.mubr.f32.vlgmr.msra.gmra.mrb[126].mxu1 %v5626_v41  ;;  %v21107_v41 = vld [vmem:[#allocation9_spill] sm:$0xff] }
0x13ae   :  { %5817 = vmatpush1.bf16.msra.mxu0 %v16827_v50  ;;  %5848 = vmatprep.mubr.bf16.mxu0 %v20543_v48  ;;  %v5809_v50 = vor.u32 %v5807_v49, %v5805_v24 }
0x13af   :  { %11806 = vmatprep.subr.msk.bf16.mxu0 %vm21082_vm2, %v16834_v25  ;;  %6202 = vmatprep.mubr.f32.mxu1 %v20601_v58  ;;  %vm21086_vm2 = vmmov %vm21084_vm12  ;;  %v21089_v25 = vld [vmem:[#allocation93_spill] sm:$0xff] }
0x13b0   :  { %vm21087_vm10 = vmmov %vm21086_vm2 }
0x13b2   :  { %5819 = vmatpush1.bf16.msra.mxu0 %v14442_v8 }
0x13b3   :  { %5871 = vmatprep.subr.bf16.mxu0 %v16844_v55  ;;  %v5924_v55 = vrot.slane %v17336_v33, 1 }
0x13b5   :  { %11807 = vmatmul.mubr.msk.bf16.vlgmr.msra.gmra.mrb[136].mxu0 %vm21084_vm12, %v5806_v43  ;;  %vm21088_vm12 = vmmov %vm21085_vm13 }
0x13b6   :  { %5858 = vmatprep.mubr.bf16.mxu0 %v20543_v48  ;;  %5872 = vmatpush1.bf16.msra.mxu0 %v16853_v35  ;;  %v5925_v35 = vrot.slane %v17344_v54, 1 }
0x13b7   :  { %11809 = vmatprep.subr.msk.bf16.mxu0 %vm21085_vm13, %v16859_v53  ;;  %vm21090_vm13 = vmmov %vm21086_vm2 }
0x13ba   :  { %5874 = vmatpush1.bf16.msra.mxu0 %v14473_v27 }
0x13bb   :  { %5933 = vmatprep.subr.bf16.mxu0 %v16867_v38  ;;  %v21092_v38 = vld [vmem:[#allocation2_spill] sm:$0xff] }
0x13bd   :  { %11808 = vmatmul.mubr.msk.bf16.gmra.mrb[140].mxu0 %vm21086_vm2, %v5809_v50  ;;  %vm21091_vm2 = vcmask 1046528   ;;  %v21116_v50 = vld [vmem:[#allocation99_spill] sm:$0xff] }
0x13be   :  { %5903 = vmatprep.mubr.bf16.mxu0 %v20543_v48  ;;  %v5926_v53 = vsel %vm21091_vm2, %v5924_v55, %v5925_v35  ;;  %vm21097_vm2 = vsmask.f32 6400  ;;  %v2141_v7 = vrot.slane %v21116_v50, 3 }
0x13c5   :  { %11810 = vmatmul.mubr.msk.bf16.vlgmr.msra.gmra.mrb[136].mxu0 %vm21087_vm10, %v17336_v33 }
0x13c6   :  { %5913 = vmatprep.mubr.bf16.mxu0 %v20543_v48  ;;  %5934 = vmatpush1.bf16.msra.mxu0 %v16878_v63  ;;  %v21093_v63 = vld [vmem:[#allocation94_spill] sm:$0xff] }
0x13c7   :  { %11812 = vmatprep.subr.msk.bf16.mxu0 %vm21088_vm12, %v16884_v30  ;;  %v5990_v30 = vrot.slane %v5796_v62, 1  ;;  %v21113_v62 = vld [vmem:[#allocation19_spill] sm:$0xff] }
0x13c9   :  { %v5992_v60 = vor.u32 %v5991_v46, %v5990_v30 }
0x13ca   :  { %5936 = vmatpush1.bf16.msra.mxu0 %v20769_v56 }
0x13cb   :  { %6003 = vmatprep.subr.bf16.mxu0 %v21089_v25  ;;  %v5996_v39 = vsel %vm21097_vm2, %v5992_v60, %v5995_v45  ;;  %vm21102_vm2 = vmmov %vm21088_vm12  ;;  %v2137_v25 = vrot.slane %v21116_v50, 2 }
0x13cc   :  { %v6062_v59 = vsel %vm21102_vm2, %v6060_v51, %v6061_v1  ;;  %vm21108_vm2 = vnez %v21107_v41 }
0x13cd   :  { %11811 = vmatmul.mubr.msk.bf16.gmra.mrb[144].mxu0 %vm21090_vm13, %v17344_v54  ;;  %vm21096_vm13 = vmmov %vm21087_vm10  ;;  %v21105_v54 = vld [vmem:[#allocation7_spill] sm:$0xff] }
0x13ce   :  { %5965 = vmatprep.mubr.bf16.mxu0 %v20543_v48 }
0x13d5   :  { %11813 = vmatmul.mubr.msk.bf16.vlgmr.msra.gmra.mrb[136].mxu0 %vm21087_vm10, %v5926_v53 }
0x13d6   :  { %5975 = vmatprep.mubr.bf16.mxu0 %v20543_v48  ;;  %6004 = vmatpush1.bf16.msra.mxu0 %v21092_v38 }
0x13d7   :  { %11815 = vmatprep.subr.msk.bf16.mxu0 %vm21088_vm12, %v21093_v63 }
0x13da   :  { %6006 = vmatpush1.bf16.msra.mxu0 %v21094_v13 }
0x13db   :  { %6069 = vmatprep.subr.bf16.mxu0 %v21095_v52 }
0x13dd   :  { %11814 = vmatmul.mubr.msk.bf16.gmra.mrb[148].mxu0 %vm21096_vm13, %v5925_v35  ;;  %vm21101_vm13 = vmmov %vm21087_vm10  ;;  %v2133_v35 = vrot.slane %v21116_v50, 1  ;;  %v21149_v50 = vld [vmem:[#allocation104_spill] sm:$0xff] }
0x13de   :  { %6035 = vmatprep.mubr.bf16.mxu0 %v20543_v48 }
0x13e5   :  { %11816 = vmatmul.mubr.msk.bf16.vlgmr.msra.gmra.mrb[136].mxu0 %vm21087_vm10, %v5996_v39 }
0x13e6   :  { %6045 = vmatprep.mubr.bf16.mxu0 %v20543_v48  ;;  %6070 = vmatpush1.bf16.msra.mxu0 %v21098_v34 }
0x13e7   :  { %11818 = vmatprep.subr.msk.bf16.mxu0 %vm21088_vm12, %v21099_v4  ;;  %vm21103_vm12 = vmmov %vm21087_vm10 }
0x13ea   :  { %6072 = vmatpush1.bf16.msra.mxu0 %v21100_v20 }
0x13eb   :  { %13135 = vmatprep.subr.bf16.mxu0 %v20571_v44 }
0x13ed   :  { %11817 = vmatmul.mubr.msk.bf16.gmra.mrb[152].mxu0 %vm21101_vm13, %v5995_v45  ;;  %vm21106_vm13 = vnez %v21105_v54 }
0x13ee   :  { %6101 = vmatprep.mubr.bf16.mxu0 %v20543_v48 }
0x13f5   :  { %11819 = vmatmul.mubr.msk.bf16.vlgmr.msra.gmra.mrb[136].mxu0 %vm21087_vm10, %v6062_v59  ;;  %vm21110_vm10 = vnez %v21109_v3 }
0x13f6   :  { %6111 = vmatprep.mubr.bf16.mxu0 %v20543_v48  ;;  %13137 = vmatpush1.bf16.msk.msra.mxu0 %vm20574_vm8, %v20573_v5 }
0x13f7   :  { %13138 = vmatprep.subr.bf16.mxu0 %v20571_v44 }
0x13fa   :  { %13140 = vmatpush1.bf16.msk.msra.mxu0 %vm20578_vm9, %v20573_v5 }
0x13fb   :  { %13141 = vmatprep.subr.bf16.mxu0 %v20571_v44 }
0x13fd   :  { %11820 = vmatmul.mubr.msk.bf16.gmra.mrb[156].mxu0 %vm21103_vm12, %v6061_v1  ;;  %vm21112_vm12 = vnez %v21111_v17 }
0x13fe   :  { %13143 = vmatpush1.bf16.msk.msra.mxu0 %vm20735_vm15, %v20573_v5 }
0x13ff   :  { %13144 = vmatprep.subr.bf16.mxu0 %v20571_v44 }
0x1402   :  { %13146 = vmatpush1.bf16.msk.msra.mxu0 %vm20629_vm7, %v20573_v5 }
0x1403   :  { %13147 = vmatprep.subr.bf16.mxu0 %v20571_v44 }
0x1406   :  { %13149 = vmatpush1.bf16.msk.msra.mxu0 %vm20630_vm6, %v20573_v5 }
0x1407   :  { %13150 = vmatprep.subr.bf16.mxu0 %v20571_v44 }
0x140a   :  { %13152 = vmatpush1.bf16.msk.msra.mxu0 %vm20785_vm1, %v20573_v5 }
0x140b   :  { %13153 = vmatprep.subr.bf16.mxu0 %v20571_v44 }
0x140e   :  { %13155 = vmatpush1.bf16.msk.msra.mxu0 %vm20786_vm3, %v20573_v5 }
0x140f   :  { %13156 = vmatprep.subr.bf16.mxu0 %v20571_v44 }
0x1412   :  { %13158 = vmatpush1.bf16.msk.msra.mxu0 %vm20909_vm11, %v20573_v5 }
0x1413   :  { %13159 = vmatprep.subr.bf16.mxu0 %v20571_v44 }
0x1416   :  { %13161 = vmatpush1.bf16.msk.msra.mxu0 %vm20911_vm4, %v20573_v5 }
0x1417   :  { %13162 = vmatprep.subr.bf16.mxu0 %v20571_v44 }
0x141a   :  { %13164 = vmatpush1.bf16.msk.msra.mxu0 %vm21070_vm0, %v20573_v5 }
0x141b   :  { %13165 = vmatprep.subr.bf16.mxu0 %v20571_v44 }
0x141e   :  { %13167 = vmatpush1.bf16.msk.msra.mxu0 %vm21106_vm13, %v20573_v5  ;;  %vm21114_vm13 = vnez %v21113_v62 }
0x141f   :  { %13168 = vmatprep.subr.bf16.mxu0 %v20571_v44 }
0x1422   :  { %13170 = vmatpush1.bf16.msk.msra.mxu0 %vm21108_vm2, %v20573_v5  ;;  %vm21128_vm2 = vnez %v20453_v23 }
0x1423   :  { %13171 = vmatprep.subr.bf16.mxu0 %v20571_v44 }
0x1426   :  { %13173 = vmatpush1.bf16.msk.msra.mxu0 %vm21110_vm10, %v20573_v5 }
0x1427   :  { %13174 = vmatprep.subr.bf16.mxu0 %v20571_v44 }
0x142a   :  { %13176 = vmatpush1.bf16.msk.msra.mxu0 %vm21112_vm12, %v20573_v5 }
0x142b   :  { %13177 = vmatprep.subr.bf16.mxu0 %v20571_v44 }
0x142e   :  { %13179 = vmatpush1.bf16.msk.msra.mxu0 %vm21114_vm13, %v20573_v5  ;;  %vm21119_vm13 = vcmask 195584  }
0x142f   :  { %6554 = vmatprep.subr.bf16.mxu0 %v17470_v57  ;;  %vm21121_vm12 = vmmov %vm21119_vm13 }
0x1430   :  { %vm21122_vm10 = vmmov %vm21121_vm12 }
0x1480   :  { %v5697_v9 = vpop.f32.mrb[134].mxu0  ;;  %v5767_v29 = vpop.f32.mrb[126].mxu1 }
0x1481   :  { %v17473_v24 = vmax.f32 %v5697_v9, %v5767_v29  ;;  %v5699_v43 = vpop.f32.mrb[135].mxu0  ;;  %v5769_v49 = vpop.f32.mrb[127].mxu1 }
0x1483   :  { %21115 = vst [vmem:[#allocation21_spill] sm:$0xff] %v17473_v24  ;;  %v5777_v55 = vrot.slane %v17473_v24, 2  ;;  %v5773_v53 = vrot.slane %v17473_v24, 1  ;;  %v5781_v30 = vrot.slane %v17473_v24, 3 }
0x1485   :  { %v13870_v38 = vpack.i.bf16 %v5777_v55, %v2137_v25  ;;  %v13865_v63 = vpack.i.bf16 %v5773_v53, %v2133_v35  ;;  %v13875_v47 = vpack.i.bf16 %v5781_v30, %v2141_v7 }
0x1487   :  { %13871 = vrot.lane.b32.xlu0 %v13870_v38, %s14366_s11  ;;  %13866 = vrot.lane.b32.xlu1 %v13865_v63, %s14365_s10 }
0x148b   :  { %13876 = vrot.lane.b32.xlu1 %v13875_v47, %s14364_s30 }
0x1490   :  { %v5860_v46 = vpop.f32.mrb[140].mxu0 }
0x1491   :  { %v5862_v52 = vpop.f32.mrb[141].mxu0 }
0x1492   :  { %v5864_v60 = vpop.f32.mrb[142].mxu0 }
0x1493   :  { %v5865_v45 = vpop.f32.mrb[143].mxu0  ;;  %v21117_v60 = vld [vmem:[#allocation10_spill] sm:$0xff] }
0x14a0   :  { %v5915_v39 = vpop.f32.mrb[144].mxu0 }
0x14a1   :  { %v5916_v34 = vadd.f32 %v5915_v39, %v5860_v46  ;;  %v5917_v4 = vpop.f32.mrb[145].mxu0  ;;  %v21118_v39 = vld [vmem:[#allocation11_spill] sm:$0xff] }
0x14a2   :  { %v5918_v51 = vadd.f32 %v5917_v4, %v5862_v52  ;;  %v5919_v1 = vpop.f32.mrb[146].mxu0 }
0x14a3   :  { %v5920_v59 = vpop.f32.mrb[147].mxu0 }
0x14b0   :  { %v5977_v9 = vpop.f32.mrb[148].mxu0 }
0x14b1   :  { %v5988_v29 = vadd.f32 %v5977_v9, %v5916_v34  ;;  %v5979_v43 = vpop.f32.mrb[149].mxu0 }
0x14b2   :  { %v5989_v49 = vadd.f32 %v5979_v43, %v5918_v51  ;;  %v5981_v25 = vpop.f32.mrb[150].mxu0 }
0x14b3   :  { %v5982_v55 = vpop.f32.mrb[151].mxu0 }
0x14c0   :  { %v6047_v35 = vpop.f32.mrb[152].mxu0 }
0x14c1   :  { %v6058_v53 = vadd.f32 %v6047_v35, %v5988_v29  ;;  %v6049_v38 = vpop.f32.mrb[153].mxu0 }
0x14c2   :  { %v6059_v63 = vadd.f32 %v6049_v38, %v5989_v49  ;;  %v6051_v30 = vpop.f32.mrb[154].mxu0 }
0x14c3   :  { %v6052_v7 = vpop.f32.mrb[155].mxu0 }
0x14c8   :  { %v6103_v47 = vpop.f32.mrb[136].mxu0 }
0x14c9   :  { %v6126_v45 = vadd.f32 %v6103_v47, %v21117_v60  ;;  %v6105_v46 = vpop.f32.mrb[137].mxu0 }
0x14ca   :  { %v6127_v52 = vadd.f32 %v6105_v46, %v21118_v39  ;;  %v6107_v4 = vpop.f32.mrb[138].mxu0 }
0x14cb   :  { %v6128_v1 = vadd.f32 %v6107_v4, %v21117_v60  ;;  %v6109_v34 = vpop.f32.mrb[139].mxu0  ;;  %v6132_v59 = vmax.f32 %v6126_v45, 0.0  ;;  %v21135_v45 = vld [vmem:[#allocation8_spill] sm:$0xff] }
0x14cc   :  { %v6129_v51 = vadd.f32 %v6109_v34, %v21118_v39  ;;  %v6133_v43 = vmax.f32 %v6127_v52, 0.0  ;;  %v21137_v52 = vld [vmem:[#allocation14_spill] sm:$0xff] }
0x14cd   :  { %v6134_v9 = vmax.f32 %v6128_v1, 0.0  ;;  %v21139_v1 = vld [vmem:[#allocation16_spill] sm:$0xff] }
0x14ce   :  { %v6135_v29 = vmax.f32 %v6129_v51, 0.0  ;;  %v21141_v51 = vld [vmem:[#allocation18_spill] sm:$0xff] }
0x14cf   :  { %v13084_v25 = vpack.c.bf16 %v6134_v9, %v6132_v59  ;;  %v21143_v59 = vld [vmem:[#allocation100_spill] sm:$0xff] }
0x14d0   :  { %v13082_v49 = vpack.c.bf16 %v6135_v29, %v6133_v43  ;;  %v6113_v55 = vpop.f32.mrb[156].mxu0 }
0x14d1   :  { %v6124_v35 = vadd.f32 %v6113_v55, %v6058_v53  ;;  %v6115_v38 = vpop.f32.mrb[157].mxu0  ;;  %v21120_v53 = vld [vmem:[#allocation12_spill] sm:$0xff] }
0x14d2   :  { %v6125_v30 = vadd.f32 %v6115_v38, %v6059_v63  ;;  %v6117_v7 = vpop.f32.mrb[158].mxu0  ;;  %13083 = vmatprep.subr.bf16.mxu1 %v13082_v49  ;;  %v21133_v63 = vld [vmem:[#allocation6_spill] sm:$0xff] }
0x14d3   :  { %v6130_v47 = vadd.f32 %v6124_v35, %v21117_v60  ;;  %v6118_v46 = vpop.f32.mrb[159].mxu0  ;;  %13085 = vmatpush1.bf16.msra.mxu1 %v13084_v25 }
0x14d4   :  { %v6131_v4 = vadd.f32 %v6125_v30, %v21118_v39 }
0x14d5   :  { %v6136_v34 = vmax.f32 %v6130_v47, 0.0 }
0x14d6   :  { %v6137_v24 = vmax.f32 %v6131_v4, 0.0  ;;  %v21146_v4 = vld [vmem:[#allocation101_spill] sm:$0xff] }
0x14d8   :  { %6142 = vmatprep.subr.mxu1 %v6137_v24 }
0x14d9   :  { %6143 = vmatpush1.msra.mxu1 %v6136_v34 }
0x14da   :  { %11821 = vmatmul.mubr.msk.f32.vlgmr.msra.gmra.mrb[136].mxu1 %vm21119_vm13, %v14807_v12  ;;  %13087 = vmatprep.subr.bf16.mxu1 %v13082_v49  ;;  %vm21124_vm13 = vmmov %vm21122_vm10 }
0x14db   :  { %13089 = vmatpush1.bf16.msra.mxu1 %v13084_v25  ;;  %6208 = vmatprep.mubr.f32.mxu1 %v20601_v58 }
0x14dc   :  { %6219 = vmatprep.subr.mxu1 %v6137_v24  ;;  %v21123_v24 = vld [vmem:[#allocation13_spill] sm:$0xff] }
0x14de   :  { %11822 = vmatmul.mubr.msk.f32.gmra.mrb[138].mxu1 %vm21121_vm12, %v21120_v53  ;;  %vm21126_vm12 = vnez %v20445_v15 }
0x14df   :  { %6220 = vmatpush1.msra.mxu1 %v6136_v34  ;;  %6279 = vmatprep.mubr.f32.mxu1 %v20601_v58  ;;  %v21147_v34 = vld [vmem:[#allocation102_spill] sm:$0xff] }
0x14e0   :  { %13090 = vmatprep.subr.bf16.mxu1 %v20571_v44 }
0x14e2   :  { %11823 = vmatmul.mubr.msk.f32.vlgmr.msra.gmra.mrb[140].mxu1 %vm21122_vm10, %v14826_v16  ;;  %vm21125_vm10 = vnez %v20441_v11 }
0x14e3   :  { %6285 = vmatprep.mubr.f32.mxu1 %v20601_v58  ;;  %13092 = vmatpush1.bf16.msk.msra.mxu1 %vm14828_vm5, %v20573_v5 }
0x14e4   :  { %13093 = vmatprep.subr.bf16.mxu1 %v20571_v44 }
0x14e6   :  { %11824 = vmatmul.mubr.msk.f32.gmra.mrb[142].mxu1 %vm21124_vm13, %v21123_v24  ;;  %vm21127_vm13 = vnez %v20449_v19 }
0x14e7   :  { %13095 = vmatpush1.bf16.msk.msra.mxu1 %vm14593_vm14, %v20573_v5 }
0x14e8   :  { %13096 = vmatprep.subr.bf16.mxu1 %v20571_v44 }
0x14eb   :  { %13098 = vmatpush1.bf16.msk.msra.mxu1 %vm21125_vm10, %v20573_v5  ;;  %vm21129_vm10 = vnez %v20457_v28 }
0x14ec   :  { %13099 = vmatprep.subr.bf16.mxu1 %v20571_v44 }
0x14ef   :  { %13101 = vmatpush1.bf16.msk.msra.mxu1 %vm21126_vm12, %v20573_v5  ;;  %vm21130_vm12 = vnez %v20461_v32 }
0x14f0   :  { %13102 = vmatprep.subr.bf16.mxu1 %v20571_v44 }
0x14f3   :  { %13104 = vmatpush1.bf16.msk.msra.mxu1 %vm21127_vm13, %v20573_v5  ;;  %vm21131_vm13 = vnez %v20465_v37 }
0x14f4   :  { %13105 = vmatprep.subr.bf16.mxu1 %v20571_v44 }
0x14f7   :  { %13107 = vmatpush1.bf16.msk.msra.mxu1 %vm21128_vm2, %v20573_v5  ;;  %vm21132_vm2 = vnez %v20469_v42 }
0x14f8   :  { %13108 = vmatprep.subr.bf16.mxu1 %v20571_v44 }
0x14fb   :  { %13110 = vmatpush1.bf16.msk.msra.mxu1 %vm21129_vm10, %v20573_v5  ;;  %vm21134_vm10 = vnez %v21133_v63 }
0x14fc   :  { %13111 = vmatprep.subr.bf16.mxu1 %v20571_v44 }
0x14ff   :  { %13113 = vmatpush1.bf16.msk.msra.mxu1 %vm21130_vm12, %v20573_v5  ;;  %vm21136_vm12 = vnez %v21135_v45 }
0x1500   :  { %13114 = vmatprep.subr.bf16.mxu1 %v20571_v44 }
0x1503   :  { %13116 = vmatpush1.bf16.msk.msra.mxu1 %vm21131_vm13, %v20573_v5  ;;  %vm21138_vm13 = vnez %v21137_v52 }
0x1504   :  { %13117 = vmatprep.subr.bf16.mxu1 %v20571_v44 }
0x1507   :  { %13119 = vmatpush1.bf16.msk.msra.mxu1 %vm21132_vm2, %v20573_v5  ;;  %vm21140_vm2 = vnez %v21139_v1 }
0x1508   :  { %13120 = vmatprep.subr.bf16.mxu1 %v20571_v44 }
0x150b   :  { %13122 = vmatpush1.bf16.msk.msra.mxu1 %vm21134_vm10, %v20573_v5  ;;  %vm21142_vm10 = vnez %v21141_v51 }
0x150c   :  { %13123 = vmatprep.subr.bf16.mxu1 %v20571_v44 }
0x150f   :  { %13125 = vmatpush1.bf16.msk.msra.mxu1 %vm21136_vm12, %v20573_v5 }
0x1510   :  { %13126 = vmatprep.subr.bf16.mxu1 %v20571_v44 }
0x1513   :  { %13128 = vmatpush1.bf16.msk.msra.mxu1 %vm21138_vm13, %v20573_v5  ;;  %vm21144_vm13 = vcmask 916480  }
0x1514   :  { %13129 = vmatprep.subr.bf16.mxu1 %v20571_v44 }
0x1517   :  { %13131 = vmatpush1.bf16.msk.msra.mxu1 %vm21140_vm2, %v20573_v5  ;;  %vm21145_vm2 = vmmov %vm21144_vm13 }
0x1518   :  { %13132 = vmatprep.subr.bf16.mxu1 %v20571_v44  ;;  %vm21151_vm12 = vmmov %vm21145_vm2 }
0x151b   :  { %13134 = vmatpush1.bf16.msk.msra.mxu1 %vm21142_vm10, %v20573_v5  ;;  %vm21150_vm10 = vmmov %vm21145_vm2 }
0x151c   :  { %6465 = vmatprep.subr.bf16.mxu1 %v21143_v59  ;;  %v21148_v59 = vld [vmem:[#allocation103_spill] sm:$0xff] }
0x15ad   :  { %v6204_v9 = vpop.f32.mrb[136].mxu1 }
0x15ae   :  { %v6206_v43 = vpop.f32.mrb[137].mxu1 }
0x15b1   :  { %v6210_v29 = vpop.f32.mrb[138].mxu1 }
0x15b2   :  { %v6212_v25 = vpop.f32.mrb[139].mxu1 }
0x15b5   :  { %v6281_v49 = vpop.f32.mrb[140].mxu1 }
0x15b6   :  { %v6292_v55 = vmax.f32 %v6204_v9, %v6281_v49  ;;  %v6283_v35 = vpop.f32.mrb[141].mxu1  ;;  %v21152_v9 = vld [vmem:[#allocation105_spill] sm:$0xff] }
0x15b7   :  { %v6293_v38 = vmax.f32 %v6206_v43, %v6283_v35  ;;  %v21153_v43 = vld [vmem:[#allocation106_spill] sm:$0xff]  ;;  %v17607_v35 = vld [vmem:[%s19963_s3 + $0xac] ss:$8 sps:$4 sm:$0xff]  }
0x15b8   :  { %v17595_v49 = vld [vmem:[%s19963_s3 + $0x98] ss:$8 sps:$4 sm:$0xff]   ;;  %21159 = vst [vmem:[#allocation27_spill] sm:$0xff] %v17607_v35 }
0x15b9   :  { %v6287_v30 = vpop.f32.mrb[142].mxu1  ;;  %11855 = vmatprep.mubr.msk.f32.mxu1 %vm21144_vm13, %v6293_v38  ;;  %11887 = vmatprep.mubr.msk.f32.mxu0 %vm21145_vm2, %v6293_v38  ;;  %21157 = vst [vmem:[#allocation25_spill] sm:$0xff] %v17595_v49  ;;  %v17613_v38 = vld [vmem:[%s19963_s3 + $0x120] ss:$8 sps:$4 sm:$0xff]   ;;  %vm21175_vm2 = vcmask 1043456  }
0x15ba   :  { %v6294_v7 = vmax.f32 %v6210_v29, %v6287_v30  ;;  %v6289_v47 = vpop.f32.mrb[143].mxu1  ;;  %6367 = vmatmul.mubr.f32.vlgmr.msra.gmra.mrb[144].mxu1 %v6292_v55  ;;  %6442 = vmatmul.mubr.f32.vlgmr.msra.gmra.mrb[160].mxu0 %v6292_v55  ;;  %v17575_v29 = vld [vmem:[%s19963_s3 + $0x114] ss:$8 sps:$4 sm:$0xff]   ;;  %v17601_v55 = vld [vmem:[%s19963_s3 + $0x124] ss:$8 sps:$4 sm:$0xff]   ;;  %21160 = vst [vmem:[#allocation28_spill] sm:$0xff] %v17613_v38 }
0x15bb   :  { %v6295_v46 = vmax.f32 %v6212_v25, %v6289_v47  ;;  %6555 = vmatpush1.bf16.msra.mxu0 %v21146_v4  ;;  %6466 = vmatpush1.bf16.msra.mxu1 %v21147_v34  ;;  %21154 = vst [vmem:[#allocation22_spill] sm:$0xff] %v17575_v29  ;;  %v17589_v25 = vld [vmem:[%s19963_s3 + $0x110] ss:$8 sps:$4 sm:$0xff]   ;;  %21158 = vst [vmem:[#allocation26_spill] sm:$0xff] %v17601_v55  ;;  %v17631_v47 = vld [vmem:[%s19963_s3 + $0xbc] ss:$8 sps:$4 sm:$0xff]  }
0x15bc   :  { %6556 = vmatprep.subr.bf16.mxu0 %v21148_v59  ;;  %6467 = vmatprep.subr.bf16.mxu1 %v21149_v50  ;;  %v17581_v50 = vld [vmem:[%s19963_s3 + $0x9c] ss:$8 sps:$4 sm:$0xff]   ;;  %21156 = vst [vmem:[#allocation24_spill] sm:$0xff] %v17589_v25  ;;  %v17619_v30 = vld [vmem:[%s19963_s3 + $0xa8] ss:$8 sps:$4 sm:$0xff]   ;;  %21163 = vst [vmem:[#allocation31_spill] sm:$0xff] %v17631_v47 }
0x15bd   :  { %11856 = vmatprep.mubr.msk.f32.mxu1 %vm21150_vm10, %v6295_v46  ;;  %11888 = vmatprep.mubr.msk.f32.mxu0 %vm21151_vm12, %v6295_v46  ;;  %21155 = vst [vmem:[#allocation23_spill] sm:$0xff] %v17581_v50  ;;  %21161 = vst [vmem:[#allocation29_spill] sm:$0xff] %v17619_v30  ;;  %v17637_v46 = vld [vmem:[%s19963_s3 + $0x130] ss:$8 sps:$4 sm:$0xff]   ;;  %v17649_v34 = vld [vmem:[%s19963_s3 + $0x144] ss:$8 sps:$4 sm:$0xff]  }
0x15be   :  { %6372 = vmatmul.mubr.f32.gmra.mrb[146].mxu1 %v6294_v7  ;;  %6447 = vmatmul.mubr.f32.gmra.mrb[162].mxu0 %v6294_v7  ;;  %v17625_v7 = vld [vmem:[%s19963_s3 + $0x134] ss:$8 sps:$4 sm:$0xff]   ;;  %21164 = vst [vmem:[#allocation32_spill] sm:$0xff] %v17637_v46  ;;  %v17643_v4 = vld [vmem:[%s19963_s3 + $0xb8] ss:$8 sps:$4 sm:$0xff]   ;;  %21166 = vst [vmem:[#allocation33_spill] sm:$0xff] %v17649_v34 }
0x15bf   :  { %6557 = vmatpush1.bf16.msra.mxu0 %v21152_v9  ;;  %6468 = vmatpush1.bf16.msra.mxu1 %v21153_v43  ;;  %21162 = vst [vmem:[#allocation30_spill] sm:$0xff] %v17625_v7  ;;  %21165 = vst [vmem:[#allocation34_spill] sm:$0xff] %v17643_v4  ;;  %v17655_v59 = vld [vmem:[%s19963_s3 + $0xcc] ss:$8 sps:$4 sm:$0xff]   ;;  %v17661_v9 = vld [vmem:[%s19963_s3 + $0x140] ss:$8 sps:$4 sm:$0xff]  }
0x15c0   :  { %6558 = vmatprep.subr.bf16.mxu0 %v17575_v29  ;;  %6469 = vmatprep.subr.bf16.mxu1 %v17581_v50  ;;  %21167 = vst [vmem:[#allocation36_spill] sm:$0xff] %v17655_v59  ;;  %21168 = vst [vmem:[#allocation35_spill] sm:$0xff] %v17661_v9  ;;  %v17667_v43 = vld [vmem:[%s19963_s3 + $0xc8] ss:$8 sps:$4 sm:$0xff]   ;;  %vm21182_vm12 = vcmask 982016  }
0x15c1   :  { %6586 = vmatprep.mubr.bf16.mxu0 %v20543_v48  ;;  %6497 = vmatprep.mubr.bf16.mxu1 %v20543_v48  ;;  %21169 = vst [vmem:[#allocation38_spill] sm:$0xff] %v17667_v43  ;;  %vm21177_vm10 = vmmov %vm21175_vm2 }
0x15c2   :  { %vm21185_vm13 = vmmov %vm21182_vm12 }
0x15c3   :  { %6559 = vmatpush1.bf16.msra.mxu0 %v17589_v25  ;;  %6470 = vmatpush1.bf16.msra.mxu1 %v17595_v49 }
0x15c4   :  { %6560 = vmatprep.subr.bf16.mxu0 %v17601_v55  ;;  %6471 = vmatprep.subr.bf16.mxu1 %v17607_v35 }
0x15c7   :  { %6561 = vmatpush1.bf16.msra.mxu0 %v17613_v38  ;;  %6472 = vmatpush1.bf16.msra.mxu1 %v17619_v30 }
0x15c8   :  { %6562 = vmatprep.subr.bf16.mxu0 %v17625_v7  ;;  %6473 = vmatprep.subr.bf16.mxu1 %v17631_v47 }
0x15cb   :  { %6563 = vmatpush1.bf16.msra.mxu0 %v17637_v46  ;;  %6474 = vmatpush1.bf16.msra.mxu1 %v17643_v4  ;;  %v21176_v4 = vld [vmem:[#allocation42_spill] sm:$0xff]  ;;  %v21179_v46 = vld [vmem:[#allocation44_spill] sm:$0xff] }
0x15cc   :  { %6564 = vmatprep.subr.bf16.mxu0 %v17649_v34  ;;  %6475 = vmatprep.subr.bf16.mxu1 %v17655_v59  ;;  %v17673_v34 = vld [vmem:[%s19963_s3 + $0x154] ss:$8 sps:$4 sm:$0xff]  }
0x15cd   :  { %21170 = vst [vmem:[#allocation37_spill] sm:$0xff] %v17673_v34  ;;  %v17679_v59 = vld [vmem:[%s19963_s3 + $0xdc] ss:$8 sps:$4 sm:$0xff]  }
0x15ce   :  { %21171 = vst [vmem:[#allocation40_spill] sm:$0xff] %v17679_v59 }
0x15cf   :  { %6565 = vmatpush1.bf16.msra.mxu0 %v17661_v9  ;;  %6476 = vmatpush1.bf16.msra.mxu1 %v17667_v43  ;;  %v17685_v9 = vld [vmem:[%s19963_s3 + $0x150] ss:$8 sps:$4 sm:$0xff]  }
0x15d0   :  { %6566 = vmatprep.subr.bf16.mxu0 %v17673_v34  ;;  %6477 = vmatprep.subr.bf16.mxu1 %v17679_v59  ;;  %21172 = vst [vmem:[#allocation43_spill] sm:$0xff] %v17685_v9  ;;  %v17691_v43 = vld [vmem:[%s19963_s3 + $0xd8] ss:$8 sps:$4 sm:$0xff]   ;;  %v21174_v34 = vld [vmem:[#allocation39_spill] sm:$0xff] }
0x15d1   :  { %21173 = vst [vmem:[#allocation45_spill] sm:$0xff] %v17691_v43  ;;  %v21178_v59 = vld [vmem:[#allocation41_spill] sm:$0xff] }
0x15d3   :  { %6567 = vmatpush1.bf16.msra.mxu0 %v17685_v9  ;;  %6478 = vmatpush1.bf16.msra.mxu1 %v17691_v43  ;;  %v17703_v9 = vld [vmem:[%s19963_s3 + $0x1e4] ss:$8 sps:$4 sm:$0xff]  }
0x15d4   :  { %11893 = vmatprep.subr.msk.bf16.mxu0 %vm21175_vm2, %v21174_v34  ;;  %11889 = vmatprep.subr.msk.bf16.mxu1 %vm21177_vm10, %v21176_v4  ;;  %21180 = vst [vmem:[#allocation46_spill] sm:$0xff] %v17703_v9  ;;  %v17709_v43 = vld [vmem:[%s19963_s3 + $0x4] ss:$8 sps:$4 sm:$0xff]   ;;  %vm21213_vm10 = vmmov %vm21175_vm2 }
0x15d5   :  { %21181 = vst [vmem:[#allocation47_spill] sm:$0xff] %v17709_v43 }
0x15d7   :  { %6569 = vmatpush1.bf16.msra.mxu0 %v21178_v59  ;;  %6480 = vmatpush1.bf16.msra.mxu1 %v21179_v46 }
0x15d8   :  { %6650 = vmatprep.subr.bf16.mxu0 %v17703_v9  ;;  %6508 = vmatprep.subr.bf16.mxu1 %v17709_v43 }
0x168d   :  { %v6368_v34 = vpop.f32.mrb[144].mxu1  ;;  %v6443_v4 = vpop.f32.mrb[160].mxu0 }
0x168e   :  { %v6452_v47 = vmax.f32 %v6368_v34, %v6443_v4  ;;  %v6370_v59 = vpop.f32.mrb[145].mxu1  ;;  %v6445_v7 = vpop.f32.mrb[161].mxu0  ;;  %v17778_v34 = vld [vmem:[%s19963_s3 + $0x24] ss:$8 sps:$4 sm:$0xff]  }
0x168f   :  { %v17759_v7 = vld [vmem:[%s19963_s3 + $0x204] ss:$8 sps:$4 sm:$0xff]   ;;  %21192 = vst [vmem:[#allocation56_spill] sm:$0xff] %v17778_v34  ;;  %v17784_v59 = vld [vmem:[%s19963_s3 + $0x214] ss:$8 sps:$4 sm:$0xff]  }
0x1690   :  { %21189 = vst [vmem:[#allocation53_spill] sm:$0xff] %v17759_v7  ;;  %21193 = vst [vmem:[#allocation57_spill] sm:$0xff] %v17784_v59 }
0x1691   :  { %v6373_v46 = vpop.f32.mrb[146].mxu1  ;;  %v6448_v30 = vpop.f32.mrb[162].mxu0 }
0x1692   :  { %v6453_v38 = vmax.f32 %v6373_v46, %v6448_v30  ;;  %v6375_v35 = vpop.f32.mrb[147].mxu1  ;;  %v6450_v55 = vpop.f32.mrb[163].mxu0  ;;  %v17753_v30 = vld [vmem:[%s19963_s3 + $0x14] ss:$8 sps:$4 sm:$0xff]   ;;  %v17772_v46 = vld [vmem:[%s19963_s3 + $0x200] ss:$8 sps:$4 sm:$0xff]  }
0x1693   :  { %v17725_v35 = vld [vmem:[%s19963_s3 + $0x1e0] ss:$8 sps:$4 sm:$0xff]   ;;  %21188 = vst [vmem:[#allocation52_spill] sm:$0xff] %v17753_v30  ;;  %21191 = vst [vmem:[#allocation55_spill] sm:$0xff] %v17772_v46 }
0x1694   :  { %v17712_v49 = vpack.c.bf16 %v6453_v38, %v6452_v47  ;;  %21183 = vst [vmem:[#allocation48_spill] sm:$0xff] %v17725_v35  ;;  %v17732_v38 = vld [vmem:[%s19963_s3 + $0x1f4] ss:$8 sps:$4 sm:$0xff]   ;;  %v17766_v47 = vld [vmem:[%s19963_s3 + $0x10] ss:$8 sps:$4 sm:$0xff]  }
0x1695   :  { %21184 = vst [vmem:[#allocation49_spill] sm:$0xff] %v17732_v38  ;;  %21190 = vst [vmem:[#allocation54_spill] sm:$0xff] %v17766_v47 }
0x1696   :  { %v6456_v9 = vshrl.u32 %v17712_v49, 16  ;;  %v6458_v25 = vshll.u32 %v17712_v49, 16  ;;  %v6550_v50 = vrot.slane %v17712_v49, 1 }
0x1698   :  { %v6460_v29 = vrot.slane %v6458_v25, 1  ;;  %11894 = vmatmul.mubr.msk.bf16.vlgmr.msra.gmra.mrb[164].mxu0 %vm21182_vm12, %v6550_v50  ;;  %v17718_v43 = vrot.slane %v6456_v9, 1  ;;  %v17720_v4 = vrot.slane %v6458_v25, 2  ;;  %v17741_v25 = vld [vmem:[%s19963_s3] ss:$8 sps:$4 sm:$0xff]  }
0x1699   :  { %6651 = vmatpush1.bf16.msra.mxu0 %v17725_v35  ;;  %6682 = vmatprep.mubr.bf16.mxu0 %v20543_v48  ;;  %21186 = vst [vmem:[#allocation50_spill] sm:$0xff] %v17741_v25  ;;  %v17802_v50 = vld [vmem:[%s19963_s3 + $0x34] ss:$8 sps:$4 sm:$0xff]  }
0x169a   :  { %v6461_v55 = vor.u32 %v6460_v29, %v6456_v9  ;;  %6652 = vmatprep.subr.bf16.mxu0 %v17732_v38  ;;  %v17747_v29 = vld [vmem:[%s19963_s3 + $0x1f0] ss:$8 sps:$4 sm:$0xff]   ;;  %v17790_v9 = vld [vmem:[%s19963_s3 + $0x20] ss:$8 sps:$4 sm:$0xff]   ;;  %21196 = vst [vmem:[#allocation60_spill] sm:$0xff] %v17802_v50 }
0x169b   :  { %21187 = vst [vmem:[#allocation51_spill] sm:$0xff] %v17747_v29  ;;  %21194 = vst [vmem:[#allocation58_spill] sm:$0xff] %v17790_v9 }
0x169c   :  { %11890 = vmatmul.mubr.msk.bf16.vlgmr.msra.gmra.mrb[148].mxu1 %vm21185_vm13, %v6461_v55  ;;  %v17796_v55 = vld [vmem:[%s19963_s3 + $0x210] ss:$8 sps:$4 sm:$0xff]   ;;  %vm21216_vm13 = vmmov %vm21182_vm12 }
0x169d   :  { %6509 = vmatpush1.bf16.msra.mxu1 %v17741_v25  ;;  %6653 = vmatpush1.bf16.msra.mxu0 %v17747_v29  ;;  %21195 = vst [vmem:[#allocation59_spill] sm:$0xff] %v17796_v55 }
0x169e   :  { %6510 = vmatprep.subr.bf16.mxu1 %v17753_v30  ;;  %6654 = vmatprep.subr.bf16.mxu0 %v17759_v7 }
0x169f   :  { %6540 = vmatprep.mubr.bf16.mxu1 %v20543_v48 }
0x16a1   :  { %6511 = vmatpush1.bf16.msra.mxu1 %v17766_v47  ;;  %6655 = vmatpush1.bf16.msra.mxu0 %v17772_v46  ;;  %v6646_v46 = vrot.slane %v17712_v49, 2 }
0x16a2   :  { %6512 = vmatprep.subr.bf16.mxu1 %v17778_v34  ;;  %6656 = vmatprep.subr.bf16.mxu0 %v17784_v59  ;;  %v17808_v59 = vld [vmem:[%s19963_s3 + $0x224] ss:$8 sps:$4 sm:$0xff]   ;;  %v21211_v34 = vld [vmem:[#allocation73_spill] sm:$0xff] }
0x16a3   :  { %21197 = vst [vmem:[#allocation61_spill] sm:$0xff] %v17808_v59 }
0x16a5   :  { %6513 = vmatpush1.bf16.msra.mxu1 %v17790_v9  ;;  %6657 = vmatpush1.bf16.msra.mxu0 %v17796_v55  ;;  %v17814_v9 = vld [vmem:[%s19963_s3 + $0x30] ss:$8 sps:$4 sm:$0xff]   ;;  %v17820_v55 = vld [vmem:[%s19963_s3 + $0x220] ss:$8 sps:$4 sm:$0xff]  }
0x16a6   :  { %6514 = vmatprep.subr.bf16.mxu1 %v17802_v50  ;;  %6658 = vmatprep.subr.bf16.mxu0 %v17808_v59  ;;  %21198 = vst [vmem:[#allocation62_spill] sm:$0xff] %v17814_v9  ;;  %21199 = vst [vmem:[#allocation63_spill] sm:$0xff] %v17820_v55  ;;  %v17826_v50 = vld [vmem:[%s19963_s3 + $0x44] ss:$8 sps:$4 sm:$0xff]   ;;  %v17832_v59 = vld [vmem:[%s19963_s3 + $0x234] ss:$8 sps:$4 sm:$0xff]  }
0x16a7   :  { %21200 = vst [vmem:[#allocation64_spill] sm:$0xff] %v17826_v50  ;;  %21201 = vst [vmem:[#allocation65_spill] sm:$0xff] %v17832_v59 }
0x16a9   :  { %6515 = vmatpush1.bf16.msra.mxu1 %v17814_v9  ;;  %6659 = vmatpush1.bf16.msra.mxu0 %v17820_v55  ;;  %v17838_v9 = vld [vmem:[%s19963_s3 + $0x40] ss:$8 sps:$4 sm:$0xff]   ;;  %v17844_v55 = vld [vmem:[%s19963_s3 + $0x230] ss:$8 sps:$4 sm:$0xff]  }
0x16aa   :  { %6516 = vmatprep.subr.bf16.mxu1 %v17826_v50  ;;  %6660 = vmatprep.subr.bf16.mxu0 %v17832_v59  ;;  %21202 = vst [vmem:[#allocation66_spill] sm:$0xff] %v17838_v9  ;;  %21203 = vst [vmem:[#allocation67_spill] sm:$0xff] %v17844_v55  ;;  %v17850_v50 = vld [vmem:[%s19963_s3 + $0x54] ss:$8 sps:$4 sm:$0xff]   ;;  %v17856_v59 = vld [vmem:[%s19963_s3 + $0x244] ss:$8 sps:$4 sm:$0xff]  }
0x16ab   :  { %21204 = vst [vmem:[#allocation68_spill] sm:$0xff] %v17850_v50  ;;  %21205 = vst [vmem:[#allocation69_spill] sm:$0xff] %v17856_v59 }
0x16ad   :  { %6517 = vmatpush1.bf16.msra.mxu1 %v17838_v9  ;;  %6661 = vmatpush1.bf16.msra.mxu0 %v17844_v55  ;;  %v17862_v9 = vld [vmem:[%s19963_s3 + $0x50] ss:$8 sps:$4 sm:$0xff]   ;;  %v17868_v55 = vld [vmem:[%s19963_s3 + $0x240] ss:$8 sps:$4 sm:$0xff]  }
0x16ae   :  { %6518 = vmatprep.subr.bf16.mxu1 %v17850_v50  ;;  %6662 = vmatprep.subr.bf16.mxu0 %v17856_v59  ;;  %21206 = vst [vmem:[#allocation70_spill] sm:$0xff] %v17862_v9  ;;  %21207 = vst [vmem:[#allocation72_spill] sm:$0xff] %v17868_v55  ;;  %v17874_v50 = vld [vmem:[%s19963_s3 + $0x64] ss:$8 sps:$4 sm:$0xff]  }
0x16af   :  { %21208 = vst [vmem:[#allocation76_spill] sm:$0xff] %v17874_v50  ;;  %v21209_v59 = vld [vmem:[#allocation71_spill] sm:$0xff] }
0x16b1   :  { %6519 = vmatpush1.bf16.msra.mxu1 %v17862_v9  ;;  %6663 = vmatpush1.bf16.msra.mxu0 %v17868_v55  ;;  %v17882_v9 = vld [vmem:[%s19963_s3 + $0x60] ss:$8 sps:$4 sm:$0xff]  }
0x16b2   :  { %6520 = vmatprep.subr.bf16.mxu1 %v17874_v50  ;;  %11897 = vmatprep.subr.msk.bf16.mxu0 %vm21175_vm2, %v21209_v59  ;;  %21210 = vst [vmem:[#allocation77_spill] sm:$0xff] %v17882_v9  ;;  %v21212_v55 = vld [vmem:[#allocation74_spill] sm:$0xff]  ;;  %v21214_v50 = vld [vmem:[#allocation75_spill] sm:$0xff] }
0x16b5   :  { %6521 = vmatpush1.bf16.msra.mxu1 %v17882_v9  ;;  %6665 = vmatpush1.bf16.msra.mxu0 %v21211_v34  ;;  %v17898_v9 = vld [vmem:[%s19963_s3 + $0x16c] ss:$8 sps:$4 sm:$0xff]  }
0x16b6   :  { %11891 = vmatprep.subr.msk.bf16.mxu1 %vm21213_vm10, %v21212_v55  ;;  %13210 = vmatprep.subr.bf16.mxu0 %v20571_v44  ;;  %21215 = vst [vmem:[#allocation78_spill] sm:$0xff] %v17898_v9  ;;  %vm21233_vm10 = vmmov %vm21182_vm12 }
0x16b8   :  { %11898 = vmatmul.mubr.msk.bf16.vlgmr.msra.gmra.mrb[168].mxu0 %vm21182_vm12, %v6646_v46  ;;  %v17907_v46 = vld [vmem:[%s19963_s3 + $0x168] ss:$8 sps:$4 sm:$0xff]   ;;  %vm21234_vm12 = vcmask 64512  }
0x16b9   :  { %6523 = vmatpush1.bf16.msra.mxu1 %v21214_v50  ;;  %13212 = vmatpush1.bf16.msk.msra.mxu0 %vm20574_vm8, %v20573_v5  ;;  %21217 = vst [vmem:[#allocation79_spill] sm:$0xff] %v17907_v46  ;;  %v17914_v50 = vld [vmem:[%s19963_s3 + $0x17c] ss:$8 sps:$4 sm:$0xff]  }
0x16ba   :  { %6603 = vmatprep.subr.bf16.mxu1 %v17898_v9  ;;  %13213 = vmatprep.subr.bf16.mxu0 %v20571_v44  ;;  %21218 = vst [vmem:[#allocation80_spill] sm:$0xff] %v17914_v50 }
0x16bc   :  { %11892 = vmatmul.mubr.msk.bf16.vlgmr.msra.gmra.mrb[152].mxu1 %vm21216_vm13, %v17712_v49  ;;  %v17924_v49 = vld [vmem:[%s19963_s3 + $0x178] ss:$8 sps:$4 sm:$0xff]   ;;  %vm21235_vm13 = vmmov %vm21234_vm12 }
0x16bd   :  { %6604 = vmatpush1.bf16.msra.mxu1 %v17907_v46  ;;  %6635 = vmatprep.mubr.bf16.mxu1 %v20543_v48  ;;  %21219 = vst [vmem:[#allocation81_spill] sm:$0xff] %v17924_v49  ;;  %v17930_v46 = vld [vmem:[%s19963_s3 + $0x18c] ss:$8 sps:$4 sm:$0xff]  }
0x16be   :  { %6605 = vmatprep.subr.bf16.mxu1 %v17914_v50  ;;  %13215 = vmatpush1.bf16.msk.msra.mxu0 %vm20578_vm9, %v20573_v5  ;;  %21220 = vst [vmem:[#allocation82_spill] sm:$0xff] %v17930_v46  ;;  %v17940_v50 = vld [vmem:[%s19963_s3 + $0x188] ss:$8 sps:$4 sm:$0xff]  }
0x16bf   :  { %13216 = vmatprep.subr.bf16.mxu0 %v20571_v44  ;;  %21221 = vst [vmem:[#allocation83_spill] sm:$0xff] %v17940_v50 }
0x16c1   :  { %6606 = vmatpush1.bf16.msra.mxu1 %v17924_v49  ;;  %v17946_v49 = vld [vmem:[%s19963_s3 + $0x19c] ss:$8 sps:$4 sm:$0xff]  }
0x16c2   :  { %6607 = vmatprep.subr.bf16.mxu1 %v17930_v46  ;;  %13218 = vmatpush1.bf16.msk.msra.mxu0 %vm20735_vm15, %v20573_v5  ;;  %21222 = vst [vmem:[#allocation84_spill] sm:$0xff] %v17946_v49  ;;  %v17956_v46 = vld [vmem:[%s19963_s3 + $0x198] ss:$8 sps:$4 sm:$0xff]  }
0x16c3   :  { %13219 = vmatprep.subr.bf16.mxu0 %v20571_v44  ;;  %21223 = vst [vmem:[#allocation85_spill] sm:$0xff] %v17956_v46 }
0x16c5   :  { %6608 = vmatpush1.bf16.msra.mxu1 %v17940_v50  ;;  %v17962_v50 = vld [vmem:[%s19963_s3 + $0x1ac] ss:$8 sps:$4 sm:$0xff]  }
0x16c6   :  { %6609 = vmatprep.subr.bf16.mxu1 %v17946_v49  ;;  %13221 = vmatpush1.bf16.msk.msra.mxu0 %vm20629_vm7, %v20573_v5  ;;  %21224 = vst [vmem:[#allocation86_spill] sm:$0xff] %v17962_v50  ;;  %v17972_v49 = vld [vmem:[%s19963_s3 + $0x1a8] ss:$8 sps:$4 sm:$0xff]  }
0x16c7   :  { %13222 = vmatprep.subr.bf16.mxu0 %v20571_v44  ;;  %21225 = vst [vmem:[#allocation87_spill] sm:$0xff] %v17972_v49 }
0x16c9   :  { %6610 = vmatpush1.bf16.msra.mxu1 %v17956_v46  ;;  %v17978_v46 = vld [vmem:[%s19963_s3 + $0x1bc] ss:$8 sps:$4 sm:$0xff]  }
0x16ca   :  { %6611 = vmatprep.subr.bf16.mxu1 %v17962_v50  ;;  %13224 = vmatpush1.bf16.msk.msra.mxu0 %vm20630_vm6, %v20573_v5  ;;  %21226 = vst [vmem:[#allocation88_spill] sm:$0xff] %v17978_v46  ;;  %v17988_v50 = vld [vmem:[%s19963_s3 + $0x1b8] ss:$8 sps:$4 sm:$0xff]  }
0x16cb   :  { %13225 = vmatprep.subr.bf16.mxu0 %v20571_v44  ;;  %21227 = vst [vmem:[#allocation89_spill] sm:$0xff] %v17988_v50 }
0x16cd   :  { %6612 = vmatpush1.bf16.msra.mxu1 %v17972_v49  ;;  %v17994_v49 = vld [vmem:[%s19963_s3 + $0x1cc] ss:$8 sps:$4 sm:$0xff]  }
0x16ce   :  { %6613 = vmatprep.subr.bf16.mxu1 %v17978_v46  ;;  %13227 = vmatpush1.bf16.msk.msra.mxu0 %vm20785_vm1, %v20573_v5  ;;  %21228 = vst [vmem:[#allocation92_spill] sm:$0xff] %v17994_v49  ;;  %v18004_v46 = vld [vmem:[%s19963_s3 + $0x1c8] ss:$8 sps:$4 sm:$0xff]  }
0x16cf   :  { %13228 = vmatprep.subr.bf16.mxu0 %v20571_v44  ;;  %21229 = vst [vmem:[#allocation93_spill] sm:$0xff] %v18004_v46 }
0x16d1   :  { %6614 = vmatpush1.bf16.msra.mxu1 %v17988_v50  ;;  %v21230_v50 = vld [vmem:[#allocation90_spill] sm:$0xff] }
0x16d2   :  { %6615 = vmatprep.subr.bf16.mxu1 %v17994_v49  ;;  %13230 = vmatpush1.bf16.msk.msra.mxu0 %vm20786_vm3, %v20573_v5  ;;  %v21231_v49 = vld [vmem:[#allocation91_spill] sm:$0xff] }
0x16d3   :  { %13231 = vmatprep.subr.bf16.mxu0 %v20571_v44 }
0x16d5   :  { %6616 = vmatpush1.bf16.msra.mxu1 %v18004_v46  ;;  %v21232_v46 = vor.u32 %v17720_v4, %v17718_v43 }
0x16d6   :  { %11895 = vmatprep.subr.msk.bf16.mxu1 %vm21175_vm2, %v21230_v50  ;;  %13233 = vmatpush1.bf16.msk.msra.mxu0 %vm20909_vm11, %v20573_v5  ;;  %vm21236_vm2 = vnez %v20441_v11 }
0x16d7   :  { %13234 = vmatprep.subr.bf16.mxu0 %v20571_v44 }
0x16d9   :  { %6618 = vmatpush1.bf16.msra.mxu1 %v21231_v49 }
0x16da   :  { %13236 = vmatpush1.bf16.msk.msra.mxu0 %vm20911_vm4, %v20573_v5 }
0x16db   :  { %13237 = vmatprep.subr.bf16.mxu0 %v20571_v44 }
0x16dc   :  { %11896 = vmatmul.mubr.msk.bf16.vlgmr.msra.gmra.mrb[156].mxu1 %vm21233_vm10, %v21232_v46  ;;  %vm21237_vm10 = vnez %v20445_v15 }
0x16dd   :  { %6761 = vmatprep.mubr.f32.mxu1 %v20601_v58 }
0x16de   :  { %13239 = vmatpush1.bf16.msk.msra.mxu0 %vm21070_vm0, %v20573_v5 }
0x176b   :  { %v6588_v50 = vpop.f32.mrb[164].mxu0 }
0x176c   :  { %v6590_v9 = vpop.f32.mrb[165].mxu0 }
0x176d   :  { %v6592_v49 = vpop.f32.mrb[166].mxu0 }
0x176e   :  { %v6593_v55 = vpop.f32.mrb[167].mxu0 }
0x176f   :  { %v6499_v34 = vpop.f32.mrb[148].mxu1 }
0x1770   :  { %v6501_v59 = vpop.f32.mrb[149].mxu1 }
0x1771   :  { %v6503_v47 = vpop.f32.mrb[150].mxu1 }
0x1772   :  { %v6504_v7 = vpop.f32.mrb[151].mxu1 }
0x178b   :  { %v6684_v30 = vpop.f32.mrb[168].mxu0 }
0x178c   :  { %v6686_v29 = vpop.f32.mrb[169].mxu0 }
0x178d   :  { %v6688_v25 = vpop.f32.mrb[170].mxu0 }
0x178e   :  { %v6689_v43 = vpop.f32.mrb[171].mxu0 }
0x178f   :  { %v6542_v4 = vpop.f32.mrb[152].mxu1 }
0x1790   :  { %v6543_v46 = vadd.f32 %v6542_v4, %v6499_v34  ;;  %v6544_v38 = vpop.f32.mrb[153].mxu1 }
0x1791   :  { %v6545_v35 = vadd.f32 %v6544_v38, %v6501_v59  ;;  %v6546_v51 = vpop.f32.mrb[154].mxu1 }
0x1792   :  { %v6547_v1 = vpop.f32.mrb[155].mxu1  ;;  %v6595_v52 = vadd.f32 %v6588_v50, %v6543_v46  ;;  %v18103_v46 = vld [vmem:[%s19960_s1 + $0x20] ss:$8 sps:$4 sm:$0xff]  }
0x1793   :  { %v6596_v45 = vadd.f32 %v6590_v9, %v6545_v35 }
0x17af   :  { %v6637_v63 = vpop.f32.mrb[156].mxu1 }
0x17b0   :  { %v6644_v24 = vadd.f32 %v6637_v63, %v6595_v52  ;;  %v6639_v49 = vpop.f32.mrb[157].mxu1  ;;  %v11945_v63 = vld [vmem:[%s19961_s0 + $0xb0] sm:$0xff] }
0x17b1   :  { %v6645_v55 = vadd.f32 %v6639_v49, %v6596_v45  ;;  %v6641_v53 = vpop.f32.mrb[158].mxu1  ;;  %v11946_v45 = vld [vmem:[%s19961_s0 + $0xb8] sm:$0xf] }
0x17b2   :  { %v6691_v39 = vadd.f32 %v6684_v30, %v6644_v24  ;;  %v6642_v47 = vpop.f32.mrb[159].mxu1  ;;  %v11944_v53 = vld [vmem:[%s19961_s0 + $0xa8] sm:$0xff]  ;;  %v18093_v51 = vpack.c.bf16 %v11946_v45, %v11945_v63 }
0x17b3   :  { %v6692_v7 = vadd.f32 %v6686_v29, %v6645_v55  ;;  %v18110_v47 = vld [vmem:[%s19960_s1 + $0x34] ss:$8 sps:$4 sm:$0x3f]   ;;  %v18143_v63 = vld [vmem:[%s19960_s1 + $0x44] ss:$8 sps:$4 sm:$0xff]  }
0x17b4   :  { %v6693_v60 = vadd.f32 %v6691_v39, %v15486_v21  ;;  %v11943_v39 = vld [vmem:[%s19961_s0 + $0xa0] sm:$0xff]  ;;  %v7016_v4 = vshll.u32 %v18093_v51, 16 }
0x17b5   :  { %v6694_v25 = vadd.f32 %v6692_v7, %v15490_v2  ;;  %v18085_v24 = vpack.c.bf16 %v11944_v53, %v11943_v39  ;;  %v18135_v39 = vld [vmem:[%s19960_s1 + $0x14] ss:$8 sps:$4 sm:$0x3f]   ;;  %v18154_v45 = vld [vmem:[%s19960_s1 + $0x40] ss:$8 sps:$4 sm:$0xff]  }
0x17b6   :  { %v6695_v34 = vmax.f32 %v6693_v60, 0.0  ;;  %v18076_v60 = vld [vmem:[%s19960_s1 + $0x24] ss:$8 sps:$4 sm:$0xff]   ;;  %v7018_v55 = vrot.slane %v7016_v4, 1 }
0x17b7   :  { %v6696_v43 = vmax.f32 %v6694_v25, 0.0  ;;  %v7011_v35 = vshll.u32 %v18085_v24, 16  ;;  %v7009_v59 = vshrl.u32 %v18085_v24, 16  ;;  %v18120_v25 = vld [vmem:[%s19960_s1 + $0x4] ss:$8 sps:$4 sm:$0xff]  }
0x17b9   :  { %6697 = vmatprep.subr.mxu1 %v6696_v43  ;;  %v7013_v9 = vrot.slane %v7011_v35, 1 }
0x17ba   :  { %6698 = vmatpush1.msra.mxu1 %v6695_v34 }
0x17bb   :  { %11899 = vmatmul.mubr.msk.f32.vlgmr.msra.gmra.mrb[160].mxu1 %vm21234_vm12, %v14807_v12  ;;  %6768 = vmatprep.subr.mxu1 %v6696_v43  ;;  %vm21238_vm12 = vnez %v20449_v19  ;;  %v7014_v49 = vor.u32 %v7013_v9, %v7009_v59  ;;  %v7020_v43 = vshrl.u32 %v18093_v51, 16  ;;  %v18188_v9 = vld [vmem:[%s19960_s1 + $0x74] ss:$8 sps:$4 sm:$0x3f]  }
0x17bc   :  { %6769 = vmatpush1.msra.mxu1 %v6695_v34  ;;  %6832 = vmatprep.mubr.f32.mxu1 %v20601_v58  ;;  %v18129_v34 = vld [vmem:[%s19960_s1] ss:$8 sps:$4 sm:$0xff]   ;;  %21254 = vst [vmem:[#allocation95_spill] sm:$0xff] %v18188_v9 }
0x17bd   :  { %13180 = vmatprep.subr.bf16.mxu1 %v20571_v44  ;;  %v7022_v53 = vor.u32 %v7020_v43, %v7018_v55 }
0x17bf   :  { %11900 = vmatmul.mubr.msk.f32.vlgmr.msra.gmra.mrb[162].mxu1 %vm21235_vm13, %v14826_v16  ;;  %vm21239_vm13 = vnez %v20453_v23 }
0x17c0   :  { %13182 = vmatpush1.bf16.msk.msra.mxu1 %vm14828_vm5, %v20573_v5 }
0x17c1   :  { %13183 = vmatprep.subr.bf16.mxu1 %v20571_v44 }
0x17c4   :  { %13185 = vmatpush1.bf16.msk.msra.mxu1 %vm14593_vm14, %v20573_v5 }
0x17c5   :  { %13186 = vmatprep.subr.bf16.mxu1 %v20571_v44 }
0x17c8   :  { %13188 = vmatpush1.bf16.msk.msra.mxu1 %vm21236_vm2, %v20573_v5  ;;  %vm21240_vm2 = vnez %v20457_v28 }
0x17c9   :  { %13189 = vmatprep.subr.bf16.mxu1 %v20571_v44 }
0x17cc   :  { %13191 = vmatpush1.bf16.msk.msra.mxu1 %vm21237_vm10, %v20573_v5  ;;  %vm21241_vm10 = vnez %v20461_v32 }
0x17cd   :  { %13192 = vmatprep.subr.bf16.mxu1 %v20571_v44 }
0x17d0   :  { %13194 = vmatpush1.bf16.msk.msra.mxu1 %vm21238_vm12, %v20573_v5  ;;  %vm21242_vm12 = vnez %v20465_v37 }
0x17d1   :  { %13195 = vmatprep.subr.bf16.mxu1 %v20571_v44 }
0x17d4   :  { %13197 = vmatpush1.bf16.msk.msra.mxu1 %vm21239_vm13, %v20573_v5  ;;  %vm21243_vm13 = vnez %v20469_v42 }
0x17d5   :  { %13198 = vmatprep.subr.bf16.mxu1 %v20571_v44 }
0x17d8   :  { %13200 = vmatpush1.bf16.msk.msra.mxu1 %vm21240_vm2, %v20573_v5 }
0x17d9   :  { %13201 = vmatprep.subr.bf16.mxu1 %v20571_v44 }
0x17dc   :  { %13203 = vmatpush1.bf16.msk.msra.mxu1 %vm21241_vm10, %v20573_v5  ;;  %vm21248_vm10 = vcmask 228352  }
0x17dd   :  { %13204 = vmatprep.subr.bf16.mxu1 %v20571_v44 }
0x17e0   :  { %13206 = vmatpush1.bf16.msk.msra.mxu1 %vm21242_vm12, %v20573_v5 }
0x17e1   :  { %13207 = vmatprep.subr.bf16.mxu1 %v20571_v44 }
0x17e4   :  { %13209 = vmatpush1.bf16.msk.msra.mxu1 %vm21243_vm13, %v20573_v5  ;;  %vm21244_vm13 = vcmask 261120  }
0x17e5   :  { %7029 = vmatprep.subr.bf16.mxu1 %v18076_v60  ;;  %vm21245_vm12 = vmmov %vm21244_vm13 }
0x188e   :  { %v6763_v52 = vpop.f32.mrb[160].mxu1 }
0x188f   :  { %v6765_v1 = vpop.f32.mrb[161].mxu1 }
0x1892   :  { %v6834_v38 = vpop.f32.mrb[162].mxu1 }
0x1893   :  { %v6839_v50 = vmax.f32 %v6763_v52, %v6834_v38  ;;  %v6836_v29 = vpop.f32.mrb[163].mxu1  ;;  %v18160_v52 = vld [vmem:[%s19960_s1 + $0x54] ss:$8 sps:$4 sm:$0x3f]   ;;  %v7137_v38 = vrot.slane %v18085_v24, 1 }
0x1894   :  { %v6840_v30 = vmax.f32 %v6765_v1, %v6836_v29  ;;  %v18168_v1 = vld [vmem:[%s19960_s1 + $0x64] ss:$8 sps:$4 sm:$0xff]  }
0x1895   :  { %21250 = vst [vmem:[#allocation2_spill] sm:$0xff] %v18168_v1 }
0x1896   :  { %11921 = vmatprep.mubr.msk.f32.mxu1 %vm21244_vm13, %v6840_v30  ;;  %11942 = vmatprep.mubr.msk.f32.mxu0 %vm21245_vm12, %v6840_v30  ;;  %vm21246_vm12 = vcmask 1045504   ;;  %vm21247_vm13 = vsmask.f32 7424  ;;  %v18182_v30 = vld [vmem:[%s19960_s1 + $0x60] ss:$8 sps:$4 sm:$0xff]  }
0x1897   :  { %6909 = vmatmul.mubr.f32.vlgmr.msra.gmra.mrb[164].mxu1 %v6839_v50  ;;  %6979 = vmatmul.mubr.f32.vlgmr.msra.gmra.mrb[172].mxu0 %v6839_v50  ;;  %v7019_v7 = vsel %vm21247_vm13, %v7014_v49, %v7018_v55  ;;  %vm21249_vm13 = vmmov %vm21248_vm10  ;;  %v7138_v50 = vrot.slane %v18093_v51, 1  ;;  %21253 = vst [vmem:[#allocation94_spill] sm:$0xff] %v18182_v30  ;;  %v7203_v49 = vrot.slane %v7009_v59, 1  ;;  %v7207_v55 = vrot.slane %v7016_v4, 2 }
0x1898   :  { %7030 = vmatpush1.bf16.msra.mxu1 %v18103_v46  ;;  %7061 = vmatprep.mubr.bf16.mxu1 %v20543_v48  ;;  %v18213_v4 = vld [vmem:[%s19960_s1 + $0x94] ss:$8 sps:$4 sm:$0x3f]  }
0x1899   :  { %11947 = vmatprep.subr.msk.bf16.mxu1 %vm21246_vm12, %v18110_v47  ;;  %7415 = vmatprep.mubr.f32.mxu0 %v20601_v58  ;;  %21261 = vst [vmem:[#allocation100_spill] sm:$0xff] %v18213_v4 }
0x189c   :  { %7032 = vmatpush1.bf16.msra.mxu1 %v14442_v8 }
0x189d   :  { %7084 = vmatprep.subr.bf16.mxu1 %v18120_v25 }
0x189f   :  { %11948 = vmatmul.mubr.msk.bf16.vlgmr.msra.gmra.mrb[168].mxu1 %vm21248_vm10, %v7019_v7  ;;  %v7206_v7 = vrot.slane %v7020_v43, 1  ;;  %v7273_v43 = vrot.slane %v18085_v24, 2 }
0x18a0   :  { %7071 = vmatprep.mubr.bf16.mxu1 %v20543_v48  ;;  %7085 = vmatpush1.bf16.msra.mxu1 %v18129_v34 }
0x18a1   :  { %11950 = vmatprep.subr.msk.bf16.mxu1 %vm21246_vm12, %v18135_v39 }
0x18a4   :  { %7087 = vmatpush1.bf16.msra.mxu1 %v14473_v27 }
0x18a5   :  { %7146 = vmatprep.subr.bf16.mxu1 %v18143_v63 }
0x18a7   :  { %11949 = vmatmul.mubr.msk.bf16.gmra.mrb[172].mxu1 %vm21248_vm10, %v7022_v53  ;;  %v7204_v53 = vrot.slane %v7011_v35, 2  ;;  %v18207_v35 = vld [vmem:[%s19960_s1 + $0x80] ss:$8 sps:$4 sm:$0xff]  }
0x18a8   :  { %7116 = vmatprep.mubr.bf16.mxu1 %v20543_v48  ;;  %21260 = vst [vmem:[#allocation97_spill] sm:$0xff] %v18207_v35 }
0x18af   :  { %11951 = vmatmul.mubr.msk.bf16.vlgmr.msra.gmra.mrb[168].mxu1 %vm21249_vm13, %v18085_v24  ;;  %vm21251_vm13 = vcmask 1046528  }
0x18b0   :  { %7126 = vmatprep.mubr.bf16.mxu1 %v20543_v48  ;;  %7147 = vmatpush1.bf16.msra.mxu1 %v18154_v45  ;;  %v7139_v29 = vsel %vm21251_vm13, %v7137_v38, %v7138_v50  ;;  %v18196_v38 = vld [vmem:[%s19960_s1 + $0x84] ss:$8 sps:$4 sm:$0xff]  }
0x18b1   :  { %11953 = vmatprep.subr.msk.bf16.mxu1 %vm21246_vm12, %v18160_v52  ;;  %vm21252_vm12 = vmmov %vm21248_vm10  ;;  %21256 = vst [vmem:[#allocation96_spill] sm:$0xff] %v18196_v38 }
0x18b2   :  { %vm21257_vm13 = vmmov %vm21252_vm12 }
0x18b4   :  { %7149 = vmatpush1.bf16.msra.mxu1 %v20769_v56 }
0x18b5   :  { %7216 = vmatprep.subr.bf16.mxu1 %v18168_v1 }
0x18b7   :  { %11952 = vmatmul.mubr.msk.bf16.gmra.mrb[176].mxu1 %vm21248_vm10, %v18093_v51  ;;  %vm21255_vm10 = vcmask 1045504  }
0x18b8   :  { %7178 = vmatprep.mubr.bf16.mxu1 %v20543_v48 }
0x18bf   :  { %11954 = vmatmul.mubr.msk.bf16.vlgmr.msra.gmra.mrb[168].mxu1 %vm21252_vm12, %v7139_v29  ;;  %v7205_v29 = vor.u32 %v7204_v53, %v7203_v49  ;;  %vm21258_vm12 = vsmask.f32 6400 }
0x18c0   :  { %7188 = vmatprep.mubr.bf16.mxu1 %v20543_v48  ;;  %7217 = vmatpush1.bf16.msra.mxu1 %v18182_v30  ;;  %v7208_v30 = vor.u32 %v7207_v55, %v7206_v7 }
0x18c1   :  { %11956 = vmatprep.subr.msk.bf16.mxu1 %vm21255_vm10, %v18188_v9  ;;  %vm21259_vm10 = vmmov %vm21257_vm13 }
0x18c2   :  { %v7209_v59 = vsel %vm21258_vm12, %v7205_v29, %v7208_v30  ;;  %vm21263_vm12 = vmmov %vm21259_vm10 }
0x18c3   :  { %vm21265_vm2 = vmmov %vm21263_vm12 }
0x18c4   :  { %7219 = vmatpush1.bf16.msra.mxu1 %v21094_v13 }
0x18c5   :  { %7282 = vmatprep.subr.bf16.mxu1 %v18196_v38 }
0x18c7   :  { %11955 = vmatmul.mubr.msk.bf16.gmra.mrb[180].mxu1 %vm21257_vm13, %v7138_v50  ;;  %vm21262_vm13 = vcmask 1045504   ;;  %v7274_v50 = vrot.slane %v18093_v51, 2 }
0x18c8   :  { %7248 = vmatprep.mubr.bf16.mxu1 %v20543_v48 }
0x18cf   :  { %11957 = vmatmul.mubr.msk.bf16.vlgmr.msra.gmra.mrb[168].mxu1 %vm21259_vm10, %v7209_v59  ;;  %vm21264_vm10 = vmmov %vm21262_vm13 }
0x18d0   :  { %7258 = vmatprep.mubr.bf16.mxu1 %v20543_v48  ;;  %7283 = vmatpush1.bf16.msra.mxu1 %v18207_v35  ;;  %v7275_v49 = vsel %vm21264_vm10, %v7273_v43, %v7274_v50  ;;  %vm21269_vm10 = vnez %v21109_v3 }
0x18d1   :  { %11959 = vmatprep.subr.msk.bf16.mxu1 %vm21262_vm13, %v18213_v4  ;;  %vm21266_vm13 = vmmov %vm21265_vm2 }
0x18d4   :  { %7285 = vmatpush1.bf16.msra.mxu1 %v21100_v20 }
0x18d5   :  { %13293 = vmatprep.subr.bf16.mxu1 %v20571_v44 }
0x18d7   :  { %11958 = vmatmul.mubr.msk.bf16.gmra.mrb[184].mxu1 %vm21263_vm12, %v7208_v30  ;;  %vm21268_vm12 = vnez %v21107_v41 }
0x18d8   :  { %7314 = vmatprep.mubr.bf16.mxu1 %v20543_v48 }
0x18df   :  { %11960 = vmatmul.mubr.msk.bf16.vlgmr.msra.gmra.mrb[168].mxu1 %vm21265_vm2, %v7275_v49  ;;  %vm21267_vm2 = vnez %v21105_v54 }
0x18e0   :  { %7324 = vmatprep.mubr.bf16.mxu1 %v20543_v48  ;;  %13295 = vmatpush1.bf16.msk.msra.mxu1 %vm20574_vm8, %v20573_v5 }
0x18e1   :  { %13296 = vmatprep.subr.bf16.mxu1 %v20571_v44 }
0x18e4   :  { %13298 = vmatpush1.bf16.msk.msra.mxu1 %vm20578_vm9, %v20573_v5 }
0x18e5   :  { %13299 = vmatprep.subr.bf16.mxu1 %v20571_v44 }
0x18e7   :  { %11961 = vmatmul.mubr.msk.bf16.gmra.mrb[188].mxu1 %vm21266_vm13, %v7274_v50  ;;  %vm21270_vm13 = vnez %v21111_v17 }
0x18e8   :  { %13301 = vmatpush1.bf16.msk.msra.mxu1 %vm20735_vm15, %v20573_v5 }
0x18e9   :  { %13302 = vmatprep.subr.bf16.mxu1 %v20571_v44 }
0x18ec   :  { %13304 = vmatpush1.bf16.msk.msra.mxu1 %vm20629_vm7, %v20573_v5 }
0x18ed   :  { %13305 = vmatprep.subr.bf16.mxu1 %v20571_v44 }
0x18f0   :  { %13307 = vmatpush1.bf16.msk.msra.mxu1 %vm20630_vm6, %v20573_v5 }
0x18f1   :  { %13308 = vmatprep.subr.bf16.mxu1 %v20571_v44 }
0x18f4   :  { %13310 = vmatpush1.bf16.msk.msra.mxu1 %vm20785_vm1, %v20573_v5 }
0x18f5   :  { %13311 = vmatprep.subr.bf16.mxu1 %v20571_v44 }
0x18f8   :  { %13313 = vmatpush1.bf16.msk.msra.mxu1 %vm20786_vm3, %v20573_v5 }
0x18f9   :  { %13314 = vmatprep.subr.bf16.mxu1 %v20571_v44 }
0x18fc   :  { %13316 = vmatpush1.bf16.msk.msra.mxu1 %vm20909_vm11, %v20573_v5 }
0x18fd   :  { %13317 = vmatprep.subr.bf16.mxu1 %v20571_v44 }
0x1900   :  { %13319 = vmatpush1.bf16.msk.msra.mxu1 %vm20911_vm4, %v20573_v5 }
0x1901   :  { %13320 = vmatprep.subr.bf16.mxu1 %v20571_v44 }
0x1904   :  { %13322 = vmatpush1.bf16.msk.msra.mxu1 %vm21070_vm0, %v20573_v5 }
0x1905   :  { %13323 = vmatprep.subr.bf16.mxu1 %v20571_v44 }
0x1908   :  { %13325 = vmatpush1.bf16.msk.msra.mxu1 %vm21267_vm2, %v20573_v5  ;;  %vm21271_vm2 = vnez %v21113_v62 }
0x1909   :  { %13326 = vmatprep.subr.bf16.mxu1 %v20571_v44 }
0x190c   :  { %13328 = vmatpush1.bf16.msk.msra.mxu1 %vm21268_vm12, %v20573_v5  ;;  %vm21283_vm12 = vnez %v20453_v23 }
0x190d   :  { %13329 = vmatprep.subr.bf16.mxu1 %v20571_v44 }
0x1910   :  { %13331 = vmatpush1.bf16.msk.msra.mxu1 %vm21269_vm10, %v20573_v5 }
0x1911   :  { %13332 = vmatprep.subr.bf16.mxu1 %v20571_v44 }
0x1914   :  { %13334 = vmatpush1.bf16.msk.msra.mxu1 %vm21270_vm13, %v20573_v5 }
0x1915   :  { %13335 = vmatprep.subr.bf16.mxu1 %v20571_v44 }
0x1918   :  { %13337 = vmatpush1.bf16.msk.msra.mxu1 %vm21271_vm2, %v20573_v5  ;;  %vm21275_vm2 = vcmask 195584  }
0x1919   :  { %7767 = vmatprep.subr.bf16.mxu1 %v17470_v57  ;;  %vm21277_vm13 = vmmov %vm21275_vm2 }
0x191a   :  { %vm21278_vm10 = vmmov %vm21275_vm2 }
0x196a   :  { %v6910_v24 = vpop.f32.mrb[164].mxu1  ;;  %v6980_v51 = vpop.f32.mrb[172].mxu0 }
0x196b   :  { %v18287_v30 = vmax.f32 %v6910_v24, %v6980_v51  ;;  %v6912_v55 = vpop.f32.mrb[165].mxu1  ;;  %v6982_v7 = vpop.f32.mrb[173].mxu0 }
0x196d   :  { %21272 = vst [vmem:[#allocation101_spill] sm:$0xff] %v18287_v30 }
0x197a   :  { %v7073_v53 = vpop.f32.mrb[172].mxu1 }
0x197b   :  { %v7075_v29 = vpop.f32.mrb[173].mxu1 }
0x197c   :  { %v7077_v59 = vpop.f32.mrb[174].mxu1 }
0x197d   :  { %v7078_v43 = vpop.f32.mrb[175].mxu1 }
0x197e   :  { %v21273_v43 = vld [vmem:[#allocation10_spill] sm:$0xff] }
0x198a   :  { %v7128_v50 = vpop.f32.mrb[176].mxu1 }
0x198b   :  { %v7129_v49 = vadd.f32 %v7128_v50, %v7073_v53  ;;  %v7130_v17 = vpop.f32.mrb[177].mxu1  ;;  %v21274_v50 = vld [vmem:[#allocation11_spill] sm:$0xff] }
0x198c   :  { %v7131_v3 = vadd.f32 %v7130_v17, %v7075_v29  ;;  %v7132_v41 = vpop.f32.mrb[178].mxu1 }
0x198d   :  { %v7133_v54 = vpop.f32.mrb[179].mxu1 }
0x199a   :  { %v7190_v62 = vpop.f32.mrb[180].mxu1 }
0x199b   :  { %v7201_v20 = vadd.f32 %v7190_v62, %v7129_v49  ;;  %v7192_v4 = vpop.f32.mrb[181].mxu1 }
0x199c   :  { %v7202_v57 = vadd.f32 %v7192_v4, %v7131_v3  ;;  %v7194_v35 = vpop.f32.mrb[182].mxu1 }
0x199d   :  { %v7195_v38 = vpop.f32.mrb[183].mxu1 }
0x19aa   :  { %v7260_v24 = vpop.f32.mrb[184].mxu1 }
0x19ab   :  { %v7271_v51 = vadd.f32 %v7260_v24, %v7201_v20  ;;  %v7262_v55 = vpop.f32.mrb[185].mxu1 }
0x19ac   :  { %v7272_v7 = vadd.f32 %v7262_v55, %v7202_v57  ;;  %v7264_v30 = vpop.f32.mrb[186].mxu1 }
0x19ad   :  { %v7265_v13 = vpop.f32.mrb[187].mxu1 }
0x19b2   :  { %v7316_v59 = vpop.f32.mrb[168].mxu1 }
0x19b3   :  { %v7339_v9 = vadd.f32 %v7316_v59, %v21273_v43  ;;  %v7318_v53 = vpop.f32.mrb[169].mxu1 }
0x19b4   :  { %v7340_v17 = vadd.f32 %v7318_v53, %v21274_v50  ;;  %v7320_v41 = vpop.f32.mrb[170].mxu1 }
0x19b5   :  { %v7341_v54 = vadd.f32 %v7320_v41, %v21273_v43  ;;  %v7322_v62 = vpop.f32.mrb[171].mxu1  ;;  %v7345_v35 = vmax.f32 %v7339_v9, 0.0  ;;  %v21276_v9 = vld [vmem:[#allocation12_spill] sm:$0xff] }
0x19b6   :  { %v7342_v3 = vadd.f32 %v7322_v62, %v21274_v50  ;;  %v7346_v4 = vmax.f32 %v7340_v17, 0.0  ;;  %v21292_v17 = vld [vmem:[#allocation14_spill] sm:$0xff] }
0x19b7   :  { %v7347_v38 = vmax.f32 %v7341_v54, 0.0  ;;  %v21294_v54 = vld [vmem:[#allocation16_spill] sm:$0xff] }
0x19b8   :  { %v7348_v20 = vmax.f32 %v7342_v3, 0.0  ;;  %v21296_v3 = vld [vmem:[#allocation18_spill] sm:$0xff] }
0x19b9   :  { %v13242_v29 = vpack.c.bf16 %v7347_v38, %v7345_v35  ;;  %v18369_v35 = vld [vmem:[%s19963_s3 + $0x7c] ss:$8 sps:$4 sm:$0xff]  }
0x19ba   :  { %v13240_v49 = vpack.c.bf16 %v7348_v20, %v7346_v4  ;;  %v7326_v30 = vpop.f32.mrb[188].mxu1  ;;  %21298 = vst [vmem:[#allocation102_spill] sm:$0xff] %v18369_v35 }
0x19bb   :  { %v7337_v13 = vadd.f32 %v7326_v30, %v7271_v51  ;;  %v7328_v57 = vpop.f32.mrb[189].mxu1  ;;  %v21288_v51 = vld [vmem:[#allocation6_spill] sm:$0xff] }
0x19bc   :  { %v7338_v24 = vadd.f32 %v7328_v57, %v7272_v7  ;;  %v7330_v55 = vpop.f32.mrb[190].mxu1  ;;  %13241 = vmatprep.subr.bf16.mxu0 %v13240_v49  ;;  %v21290_v7 = vld [vmem:[#allocation8_spill] sm:$0xff] }
0x19bd   :  { %v7343_v59 = vadd.f32 %v7337_v13, %v21273_v43  ;;  %v7331_v53 = vpop.f32.mrb[191].mxu1  ;;  %13243 = vmatpush1.bf16.msra.mxu0 %v13242_v29 }
0x19be   :  { %v7344_v41 = vadd.f32 %v7338_v24, %v21274_v50 }
0x19bf   :  { %v7349_v62 = vmax.f32 %v7343_v59, 0.0 }
0x19c0   :  { %v7350_v1 = vmax.f32 %v7344_v41, 0.0  ;;  %v18377_v41 = vld [vmem:[%s19963_s3 + $0xf0] ss:$8 sps:$4 sm:$0xff]  }
0x19c1   :  { %21301 = vst [vmem:[#allocation103_spill] sm:$0xff] %v18377_v41 }
0x19c2   :  { %7355 = vmatprep.subr.mxu0 %v7350_v1 }
0x19c3   :  { %7356 = vmatpush1.msra.mxu0 %v7349_v62 }
0x19c4   :  { %11962 = vmatmul.mubr.msk.f32.vlgmr.msra.gmra.mrb[174].mxu0 %vm21275_vm2, %v14807_v12  ;;  %13245 = vmatprep.subr.bf16.mxu0 %v13240_v49 }
0x19c5   :  { %13247 = vmatpush1.bf16.msra.mxu0 %v13242_v29  ;;  %7421 = vmatprep.mubr.f32.mxu0 %v20601_v58 }
0x19c6   :  { %7432 = vmatprep.subr.mxu0 %v7350_v1  ;;  %v21279_v1 = vld [vmem:[#allocation13_spill] sm:$0xff] }
0x19c8   :  { %11963 = vmatmul.mubr.msk.f32.gmra.mrb[176].mxu0 %vm21277_vm13, %v21276_v9  ;;  %vm21281_vm13 = vnez %v20445_v15 }
0x19c9   :  { %7433 = vmatpush1.msra.mxu0 %v7349_v62  ;;  %7492 = vmatprep.mubr.f32.mxu0 %v20601_v58  ;;  %v18383_v62 = vld [vmem:[%s19963_s3 + $0x78] ss:$8 sps:$4 sm:$0xff]  }
0x19ca   :  { %13248 = vmatprep.subr.bf16.mxu0 %v20571_v44  ;;  %21302 = vst [vmem:[#allocation104_spill] sm:$0xff] %v18383_v62 }
0x19cc   :  { %11964 = vmatmul.mubr.msk.f32.vlgmr.msra.gmra.mrb[178].mxu0 %vm21278_vm10, %v14826_v16  ;;  %vm21280_vm10 = vnez %v20441_v11 }
0x19cd   :  { %7498 = vmatprep.mubr.f32.mxu0 %v20601_v58  ;;  %13250 = vmatpush1.bf16.msk.msra.mxu0 %vm14828_vm5, %v20573_v5 }
0x19ce   :  { %13251 = vmatprep.subr.bf16.mxu0 %v20571_v44 }
0x19d0   :  { %11965 = vmatmul.mubr.msk.f32.gmra.mrb[180].mxu0 %vm21275_vm2, %v21279_v1  ;;  %vm21282_vm2 = vnez %v20449_v19 }
0x19d1   :  { %13253 = vmatpush1.bf16.msk.msra.mxu0 %vm14593_vm14, %v20573_v5 }
0x19d2   :  { %13254 = vmatprep.subr.bf16.mxu0 %v20571_v44 }
0x19d5   :  { %13256 = vmatpush1.bf16.msk.msra.mxu0 %vm21280_vm10, %v20573_v5  ;;  %vm21284_vm10 = vnez %v20457_v28 }
0x19d6   :  { %13257 = vmatprep.subr.bf16.mxu0 %v20571_v44 }
0x19d9   :  { %13259 = vmatpush1.bf16.msk.msra.mxu0 %vm21281_vm13, %v20573_v5  ;;  %vm21285_vm13 = vnez %v20461_v32 }
0x19da   :  { %13260 = vmatprep.subr.bf16.mxu0 %v20571_v44 }
0x19dd   :  { %13262 = vmatpush1.bf16.msk.msra.mxu0 %vm21282_vm2, %v20573_v5  ;;  %vm21286_vm2 = vnez %v20465_v37 }
0x19de   :  { %13263 = vmatprep.subr.bf16.mxu0 %v20571_v44 }
0x19e1   :  { %13265 = vmatpush1.bf16.msk.msra.mxu0 %vm21283_vm12, %v20573_v5  ;;  %vm21287_vm12 = vnez %v20469_v42 }
0x19e2   :  { %13266 = vmatprep.subr.bf16.mxu0 %v20571_v44 }
0x19e5   :  { %13268 = vmatpush1.bf16.msk.msra.mxu0 %vm21284_vm10, %v20573_v5  ;;  %vm21289_vm10 = vnez %v21288_v51 }
0x19e6   :  { %13269 = vmatprep.subr.bf16.mxu0 %v20571_v44 }
0x19e9   :  { %13271 = vmatpush1.bf16.msk.msra.mxu0 %vm21285_vm13, %v20573_v5  ;;  %vm21291_vm13 = vnez %v21290_v7 }
0x19ea   :  { %13272 = vmatprep.subr.bf16.mxu0 %v20571_v44 }
0x19ed   :  { %13274 = vmatpush1.bf16.msk.msra.mxu0 %vm21286_vm2, %v20573_v5  ;;  %vm21293_vm2 = vnez %v21292_v17 }
0x19ee   :  { %13275 = vmatprep.subr.bf16.mxu0 %v20571_v44 }
0x19f1   :  { %13277 = vmatpush1.bf16.msk.msra.mxu0 %vm21287_vm12, %v20573_v5  ;;  %vm21295_vm12 = vnez %v21294_v54 }
0x19f2   :  { %13278 = vmatprep.subr.bf16.mxu0 %v20571_v44 }
0x19f5   :  { %13280 = vmatpush1.bf16.msk.msra.mxu0 %vm21289_vm10, %v20573_v5  ;;  %vm21297_vm10 = vnez %v21296_v3 }
0x19f6   :  { %13281 = vmatprep.subr.bf16.mxu0 %v20571_v44 }
0x19f9   :  { %13283 = vmatpush1.bf16.msk.msra.mxu0 %vm21291_vm13, %v20573_v5  ;;  %vm21395_vm13 = vnez %v20453_v23 }
0x19fa   :  { %13284 = vmatprep.subr.bf16.mxu0 %v20571_v44 }
0x19fd   :  { %13286 = vmatpush1.bf16.msk.msra.mxu0 %vm21293_vm2, %v20573_v5 }
0x19fe   :  { %13287 = vmatprep.subr.bf16.mxu0 %v20571_v44 }
0x1a01   :  { %13289 = vmatpush1.bf16.msk.msra.mxu0 %vm21295_vm12, %v20573_v5  ;;  %vm21299_vm12 = vcmask 916480  }
0x1a02   :  { %13290 = vmatprep.subr.bf16.mxu0 %v20571_v44  ;;  %vm21300_vm2 = vmmov %vm21299_vm12 }
0x1a05   :  { %13292 = vmatpush1.bf16.msk.msra.mxu0 %vm21297_vm10, %v20573_v5  ;;  %vm21369_vm10 = vcmask 982016  }
0x1a06   :  { %7678 = vmatprep.subr.bf16.mxu0 %v18369_v35 }
0x1a97   :  { %v7417_v38 = vpop.f32.mrb[174].mxu0 }
0x1a98   :  { %v7419_v4 = vpop.f32.mrb[175].mxu0 }
0x1a9b   :  { %v7423_v20 = vpop.f32.mrb[176].mxu0 }
0x1a9c   :  { %v7425_v29 = vpop.f32.mrb[177].mxu0 }
0x1a9f   :  { %v7494_v49 = vpop.f32.mrb[178].mxu0 }
0x1aa0   :  { %v7505_v30 = vmax.f32 %v7417_v38, %v7494_v49  ;;  %v7496_v13 = vpop.f32.mrb[179].mxu0  ;;  %v18389_v38 = vld [vmem:[%s19963_s3 + $0x104] ss:$8 sps:$4 sm:$0xff]  }
0x1aa1   :  { %v7506_v57 = vmax.f32 %v7419_v4, %v7496_v13  ;;  %21303 = vst [vmem:[#allocation105_spill] sm:$0xff] %v18389_v38  ;;  %v18395_v4 = vld [vmem:[%s19963_s3 + $0x8c] ss:$8 sps:$4 sm:$0xff]   ;;  %v21308_v49 = vld [vmem:[#allocation22_spill] sm:$0xff] }
0x1aa2   :  { %21304 = vst [vmem:[#allocation106_spill] sm:$0xff] %v18395_v4  ;;  %v21310_v13 = vld [vmem:[#allocation24_spill] sm:$0xff] }
0x1aa3   :  { %v7500_v24 = vpop.f32.mrb[180].mxu0  ;;  %11996 = vmatprep.mubr.msk.f32.mxu0 %vm21299_vm12, %v7506_v57  ;;  %12028 = vmatprep.mubr.msk.f32.mxu1 %vm21300_vm2, %v7506_v57  ;;  %vm21305_vm12 = vmmov %vm21300_vm2  ;;  %v21311_v57 = vld [vmem:[#allocation25_spill] sm:$0xff] }
0x1aa4   :  { %v7507_v55 = vmax.f32 %v7423_v20, %v7500_v24  ;;  %v7502_v59 = vpop.f32.mrb[181].mxu0  ;;  %7580 = vmatmul.mubr.f32.vlgmr.msra.gmra.mrb[182].mxu0 %v7505_v30  ;;  %7655 = vmatmul.mubr.f32.vlgmr.msra.gmra.mrb[166].mxu1 %v7505_v30  ;;  %v18403_v20 = vld [vmem:[%s19963_s3 + $0x100] ss:$8 sps:$4 sm:$0xff]  }
0x1aa5   :  { %v7508_v53 = vmax.f32 %v7425_v29, %v7502_v59  ;;  %7768 = vmatpush1.bf16.msra.mxu1 %v18377_v41  ;;  %7679 = vmatpush1.bf16.msra.mxu0 %v18383_v62  ;;  %21306 = vst [vmem:[#allocation107_spill] sm:$0xff] %v18403_v20  ;;  %v18409_v29 = vld [vmem:[%s19963_s3 + $0x88] ss:$8 sps:$4 sm:$0xff]   ;;  %v21312_v24 = vld [vmem:[#allocation26_spill] sm:$0xff] }
0x1aa6   :  { %7769 = vmatprep.subr.bf16.mxu1 %v18389_v38  ;;  %7680 = vmatprep.subr.bf16.mxu0 %v18395_v4  ;;  %21307 = vst [vmem:[#allocation108_spill] sm:$0xff] %v18409_v29  ;;  %v21309_v30 = vld [vmem:[#allocation23_spill] sm:$0xff]  ;;  %v21314_v59 = vld [vmem:[#allocation28_spill] sm:$0xff]  ;;  %v21320_v4 = vld [vmem:[#allocation33_spill] sm:$0xff] }
0x1aa7   :  { %11997 = vmatprep.mubr.msk.f32.mxu0 %vm21305_vm12, %v7508_v53  ;;  %12029 = vmatprep.mubr.msk.f32.mxu1 %vm21300_vm2, %v7508_v53  ;;  %v21315_v53 = vld [vmem:[#allocation29_spill] sm:$0xff]  ;;  %vm21329_vm12 = vcmask 1043456  }
0x1aa8   :  { %7585 = vmatmul.mubr.f32.gmra.mrb[184].mxu0 %v7507_v55  ;;  %7660 = vmatmul.mubr.f32.gmra.mrb[192].mxu1 %v7507_v55  ;;  %v21313_v55 = vld [vmem:[#allocation27_spill] sm:$0xff]  ;;  %vm21331_vm2 = vmmov %vm21329_vm12 }
0x1aa9   :  { %7770 = vmatpush1.bf16.msra.mxu1 %v18403_v20  ;;  %7681 = vmatpush1.bf16.msra.mxu0 %v18409_v29  ;;  %v21316_v29 = vld [vmem:[#allocation30_spill] sm:$0xff] }
0x1aaa   :  { %7771 = vmatprep.subr.bf16.mxu1 %v21308_v49  ;;  %7682 = vmatprep.subr.bf16.mxu0 %v21309_v30  ;;  %v21317_v49 = vld [vmem:[#allocation31_spill] sm:$0xff]  ;;  %v21318_v30 = vld [vmem:[#allocation32_spill] sm:$0xff]  ;;  %v21319_v20 = vld [vmem:[#allocation34_spill] sm:$0xff] }
0x1aab   :  { %7799 = vmatprep.mubr.bf16.mxu1 %v20543_v48  ;;  %7710 = vmatprep.mubr.bf16.mxu0 %v20543_v48 }
0x1aad   :  { %7772 = vmatpush1.bf16.msra.mxu1 %v21310_v13  ;;  %7683 = vmatpush1.bf16.msra.mxu0 %v21311_v57  ;;  %v21321_v13 = vld [vmem:[#allocation36_spill] sm:$0xff]  ;;  %v21322_v57 = vld [vmem:[#allocation35_spill] sm:$0xff] }
0x1aae   :  { %7773 = vmatprep.subr.bf16.mxu1 %v21312_v24  ;;  %7684 = vmatprep.subr.bf16.mxu0 %v21313_v55  ;;  %v21323_v24 = vld [vmem:[#allocation38_spill] sm:$0xff]  ;;  %v21324_v55 = vld [vmem:[#allocation37_spill] sm:$0xff] }
0x1ab1   :  { %7774 = vmatpush1.bf16.msra.mxu1 %v21314_v59  ;;  %7685 = vmatpush1.bf16.msra.mxu0 %v21315_v53  ;;  %v21325_v59 = vld [vmem:[#allocation40_spill] sm:$0xff]  ;;  %v21326_v53 = vld [vmem:[#allocation43_spill] sm:$0xff] }
0x1ab2   :  { %7775 = vmatprep.subr.bf16.mxu1 %v21316_v29  ;;  %7686 = vmatprep.subr.bf16.mxu0 %v21317_v49  ;;  %v21327_v29 = vld [vmem:[#allocation45_spill] sm:$0xff]  ;;  %v21328_v49 = vld [vmem:[#allocation39_spill] sm:$0xff] }
0x1ab5   :  { %7776 = vmatpush1.bf16.msra.mxu1 %v21318_v30  ;;  %7687 = vmatpush1.bf16.msra.mxu0 %v21319_v20  ;;  %v21330_v20 = vld [vmem:[#allocation42_spill] sm:$0xff]  ;;  %v21333_v30 = vld [vmem:[#allocation44_spill] sm:$0xff] }
0x1ab6   :  { %7777 = vmatprep.subr.bf16.mxu1 %v21320_v4  ;;  %7688 = vmatprep.subr.bf16.mxu0 %v21321_v13  ;;  %v21332_v4 = vld [vmem:[#allocation41_spill] sm:$0xff]  ;;  %v21334_v13 = vld [vmem:[#allocation46_spill] sm:$0xff] }
0x1ab9   :  { %7778 = vmatpush1.bf16.msra.mxu1 %v21322_v57  ;;  %7689 = vmatpush1.bf16.msra.mxu0 %v21323_v24  ;;  %v21335_v57 = vld [vmem:[#allocation47_spill] sm:$0xff] }
0x1aba   :  { %7779 = vmatprep.subr.bf16.mxu1 %v21324_v55  ;;  %7690 = vmatprep.subr.bf16.mxu0 %v21325_v59 }
0x1abd   :  { %7780 = vmatpush1.bf16.msra.mxu1 %v21326_v53  ;;  %7691 = vmatpush1.bf16.msra.mxu0 %v21327_v29 }
0x1abe   :  { %12034 = vmatprep.subr.msk.bf16.mxu1 %vm21329_vm12, %v21328_v49  ;;  %12030 = vmatprep.subr.msk.bf16.mxu0 %vm21331_vm2, %v21330_v20  ;;  %vm21336_vm12 = vcmask 982016  }
0x1abf   :  { %vm21339_vm2 = vmmov %vm21336_vm12 }
0x1ac1   :  { %7782 = vmatpush1.bf16.msra.mxu1 %v21332_v4  ;;  %7693 = vmatpush1.bf16.msra.mxu0 %v21333_v30  ;;  %v21337_v30 = vld [vmem:[#allocation48_spill] sm:$0xff] }
0x1ac2   :  { %7863 = vmatprep.subr.bf16.mxu1 %v21334_v13  ;;  %7721 = vmatprep.subr.bf16.mxu0 %v21335_v57 }
0x1b77   :  { %v7581_v24 = vpop.f32.mrb[182].mxu0  ;;  %v7656_v55 = vpop.f32.mrb[166].mxu1 }
0x1b78   :  { %v7665_v59 = vmax.f32 %v7581_v24, %v7656_v55  ;;  %v7583_v53 = vpop.f32.mrb[183].mxu0  ;;  %v7658_v38 = vpop.f32.mrb[167].mxu1  ;;  %v21338_v24 = vld [vmem:[#allocation49_spill] sm:$0xff]  ;;  %v21348_v55 = vld [vmem:[#allocation58_spill] sm:$0xff] }
0x1b79   :  { %v21350_v53 = vld [vmem:[#allocation60_spill] sm:$0xff] }
0x1b7b   :  { %v7586_v29 = vpop.f32.mrb[184].mxu0  ;;  %v7661_v62 = vpop.f32.mrb[192].mxu1 }
0x1b7c   :  { %v7666_v41 = vmax.f32 %v7586_v29, %v7661_v62  ;;  %v7588_v49 = vpop.f32.mrb[185].mxu0  ;;  %v7663_v35 = vpop.f32.mrb[193].mxu1  ;;  %v21341_v62 = vld [vmem:[#allocation51_spill] sm:$0xff]  ;;  %v21351_v29 = vld [vmem:[#allocation61_spill] sm:$0xff] }
0x1b7d   :  { %v21342_v49 = vld [vmem:[#allocation52_spill] sm:$0xff] }
0x1b7e   :  { %v7667_v3 = vpack.c.bf16 %v7666_v41, %v7665_v59  ;;  %v21340_v41 = vld [vmem:[#allocation50_spill] sm:$0xff]  ;;  %v21349_v59 = vld [vmem:[#allocation59_spill] sm:$0xff] }
0x1b80   :  { %v7669_v20 = vshrl.u32 %v7667_v3, 16  ;;  %v7671_v54 = vshll.u32 %v7667_v3, 16  ;;  %v7763_v4 = vrot.slane %v7667_v3, 1 }
0x1b82   :  { %v7673_v17 = vrot.slane %v7671_v54, 1  ;;  %12035 = vmatmul.mubr.msk.bf16.vlgmr.msra.gmra.mrb[196].mxu1 %vm21336_vm12, %v7763_v4  ;;  %v18443_v13 = vrot.slane %v7669_v20, 1  ;;  %v18445_v57 = vrot.slane %v7671_v54, 2  ;;  %v21343_v54 = vld [vmem:[#allocation53_spill] sm:$0xff]  ;;  %v21344_v4 = vld [vmem:[#allocation54_spill] sm:$0xff]  ;;  %vm21364_vm12 = vcmask 1043456  }
0x1b83   :  { %7864 = vmatpush1.bf16.msra.mxu1 %v21337_v30  ;;  %7895 = vmatprep.mubr.bf16.mxu1 %v20543_v48  ;;  %v21347_v30 = vld [vmem:[#allocation57_spill] sm:$0xff] }
0x1b84   :  { %v7674_v38 = vor.u32 %v7673_v17, %v7669_v20  ;;  %7865 = vmatprep.subr.bf16.mxu1 %v21338_v24  ;;  %v7812_v35 = vor.u32 %v18445_v57, %v18443_v13  ;;  %v21345_v17 = vld [vmem:[#allocation55_spill] sm:$0xff]  ;;  %v21346_v20 = vld [vmem:[#allocation56_spill] sm:$0xff] }
0x1b85   :  { %v21353_v24 = vld [vmem:[#allocation63_spill] sm:$0xff] }
0x1b86   :  { %12031 = vmatmul.mubr.msk.bf16.vlgmr.msra.gmra.mrb[188].mxu0 %vm21339_vm2, %v7674_v38  ;;  %v21352_v38 = vld [vmem:[#allocation62_spill] sm:$0xff]  ;;  %vm21368_vm2 = vmmov %vm21364_vm12 }
0x1b87   :  { %7722 = vmatpush1.bf16.msra.mxu0 %v21340_v41  ;;  %7866 = vmatpush1.bf16.msra.mxu1 %v21341_v62  ;;  %v21354_v41 = vld [vmem:[#allocation64_spill] sm:$0xff]  ;;  %v21355_v62 = vld [vmem:[#allocation65_spill] sm:$0xff] }
0x1b88   :  { %7723 = vmatprep.subr.bf16.mxu0 %v21342_v49  ;;  %7867 = vmatprep.subr.bf16.mxu1 %v21343_v54  ;;  %v21356_v49 = vld [vmem:[#allocation66_spill] sm:$0xff]  ;;  %v21357_v54 = vld [vmem:[#allocation67_spill] sm:$0xff] }
0x1b89   :  { %7753 = vmatprep.mubr.bf16.mxu0 %v20543_v48 }
0x1b8b   :  { %7724 = vmatpush1.bf16.msra.mxu0 %v21344_v4  ;;  %7868 = vmatpush1.bf16.msra.mxu1 %v21345_v17  ;;  %v21358_v4 = vld [vmem:[#allocation68_spill] sm:$0xff]  ;;  %v21359_v17 = vld [vmem:[#allocation69_spill] sm:$0xff] }
0x1b8c   :  { %7725 = vmatprep.subr.bf16.mxu0 %v21346_v20  ;;  %7869 = vmatprep.subr.bf16.mxu1 %v21347_v30  ;;  %v21360_v20 = vld [vmem:[#allocation70_spill] sm:$0xff]  ;;  %v21361_v30 = vld [vmem:[#allocation72_spill] sm:$0xff] }
0x1b8f   :  { %7726 = vmatpush1.bf16.msra.mxu0 %v21348_v55  ;;  %7870 = vmatpush1.bf16.msra.mxu1 %v21349_v59  ;;  %v21362_v55 = vld [vmem:[#allocation76_spill] sm:$0xff]  ;;  %v21363_v59 = vld [vmem:[#allocation71_spill] sm:$0xff] }
0x1b90   :  { %7727 = vmatprep.subr.bf16.mxu0 %v21350_v53  ;;  %7871 = vmatprep.subr.bf16.mxu1 %v21351_v29  ;;  %v21365_v53 = vld [vmem:[#allocation77_spill] sm:$0xff] }
0x1b91   :  { %v21366_v29 = vld [vmem:[#allocation73_spill] sm:$0xff] }
0x1b93   :  { %7728 = vmatpush1.bf16.msra.mxu0 %v21352_v38  ;;  %7872 = vmatpush1.bf16.msra.mxu1 %v21353_v24  ;;  %v21367_v38 = vld [vmem:[#allocation74_spill] sm:$0xff]  ;;  %v7859_v24 = vrot.slane %v7667_v3, 2 }
0x1b94   :  { %7729 = vmatprep.subr.bf16.mxu0 %v21354_v41  ;;  %7873 = vmatprep.subr.bf16.mxu1 %v21355_v62  ;;  %v21370_v41 = vld [vmem:[#allocation75_spill] sm:$0xff]  ;;  %v21371_v62 = vld [vmem:[#allocation78_spill] sm:$0xff] }
0x1b97   :  { %7730 = vmatpush1.bf16.msra.mxu0 %v21356_v49  ;;  %7874 = vmatpush1.bf16.msra.mxu1 %v21357_v54  ;;  %v21373_v49 = vld [vmem:[#allocation79_spill] sm:$0xff]  ;;  %v21374_v54 = vld [vmem:[#allocation80_spill] sm:$0xff] }
0x1b98   :  { %7731 = vmatprep.subr.bf16.mxu0 %v21358_v4  ;;  %7875 = vmatprep.subr.bf16.mxu1 %v21359_v17  ;;  %v21375_v4 = vld [vmem:[#allocation81_spill] sm:$0xff]  ;;  %v21376_v17 = vld [vmem:[#allocation82_spill] sm:$0xff] }
0x1b9b   :  { %7732 = vmatpush1.bf16.msra.mxu0 %v21360_v20  ;;  %7876 = vmatpush1.bf16.msra.mxu1 %v21361_v30  ;;  %v21378_v20 = vld [vmem:[#allocation84_spill] sm:$0xff]  ;;  %v21379_v30 = vld [vmem:[#allocation85_spill] sm:$0xff] }
0x1b9c   :  { %7733 = vmatprep.subr.bf16.mxu0 %v21362_v55  ;;  %12038 = vmatprep.subr.msk.bf16.mxu1 %vm21364_vm12, %v21363_v59  ;;  %vm21372_vm12 = vmmov %vm21369_vm10  ;;  %v21380_v55 = vld [vmem:[#allocation86_spill] sm:$0xff] }
0x1b9f   :  { %7734 = vmatpush1.bf16.msra.mxu0 %v21365_v53  ;;  %7878 = vmatpush1.bf16.msra.mxu1 %v21366_v29  ;;  %v21381_v53 = vld [vmem:[#allocation87_spill] sm:$0xff] }
0x1ba0   :  { %12032 = vmatprep.subr.msk.bf16.mxu0 %vm21368_vm2, %v21367_v38  ;;  %13368 = vmatprep.subr.bf16.mxu1 %v20571_v44 }
0x1ba2   :  { %12039 = vmatmul.mubr.msk.bf16.vlgmr.msra.gmra.mrb[200].mxu1 %vm21369_vm10, %v7859_v24  ;;  %v21382_v24 = vld [vmem:[#allocation88_spill] sm:$0xff]  ;;  %vm21387_vm10 = vmmov %vm21368_vm2 }
0x1ba3   :  { %7736 = vmatpush1.bf16.msra.mxu0 %v21370_v41  ;;  %13370 = vmatpush1.bf16.msk.msra.mxu1 %vm20574_vm8, %v20573_v5  ;;  %vm21389_vm2 = vmmov %vm21372_vm12 }
0x1ba4   :  { %7816 = vmatprep.subr.bf16.mxu0 %v21371_v62  ;;  %13371 = vmatprep.subr.bf16.mxu1 %v20571_v44  ;;  %v21383_v62 = vld [vmem:[#allocation89_spill] sm:$0xff] }
0x1ba6   :  { %12033 = vmatmul.mubr.msk.bf16.vlgmr.msra.gmra.mrb[192].mxu0 %vm21372_vm12, %v7667_v3  ;;  %v21377_v3 = vld [vmem:[#allocation83_spill] sm:$0xff]  ;;  %vm21390_vm12 = vcmask 64512  }
0x1ba7   :  { %7817 = vmatpush1.bf16.msra.mxu0 %v21373_v49  ;;  %7848 = vmatprep.mubr.bf16.mxu0 %v20543_v48  ;;  %v21384_v49 = vld [vmem:[#allocation92_spill] sm:$0xff] }
0x1ba8   :  { %7818 = vmatprep.subr.bf16.mxu0 %v21374_v54  ;;  %13373 = vmatpush1.bf16.msk.msra.mxu1 %vm20578_vm9, %v20573_v5  ;;  %v21385_v54 = vld [vmem:[#allocation93_spill] sm:$0xff] }
0x1ba9   :  { %13374 = vmatprep.subr.bf16.mxu1 %v20571_v44 }
0x1bab   :  { %7819 = vmatpush1.bf16.msra.mxu0 %v21375_v4  ;;  %v21386_v4 = vld [vmem:[#allocation90_spill] sm:$0xff] }
0x1bac   :  { %7820 = vmatprep.subr.bf16.mxu0 %v21376_v17  ;;  %13376 = vmatpush1.bf16.msk.msra.mxu1 %vm20735_vm15, %v20573_v5  ;;  %v21388_v17 = vld [vmem:[#allocation91_spill] sm:$0xff] }
0x1bad   :  { %13377 = vmatprep.subr.bf16.mxu1 %v20571_v44 }
0x1baf   :  { %7821 = vmatpush1.bf16.msra.mxu0 %v21377_v3 }
0x1bb0   :  { %7822 = vmatprep.subr.bf16.mxu0 %v21378_v20  ;;  %13379 = vmatpush1.bf16.msk.msra.mxu1 %vm20629_vm7, %v20573_v5 }
0x1bb1   :  { %13380 = vmatprep.subr.bf16.mxu1 %v20571_v44 }
0x1bb3   :  { %7823 = vmatpush1.bf16.msra.mxu0 %v21379_v30 }
0x1bb4   :  { %7824 = vmatprep.subr.bf16.mxu0 %v21380_v55  ;;  %13382 = vmatpush1.bf16.msk.msra.mxu1 %vm20630_vm6, %v20573_v5 }
0x1bb5   :  { %13383 = vmatprep.subr.bf16.mxu1 %v20571_v44 }
0x1bb7   :  { %7825 = vmatpush1.bf16.msra.mxu0 %v21381_v53 }
0x1bb8   :  { %7826 = vmatprep.subr.bf16.mxu0 %v21382_v24  ;;  %13385 = vmatpush1.bf16.msk.msra.mxu1 %vm20785_vm1, %v20573_v5 }
0x1bb9   :  { %13386 = vmatprep.subr.bf16.mxu1 %v20571_v44 }
0x1bbb   :  { %7827 = vmatpush1.bf16.msra.mxu0 %v21383_v62 }
0x1bbc   :  { %7828 = vmatprep.subr.bf16.mxu0 %v21384_v49  ;;  %13388 = vmatpush1.bf16.msk.msra.mxu1 %vm20786_vm3, %v20573_v5 }
0x1bbd   :  { %13389 = vmatprep.subr.bf16.mxu1 %v20571_v44 }
0x1bbf   :  { %7829 = vmatpush1.bf16.msra.mxu0 %v21385_v54 }
0x1bc0   :  { %12036 = vmatprep.subr.msk.bf16.mxu0 %vm21387_vm10, %v21386_v4  ;;  %13391 = vmatpush1.bf16.msk.msra.mxu1 %vm20909_vm11, %v20573_v5  ;;  %vm21391_vm10 = vmmov %vm21390_vm12 }
0x1bc1   :  { %13392 = vmatprep.subr.bf16.mxu1 %v20571_v44 }
0x1bc3   :  { %7831 = vmatpush1.bf16.msra.mxu0 %v21388_v17 }
0x1bc4   :  { %13394 = vmatpush1.bf16.msk.msra.mxu1 %vm20911_vm4, %v20573_v5 }
0x1bc5   :  { %13395 = vmatprep.subr.bf16.mxu1 %v20571_v44 }
0x1bc6   :  { %12037 = vmatmul.mubr.msk.bf16.vlgmr.msra.gmra.mrb[196].mxu0 %vm21389_vm2, %v7812_v35  ;;  %vm21392_vm2 = vnez %v20441_v11 }
0x1bc7   :  { %7974 = vmatprep.mubr.f32.mxu0 %v20601_v58 }
0x1bc8   :  { %13397 = vmatpush1.bf16.msk.msra.mxu1 %vm21070_vm0, %v20573_v5 }
0x1c55   :  { %v7801_v3 = vpop.f32.mrb[196].mxu1 }
0x1c56   :  { %v7803_v20 = vpop.f32.mrb[197].mxu1 }
0x1c57   :  { %v7805_v30 = vpop.f32.mrb[198].mxu1 }
0x1c58   :  { %v7806_v55 = vpop.f32.mrb[199].mxu1 }
0x1c59   :  { %v7712_v53 = vpop.f32.mrb[188].mxu0 }
0x1c5a   :  { %v7714_v24 = vpop.f32.mrb[189].mxu0 }
0x1c5b   :  { %v7716_v62 = vpop.f32.mrb[190].mxu0 }
0x1c5c   :  { %v7717_v49 = vpop.f32.mrb[191].mxu0 }
0x1c75   :  { %v7897_v54 = vpop.f32.mrb[200].mxu1 }
0x1c76   :  { %v7899_v17 = vpop.f32.mrb[201].mxu1 }
0x1c77   :  { %v7901_v4 = vpop.f32.mrb[202].mxu1 }
0x1c78   :  { %v7902_v13 = vpop.f32.mrb[203].mxu1 }
0x1c79   :  { %v7755_v57 = vpop.f32.mrb[192].mxu0 }
0x1c7a   :  { %v7756_v35 = vadd.f32 %v7755_v57, %v7712_v53  ;;  %v7757_v41 = vpop.f32.mrb[193].mxu0 }
0x1c7b   :  { %v7758_v38 = vadd.f32 %v7757_v41, %v7714_v24  ;;  %v7759_v29 = vpop.f32.mrb[194].mxu0 }
0x1c7c   :  { %v7760_v59 = vpop.f32.mrb[195].mxu0  ;;  %v7808_v7 = vadd.f32 %v7801_v3, %v7756_v35 }
0x1c7d   :  { %v7809_v51 = vadd.f32 %v7803_v20, %v7758_v38 }
0x1c99   :  { %v7850_v1 = vpop.f32.mrb[196].mxu0 }
0x1c9a   :  { %v7857_v9 = vadd.f32 %v7850_v1, %v7808_v7  ;;  %v7852_v30 = vpop.f32.mrb[197].mxu0  ;;  %v12087_v1 = vld [vmem:[%s19961_s0 + $0xd8] sm:$0xf] }
0x1c9b   :  { %v7858_v55 = vadd.f32 %v7852_v30, %v7809_v51  ;;  %v7854_v50 = vpop.f32.mrb[198].mxu0 }
0x1c9c   :  { %v7904_v43 = vadd.f32 %v7897_v54, %v7857_v9  ;;  %v7855_v62 = vpop.f32.mrb[199].mxu0  ;;  %v12086_v9 = vld [vmem:[%s19961_s0 + $0xd0] sm:$0xff] }
0x1c9d   :  { %v7905_v49 = vadd.f32 %v7899_v17, %v7858_v55  ;;  %v18611_v7 = vpack.c.bf16 %v12087_v1, %v12086_v9  ;;  %v21418_v9 = vld [vmem:[#allocation97_spill] sm:$0xff]  ;;  %v21419_v1 = vld [vmem:[#allocation100_spill] sm:$0xff] }
0x1c9e   :  { %v7906_v33 = vadd.f32 %v7904_v43, %v15486_v21  ;;  %v12085_v43 = vld [vmem:[%s19961_s0 + $0xc8] sm:$0xff] }
0x1c9f   :  { %v7907_v4 = vadd.f32 %v7905_v49, %v15490_v2  ;;  %v8229_v24 = vshll.u32 %v18611_v7, 16  ;;  %v8233_v30 = vshrl.u32 %v18611_v7, 16  ;;  %v21414_v49 = vld [vmem:[#allocation3_spill] sm:$0xff] }
0x1ca0   :  { %v7908_v53 = vmax.f32 %v7906_v33, 0.0  ;;  %v12084_v33 = vld [vmem:[%s19961_s0 + $0xc0] sm:$0xff] }
0x1ca1   :  { %v7909_v13 = vmax.f32 %v7907_v4, 0.0  ;;  %v18603_v50 = vpack.c.bf16 %v12085_v43, %v12084_v33  ;;  %v8231_v57 = vrot.slane %v8229_v24, 1  ;;  %v8420_v55 = vrot.slane %v8229_v24, 2 }
0x1ca2   :  { %v8419_v62 = vrot.slane %v8233_v30, 1 }
0x1ca3   :  { %7910 = vmatprep.subr.mxu0 %v7909_v13  ;;  %v8224_v59 = vshll.u32 %v18603_v50, 16  ;;  %v8222_v3 = vshrl.u32 %v18603_v50, 16 }
0x1ca4   :  { %7911 = vmatpush1.msra.mxu0 %v7908_v53  ;;  %v8421_v33 = vor.u32 %v8420_v55, %v8419_v62 }
0x1ca5   :  { %12040 = vmatmul.mubr.msk.f32.vlgmr.msra.gmra.mrb[186].mxu0 %vm21390_vm12, %v14807_v12  ;;  %7981 = vmatprep.subr.mxu0 %v7909_v13  ;;  %vm21393_vm12 = vnez %v20445_v15  ;;  %v8226_v20 = vrot.slane %v8224_v59, 1  ;;  %v8417_v4 = vrot.slane %v8224_v59, 2  ;;  %v21415_v13 = vld [vmem:[#allocation96_spill] sm:$0xff]  ;;  %v8487_v59 = vrot.slane %v18611_v7, 2 }
0x1ca6   :  { %7982 = vmatpush1.msra.mxu0 %v7908_v53  ;;  %8045 = vmatprep.mubr.f32.mxu0 %v20601_v58 }
0x1ca7   :  { %13338 = vmatprep.subr.bf16.mxu0 %v20571_v44  ;;  %v8227_v54 = vor.u32 %v8226_v20, %v8222_v3  ;;  %v18737_v20 = vld [vmem:[%s19963_s3 + $0xf4] ss:$8 sps:$4 sm:$0xff]  }
0x1ca9   :  { %12041 = vmatmul.mubr.msk.f32.vlgmr.msra.gmra.mrb[200].mxu0 %vm21391_vm10, %v14826_v16  ;;  %vm21394_vm10 = vnez %v20449_v19 }
0x1caa   :  { %13340 = vmatpush1.bf16.msk.msra.mxu0 %vm14828_vm5, %v20573_v5 }
0x1cab   :  { %13341 = vmatprep.subr.bf16.mxu0 %v20571_v44 }
0x1cae   :  { %13343 = vmatpush1.bf16.msk.msra.mxu0 %vm14593_vm14, %v20573_v5 }
0x1caf   :  { %13344 = vmatprep.subr.bf16.mxu0 %v20571_v44 }
0x1cb2   :  { %13346 = vmatpush1.bf16.msk.msra.mxu0 %vm21392_vm2, %v20573_v5  ;;  %vm21396_vm2 = vnez %v20457_v28 }
0x1cb3   :  { %13347 = vmatprep.subr.bf16.mxu0 %v20571_v44 }
0x1cb6   :  { %13349 = vmatpush1.bf16.msk.msra.mxu0 %vm21393_vm12, %v20573_v5  ;;  %vm21397_vm12 = vnez %v20461_v32 }
0x1cb7   :  { %13350 = vmatprep.subr.bf16.mxu0 %v20571_v44 }
0x1cba   :  { %13352 = vmatpush1.bf16.msk.msra.mxu0 %vm21394_vm10, %v20573_v5  ;;  %vm21398_vm10 = vnez %v20465_v37 }
0x1cbb   :  { %13353 = vmatprep.subr.bf16.mxu0 %v20571_v44 }
0x1cbe   :  { %13355 = vmatpush1.bf16.msk.msra.mxu0 %vm21395_vm13, %v20573_v5  ;;  %vm21399_vm13 = vnez %v20469_v42 }
0x1cbf   :  { %13356 = vmatprep.subr.bf16.mxu0 %v20571_v44 }
0x1cc2   :  { %13358 = vmatpush1.bf16.msk.msra.mxu0 %vm21396_vm2, %v20573_v5  ;;  %vm21403_vm2 = vsmask.f32 7424 }
0x1cc3   :  { %13359 = vmatprep.subr.bf16.mxu0 %v20571_v44  ;;  %v8232_v35 = vsel %vm21403_vm2, %v8227_v54, %v8231_v57 }
0x1cc6   :  { %13361 = vmatpush1.bf16.msk.msra.mxu0 %vm21397_vm12, %v20573_v5  ;;  %vm21402_vm12 = vcmask 1045504  }
0x1cc7   :  { %13362 = vmatprep.subr.bf16.mxu0 %v20571_v44 }
0x1cca   :  { %13364 = vmatpush1.bf16.msk.msra.mxu0 %vm21398_vm10, %v20573_v5 }
0x1ccb   :  { %13365 = vmatprep.subr.bf16.mxu0 %v20571_v44 }
0x1cce   :  { %13367 = vmatpush1.bf16.msk.msra.mxu0 %vm21399_vm13, %v20573_v5  ;;  %vm21400_vm13 = vcmask 261120  }
0x1ccf   :  { %8242 = vmatprep.subr.bf16.mxu0 %v18076_v60  ;;  %vm21401_vm10 = vmmov %vm21400_vm13 }
0x1d78   :  { %v7976_v51 = vpop.f32.mrb[186].mxu0 }
0x1d79   :  { %v7978_v60 = vpop.f32.mrb[187].mxu0 }
0x1d7c   :  { %v8047_v29 = vpop.f32.mrb[200].mxu0 }
0x1d7d   :  { %v8052_v38 = vmax.f32 %v7976_v51, %v8047_v29  ;;  %v8049_v41 = vpop.f32.mrb[201].mxu0  ;;  %v21420_v51 = vld [vmem:[#allocation4_spill] sm:$0xff] }
0x1d7e   :  { %v8053_v17 = vmax.f32 %v7978_v60, %v8049_v41  ;;  %v8486_v60 = vrot.slane %v18603_v50, 2  ;;  %v21429_v41 = vld [vmem:[#allocation15_spill] sm:$0xff] }
0x1d80   :  { %12062 = vmatprep.mubr.msk.f32.mxu0 %vm21400_vm13, %v8053_v17  ;;  %12083 = vmatprep.mubr.msk.f32.mxu1 %vm21401_vm10, %v8053_v17  ;;  %vm21404_vm13 = vcmask 228352   ;;  %vm21405_vm10 = vmmov %vm21402_vm12  ;;  %v21431_v17 = vld [vmem:[#allocation17_spill] sm:$0xff] }
0x1d81   :  { %8122 = vmatmul.mubr.f32.vlgmr.msra.gmra.mrb[202].mxu0 %v8052_v38  ;;  %8192 = vmatmul.mubr.f32.vlgmr.msra.gmra.mrb[194].mxu1 %v8052_v38  ;;  %v21427_v38 = vld [vmem:[#allocation9_spill] sm:$0xff] }
0x1d82   :  { %8243 = vmatpush1.bf16.msra.mxu0 %v18103_v46  ;;  %8274 = vmatprep.mubr.bf16.mxu0 %v20543_v48  ;;  %v8235_v46 = vor.u32 %v8233_v30, %v8231_v57 }
0x1d83   :  { %12088 = vmatprep.subr.msk.bf16.mxu0 %vm21402_vm12, %v18110_v47  ;;  %8628 = vmatprep.mubr.f32.mxu1 %v20601_v58  ;;  %vm21406_vm12 = vmmov %vm21404_vm13  ;;  %v21409_v47 = vld [vmem:[#allocation2_spill] sm:$0xff] }
0x1d84   :  { %vm21407_vm2 = vmmov %vm21406_vm12 }
0x1d86   :  { %8245 = vmatpush1.bf16.msra.mxu0 %v14442_v8 }
0x1d87   :  { %8297 = vmatprep.subr.bf16.mxu0 %v18120_v25  ;;  %v8350_v25 = vrot.slane %v18603_v50, 1 }
0x1d89   :  { %12089 = vmatmul.mubr.msk.bf16.vlgmr.msra.gmra.mrb[204].mxu0 %vm21404_vm13, %v8232_v35  ;;  %vm21408_vm13 = vmmov %vm21405_vm10 }
0x1d8a   :  { %8284 = vmatprep.mubr.bf16.mxu0 %v20543_v48  ;;  %8298 = vmatpush1.bf16.msra.mxu0 %v18129_v34  ;;  %v8351_v34 = vrot.slane %v18611_v7, 1 }
0x1d8b   :  { %12091 = vmatprep.subr.msk.bf16.mxu0 %vm21405_vm10, %v18135_v39  ;;  %vm21410_vm10 = vmmov %vm21407_vm2 }
0x1d8e   :  { %8300 = vmatpush1.bf16.msra.mxu0 %v14473_v27 }
0x1d8f   :  { %8359 = vmatprep.subr.bf16.mxu0 %v18143_v63  ;;  %v21412_v63 = vld [vmem:[#allocation94_spill] sm:$0xff] }
0x1d91   :  { %12090 = vmatmul.mubr.msk.bf16.gmra.mrb[208].mxu0 %vm21406_vm12, %v8235_v46  ;;  %vm21411_vm12 = vcmask 1046528   ;;  %v21436_v46 = vld [vmem:[#allocation101_spill] sm:$0xff] }
0x1d92   :  { %8329 = vmatprep.mubr.bf16.mxu0 %v20543_v48  ;;  %v8352_v39 = vsel %vm21411_vm12, %v8350_v25, %v8351_v34  ;;  %vm21417_vm12 = vsmask.f32 6400  ;;  %v6994_v55 = vrot.slane %v21436_v46, 3 }
0x1d99   :  { %12092 = vmatmul.mubr.msk.bf16.vlgmr.msra.gmra.mrb[204].mxu0 %vm21407_vm2, %v18603_v50 }
0x1d9a   :  { %8339 = vmatprep.mubr.bf16.mxu0 %v20543_v48  ;;  %8360 = vmatpush1.bf16.msra.mxu0 %v18154_v45  ;;  %v21413_v45 = vld [vmem:[#allocation95_spill] sm:$0xff] }
0x1d9b   :  { %12094 = vmatprep.subr.msk.bf16.mxu0 %vm21408_vm13, %v18160_v52  ;;  %v8416_v52 = vrot.slane %v8222_v3, 1  ;;  %v21433_v3 = vld [vmem:[#allocation19_spill] sm:$0xff] }
0x1d9d   :  { %v8418_v53 = vor.u32 %v8417_v4, %v8416_v52 }
0x1d9e   :  { %8362 = vmatpush1.bf16.msra.mxu0 %v20769_v56 }
0x1d9f   :  { %8429 = vmatprep.subr.bf16.mxu0 %v21409_v47  ;;  %v8422_v43 = vsel %vm21417_vm12, %v8418_v53, %v8421_v33  ;;  %vm21422_vm12 = vmmov %vm21408_vm13  ;;  %v6990_v47 = vrot.slane %v21436_v46, 2 }
0x1da0   :  { %v8488_v29 = vsel %vm21422_vm12, %v8486_v60, %v8487_v59  ;;  %vm21428_vm12 = vnez %v21427_v38 }
0x1da1   :  { %12093 = vmatmul.mubr.msk.bf16.gmra.mrb[212].mxu0 %vm21410_vm10, %v18611_v7  ;;  %vm21416_vm10 = vmmov %vm21407_vm2  ;;  %v21425_v7 = vld [vmem:[#allocation7_spill] sm:$0xff] }
0x1da2   :  { %8391 = vmatprep.mubr.bf16.mxu0 %v20543_v48 }
0x1da9   :  { %12095 = vmatmul.mubr.msk.bf16.vlgmr.msra.gmra.mrb[204].mxu0 %vm21407_vm2, %v8352_v39 }
0x1daa   :  { %8401 = vmatprep.mubr.bf16.mxu0 %v20543_v48  ;;  %8430 = vmatpush1.bf16.msra.mxu0 %v21412_v63 }
0x1dab   :  { %12097 = vmatprep.subr.msk.bf16.mxu0 %vm21408_vm13, %v21413_v45 }
0x1dae   :  { %8432 = vmatpush1.bf16.msra.mxu0 %v21414_v49 }
0x1daf   :  { %8495 = vmatprep.subr.bf16.mxu0 %v21415_v13 }
0x1db1   :  { %12096 = vmatmul.mubr.msk.bf16.gmra.mrb[216].mxu0 %vm21416_vm10, %v8351_v34  ;;  %vm21421_vm10 = vmmov %vm21407_vm2  ;;  %v6986_v34 = vrot.slane %v21436_v46, 1  ;;  %v21469_v46 = vld [vmem:[#allocation106_spill] sm:$0xff] }
0x1db2   :  { %8461 = vmatprep.mubr.bf16.mxu0 %v20543_v48 }
0x1db9   :  { %12098 = vmatmul.mubr.msk.bf16.vlgmr.msra.gmra.mrb[204].mxu0 %vm21407_vm2, %v8422_v43 }
0x1dba   :  { %8471 = vmatprep.mubr.bf16.mxu0 %v20543_v48  ;;  %8496 = vmatpush1.bf16.msra.mxu0 %v21418_v9 }
0x1dbb   :  { %12100 = vmatprep.subr.msk.bf16.mxu0 %vm21408_vm13, %v21419_v1  ;;  %vm21423_vm13 = vmmov %vm21407_vm2 }
0x1dbe   :  { %8498 = vmatpush1.bf16.msra.mxu0 %v21420_v51 }
0x1dbf   :  { %13451 = vmatprep.subr.bf16.mxu0 %v20571_v44 }
0x1dc1   :  { %12099 = vmatmul.mubr.msk.bf16.gmra.mrb[220].mxu0 %vm21421_vm10, %v8421_v33  ;;  %vm21426_vm10 = vnez %v21425_v7 }
0x1dc2   :  { %8527 = vmatprep.mubr.bf16.mxu0 %v20543_v48 }
0x1dc9   :  { %12101 = vmatmul.mubr.msk.bf16.vlgmr.msra.gmra.mrb[204].mxu0 %vm21407_vm2, %v8488_v29  ;;  %vm21430_vm2 = vnez %v21429_v41 }
0x1dca   :  { %8537 = vmatprep.mubr.bf16.mxu0 %v20543_v48  ;;  %13453 = vmatpush1.bf16.msk.msra.mxu0 %vm20574_vm8, %v20573_v5 }
0x1dcb   :  { %13454 = vmatprep.subr.bf16.mxu0 %v20571_v44 }
0x1dce   :  { %13456 = vmatpush1.bf16.msk.msra.mxu0 %vm20578_vm9, %v20573_v5 }
0x1dcf   :  { %13457 = vmatprep.subr.bf16.mxu0 %v20571_v44 }
0x1dd1   :  { %12102 = vmatmul.mubr.msk.bf16.gmra.mrb[224].mxu0 %vm21423_vm13, %v8487_v59  ;;  %vm21432_vm13 = vnez %v21431_v17 }
0x1dd2   :  { %13459 = vmatpush1.bf16.msk.msra.mxu0 %vm20735_vm15, %v20573_v5 }
0x1dd3   :  { %13460 = vmatprep.subr.bf16.mxu0 %v20571_v44 }
0x1dd6   :  { %13462 = vmatpush1.bf16.msk.msra.mxu0 %vm20629_vm7, %v20573_v5 }
0x1dd7   :  { %13463 = vmatprep.subr.bf16.mxu0 %v20571_v44 }
0x1dda   :  { %13465 = vmatpush1.bf16.msk.msra.mxu0 %vm20630_vm6, %v20573_v5 }
0x1ddb   :  { %13466 = vmatprep.subr.bf16.mxu0 %v20571_v44 }
0x1dde   :  { %13468 = vmatpush1.bf16.msk.msra.mxu0 %vm20785_vm1, %v20573_v5 }
0x1ddf   :  { %13469 = vmatprep.subr.bf16.mxu0 %v20571_v44 }
0x1de2   :  { %13471 = vmatpush1.bf16.msk.msra.mxu0 %vm20786_vm3, %v20573_v5 }
0x1de3   :  { %13472 = vmatprep.subr.bf16.mxu0 %v20571_v44 }
0x1de6   :  { %13474 = vmatpush1.bf16.msk.msra.mxu0 %vm20909_vm11, %v20573_v5 }
0x1de7   :  { %13475 = vmatprep.subr.bf16.mxu0 %v20571_v44 }
0x1dea   :  { %13477 = vmatpush1.bf16.msk.msra.mxu0 %vm20911_vm4, %v20573_v5 }
0x1deb   :  { %13478 = vmatprep.subr.bf16.mxu0 %v20571_v44 }
0x1dee   :  { %13480 = vmatpush1.bf16.msk.msra.mxu0 %vm21070_vm0, %v20573_v5 }
0x1def   :  { %13481 = vmatprep.subr.bf16.mxu0 %v20571_v44 }
0x1df2   :  { %13483 = vmatpush1.bf16.msk.msra.mxu0 %vm21426_vm10, %v20573_v5  ;;  %vm21434_vm10 = vnez %v21433_v3 }
0x1df3   :  { %13484 = vmatprep.subr.bf16.mxu0 %v20571_v44 }
0x1df6   :  { %13486 = vmatpush1.bf16.msk.msra.mxu0 %vm21428_vm12, %v20573_v5  ;;  %vm21448_vm12 = vnez %v20453_v23 }
0x1df7   :  { %13487 = vmatprep.subr.bf16.mxu0 %v20571_v44 }
0x1dfa   :  { %13489 = vmatpush1.bf16.msk.msra.mxu0 %vm21430_vm2, %v20573_v5 }
0x1dfb   :  { %13490 = vmatprep.subr.bf16.mxu0 %v20571_v44 }
0x1dfe   :  { %13492 = vmatpush1.bf16.msk.msra.mxu0 %vm21432_vm13, %v20573_v5 }
0x1dff   :  { %13493 = vmatprep.subr.bf16.mxu0 %v20571_v44 }
0x1e02   :  { %13495 = vmatpush1.bf16.msk.msra.mxu0 %vm21434_vm10, %v20573_v5  ;;  %vm21439_vm10 = vcmask 195584  }
0x1e03   :  { %8980 = vmatprep.subr.bf16.mxu0 %v18737_v20  ;;  %vm21441_vm13 = vmmov %vm21439_vm10 }
0x1e04   :  { %vm21442_vm2 = vmmov %vm21439_vm10 }
0x1e54   :  { %v8123_v24 = vpop.f32.mrb[202].mxu0  ;;  %v8193_v54 = vpop.f32.mrb[194].mxu1 }
0x1e55   :  { %v18740_v57 = vmax.f32 %v8123_v24, %v8193_v54  ;;  %v8125_v35 = vpop.f32.mrb[203].mxu0  ;;  %v8195_v30 = vpop.f32.mrb[195].mxu1 }
0x1e57   :  { %21435 = vst [vmem:[#allocation22_spill] sm:$0xff] %v18740_v57  ;;  %v8203_v25 = vrot.slane %v18740_v57, 2  ;;  %v8199_v39 = vrot.slane %v18740_v57, 1  ;;  %v8207_v52 = vrot.slane %v18740_v57, 3 }
0x1e59   :  { %v13885_v63 = vpack.i.bf16 %v8203_v25, %v6990_v47  ;;  %v13880_v45 = vpack.i.bf16 %v8199_v39, %v6986_v34  ;;  %v13890_v62 = vpack.i.bf16 %v8207_v52, %v6994_v55 }
0x1e5b   :  { %13886 = vrot.lane.b32.xlu1 %v13885_v63, %s14366_s11  ;;  %13881 = vrot.lane.b32.xlu0 %v13880_v45, %s14365_s10 }
0x1e5f   :  { %13891 = vrot.lane.b32.xlu0 %v13890_v62, %s14364_s30 }
0x1e64   :  { %v8286_v4 = vpop.f32.mrb[208].mxu0 }
0x1e65   :  { %v8288_v13 = vpop.f32.mrb[209].mxu0 }
0x1e66   :  { %v8290_v53 = vpop.f32.mrb[210].mxu0 }
0x1e67   :  { %v8291_v33 = vpop.f32.mrb[211].mxu0  ;;  %v21437_v53 = vld [vmem:[#allocation10_spill] sm:$0xff] }
0x1e74   :  { %v8341_v43 = vpop.f32.mrb[212].mxu0 }
0x1e75   :  { %v8342_v9 = vadd.f32 %v8341_v43, %v8286_v4  ;;  %v8343_v1 = vpop.f32.mrb[213].mxu0  ;;  %v21438_v43 = vld [vmem:[#allocation11_spill] sm:$0xff] }
0x1e76   :  { %v8344_v60 = vadd.f32 %v8343_v1, %v8288_v13  ;;  %v8345_v59 = vpop.f32.mrb[214].mxu0 }
0x1e77   :  { %v8346_v29 = vpop.f32.mrb[215].mxu0 }
0x1e84   :  { %v8403_v24 = vpop.f32.mrb[216].mxu0 }
0x1e85   :  { %v8414_v54 = vadd.f32 %v8403_v24, %v8342_v9  ;;  %v8405_v35 = vpop.f32.mrb[217].mxu0 }
0x1e86   :  { %v8415_v30 = vadd.f32 %v8405_v35, %v8344_v60  ;;  %v8407_v47 = vpop.f32.mrb[218].mxu0 }
0x1e87   :  { %v8408_v25 = vpop.f32.mrb[219].mxu0 }
0x1e94   :  { %v8473_v34 = vpop.f32.mrb[220].mxu0 }
0x1e95   :  { %v8484_v39 = vadd.f32 %v8473_v34, %v8414_v54  ;;  %v8475_v63 = vpop.f32.mrb[221].mxu0 }
0x1e96   :  { %v8485_v45 = vadd.f32 %v8475_v63, %v8415_v30  ;;  %v8477_v52 = vpop.f32.mrb[222].mxu0 }
0x1e97   :  { %v8478_v55 = vpop.f32.mrb[223].mxu0 }
0x1e9c   :  { %v8529_v62 = vpop.f32.mrb[204].mxu0 }
0x1e9d   :  { %v8552_v33 = vadd.f32 %v8529_v62, %v21437_v53  ;;  %v8531_v4 = vpop.f32.mrb[205].mxu0 }
0x1e9e   :  { %v8553_v13 = vadd.f32 %v8531_v4, %v21438_v43  ;;  %v8533_v1 = vpop.f32.mrb[206].mxu0 }
0x1e9f   :  { %v8554_v59 = vadd.f32 %v8533_v1, %v21437_v53  ;;  %v8535_v9 = vpop.f32.mrb[207].mxu0  ;;  %v8558_v29 = vmax.f32 %v8552_v33, 0.0  ;;  %v21455_v33 = vld [vmem:[#allocation8_spill] sm:$0xff] }
0x1ea0   :  { %v8555_v60 = vadd.f32 %v8535_v9, %v21438_v43  ;;  %v8559_v35 = vmax.f32 %v8553_v13, 0.0  ;;  %v21457_v13 = vld [vmem:[#allocation14_spill] sm:$0xff] }
0x1ea1   :  { %v8560_v24 = vmax.f32 %v8554_v59, 0.0  ;;  %v21459_v59 = vld [vmem:[#allocation16_spill] sm:$0xff] }
0x1ea2   :  { %v8561_v54 = vmax.f32 %v8555_v60, 0.0  ;;  %v21461_v60 = vld [vmem:[#allocation18_spill] sm:$0xff] }
0x1ea3   :  { %v13400_v47 = vpack.c.bf16 %v8560_v24, %v8558_v29  ;;  %v21463_v29 = vld [vmem:[#allocation102_spill] sm:$0xff] }
0x1ea4   :  { %v13398_v30 = vpack.c.bf16 %v8561_v54, %v8559_v35  ;;  %v8539_v25 = vpop.f32.mrb[224].mxu0 }
0x1ea5   :  { %v8550_v34 = vadd.f32 %v8539_v25, %v8484_v39  ;;  %v8541_v63 = vpop.f32.mrb[225].mxu0  ;;  %v21440_v39 = vld [vmem:[#allocation12_spill] sm:$0xff] }
0x1ea6   :  { %v8551_v52 = vadd.f32 %v8541_v63, %v8485_v45  ;;  %v8543_v55 = vpop.f32.mrb[226].mxu0  ;;  %13399 = vmatprep.subr.bf16.mxu1 %v13398_v30  ;;  %v21453_v45 = vld [vmem:[#allocation6_spill] sm:$0xff] }
0x1ea7   :  { %v8556_v62 = vadd.f32 %v8550_v34, %v21437_v53  ;;  %v8544_v4 = vpop.f32.mrb[227].mxu0  ;;  %13401 = vmatpush1.bf16.msra.mxu1 %v13400_v47 }
0x1ea8   :  { %v8557_v1 = vadd.f32 %v8551_v52, %v21438_v43 }
0x1ea9   :  { %v8562_v9 = vmax.f32 %v8556_v62, 0.0 }
0x1eaa   :  { %v8563_v57 = vmax.f32 %v8557_v1, 0.0  ;;  %v21466_v1 = vld [vmem:[#allocation103_spill] sm:$0xff] }
0x1eac   :  { %8568 = vmatprep.subr.mxu1 %v8563_v57 }
0x1ead   :  { %8569 = vmatpush1.msra.mxu1 %v8562_v9 }
0x1eae   :  { %12103 = vmatmul.mubr.msk.f32.vlgmr.msra.gmra.mrb[204].mxu1 %vm21439_vm10, %v14807_v12  ;;  %13403 = vmatprep.subr.bf16.mxu1 %v13398_v30  ;;  %vm21444_vm10 = vmmov %vm21442_vm2 }
0x1eaf   :  { %13405 = vmatpush1.bf16.msra.mxu1 %v13400_v47  ;;  %8634 = vmatprep.mubr.f32.mxu1 %v20601_v58 }
0x1eb0   :  { %8645 = vmatprep.subr.mxu1 %v8563_v57  ;;  %v21443_v57 = vld [vmem:[#allocation13_spill] sm:$0xff] }
0x1eb2   :  { %12104 = vmatmul.mubr.msk.f32.gmra.mrb[206].mxu1 %vm21441_vm13, %v21440_v39  ;;  %vm21446_vm13 = vnez %v20445_v15 }
0x1eb3   :  { %8646 = vmatpush1.msra.mxu1 %v8562_v9  ;;  %8705 = vmatprep.mubr.f32.mxu1 %v20601_v58  ;;  %v21467_v9 = vld [vmem:[#allocation104_spill] sm:$0xff] }
0x1eb4   :  { %13406 = vmatprep.subr.bf16.mxu1 %v20571_v44 }
0x1eb6   :  { %12105 = vmatmul.mubr.msk.f32.vlgmr.msra.gmra.mrb[208].mxu1 %vm21442_vm2, %v14826_v16  ;;  %vm21445_vm2 = vnez %v20441_v11 }
0x1eb7   :  { %8711 = vmatprep.mubr.f32.mxu1 %v20601_v58  ;;  %13408 = vmatpush1.bf16.msk.msra.mxu1 %vm14828_vm5, %v20573_v5 }
0x1eb8   :  { %13409 = vmatprep.subr.bf16.mxu1 %v20571_v44 }
0x1eba   :  { %12106 = vmatmul.mubr.msk.f32.gmra.mrb[210].mxu1 %vm21444_vm10, %v21443_v57  ;;  %vm21447_vm10 = vnez %v20449_v19 }
0x1ebb   :  { %13411 = vmatpush1.bf16.msk.msra.mxu1 %vm14593_vm14, %v20573_v5 }
0x1ebc   :  { %13412 = vmatprep.subr.bf16.mxu1 %v20571_v44 }
0x1ebf   :  { %13414 = vmatpush1.bf16.msk.msra.mxu1 %vm21445_vm2, %v20573_v5  ;;  %vm21449_vm2 = vnez %v20457_v28 }
0x1ec0   :  { %13415 = vmatprep.subr.bf16.mxu1 %v20571_v44 }
0x1ec3   :  { %13417 = vmatpush1.bf16.msk.msra.mxu1 %vm21446_vm13, %v20573_v5  ;;  %vm21450_vm13 = vnez %v20461_v32 }
0x1ec4   :  { %13418 = vmatprep.subr.bf16.mxu1 %v20571_v44 }
0x1ec7   :  { %13420 = vmatpush1.bf16.msk.msra.mxu1 %vm21447_vm10, %v20573_v5  ;;  %vm21451_vm10 = vnez %v20465_v37 }
0x1ec8   :  { %13421 = vmatprep.subr.bf16.mxu1 %v20571_v44 }
0x1ecb   :  { %13423 = vmatpush1.bf16.msk.msra.mxu1 %vm21448_vm12, %v20573_v5  ;;  %vm21452_vm12 = vnez %v20469_v42 }
0x1ecc   :  { %13424 = vmatprep.subr.bf16.mxu1 %v20571_v44 }
0x1ecf   :  { %13426 = vmatpush1.bf16.msk.msra.mxu1 %vm21449_vm2, %v20573_v5  ;;  %vm21454_vm2 = vnez %v21453_v45 }
0x1ed0   :  { %13427 = vmatprep.subr.bf16.mxu1 %v20571_v44 }
0x1ed3   :  { %13429 = vmatpush1.bf16.msk.msra.mxu1 %vm21450_vm13, %v20573_v5  ;;  %vm21456_vm13 = vnez %v21455_v33 }
0x1ed4   :  { %13430 = vmatprep.subr.bf16.mxu1 %v20571_v44 }
0x1ed7   :  { %13432 = vmatpush1.bf16.msk.msra.mxu1 %vm21451_vm10, %v20573_v5  ;;  %vm21458_vm10 = vnez %v21457_v13 }
0x1ed8   :  { %13433 = vmatprep.subr.bf16.mxu1 %v20571_v44 }
0x1edb   :  { %13435 = vmatpush1.bf16.msk.msra.mxu1 %vm21452_vm12, %v20573_v5  ;;  %vm21460_vm12 = vnez %v21459_v59 }
0x1edc   :  { %13436 = vmatprep.subr.bf16.mxu1 %v20571_v44 }
0x1edf   :  { %13438 = vmatpush1.bf16.msk.msra.mxu1 %vm21454_vm2, %v20573_v5  ;;  %vm21462_vm2 = vnez %v21461_v60 }
0x1ee0   :  { %13439 = vmatprep.subr.bf16.mxu1 %v20571_v44 }
0x1ee3   :  { %13441 = vmatpush1.bf16.msk.msra.mxu1 %vm21456_vm13, %v20573_v5 }
0x1ee4   :  { %13442 = vmatprep.subr.bf16.mxu1 %v20571_v44 }
0x1ee7   :  { %13444 = vmatpush1.bf16.msk.msra.mxu1 %vm21458_vm10, %v20573_v5  ;;  %vm21464_vm10 = vcmask 916480  }
0x1ee8   :  { %13445 = vmatprep.subr.bf16.mxu1 %v20571_v44 }
0x1eeb   :  { %13447 = vmatpush1.bf16.msk.msra.mxu1 %vm21460_vm12, %v20573_v5  ;;  %vm21465_vm12 = vmmov %vm21464_vm10 }
0x1eec   :  { %13448 = vmatprep.subr.bf16.mxu1 %v20571_v44 }
0x1eef   :  { %13450 = vmatpush1.bf16.msk.msra.mxu1 %vm21462_vm2, %v20573_v5  ;;  %vm21470_vm2 = vmmov %vm21464_vm10 }
0x1ef0   :  { %8891 = vmatprep.subr.bf16.mxu1 %v21463_v29  ;;  %v21468_v29 = vld [vmem:[#allocation105_spill] sm:$0xff]  ;;  %vm21471_vm13 = vmmov %vm21470_vm2 }
0x1f81   :  { %v8630_v24 = vpop.f32.mrb[204].mxu1 }
0x1f82   :  { %v8632_v35 = vpop.f32.mrb[205].mxu1 }
0x1f85   :  { %v8636_v54 = vpop.f32.mrb[206].mxu1 }
0x1f86   :  { %v8638_v47 = vpop.f32.mrb[207].mxu1 }
0x1f89   :  { %v8707_v30 = vpop.f32.mrb[208].mxu1 }
0x1f8a   :  { %v8718_v25 = vmax.f32 %v8630_v24, %v8707_v30  ;;  %v8709_v34 = vpop.f32.mrb[209].mxu1  ;;  %v21472_v24 = vld [vmem:[#allocation107_spill] sm:$0xff]  ;;  %v18862_v30 = vld [vmem:[%s19963_s3 + $0x98] ss:$8 sps:$4 sm:$0xff]  }
0x1f8b   :  { %v8719_v63 = vmax.f32 %v8632_v35, %v8709_v34  ;;  %v21473_v35 = vld [vmem:[#allocation108_spill] sm:$0xff]  ;;  %21477 = vst [vmem:[#allocation26_spill] sm:$0xff] %v18862_v30 }
0x1f8c   :  { %v18874_v34 = vld [vmem:[%s19963_s3 + $0xac] ss:$8 sps:$4 sm:$0xff]  }
0x1f8d   :  { %v8713_v52 = vpop.f32.mrb[210].mxu1  ;;  %12137 = vmatprep.mubr.msk.f32.mxu1 %vm21464_vm10, %v8719_v63  ;;  %12169 = vmatprep.mubr.msk.f32.mxu0 %vm21465_vm12, %v8719_v63  ;;  %21479 = vst [vmem:[#allocation28_spill] sm:$0xff] %v18874_v34  ;;  %v18880_v63 = vld [vmem:[%s19963_s3 + $0x120] ss:$8 sps:$4 sm:$0xff]   ;;  %vm21495_vm12 = vcmask 1043456  }
0x1f8e   :  { %v8720_v55 = vmax.f32 %v8636_v54, %v8713_v52  ;;  %v8715_v62 = vpop.f32.mrb[211].mxu1  ;;  %8793 = vmatmul.mubr.f32.vlgmr.msra.gmra.mrb[212].mxu1 %v8718_v25  ;;  %8868 = vmatmul.mubr.f32.vlgmr.msra.gmra.mrb[228].mxu0 %v8718_v25  ;;  %v18842_v54 = vld [vmem:[%s19963_s3 + $0x114] ss:$8 sps:$4 sm:$0xff]   ;;  %v18868_v25 = vld [vmem:[%s19963_s3 + $0x124] ss:$8 sps:$4 sm:$0xff]   ;;  %21480 = vst [vmem:[#allocation29_spill] sm:$0xff] %v18880_v63 }
0x1f8f   :  { %v8721_v4 = vmax.f32 %v8638_v47, %v8715_v62  ;;  %8981 = vmatpush1.bf16.msra.mxu0 %v21466_v1  ;;  %8892 = vmatpush1.bf16.msra.mxu1 %v21467_v9  ;;  %21474 = vst [vmem:[#allocation23_spill] sm:$0xff] %v18842_v54  ;;  %v18856_v47 = vld [vmem:[%s19963_s3 + $0x110] ss:$8 sps:$4 sm:$0xff]   ;;  %21478 = vst [vmem:[#allocation27_spill] sm:$0xff] %v18868_v25  ;;  %v18898_v62 = vld [vmem:[%s19963_s3 + $0xbc] ss:$8 sps:$4 sm:$0xff]  }
0x1f90   :  { %8982 = vmatprep.subr.bf16.mxu0 %v21468_v29  ;;  %8893 = vmatprep.subr.bf16.mxu1 %v21469_v46  ;;  %v18848_v46 = vld [vmem:[%s19963_s3 + $0x9c] ss:$8 sps:$4 sm:$0xff]   ;;  %21476 = vst [vmem:[#allocation25_spill] sm:$0xff] %v18856_v47  ;;  %v18886_v52 = vld [vmem:[%s19963_s3 + $0xa8] ss:$8 sps:$4 sm:$0xff]   ;;  %21483 = vst [vmem:[#allocation32_spill] sm:$0xff] %v18898_v62 }
0x1f91   :  { %12138 = vmatprep.mubr.msk.f32.mxu1 %vm21470_vm2, %v8721_v4  ;;  %12170 = vmatprep.mubr.msk.f32.mxu0 %vm21471_vm13, %v8721_v4  ;;  %21475 = vst [vmem:[#allocation24_spill] sm:$0xff] %v18848_v46  ;;  %21481 = vst [vmem:[#allocation30_spill] sm:$0xff] %v18886_v52  ;;  %v18904_v4 = vld [vmem:[%s19963_s3 + $0x130] ss:$8 sps:$4 sm:$0xff]   ;;  %v18916_v9 = vld [vmem:[%s19963_s3 + $0x144] ss:$8 sps:$4 sm:$0xff]  }
0x1f92   :  { %8798 = vmatmul.mubr.f32.gmra.mrb[214].mxu1 %v8720_v55  ;;  %8873 = vmatmul.mubr.f32.gmra.mrb[230].mxu0 %v8720_v55  ;;  %v18892_v55 = vld [vmem:[%s19963_s3 + $0x134] ss:$8 sps:$4 sm:$0xff]   ;;  %21484 = vst [vmem:[#allocation34_spill] sm:$0xff] %v18904_v4  ;;  %v18910_v1 = vld [vmem:[%s19963_s3 + $0xb8] ss:$8 sps:$4 sm:$0xff]   ;;  %21486 = vst [vmem:[#allocation36_spill] sm:$0xff] %v18916_v9 }
0x1f93   :  { %8983 = vmatpush1.bf16.msra.mxu0 %v21472_v24  ;;  %8894 = vmatpush1.bf16.msra.mxu1 %v21473_v35  ;;  %21482 = vst [vmem:[#allocation31_spill] sm:$0xff] %v18892_v55  ;;  %21485 = vst [vmem:[#allocation33_spill] sm:$0xff] %v18910_v1  ;;  %v18922_v29 = vld [vmem:[%s19963_s3 + $0xcc] ss:$8 sps:$4 sm:$0xff]   ;;  %v18928_v24 = vld [vmem:[%s19963_s3 + $0x140] ss:$8 sps:$4 sm:$0xff]  }
0x1f94   :  { %8984 = vmatprep.subr.bf16.mxu0 %v18842_v54  ;;  %8895 = vmatprep.subr.bf16.mxu1 %v18848_v46  ;;  %21487 = vst [vmem:[#allocation35_spill] sm:$0xff] %v18922_v29  ;;  %21488 = vst [vmem:[#allocation38_spill] sm:$0xff] %v18928_v24  ;;  %v18934_v35 = vld [vmem:[%s19963_s3 + $0xc8] ss:$8 sps:$4 sm:$0xff]   ;;  %vm21502_vm13 = vcmask 982016  }
0x1f95   :  { %9012 = vmatprep.mubr.bf16.mxu0 %v20543_v48  ;;  %8923 = vmatprep.mubr.bf16.mxu1 %v20543_v48  ;;  %21489 = vst [vmem:[#allocation37_spill] sm:$0xff] %v18934_v35  ;;  %vm21497_vm2 = vmmov %vm21495_vm12 }
0x1f96   :  { %vm21505_vm10 = vmmov %vm21502_vm13 }
0x1f97   :  { %8985 = vmatpush1.bf16.msra.mxu0 %v18856_v47  ;;  %8896 = vmatpush1.bf16.msra.mxu1 %v18862_v30 }
0x1f98   :  { %8986 = vmatprep.subr.bf16.mxu0 %v18868_v25  ;;  %8897 = vmatprep.subr.bf16.mxu1 %v18874_v34 }
0x1f9b   :  { %8987 = vmatpush1.bf16.msra.mxu0 %v18880_v63  ;;  %8898 = vmatpush1.bf16.msra.mxu1 %v18886_v52 }
0x1f9c   :  { %8988 = vmatprep.subr.bf16.mxu0 %v18892_v55  ;;  %8899 = vmatprep.subr.bf16.mxu1 %v18898_v62 }
0x1f9f   :  { %8989 = vmatpush1.bf16.msra.mxu0 %v18904_v4  ;;  %8900 = vmatpush1.bf16.msra.mxu1 %v18910_v1  ;;  %v21496_v1 = vld [vmem:[#allocation42_spill] sm:$0xff]  ;;  %v21499_v4 = vld [vmem:[#allocation44_spill] sm:$0xff] }
0x1fa0   :  { %8990 = vmatprep.subr.bf16.mxu0 %v18916_v9  ;;  %8901 = vmatprep.subr.bf16.mxu1 %v18922_v29  ;;  %v18940_v9 = vld [vmem:[%s19963_s3 + $0x154] ss:$8 sps:$4 sm:$0xff]  }
0x1fa1   :  { %21490 = vst [vmem:[#allocation40_spill] sm:$0xff] %v18940_v9  ;;  %v18946_v29 = vld [vmem:[%s19963_s3 + $0xdc] ss:$8 sps:$4 sm:$0xff]  }
0x1fa2   :  { %21491 = vst [vmem:[#allocation43_spill] sm:$0xff] %v18946_v29 }
0x1fa3   :  { %8991 = vmatpush1.bf16.msra.mxu0 %v18928_v24  ;;  %8902 = vmatpush1.bf16.msra.mxu1 %v18934_v35  ;;  %v18952_v24 = vld [vmem:[%s19963_s3 + $0x150] ss:$8 sps:$4 sm:$0xff]  }
0x1fa4   :  { %8992 = vmatprep.subr.bf16.mxu0 %v18940_v9  ;;  %8903 = vmatprep.subr.bf16.mxu1 %v18946_v29  ;;  %21492 = vst [vmem:[#allocation45_spill] sm:$0xff] %v18952_v24  ;;  %v18958_v35 = vld [vmem:[%s19963_s3 + $0xd8] ss:$8 sps:$4 sm:$0xff]   ;;  %v21494_v9 = vld [vmem:[#allocation39_spill] sm:$0xff] }
0x1fa5   :  { %21493 = vst [vmem:[#allocation46_spill] sm:$0xff] %v18958_v35  ;;  %v21498_v29 = vld [vmem:[#allocation41_spill] sm:$0xff] }
0x1fa7   :  { %8993 = vmatpush1.bf16.msra.mxu0 %v18952_v24  ;;  %8904 = vmatpush1.bf16.msra.mxu1 %v18958_v35  ;;  %v18970_v24 = vld [vmem:[%s19963_s3 + $0x1e4] ss:$8 sps:$4 sm:$0xff]  }
0x1fa8   :  { %12175 = vmatprep.subr.msk.bf16.mxu0 %vm21495_vm12, %v21494_v9  ;;  %12171 = vmatprep.subr.msk.bf16.mxu1 %vm21497_vm2, %v21496_v1  ;;  %21500 = vst [vmem:[#allocation47_spill] sm:$0xff] %v18970_v24  ;;  %v18976_v35 = vld [vmem:[%s19963_s3 + $0x4] ss:$8 sps:$4 sm:$0xff]   ;;  %vm21530_vm12 = vmmov %vm21497_vm2 }
0x1fa9   :  { %21501 = vst [vmem:[#allocation48_spill] sm:$0xff] %v18976_v35 }
0x1fab   :  { %8995 = vmatpush1.bf16.msra.mxu0 %v21498_v29  ;;  %8906 = vmatpush1.bf16.msra.mxu1 %v21499_v4 }
0x1fac   :  { %9076 = vmatprep.subr.bf16.mxu0 %v18970_v24  ;;  %8934 = vmatprep.subr.bf16.mxu1 %v18976_v35 }
0x2061   :  { %v8794_v9 = vpop.f32.mrb[212].mxu1  ;;  %v8869_v1 = vpop.f32.mrb[228].mxu0 }
0x2062   :  { %v8878_v62 = vmax.f32 %v8794_v9, %v8869_v1  ;;  %v8796_v29 = vpop.f32.mrb[213].mxu1  ;;  %v8871_v55 = vpop.f32.mrb[229].mxu0  ;;  %v19045_v9 = vld [vmem:[%s19963_s3 + $0x24] ss:$8 sps:$4 sm:$0xff]  }
0x2063   :  { %v19026_v55 = vld [vmem:[%s19963_s3 + $0x204] ss:$8 sps:$4 sm:$0xff]   ;;  %21512 = vst [vmem:[#allocation57_spill] sm:$0xff] %v19045_v9  ;;  %v19051_v29 = vld [vmem:[%s19963_s3 + $0x214] ss:$8 sps:$4 sm:$0xff]  }
0x2064   :  { %21509 = vst [vmem:[#allocation54_spill] sm:$0xff] %v19026_v55  ;;  %21513 = vst [vmem:[#allocation58_spill] sm:$0xff] %v19051_v29 }
0x2065   :  { %v8799_v4 = vpop.f32.mrb[214].mxu1  ;;  %v8874_v52 = vpop.f32.mrb[230].mxu0 }
0x2066   :  { %v8879_v63 = vmax.f32 %v8799_v4, %v8874_v52  ;;  %v8801_v34 = vpop.f32.mrb[215].mxu1  ;;  %v8876_v25 = vpop.f32.mrb[231].mxu0  ;;  %v19020_v52 = vld [vmem:[%s19963_s3 + $0x14] ss:$8 sps:$4 sm:$0xff]   ;;  %v19039_v4 = vld [vmem:[%s19963_s3 + $0x200] ss:$8 sps:$4 sm:$0xff]  }
0x2067   :  { %v18992_v34 = vld [vmem:[%s19963_s3 + $0x1e0] ss:$8 sps:$4 sm:$0xff]   ;;  %21508 = vst [vmem:[#allocation53_spill] sm:$0xff] %v19020_v52  ;;  %21511 = vst [vmem:[#allocation56_spill] sm:$0xff] %v19039_v4 }
0x2068   :  { %v18979_v30 = vpack.c.bf16 %v8879_v63, %v8878_v62  ;;  %21503 = vst [vmem:[#allocation49_spill] sm:$0xff] %v18992_v34  ;;  %v18999_v63 = vld [vmem:[%s19963_s3 + $0x1f4] ss:$8 sps:$4 sm:$0xff]   ;;  %v19033_v62 = vld [vmem:[%s19963_s3 + $0x10] ss:$8 sps:$4 sm:$0xff]  }
0x2069   :  { %21504 = vst [vmem:[#allocation50_spill] sm:$0xff] %v18999_v63  ;;  %21510 = vst [vmem:[#allocation55_spill] sm:$0xff] %v19033_v62 }
0x206a   :  { %v8882_v24 = vshrl.u32 %v18979_v30, 16  ;;  %v8884_v47 = vshll.u32 %v18979_v30, 16  ;;  %v8976_v46 = vrot.slane %v18979_v30, 1 }
0x206c   :  { %v8886_v54 = vrot.slane %v8884_v47, 1  ;;  %12176 = vmatmul.mubr.msk.bf16.vlgmr.msra.gmra.mrb[232].mxu0 %vm21502_vm13, %v8976_v46  ;;  %v18985_v35 = vrot.slane %v8882_v24, 1  ;;  %v18987_v1 = vrot.slane %v8884_v47, 2  ;;  %v19008_v47 = vld [vmem:[%s19963_s3] ss:$8 sps:$4 sm:$0xff]   ;;  %vm21534_vm13 = vmmov %vm21505_vm10 }
0x206d   :  { %9077 = vmatpush1.bf16.msra.mxu0 %v18992_v34  ;;  %9108 = vmatprep.mubr.bf16.mxu0 %v20543_v48  ;;  %21506 = vst [vmem:[#allocation51_spill] sm:$0xff] %v19008_v47  ;;  %v19069_v46 = vld [vmem:[%s19963_s3 + $0x34] ss:$8 sps:$4 sm:$0xff]  }
0x206e   :  { %v8887_v25 = vor.u32 %v8886_v54, %v8882_v24  ;;  %9078 = vmatprep.subr.bf16.mxu0 %v18999_v63  ;;  %v19014_v54 = vld [vmem:[%s19963_s3 + $0x1f0] ss:$8 sps:$4 sm:$0xff]   ;;  %v19057_v24 = vld [vmem:[%s19963_s3 + $0x20] ss:$8 sps:$4 sm:$0xff]   ;;  %21516 = vst [vmem:[#allocation61_spill] sm:$0xff] %v19069_v46 }
0x206f   :  { %21507 = vst [vmem:[#allocation52_spill] sm:$0xff] %v19014_v54  ;;  %21514 = vst [vmem:[#allocation59_spill] sm:$0xff] %v19057_v24 }
0x2070   :  { %12172 = vmatmul.mubr.msk.bf16.vlgmr.msra.gmra.mrb[216].mxu1 %vm21505_vm10, %v8887_v25  ;;  %v19063_v25 = vld [vmem:[%s19963_s3 + $0x210] ss:$8 sps:$4 sm:$0xff]  }
0x2071   :  { %8935 = vmatpush1.bf16.msra.mxu1 %v19008_v47  ;;  %9079 = vmatpush1.bf16.msra.mxu0 %v19014_v54  ;;  %21515 = vst [vmem:[#allocation60_spill] sm:$0xff] %v19063_v25 }
0x2072   :  { %8936 = vmatprep.subr.bf16.mxu1 %v19020_v52  ;;  %9080 = vmatprep.subr.bf16.mxu0 %v19026_v55 }
0x2073   :  { %8966 = vmatprep.mubr.bf16.mxu1 %v20543_v48 }
0x2075   :  { %8937 = vmatpush1.bf16.msra.mxu1 %v19033_v62  ;;  %9081 = vmatpush1.bf16.msra.mxu0 %v19039_v4  ;;  %v9072_v4 = vrot.slane %v18979_v30, 2 }
0x2076   :  { %8938 = vmatprep.subr.bf16.mxu1 %v19045_v9  ;;  %9082 = vmatprep.subr.bf16.mxu0 %v19051_v29  ;;  %v19075_v29 = vld [vmem:[%s19963_s3 + $0x224] ss:$8 sps:$4 sm:$0xff]   ;;  %v21532_v9 = vld [vmem:[#allocation73_spill] sm:$0xff] }
0x2077   :  { %21517 = vst [vmem:[#allocation62_spill] sm:$0xff] %v19075_v29 }
0x2079   :  { %8939 = vmatpush1.bf16.msra.mxu1 %v19057_v24  ;;  %9083 = vmatpush1.bf16.msra.mxu0 %v19063_v25  ;;  %v19081_v24 = vld [vmem:[%s19963_s3 + $0x30] ss:$8 sps:$4 sm:$0xff]   ;;  %v19087_v25 = vld [vmem:[%s19963_s3 + $0x220] ss:$8 sps:$4 sm:$0xff]  }
0x207a   :  { %8940 = vmatprep.subr.bf16.mxu1 %v19069_v46  ;;  %9084 = vmatprep.subr.bf16.mxu0 %v19075_v29  ;;  %21518 = vst [vmem:[#allocation63_spill] sm:$0xff] %v19081_v24  ;;  %21519 = vst [vmem:[#allocation64_spill] sm:$0xff] %v19087_v25  ;;  %v19093_v46 = vld [vmem:[%s19963_s3 + $0x44] ss:$8 sps:$4 sm:$0xff]   ;;  %v19099_v29 = vld [vmem:[%s19963_s3 + $0x234] ss:$8 sps:$4 sm:$0xff]  }
0x207b   :  { %21520 = vst [vmem:[#allocation65_spill] sm:$0xff] %v19093_v46  ;;  %21521 = vst [vmem:[#allocation66_spill] sm:$0xff] %v19099_v29 }
0x207d   :  { %8941 = vmatpush1.bf16.msra.mxu1 %v19081_v24  ;;  %9085 = vmatpush1.bf16.msra.mxu0 %v19087_v25  ;;  %v19105_v24 = vld [vmem:[%s19963_s3 + $0x40] ss:$8 sps:$4 sm:$0xff]   ;;  %v19111_v25 = vld [vmem:[%s19963_s3 + $0x230] ss:$8 sps:$4 sm:$0xff]  }
0x207e   :  { %8942 = vmatprep.subr.bf16.mxu1 %v19093_v46  ;;  %9086 = vmatprep.subr.bf16.mxu0 %v19099_v29  ;;  %21522 = vst [vmem:[#allocation67_spill] sm:$0xff] %v19105_v24  ;;  %21523 = vst [vmem:[#allocation68_spill] sm:$0xff] %v19111_v25  ;;  %v19117_v46 = vld [vmem:[%s19963_s3 + $0x54] ss:$8 sps:$4 sm:$0xff]   ;;  %v19123_v29 = vld [vmem:[%s19963_s3 + $0x244] ss:$8 sps:$4 sm:$0xff]  }
0x207f   :  { %21524 = vst [vmem:[#allocation69_spill] sm:$0xff] %v19117_v46  ;;  %21525 = vst [vmem:[#allocation70_spill] sm:$0xff] %v19123_v29 }
0x2081   :  { %8943 = vmatpush1.bf16.msra.mxu1 %v19105_v24  ;;  %9087 = vmatpush1.bf16.msra.mxu0 %v19111_v25  ;;  %v19129_v24 = vld [vmem:[%s19963_s3 + $0x50] ss:$8 sps:$4 sm:$0xff]   ;;  %v19135_v25 = vld [vmem:[%s19963_s3 + $0x240] ss:$8 sps:$4 sm:$0xff]  }
0x2082   :  { %8944 = vmatprep.subr.bf16.mxu1 %v19117_v46  ;;  %9088 = vmatprep.subr.bf16.mxu0 %v19123_v29  ;;  %21526 = vst [vmem:[#allocation72_spill] sm:$0xff] %v19129_v24  ;;  %21527 = vst [vmem:[#allocation76_spill] sm:$0xff] %v19135_v25  ;;  %v19141_v46 = vld [vmem:[%s19963_s3 + $0x64] ss:$8 sps:$4 sm:$0xff]  }
0x2083   :  { %21528 = vst [vmem:[#allocation77_spill] sm:$0xff] %v19141_v46  ;;  %v21529_v29 = vld [vmem:[#allocation71_spill] sm:$0xff] }
0x2085   :  { %8945 = vmatpush1.bf16.msra.mxu1 %v19129_v24  ;;  %9089 = vmatpush1.bf16.msra.mxu0 %v19135_v25  ;;  %v19149_v24 = vld [vmem:[%s19963_s3 + $0x60] ss:$8 sps:$4 sm:$0xff]  }
0x2086   :  { %8946 = vmatprep.subr.bf16.mxu1 %v19141_v46  ;;  %12179 = vmatprep.subr.msk.bf16.mxu0 %vm21530_vm12, %v21529_v29  ;;  %21531 = vst [vmem:[#allocation78_spill] sm:$0xff] %v19149_v24  ;;  %v21533_v25 = vld [vmem:[#allocation74_spill] sm:$0xff]  ;;  %v21535_v46 = vld [vmem:[#allocation75_spill] sm:$0xff]  ;;  %vm21551_vm12 = vmmov %vm21497_vm2 }
0x2089   :  { %8947 = vmatpush1.bf16.msra.mxu1 %v19149_v24  ;;  %9091 = vmatpush1.bf16.msra.mxu0 %v21532_v9  ;;  %v19165_v24 = vld [vmem:[%s19963_s3 + $0x16c] ss:$8 sps:$4 sm:$0xff]  }
0x208a   :  { %12173 = vmatprep.subr.msk.bf16.mxu1 %vm21497_vm2, %v21533_v25  ;;  %13526 = vmatprep.subr.bf16.mxu0 %v20571_v44  ;;  %21536 = vst [vmem:[#allocation79_spill] sm:$0xff] %v19165_v24  ;;  %vm21554_vm2 = vmmov %vm21505_vm10 }
0x208c   :  { %12180 = vmatmul.mubr.msk.bf16.vlgmr.msra.gmra.mrb[236].mxu0 %vm21534_vm13, %v9072_v4  ;;  %v19174_v4 = vld [vmem:[%s19963_s3 + $0x168] ss:$8 sps:$4 sm:$0xff]   ;;  %vm21555_vm13 = vcmask 64512  }
0x208d   :  { %8949 = vmatpush1.bf16.msra.mxu1 %v21535_v46  ;;  %13528 = vmatpush1.bf16.msk.msra.mxu0 %vm20574_vm8, %v20573_v5  ;;  %21537 = vst [vmem:[#allocation80_spill] sm:$0xff] %v19174_v4  ;;  %v19181_v46 = vld [vmem:[%s19963_s3 + $0x17c] ss:$8 sps:$4 sm:$0xff]  }
0x208e   :  { %9029 = vmatprep.subr.bf16.mxu1 %v19165_v24  ;;  %13529 = vmatprep.subr.bf16.mxu0 %v20571_v44  ;;  %21538 = vst [vmem:[#allocation81_spill] sm:$0xff] %v19181_v46 }
0x2090   :  { %12174 = vmatmul.mubr.msk.bf16.vlgmr.msra.gmra.mrb[220].mxu1 %vm21505_vm10, %v18979_v30  ;;  %v19191_v30 = vld [vmem:[%s19963_s3 + $0x178] ss:$8 sps:$4 sm:$0xff]   ;;  %vm21556_vm10 = vmmov %vm21555_vm13 }
0x2091   :  { %9030 = vmatpush1.bf16.msra.mxu1 %v19174_v4  ;;  %9061 = vmatprep.mubr.bf16.mxu1 %v20543_v48  ;;  %21539 = vst [vmem:[#allocation82_spill] sm:$0xff] %v19191_v30  ;;  %v19197_v4 = vld [vmem:[%s19963_s3 + $0x18c] ss:$8 sps:$4 sm:$0xff]  }
0x2092   :  { %9031 = vmatprep.subr.bf16.mxu1 %v19181_v46  ;;  %13531 = vmatpush1.bf16.msk.msra.mxu0 %vm20578_vm9, %v20573_v5  ;;  %21540 = vst [vmem:[#allocation83_spill] sm:$0xff] %v19197_v4  ;;  %v19207_v46 = vld [vmem:[%s19963_s3 + $0x188] ss:$8 sps:$4 sm:$0xff]  }
0x2093   :  { %13532 = vmatprep.subr.bf16.mxu0 %v20571_v44  ;;  %21541 = vst [vmem:[#allocation84_spill] sm:$0xff] %v19207_v46 }
0x2095   :  { %9032 = vmatpush1.bf16.msra.mxu1 %v19191_v30  ;;  %v19213_v30 = vld [vmem:[%s19963_s3 + $0x19c] ss:$8 sps:$4 sm:$0xff]  }
0x2096   :  { %9033 = vmatprep.subr.bf16.mxu1 %v19197_v4  ;;  %13534 = vmatpush1.bf16.msk.msra.mxu0 %vm20735_vm15, %v20573_v5  ;;  %21542 = vst [vmem:[#allocation85_spill] sm:$0xff] %v19213_v30  ;;  %v19223_v4 = vld [vmem:[%s19963_s3 + $0x198] ss:$8 sps:$4 sm:$0xff]  }
0x2097   :  { %13535 = vmatprep.subr.bf16.mxu0 %v20571_v44  ;;  %21543 = vst [vmem:[#allocation86_spill] sm:$0xff] %v19223_v4 }
0x2098   :  { %v21679_v0 = vld [vmem:[#allocation82_spill] sm:$0xff] }
0x2099   :  { %9034 = vmatpush1.bf16.msra.mxu1 %v19207_v46  ;;  %v19229_v46 = vld [vmem:[%s19963_s3 + $0x1ac] ss:$8 sps:$4 sm:$0xff]  }
0x209a   :  { %9035 = vmatprep.subr.bf16.mxu1 %v19213_v30  ;;  %13537 = vmatpush1.bf16.msk.msra.mxu0 %vm20629_vm7, %v20573_v5  ;;  %21544 = vst [vmem:[#allocation87_spill] sm:$0xff] %v19229_v46  ;;  %v19239_v30 = vld [vmem:[%s19963_s3 + $0x1a8] ss:$8 sps:$4 sm:$0xff]  }
0x209b   :  { %13538 = vmatprep.subr.bf16.mxu0 %v20571_v44  ;;  %21545 = vst [vmem:[#allocation88_spill] sm:$0xff] %v19239_v30 }
0x209d   :  { %9036 = vmatpush1.bf16.msra.mxu1 %v19223_v4  ;;  %v19245_v4 = vld [vmem:[%s19963_s3 + $0x1bc] ss:$8 sps:$4 sm:$0xff]  }
0x209e   :  { %9037 = vmatprep.subr.bf16.mxu1 %v19229_v46  ;;  %13540 = vmatpush1.bf16.msk.msra.mxu0 %vm20630_vm6, %v20573_v5  ;;  %21546 = vst [vmem:[#allocation89_spill] sm:$0xff] %v19245_v4  ;;  %v19255_v46 = vld [vmem:[%s19963_s3 + $0x1b8] ss:$8 sps:$4 sm:$0xff]  }
0x209f   :  { %13541 = vmatprep.subr.bf16.mxu0 %v20571_v44  ;;  %21547 = vst [vmem:[#allocation92_spill] sm:$0xff] %v19255_v46  ;;  %v21683_v10 = vld [vmem:[#allocation86_spill] sm:$0xff] }
0x20a1   :  { %9038 = vmatpush1.bf16.msra.mxu1 %v19239_v30  ;;  %v19261_v30 = vld [vmem:[%s19963_s3 + $0x1cc] ss:$8 sps:$4 sm:$0xff]  }
0x20a2   :  { %9039 = vmatprep.subr.bf16.mxu1 %v19245_v4  ;;  %13543 = vmatpush1.bf16.msk.msra.mxu0 %vm20785_vm1, %v20573_v5  ;;  %21548 = vst [vmem:[#allocation93_spill] sm:$0xff] %v19261_v30  ;;  %v19271_v4 = vld [vmem:[%s19963_s3 + $0x1c8] ss:$8 sps:$4 sm:$0xff]  }
0x20a3   :  { %13544 = vmatprep.subr.bf16.mxu0 %v20571_v44  ;;  %21549 = vst [vmem:[#allocation2_spill] sm:$0xff] %v19271_v4  ;;  %v21685_v14 = vld [vmem:[#allocation88_spill] sm:$0xff] }
0x20a5   :  { %9040 = vmatpush1.bf16.msra.mxu1 %v19255_v46  ;;  %v21550_v46 = vld [vmem:[#allocation90_spill] sm:$0xff] }
0x20a6   :  { %9041 = vmatprep.subr.bf16.mxu1 %v19261_v30  ;;  %13546 = vmatpush1.bf16.msk.msra.mxu0 %vm20786_vm3, %v20573_v5  ;;  %v21552_v30 = vld [vmem:[#allocation91_spill] sm:$0xff]  ;;  %v21687_v18 = vld [vmem:[#allocation92_spill] sm:$0xff] }
0x20a7   :  { %13547 = vmatprep.subr.bf16.mxu0 %v20571_v44 }
0x20a9   :  { %9042 = vmatpush1.bf16.msra.mxu1 %v19271_v4  ;;  %v21553_v4 = vor.u32 %v18987_v1, %v18985_v35 }
0x20aa   :  { %12177 = vmatprep.subr.msk.bf16.mxu1 %vm21551_vm12, %v21550_v46  ;;  %13549 = vmatpush1.bf16.msk.msra.mxu0 %vm20909_vm11, %v20573_v5  ;;  %vm21557_vm12 = vnez %v20441_v11  ;;  %v21689_v22 = vld [vmem:[#allocation2_spill] sm:$0xff] }
0x20ab   :  { %13550 = vmatprep.subr.bf16.mxu0 %v20571_v44 }
0x20ad   :  { %9044 = vmatpush1.bf16.msra.mxu1 %v21552_v30 }
0x20ae   :  { %13552 = vmatpush1.bf16.msk.msra.mxu0 %vm20911_vm4, %v20573_v5 }
0x20af   :  { %13553 = vmatprep.subr.bf16.mxu0 %v20571_v44 }
0x20b0   :  { %12178 = vmatmul.mubr.msk.bf16.vlgmr.msra.gmra.mrb[224].mxu1 %vm21554_vm2, %v21553_v4  ;;  %vm21558_vm2 = vnez %v20445_v15 }
0x20b1   :  { %9187 = vmatprep.mubr.f32.mxu1 %v20601_v58 }
0x20b2   :  { %13555 = vmatpush1.bf16.msk.msra.mxu0 %vm21070_vm0, %v20573_v5 }
0x213f   :  { %v9014_v46 = vpop.f32.mrb[232].mxu0 }
0x2140   :  { %v9016_v24 = vpop.f32.mrb[233].mxu0 }
0x2141   :  { %v9018_v30 = vpop.f32.mrb[234].mxu0 }
0x2142   :  { %v9019_v25 = vpop.f32.mrb[235].mxu0 }
0x2143   :  { %v8925_v9 = vpop.f32.mrb[216].mxu1 }
0x2144   :  { %v8927_v29 = vpop.f32.mrb[217].mxu1 }
0x2145   :  { %v8929_v62 = vpop.f32.mrb[218].mxu1 }
0x2146   :  { %v8930_v55 = vpop.f32.mrb[219].mxu1 }
0x215f   :  { %v9110_v52 = vpop.f32.mrb[236].mxu0 }
0x2160   :  { %v9112_v54 = vpop.f32.mrb[237].mxu0 }
0x2161   :  { %v9114_v47 = vpop.f32.mrb[238].mxu0 }
0x2162   :  { %v9115_v35 = vpop.f32.mrb[239].mxu0 }
0x2163   :  { %v8968_v1 = vpop.f32.mrb[220].mxu1 }
0x2164   :  { %v8969_v4 = vadd.f32 %v8968_v1, %v8925_v9  ;;  %v8970_v63 = vpop.f32.mrb[221].mxu1 }
0x2165   :  { %v8971_v34 = vadd.f32 %v8970_v63, %v8927_v29  ;;  %v8972_v60 = vpop.f32.mrb[222].mxu1 }
0x2166   :  { %v8973_v59 = vpop.f32.mrb[223].mxu1  ;;  %v9021_v13 = vadd.f32 %v9014_v46, %v8969_v4  ;;  %v14339_v4 = vld [vmem:[%s19960_s1 + $0x20] ss:$8 sps:$4 sm:$0xff]  }
0x2167   :  { %v9022_v33 = vadd.f32 %v9016_v24, %v8971_v34 }
0x2183   :  { %v9063_v45 = vpop.f32.mrb[224].mxu1 }
0x2184   :  { %v9070_v57 = vadd.f32 %v9063_v45, %v9021_v13  ;;  %v9065_v30 = vpop.f32.mrb[225].mxu1  ;;  %v12227_v45 = vld [vmem:[%s19961_s0 + $0xf0] sm:$0xff] }
0x2185   :  { %v9071_v25 = vadd.f32 %v9065_v30, %v9022_v33  ;;  %v9067_v39 = vpop.f32.mrb[226].mxu1  ;;  %v12228_v33 = vld [vmem:[%s19961_s0 + $0xf8] sm:$0xf] }
0x2186   :  { %v9117_v43 = vadd.f32 %v9110_v52, %v9070_v57  ;;  %v9068_v62 = vpop.f32.mrb[227].mxu1  ;;  %v12226_v39 = vld [vmem:[%s19961_s0 + $0xe8] sm:$0xff]  ;;  %v19357_v60 = vpack.c.bf16 %v12228_v33, %v12227_v45 }
0x2187   :  { %v9118_v55 = vadd.f32 %v9112_v54, %v9071_v25  ;;  %v14340_v62 = vld [vmem:[%s19960_s1 + $0x34] ss:$8 sps:$4 sm:$0x3f]   ;;  %v14347_v45 = vld [vmem:[%s19960_s1 + $0x64] ss:$8 sps:$4 sm:$0xff]  }
0x2188   :  { %v9119_v53 = vadd.f32 %v9117_v43, %v15486_v21  ;;  %v12225_v43 = vld [vmem:[%s19961_s0 + $0xe0] sm:$0xff]  ;;  %v9442_v1 = vshll.u32 %v19357_v60, 16 }
0x2189   :  { %v9120_v47 = vadd.f32 %v9118_v55, %v15490_v2  ;;  %v19349_v57 = vpack.c.bf16 %v12226_v39, %v12225_v43  ;;  %v14344_v43 = vld [vmem:[%s19960_s1 + $0x44] ss:$8 sps:$4 sm:$0xff]   ;;  %v14345_v39 = vld [vmem:[%s19960_s1 + $0x40] ss:$8 sps:$4 sm:$0xff]  }
0x218a   :  { %v9121_v9 = vmax.f32 %v9119_v53, 0.0  ;;  %v14338_v53 = vld [vmem:[%s19960_s1 + $0x24] ss:$8 sps:$4 sm:$0xff]   ;;  %v9444_v25 = vrot.slane %v9442_v1, 1 }
0x218b   :  { %v9122_v35 = vmax.f32 %v9120_v47, 0.0  ;;  %v9437_v34 = vshll.u32 %v19349_v57, 16  ;;  %v9435_v29 = vshrl.u32 %v19349_v57, 16  ;;  %v14341_v47 = vld [vmem:[%s19960_s1 + $0x4] ss:$8 sps:$4 sm:$0xff]   ;;  %v9563_v33 = vrot.slane %v19349_v57, 1 }
0x218d   :  { %9123 = vmatprep.subr.mxu1 %v9122_v35  ;;  %v9439_v24 = vrot.slane %v9437_v34, 1 }
0x218e   :  { %9124 = vmatpush1.msra.mxu1 %v9121_v9 }
0x218f   :  { %12181 = vmatmul.mubr.msk.f32.vlgmr.msra.gmra.mrb[228].mxu1 %vm21555_vm13, %v14807_v12  ;;  %9194 = vmatprep.subr.mxu1 %v9122_v35  ;;  %vm21559_vm13 = vnez %v20449_v19  ;;  %v9440_v30 = vor.u32 %v9439_v24, %v9435_v29  ;;  %v9446_v35 = vshrl.u32 %v19357_v60, 16  ;;  %v9630_v24 = vrot.slane %v9437_v34, 2  ;;  %v14352_v34 = vld [vmem:[%s19960_s1 + $0x94] ss:$8 sps:$4 sm:$0x3f]  }
0x2190   :  { %9195 = vmatpush1.msra.mxu1 %v9121_v9  ;;  %9258 = vmatprep.mubr.f32.mxu1 %v20601_v58  ;;  %v14342_v9 = vld [vmem:[%s19960_s1] ss:$8 sps:$4 sm:$0xff]  }
0x2191   :  { %13496 = vmatprep.subr.bf16.mxu1 %v20571_v44 }
0x2193   :  { %12182 = vmatmul.mubr.msk.f32.vlgmr.msra.gmra.mrb[230].mxu1 %vm21556_vm10, %v14826_v16  ;;  %vm21560_vm10 = vnez %v20453_v23 }
0x2194   :  { %13498 = vmatpush1.bf16.msk.msra.mxu1 %vm14828_vm5, %v20573_v5 }
0x2195   :  { %13499 = vmatprep.subr.bf16.mxu1 %v20571_v44 }
0x2198   :  { %13501 = vmatpush1.bf16.msk.msra.mxu1 %vm14593_vm14, %v20573_v5 }
0x2199   :  { %13502 = vmatprep.subr.bf16.mxu1 %v20571_v44 }
0x219c   :  { %13504 = vmatpush1.bf16.msk.msra.mxu1 %vm21557_vm12, %v20573_v5  ;;  %vm21561_vm12 = vnez %v20457_v28 }
0x219d   :  { %13505 = vmatprep.subr.bf16.mxu1 %v20571_v44 }
0x21a0   :  { %13507 = vmatpush1.bf16.msk.msra.mxu1 %vm21558_vm2, %v20573_v5  ;;  %vm21562_vm2 = vnez %v20461_v32 }
0x21a1   :  { %13508 = vmatprep.subr.bf16.mxu1 %v20571_v44 }
0x21a4   :  { %13510 = vmatpush1.bf16.msk.msra.mxu1 %vm21559_vm13, %v20573_v5  ;;  %vm21563_vm13 = vnez %v20465_v37 }
0x21a5   :  { %13511 = vmatprep.subr.bf16.mxu1 %v20571_v44 }
0x21a8   :  { %13513 = vmatpush1.bf16.msk.msra.mxu1 %vm21560_vm10, %v20573_v5  ;;  %vm21564_vm10 = vnez %v20469_v42 }
0x21a9   :  { %13514 = vmatprep.subr.bf16.mxu1 %v20571_v44 }
0x21ac   :  { %13516 = vmatpush1.bf16.msk.msra.mxu1 %vm21561_vm12, %v20573_v5 }
0x21ad   :  { %13517 = vmatprep.subr.bf16.mxu1 %v20571_v44 }
0x21b0   :  { %13519 = vmatpush1.bf16.msk.msra.mxu1 %vm21562_vm2, %v20573_v5  ;;  %vm21567_vm2 = vcmask 1045504  }
0x21b1   :  { %13520 = vmatprep.subr.bf16.mxu1 %v20571_v44 }
0x21b4   :  { %13522 = vmatpush1.bf16.msk.msra.mxu1 %vm21563_vm13, %v20573_v5 }
0x21b5   :  { %13523 = vmatprep.subr.bf16.mxu1 %v20571_v44 }
0x21b8   :  { %13525 = vmatpush1.bf16.msk.msra.mxu1 %vm21564_vm10, %v20573_v5  ;;  %vm21565_vm10 = vcmask 261120  }
0x21b9   :  { %9455 = vmatprep.subr.bf16.mxu1 %v14338_v53  ;;  %vm21566_vm13 = vmmov %vm21565_vm10  ;;  %v9448_v53 = vor.u32 %v9446_v35, %v9444_v25 }
0x2262   :  { %v9189_v13 = vpop.f32.mrb[228].mxu1 }
0x2263   :  { %v9191_v59 = vpop.f32.mrb[229].mxu1 }
0x2266   :  { %v9260_v63 = vpop.f32.mrb[230].mxu1 }
0x2267   :  { %v9265_v46 = vmax.f32 %v9189_v13, %v9260_v63  ;;  %v9262_v54 = vpop.f32.mrb[231].mxu1  ;;  %v9564_v13 = vrot.slane %v19357_v60, 1  ;;  %v14349_v63 = vld [vmem:[%s19960_s1 + $0x74] ss:$8 sps:$4 sm:$0x3f]  }
0x2268   :  { %v9266_v52 = vmax.f32 %v9191_v59, %v9262_v54  ;;  %v9633_v54 = vrot.slane %v9442_v1, 2  ;;  %v9700_v1 = vrot.slane %v19357_v60, 2 }
0x226a   :  { %12203 = vmatprep.mubr.msk.f32.mxu1 %vm21565_vm10, %v9266_v52  ;;  %12224 = vmatprep.mubr.msk.f32.mxu0 %vm21566_vm13, %v9266_v52  ;;  %vm21568_vm13 = vsmask.f32 7424  ;;  %vm21569_vm10 = vcmask 228352   ;;  %v9632_v52 = vrot.slane %v9446_v35, 1 }
0x226b   :  { %9335 = vmatmul.mubr.f32.vlgmr.msra.gmra.mrb[232].mxu1 %v9265_v46  ;;  %9405 = vmatmul.mubr.f32.vlgmr.msra.gmra.mrb[240].mxu0 %v9265_v46  ;;  %v9445_v55 = vsel %vm21568_vm13, %v9440_v30, %v9444_v25  ;;  %vm21570_vm13 = vmmov %vm21569_vm10  ;;  %v9629_v46 = vrot.slane %v9435_v29, 1  ;;  %v9699_v29 = vrot.slane %v19349_v57, 2 }
0x226c   :  { %9456 = vmatpush1.bf16.msra.mxu1 %v14339_v4  ;;  %9487 = vmatprep.mubr.bf16.mxu1 %v20543_v48  ;;  %v14350_v4 = vld [vmem:[%s19960_s1 + $0x84] ss:$8 sps:$4 sm:$0xff]   ;;  %v9634_v25 = vor.u32 %v9633_v54, %v9632_v52 }
0x226d   :  { %12229 = vmatprep.subr.msk.bf16.mxu1 %vm21567_vm2, %v14340_v62  ;;  %9841 = vmatprep.mubr.f32.mxu0 %v20601_v58  ;;  %v9631_v30 = vor.u32 %v9630_v24, %v9629_v46 }
0x2270   :  { %9458 = vmatpush1.bf16.msra.mxu1 %v14442_v8  ;;  %v14343_v8 = vld [vmem:[%s19960_s1 + $0x14] ss:$8 sps:$4 sm:$0x3f]  }
0x2271   :  { %9510 = vmatprep.subr.bf16.mxu1 %v14341_v47 }
0x2273   :  { %12230 = vmatmul.mubr.msk.bf16.vlgmr.msra.gmra.mrb[236].mxu1 %vm21569_vm10, %v9445_v55 }
0x2274   :  { %9497 = vmatprep.mubr.bf16.mxu1 %v20543_v48  ;;  %9511 = vmatpush1.bf16.msra.mxu1 %v14342_v9 }
0x2275   :  { %12232 = vmatprep.subr.msk.bf16.mxu1 %vm21567_vm2, %v14343_v8 }
0x2278   :  { %9513 = vmatpush1.bf16.msra.mxu1 %v14473_v27  ;;  %v14346_v27 = vld [vmem:[%s19960_s1 + $0x54] ss:$8 sps:$4 sm:$0x3f]  }
0x2279   :  { %9572 = vmatprep.subr.bf16.mxu1 %v14344_v43 }
0x227b   :  { %12231 = vmatmul.mubr.msk.bf16.gmra.mrb[240].mxu1 %vm21570_vm13, %v9448_v53  ;;  %vm21571_vm13 = vmmov %vm21569_vm10 }
0x227c   :  { %9542 = vmatprep.mubr.bf16.mxu1 %v20543_v48  ;;  %vm21573_vm12 = vmmov %vm21571_vm13 }
0x2283   :  { %12233 = vmatmul.mubr.msk.bf16.vlgmr.msra.gmra.mrb[236].mxu1 %vm21569_vm10, %v19349_v57  ;;  %vm21572_vm10 = vcmask 1046528  }
0x2284   :  { %9552 = vmatprep.mubr.bf16.mxu1 %v20543_v48  ;;  %9573 = vmatpush1.bf16.msra.mxu1 %v14345_v39  ;;  %v9565_v59 = vsel %vm21572_vm10, %v9563_v33, %v9564_v13  ;;  %vm21575_vm10 = vmmov %vm21573_vm12 }
0x2285   :  { %12235 = vmatprep.subr.msk.bf16.mxu1 %vm21567_vm2, %v14346_v27 }
0x2288   :  { %9575 = vmatpush1.bf16.msra.mxu1 %v20769_v56  ;;  %v14348_v56 = vld [vmem:[%s19960_s1 + $0x60] ss:$8 sps:$4 sm:$0xff]  }
0x2289   :  { %9642 = vmatprep.subr.bf16.mxu1 %v14347_v45 }
0x228b   :  { %12234 = vmatmul.mubr.msk.bf16.gmra.mrb[244].mxu1 %vm21571_vm13, %v19357_v60  ;;  %vm21574_vm13 = vsmask.f32 6400 }
0x228c   :  { %9604 = vmatprep.mubr.bf16.mxu1 %v20543_v48  ;;  %v9635_v62 = vsel %vm21574_vm13, %v9631_v30, %v9634_v25  ;;  %vm21577_vm13 = vmmov %vm21567_vm2  ;;  %v21584_v30 = vld [vmem:[#allocation10_spill] sm:$0xff] }
0x228d   :  { %v9701_v55 = vsel %vm21577_vm13, %v9699_v29, %v9700_v1  ;;  %vm21580_vm13 = vnez %v21427_v38 }
0x2293   :  { %12236 = vmatmul.mubr.msk.bf16.vlgmr.msra.gmra.mrb[236].mxu1 %vm21573_vm12, %v9565_v59 }
0x2294   :  { %9614 = vmatprep.mubr.bf16.mxu1 %v20543_v48  ;;  %9643 = vmatpush1.bf16.msra.mxu1 %v14348_v56 }
0x2295   :  { %12238 = vmatprep.subr.msk.bf16.mxu1 %vm21567_vm2, %v14349_v63 }
0x2298   :  { %9645 = vmatpush1.bf16.msra.mxu1 %v21414_v49  ;;  %v14351_v49 = vld [vmem:[%s19960_s1 + $0x80] ss:$8 sps:$4 sm:$0xff]  }
0x2299   :  { %9708 = vmatprep.subr.bf16.mxu1 %v14350_v4 }
0x229b   :  { %12237 = vmatmul.mubr.msk.bf16.gmra.mrb[248].mxu1 %vm21573_vm12, %v9564_v13  ;;  %vm21576_vm12 = vmmov %vm21575_vm10 }
0x229c   :  { %9674 = vmatprep.mubr.bf16.mxu1 %v20543_v48 }
0x22a3   :  { %12239 = vmatmul.mubr.msk.bf16.vlgmr.msra.gmra.mrb[236].mxu1 %vm21575_vm10, %v9635_v62 }
0x22a4   :  { %9684 = vmatprep.mubr.bf16.mxu1 %v20543_v48  ;;  %9709 = vmatpush1.bf16.msra.mxu1 %v14351_v49  ;;  %v21585_v49 = vld [vmem:[#allocation11_spill] sm:$0xff] }
0x22a5   :  { %12241 = vmatprep.subr.msk.bf16.mxu1 %vm21567_vm2, %v14352_v34  ;;  %vm21578_vm2 = vmmov %vm21575_vm10 }
0x22a8   :  { %9711 = vmatpush1.bf16.msra.mxu1 %v21420_v51 }
0x22a9   :  { %13609 = vmatprep.subr.bf16.mxu1 %v20571_v44 }
0x22ab   :  { %12240 = vmatmul.mubr.msk.bf16.gmra.mrb[252].mxu1 %vm21576_vm12, %v9634_v25  ;;  %vm21579_vm12 = vnez %v21425_v7 }
0x22ac   :  { %9740 = vmatprep.mubr.bf16.mxu1 %v20543_v48 }
0x22b3   :  { %12242 = vmatmul.mubr.msk.bf16.vlgmr.msra.gmra.mrb[236].mxu1 %vm21575_vm10, %v9701_v55  ;;  %vm21581_vm10 = vnez %v21429_v41 }
0x22b4   :  { %9750 = vmatprep.mubr.bf16.mxu1 %v20543_v48  ;;  %13611 = vmatpush1.bf16.msk.msra.mxu1 %vm20574_vm8, %v20573_v5 }
0x22b5   :  { %13612 = vmatprep.subr.bf16.mxu1 %v20571_v44 }
0x22b8   :  { %13614 = vmatpush1.bf16.msk.msra.mxu1 %vm20578_vm9, %v20573_v5 }
0x22b9   :  { %13615 = vmatprep.subr.bf16.mxu1 %v20571_v44 }
0x22bb   :  { %12243 = vmatmul.mubr.msk.bf16.gmra.mrb[0].mxu1 %vm21578_vm2, %v9700_v1  ;;  %vm21582_vm2 = vnez %v21431_v17 }
0x22bc   :  { %13617 = vmatpush1.bf16.msk.msra.mxu1 %vm20735_vm15, %v20573_v5 }
0x22bd   :  { %13618 = vmatprep.subr.bf16.mxu1 %v20571_v44 }
0x22c0   :  { %13620 = vmatpush1.bf16.msk.msra.mxu1 %vm20629_vm7, %v20573_v5 }
0x22c1   :  { %13621 = vmatprep.subr.bf16.mxu1 %v20571_v44 }
0x22c4   :  { %13623 = vmatpush1.bf16.msk.msra.mxu1 %vm20630_vm6, %v20573_v5 }
0x22c5   :  { %13624 = vmatprep.subr.bf16.mxu1 %v20571_v44 }
0x22c8   :  { %13626 = vmatpush1.bf16.msk.msra.mxu1 %vm20785_vm1, %v20573_v5 }
0x22c9   :  { %13627 = vmatprep.subr.bf16.mxu1 %v20571_v44 }
0x22cc   :  { %13629 = vmatpush1.bf16.msk.msra.mxu1 %vm20786_vm3, %v20573_v5 }
0x22cd   :  { %13630 = vmatprep.subr.bf16.mxu1 %v20571_v44 }
0x22d0   :  { %13632 = vmatpush1.bf16.msk.msra.mxu1 %vm20909_vm11, %v20573_v5 }
0x22d1   :  { %13633 = vmatprep.subr.bf16.mxu1 %v20571_v44 }
0x22d4   :  { %13635 = vmatpush1.bf16.msk.msra.mxu1 %vm20911_vm4, %v20573_v5 }
0x22d5   :  { %13636 = vmatprep.subr.bf16.mxu1 %v20571_v44 }
0x22d8   :  { %13638 = vmatpush1.bf16.msk.msra.mxu1 %vm21070_vm0, %v20573_v5 }
0x22d9   :  { %13639 = vmatprep.subr.bf16.mxu1 %v20571_v44 }
0x22dc   :  { %13641 = vmatpush1.bf16.msk.msra.mxu1 %vm21579_vm12, %v20573_v5  ;;  %vm21583_vm12 = vnez %v21433_v3 }
0x22dd   :  { %13642 = vmatprep.subr.bf16.mxu1 %v20571_v44 }
0x22e0   :  { %13644 = vmatpush1.bf16.msk.msra.mxu1 %vm21580_vm13, %v20573_v5  ;;  %vm21586_vm13 = vcmask 195584  }
0x22e1   :  { %13645 = vmatprep.subr.bf16.mxu1 %v20571_v44 }
0x22e4   :  { %13647 = vmatpush1.bf16.msk.msra.mxu1 %vm21581_vm10, %v20573_v5  ;;  %vm21588_vm10 = vmmov %vm21586_vm13 }
0x22e5   :  { %13648 = vmatprep.subr.bf16.mxu1 %v20571_v44 }
0x22e8   :  { %13650 = vmatpush1.bf16.msk.msra.mxu1 %vm21582_vm2, %v20573_v5  ;;  %vm21589_vm2 = vmmov %vm21588_vm10 }
0x22e9   :  { %13651 = vmatprep.subr.bf16.mxu1 %v20571_v44 }
0x22ec   :  { %13653 = vmatpush1.bf16.msk.msra.mxu1 %vm21583_vm12, %v20573_v5  ;;  %vm21591_vm12 = vmmov %vm21589_vm2 }
0x22ed   :  { %10193 = vmatprep.subr.bf16.mxu1 %v18737_v20 }
0x233e   :  { %v9336_v51 = vpop.f32.mrb[232].mxu1  ;;  %v9406_v7 = vpop.f32.mrb[240].mxu0 }
0x233f   :  { %v19509_v38 = vmax.f32 %v9336_v51, %v9406_v7  ;;  %v9338_v41 = vpop.f32.mrb[233].mxu1  ;;  %v9408_v57 = vpop.f32.mrb[241].mxu0 }
0x234e   :  { %v9499_v60 = vpop.f32.mrb[240].mxu1 }
0x234f   :  { %v9501_v47 = vpop.f32.mrb[241].mxu1 }
0x2350   :  { %v9503_v35 = vpop.f32.mrb[242].mxu1 }
0x2351   :  { %v9504_v9 = vpop.f32.mrb[243].mxu1 }
0x235e   :  { %v9554_v17 = vpop.f32.mrb[244].mxu1 }
0x235f   :  { %v9555_v8 = vadd.f32 %v9554_v17, %v9499_v60  ;;  %v9556_v53 = vpop.f32.mrb[245].mxu1 }
0x2360   :  { %v9557_v43 = vadd.f32 %v9556_v53, %v9501_v47  ;;  %v9558_v39 = vpop.f32.mrb[246].mxu1 }
0x2361   :  { %v9559_v27 = vpop.f32.mrb[247].mxu1 }
0x236e   :  { %v9616_v3 = vpop.f32.mrb[248].mxu1 }
0x236f   :  { %v9627_v45 = vadd.f32 %v9616_v3, %v9555_v8  ;;  %v9618_v33 = vpop.f32.mrb[249].mxu1 }
0x2370   :  { %v9628_v20 = vadd.f32 %v9618_v33, %v9557_v43  ;;  %v9620_v13 = vpop.f32.mrb[250].mxu1 }
0x2371   :  { %v9621_v59 = vpop.f32.mrb[251].mxu1  ;;  %v21590_v13 = vld [vmem:[#allocation13_spill] sm:$0xff] }
0x2372   :  { %v21600_v59 = vld [vmem:[#allocation6_spill] sm:$0xff] }
0x237e   :  { %v9686_v56 = vpop.f32.mrb[252].mxu1 }
0x237f   :  { %v9697_v63 = vadd.f32 %v9686_v56, %v9627_v45  ;;  %v9688_v46 = vpop.f32.mrb[253].mxu1  ;;  %v21602_v56 = vld [vmem:[#allocation8_spill] sm:$0xff] }
0x2380   :  { %v9698_v54 = vadd.f32 %v9688_v46, %v9628_v20  ;;  %v9690_v52 = vpop.f32.mrb[254].mxu1  ;;  %v21587_v20 = vld [vmem:[#allocation12_spill] sm:$0xff] }
0x2381   :  { %v9691_v24 = vpop.f32.mrb[255].mxu1  ;;  %v21606_v46 = vld [vmem:[#allocation16_spill] sm:$0xff]  ;;  %v14353_v52 = vld [vmem:[%s19963_s3 + $0x7c] ss:$8 sps:$4 sm:$0xff]  }
0x2386   :  { %v9742_v4 = vpop.f32.mrb[236].mxu1 }
0x2387   :  { %v9765_v25 = vadd.f32 %v9742_v4, %v21584_v30  ;;  %v9744_v62 = vpop.f32.mrb[237].mxu1 }
0x2388   :  { %v9766_v34 = vadd.f32 %v9744_v62, %v21585_v49  ;;  %v9746_v29 = vpop.f32.mrb[238].mxu1 }
0x2389   :  { %v9767_v1 = vadd.f32 %v9746_v29, %v21584_v30  ;;  %v9748_v55 = vpop.f32.mrb[239].mxu1  ;;  %v9771_v7 = vmax.f32 %v9765_v25, 0.0 }
0x238a   :  { %v9768_v51 = vadd.f32 %v9748_v55, %v21585_v49  ;;  %v9772_v57 = vmax.f32 %v9766_v34, 0.0 }
0x238b   :  { %v9773_v41 = vmax.f32 %v9767_v1, 0.0 }
0x238c   :  { %v9774_v60 = vmax.f32 %v9768_v51, 0.0 }
0x238d   :  { %v13558_v47 = vpack.c.bf16 %v9773_v41, %v9771_v7  ;;  %v14354_v41 = vld [vmem:[%s19963_s3 + $0xf0] ss:$8 sps:$4 sm:$0xff]  }
0x238e   :  { %v13556_v35 = vpack.c.bf16 %v9774_v60, %v9772_v57  ;;  %v9752_v9 = vpop.f32.mrb[0].mxu1  ;;  %v14355_v57 = vld [vmem:[%s19963_s3 + $0x78] ss:$8 sps:$4 sm:$0xff]   ;;  %v14356_v60 = vld [vmem:[%s19963_s3 + $0x104] ss:$8 sps:$4 sm:$0xff]  }
0x238f   :  { %v9763_v17 = vadd.f32 %v9752_v9, %v9697_v63  ;;  %v9754_v8 = vpop.f32.mrb[1].mxu1  ;;  %v21604_v63 = vld [vmem:[#allocation14_spill] sm:$0xff]  ;;  %v14359_v9 = vld [vmem:[%s19963_s3 + $0x88] ss:$8 sps:$4 sm:$0xff]  }
0x2390   :  { %v9764_v53 = vadd.f32 %v9754_v8, %v9698_v54  ;;  %v9756_v43 = vpop.f32.mrb[2].mxu1  ;;  %13557 = vmatprep.subr.bf16.mxu0 %v13556_v35  ;;  %v21608_v54 = vld [vmem:[#allocation18_spill] sm:$0xff]  ;;  %v21615_v8 = vld [vmem:[#allocation24_spill] sm:$0xff] }
0x2391   :  { %v9769_v39 = vadd.f32 %v9763_v17, %v21584_v30  ;;  %v9757_v27 = vpop.f32.mrb[3].mxu1  ;;  %13559 = vmatpush1.bf16.msra.mxu0 %v13558_v47  ;;  %v21614_v17 = vld [vmem:[#allocation23_spill] sm:$0xff]  ;;  %v21617_v43 = vld [vmem:[#allocation26_spill] sm:$0xff] }
0x2392   :  { %v9770_v3 = vadd.f32 %v9764_v53, %v21585_v49  ;;  %v21616_v53 = vld [vmem:[#allocation25_spill] sm:$0xff]  ;;  %v21619_v27 = vld [vmem:[#allocation28_spill] sm:$0xff] }
0x2393   :  { %v9775_v33 = vmax.f32 %v9769_v39, 0.0  ;;  %v21618_v39 = vld [vmem:[#allocation27_spill] sm:$0xff] }
0x2394   :  { %v9776_v45 = vmax.f32 %v9770_v3, 0.0  ;;  %v21620_v3 = vld [vmem:[#allocation29_spill] sm:$0xff] }
0x2396   :  { %9781 = vmatprep.subr.mxu0 %v9776_v45 }
0x2397   :  { %9782 = vmatpush1.msra.mxu0 %v9775_v33 }
0x2398   :  { %12244 = vmatmul.mubr.msk.f32.vlgmr.msra.gmra.mrb[242].mxu0 %vm21586_vm13, %v14807_v12  ;;  %13561 = vmatprep.subr.bf16.mxu0 %v13556_v35  ;;  %vm21592_vm13 = vnez %v20441_v11  ;;  %v14358_v35 = vld [vmem:[%s19963_s3 + $0x100] ss:$8 sps:$4 sm:$0xff]  }
0x2399   :  { %13563 = vmatpush1.bf16.msra.mxu0 %v13558_v47  ;;  %9847 = vmatprep.mubr.f32.mxu0 %v20601_v58  ;;  %v14357_v47 = vld [vmem:[%s19963_s3 + $0x8c] ss:$8 sps:$4 sm:$0xff]  }
0x239a   :  { %9858 = vmatprep.subr.mxu0 %v9776_v45  ;;  %v21621_v45 = vld [vmem:[#allocation30_spill] sm:$0xff] }
0x239c   :  { %12245 = vmatmul.mubr.msk.f32.gmra.mrb[244].mxu0 %vm21588_vm10, %v21587_v20  ;;  %vm21593_vm10 = vnez %v20445_v15  ;;  %v21623_v20 = vld [vmem:[#allocation32_spill] sm:$0xff] }
0x239d   :  { %9859 = vmatpush1.msra.mxu0 %v9775_v33  ;;  %9918 = vmatprep.mubr.f32.mxu0 %v20601_v58  ;;  %v21622_v33 = vld [vmem:[#allocation31_spill] sm:$0xff] }
0x239e   :  { %13564 = vmatprep.subr.bf16.mxu0 %v20571_v44 }
0x23a0   :  { %12246 = vmatmul.mubr.msk.f32.vlgmr.msra.gmra.mrb[246].mxu0 %vm21589_vm2, %v14826_v16  ;;  %vm21594_vm2 = vnez %v20449_v19 }
0x23a1   :  { %9924 = vmatprep.mubr.f32.mxu0 %v20601_v58  ;;  %13566 = vmatpush1.bf16.msk.msra.mxu0 %vm14828_vm5, %v20573_v5 }
0x23a2   :  { %13567 = vmatprep.subr.bf16.mxu0 %v20571_v44 }
0x23a4   :  { %12247 = vmatmul.mubr.msk.f32.gmra.mrb[248].mxu0 %vm21591_vm12, %v21590_v13  ;;  %vm21595_vm12 = vnez %v20453_v23  ;;  %v21624_v13 = vld [vmem:[#allocation34_spill] sm:$0xff] }
0x23a5   :  { %13569 = vmatpush1.bf16.msk.msra.mxu0 %vm14593_vm14, %v20573_v5 }
0x23a6   :  { %13570 = vmatprep.subr.bf16.mxu0 %v20571_v44 }
0x23a9   :  { %13572 = vmatpush1.bf16.msk.msra.mxu0 %vm21592_vm13, %v20573_v5  ;;  %vm21596_vm13 = vnez %v20457_v28 }
0x23aa   :  { %13573 = vmatprep.subr.bf16.mxu0 %v20571_v44 }
0x23ad   :  { %13575 = vmatpush1.bf16.msk.msra.mxu0 %vm21593_vm10, %v20573_v5  ;;  %vm21597_vm10 = vnez %v20461_v32 }
0x23ae   :  { %13576 = vmatprep.subr.bf16.mxu0 %v20571_v44 }
0x23b1   :  { %13578 = vmatpush1.bf16.msk.msra.mxu0 %vm21594_vm2, %v20573_v5  ;;  %vm21598_vm2 = vnez %v20465_v37 }
0x23b2   :  { %13579 = vmatprep.subr.bf16.mxu0 %v20571_v44 }
0x23b5   :  { %13581 = vmatpush1.bf16.msk.msra.mxu0 %vm21595_vm12, %v20573_v5  ;;  %vm21599_vm12 = vnez %v20469_v42 }
0x23b6   :  { %13582 = vmatprep.subr.bf16.mxu0 %v20571_v44 }
0x23b9   :  { %13584 = vmatpush1.bf16.msk.msra.mxu0 %vm21596_vm13, %v20573_v5  ;;  %vm21601_vm13 = vnez %v21600_v59  ;;  %v21625_v59 = vld [vmem:[#allocation33_spill] sm:$0xff] }
0x23ba   :  { %13585 = vmatprep.subr.bf16.mxu0 %v20571_v44 }
0x23bd   :  { %13587 = vmatpush1.bf16.msk.msra.mxu0 %vm21597_vm10, %v20573_v5  ;;  %vm21603_vm10 = vnez %v21602_v56  ;;  %v21626_v56 = vld [vmem:[#allocation36_spill] sm:$0xff] }
0x23be   :  { %13588 = vmatprep.subr.bf16.mxu0 %v20571_v44 }
0x23c1   :  { %13590 = vmatpush1.bf16.msk.msra.mxu0 %vm21598_vm2, %v20573_v5  ;;  %vm21605_vm2 = vnez %v21604_v63  ;;  %v21627_v63 = vld [vmem:[#allocation35_spill] sm:$0xff] }
0x23c2   :  { %13591 = vmatprep.subr.bf16.mxu0 %v20571_v44 }
0x23c5   :  { %13593 = vmatpush1.bf16.msk.msra.mxu0 %vm21599_vm12, %v20573_v5  ;;  %vm21607_vm12 = vnez %v21606_v46  ;;  %v21628_v46 = vld [vmem:[#allocation38_spill] sm:$0xff] }
0x23c6   :  { %13594 = vmatprep.subr.bf16.mxu0 %v20571_v44 }
0x23c9   :  { %13596 = vmatpush1.bf16.msk.msra.mxu0 %vm21601_vm13, %v20573_v5  ;;  %vm21609_vm13 = vnez %v21608_v54  ;;  %v21629_v54 = vld [vmem:[#allocation37_spill] sm:$0xff] }
0x23ca   :  { %13597 = vmatprep.subr.bf16.mxu0 %v20571_v44 }
0x23cd   :  { %13599 = vmatpush1.bf16.msk.msra.mxu0 %vm21603_vm10, %v20573_v5  ;;  %vm21610_vm10 = vcmask 916480  }
0x23ce   :  { %13600 = vmatprep.subr.bf16.mxu0 %v20571_v44 }
0x23d1   :  { %13602 = vmatpush1.bf16.msk.msra.mxu0 %vm21605_vm2, %v20573_v5  ;;  %vm21611_vm2 = vmmov %vm21610_vm10 }
0x23d2   :  { %13603 = vmatprep.subr.bf16.mxu0 %v20571_v44 }
0x23d5   :  { %13605 = vmatpush1.bf16.msk.msra.mxu0 %vm21607_vm12, %v20573_v5  ;;  %vm21612_vm12 = vmmov %vm21611_vm2 }
0x23d6   :  { %13606 = vmatprep.subr.bf16.mxu0 %v20571_v44 }
0x23d9   :  { %13608 = vmatpush1.bf16.msk.msra.mxu0 %vm21609_vm13, %v20573_v5  ;;  %vm21613_vm13 = vmmov %vm21611_vm2 }
0x23da   :  { %10104 = vmatprep.subr.bf16.mxu0 %v14353_v52  ;;  %v21630_v52 = vld [vmem:[#allocation40_spill] sm:$0xff] }
0x246b   :  { %v9843_v24 = vpop.f32.mrb[242].mxu0 }
0x246c   :  { %v9845_v4 = vpop.f32.mrb[243].mxu0 }
0x246f   :  { %v9849_v30 = vpop.f32.mrb[244].mxu0 }
0x2470   :  { %v9851_v25 = vpop.f32.mrb[245].mxu0 }
0x2473   :  { %v9920_v62 = vpop.f32.mrb[246].mxu0 }
0x2474   :  { %v9931_v49 = vmax.f32 %v9843_v24, %v9920_v62  ;;  %v9922_v34 = vpop.f32.mrb[247].mxu0  ;;  %v21631_v24 = vld [vmem:[#allocation43_spill] sm:$0xff]  ;;  %v21636_v62 = vld [vmem:[#allocation42_spill] sm:$0xff] }
0x2475   :  { %v9932_v29 = vmax.f32 %v9845_v4, %v9922_v34  ;;  %v21632_v4 = vld [vmem:[#allocation45_spill] sm:$0xff]  ;;  %v21639_v34 = vld [vmem:[#allocation44_spill] sm:$0xff] }
0x2477   :  { %v9926_v1 = vpop.f32.mrb[248].mxu0  ;;  %12278 = vmatprep.mubr.msk.f32.mxu0 %vm21610_vm10, %v9932_v29  ;;  %12310 = vmatprep.mubr.msk.f32.mxu1 %vm21611_vm2, %v9932_v29  ;;  %vm21635_vm10 = vcmask 1043456   ;;  %v21640_v29 = vld [vmem:[#allocation47_spill] sm:$0xff] }
0x2478   :  { %v9933_v55 = vmax.f32 %v9849_v30, %v9926_v1  ;;  %v9928_v51 = vpop.f32.mrb[249].mxu0  ;;  %10006 = vmatmul.mubr.f32.vlgmr.msra.gmra.mrb[250].mxu0 %v9931_v49  ;;  %10081 = vmatmul.mubr.f32.vlgmr.msra.gmra.mrb[234].mxu1 %v9931_v49  ;;  %v21633_v30 = vld [vmem:[#allocation46_spill] sm:$0xff]  ;;  %vm21637_vm2 = vmmov %vm21635_vm10  ;;  %v21638_v49 = vld [vmem:[#allocation41_spill] sm:$0xff] }
0x2479   :  { %v9934_v7 = vmax.f32 %v9851_v25, %v9928_v51  ;;  %10194 = vmatpush1.bf16.msra.mxu1 %v14354_v41  ;;  %10105 = vmatpush1.bf16.msra.mxu0 %v14355_v57  ;;  %v21634_v25 = vld [vmem:[#allocation39_spill] sm:$0xff]  ;;  %v21641_v1 = vld [vmem:[#allocation48_spill] sm:$0xff] }
0x247a   :  { %10195 = vmatprep.subr.bf16.mxu1 %v14356_v60  ;;  %10106 = vmatprep.subr.bf16.mxu0 %v14357_v47 }
0x247b   :  { %12279 = vmatprep.mubr.msk.f32.mxu0 %vm21612_vm12, %v9934_v7  ;;  %12311 = vmatprep.mubr.msk.f32.mxu1 %vm21613_vm13, %v9934_v7  ;;  %vm21642_vm12 = vcmask 982016  }
0x247c   :  { %10011 = vmatmul.mubr.f32.gmra.mrb[252].mxu0 %v9933_v55  ;;  %10086 = vmatmul.mubr.f32.gmra.mrb[4].mxu1 %v9933_v55  ;;  %vm21645_vm13 = vmmov %vm21642_vm12 }
0x247d   :  { %10196 = vmatpush1.bf16.msra.mxu1 %v14358_v35  ;;  %10107 = vmatpush1.bf16.msra.mxu0 %v14359_v9 }
0x247e   :  { %10197 = vmatprep.subr.bf16.mxu1 %v21614_v17  ;;  %10108 = vmatprep.subr.bf16.mxu0 %v21615_v8 }
0x247f   :  { %10225 = vmatprep.mubr.bf16.mxu1 %v20543_v48  ;;  %10136 = vmatprep.mubr.bf16.mxu0 %v20543_v48 }
0x2481   :  { %10198 = vmatpush1.bf16.msra.mxu1 %v21616_v53  ;;  %10109 = vmatpush1.bf16.msra.mxu0 %v21617_v43 }
0x2482   :  { %10199 = vmatprep.subr.bf16.mxu1 %v21618_v39  ;;  %10110 = vmatprep.subr.bf16.mxu0 %v21619_v27 }
0x2485   :  { %10200 = vmatpush1.bf16.msra.mxu1 %v21620_v3  ;;  %10111 = vmatpush1.bf16.msra.mxu0 %v21621_v45 }
0x2486   :  { %10201 = vmatprep.subr.bf16.mxu1 %v21622_v33  ;;  %10112 = vmatprep.subr.bf16.mxu0 %v21623_v20  ;;  %v21643_v33 = vld [vmem:[#allocation49_spill] sm:$0xff] }
0x2489   :  { %10202 = vmatpush1.bf16.msra.mxu1 %v21624_v13  ;;  %10113 = vmatpush1.bf16.msra.mxu0 %v21625_v59  ;;  %v21644_v59 = vld [vmem:[#allocation50_spill] sm:$0xff] }
0x248a   :  { %10203 = vmatprep.subr.bf16.mxu1 %v21626_v56  ;;  %10114 = vmatprep.subr.bf16.mxu0 %v21627_v63  ;;  %v21646_v56 = vld [vmem:[#allocation51_spill] sm:$0xff]  ;;  %v21647_v63 = vld [vmem:[#allocation52_spill] sm:$0xff] }
0x248d   :  { %10204 = vmatpush1.bf16.msra.mxu1 %v21628_v46  ;;  %10115 = vmatpush1.bf16.msra.mxu0 %v21629_v54  ;;  %v21648_v46 = vld [vmem:[#allocation53_spill] sm:$0xff]  ;;  %v21649_v54 = vld [vmem:[#allocation54_spill] sm:$0xff] }
0x248e   :  { %10205 = vmatprep.subr.bf16.mxu1 %v21630_v52  ;;  %10116 = vmatprep.subr.bf16.mxu0 %v21631_v24  ;;  %v21650_v52 = vld [vmem:[#allocation55_spill] sm:$0xff]  ;;  %v21651_v24 = vld [vmem:[#allocation56_spill] sm:$0xff] }
0x2491   :  { %10206 = vmatpush1.bf16.msra.mxu1 %v21632_v4  ;;  %10117 = vmatpush1.bf16.msra.mxu0 %v21633_v30  ;;  %v21652_v4 = vld [vmem:[#allocation57_spill] sm:$0xff]  ;;  %v21653_v30 = vld [vmem:[#allocation58_spill] sm:$0xff] }
0x2492   :  { %12316 = vmatprep.subr.msk.bf16.mxu1 %vm21635_vm10, %v21634_v25  ;;  %12312 = vmatprep.subr.msk.bf16.mxu0 %vm21637_vm2, %v21636_v62  ;;  %v21654_v25 = vld [vmem:[#allocation59_spill] sm:$0xff]  ;;  %v21655_v62 = vld [vmem:[#allocation60_spill] sm:$0xff]  ;;  %vm21670_vm10 = vmmov %vm21637_vm2 }
0x2495   :  { %10208 = vmatpush1.bf16.msra.mxu1 %v21638_v49  ;;  %10119 = vmatpush1.bf16.msra.mxu0 %v21639_v34  ;;  %v21656_v49 = vld [vmem:[#allocation61_spill] sm:$0xff]  ;;  %v21657_v34 = vld [vmem:[#allocation62_spill] sm:$0xff] }
0x2496   :  { %10289 = vmatprep.subr.bf16.mxu1 %v21640_v29  ;;  %10147 = vmatprep.subr.bf16.mxu0 %v21641_v1  ;;  %v21658_v29 = vld [vmem:[#allocation63_spill] sm:$0xff]  ;;  %v21659_v1 = vld [vmem:[#allocation64_spill] sm:$0xff] }
0x254b   :  { %v10007_v55 = vpop.f32.mrb[250].mxu0  ;;  %v10082_v51 = vpop.f32.mrb[234].mxu1 }
0x254c   :  { %v10091_v7 = vmax.f32 %v10007_v55, %v10082_v51  ;;  %v10009_v41 = vpop.f32.mrb[251].mxu0  ;;  %v10084_v57 = vpop.f32.mrb[235].mxu1  ;;  %v21660_v55 = vld [vmem:[#allocation65_spill] sm:$0xff]  ;;  %v21661_v51 = vld [vmem:[#allocation66_spill] sm:$0xff] }
0x254d   :  { %v21663_v41 = vld [vmem:[#allocation68_spill] sm:$0xff]  ;;  %v21664_v57 = vld [vmem:[#allocation69_spill] sm:$0xff] }
0x254f   :  { %v10012_v60 = vpop.f32.mrb[252].mxu0  ;;  %v10087_v47 = vpop.f32.mrb[4].mxu1 }
0x2550   :  { %v10092_v35 = vmax.f32 %v10012_v60, %v10087_v47  ;;  %v10014_v9 = vpop.f32.mrb[253].mxu0  ;;  %v10089_v17 = vpop.f32.mrb[5].mxu1  ;;  %v21665_v60 = vld [vmem:[#allocation70_spill] sm:$0xff]  ;;  %v21666_v47 = vld [vmem:[#allocation72_spill] sm:$0xff] }
0x2551   :  { %v21668_v9 = vld [vmem:[#allocation77_spill] sm:$0xff]  ;;  %v21669_v17 = vld [vmem:[#allocation71_spill] sm:$0xff] }
0x2552   :  { %v10093_v8 = vpack.c.bf16 %v10092_v35, %v10091_v7  ;;  %v21662_v7 = vld [vmem:[#allocation67_spill] sm:$0xff]  ;;  %v21667_v35 = vld [vmem:[#allocation76_spill] sm:$0xff] }
0x2554   :  { %v10095_v53 = vshrl.u32 %v10093_v8, 16  ;;  %v10097_v43 = vshll.u32 %v10093_v8, 16  ;;  %v10189_v39 = vrot.slane %v10093_v8, 1 }
0x2556   :  { %v10099_v27 = vrot.slane %v10097_v43, 1  ;;  %v19643_v3 = vrot.slane %v10095_v53, 1  ;;  %v19645_v45 = vrot.slane %v10097_v43, 2  ;;  %12317 = vmatmul.mubr.msk.bf16.vlgmr.msra.gmra.mrb[8].mxu1 %vm21642_vm12, %v10189_v39  ;;  %v21672_v43 = vld [vmem:[#allocation73_spill] sm:$0xff]  ;;  %v10285_v39 = vrot.slane %v10093_v8, 2 }
0x2557   :  { %10290 = vmatpush1.bf16.msra.mxu1 %v21643_v33  ;;  %10321 = vmatprep.mubr.bf16.mxu1 %v20543_v48  ;;  %v21674_v33 = vld [vmem:[#allocation75_spill] sm:$0xff] }
0x2558   :  { %v10100_v20 = vor.u32 %v10099_v27, %v10095_v53  ;;  %v10238_v13 = vor.u32 %v19645_v45, %v19643_v3  ;;  %10291 = vmatprep.subr.bf16.mxu1 %v21644_v59  ;;  %v21671_v53 = vld [vmem:[#allocation78_spill] sm:$0xff]  ;;  %v21677_v59 = vld [vmem:[#allocation80_spill] sm:$0xff] }
0x2559   :  { %v21673_v27 = vld [vmem:[#allocation74_spill] sm:$0xff] }
0x255a   :  { %12313 = vmatmul.mubr.msk.bf16.vlgmr.msra.gmra.mrb[4].mxu0 %vm21645_vm13, %v10100_v20  ;;  %v21675_v20 = vld [vmem:[#allocation79_spill] sm:$0xff]  ;;  %vm21676_vm13 = vmmov %vm21642_vm12 }
0x255b   :  { %10148 = vmatpush1.bf16.msra.mxu0 %v21646_v56  ;;  %10292 = vmatpush1.bf16.msra.mxu1 %v21647_v63  ;;  %v21678_v56 = vld [vmem:[#allocation81_spill] sm:$0xff]  ;;  %v21680_v63 = vld [vmem:[#allocation83_spill] sm:$0xff] }
0x255c   :  { %10149 = vmatprep.subr.bf16.mxu0 %v21648_v46  ;;  %10293 = vmatprep.subr.bf16.mxu1 %v21649_v54  ;;  %v21684_v46 = vld [vmem:[#allocation87_spill] sm:$0xff]  ;;  %v21686_v54 = vld [vmem:[#allocation89_spill] sm:$0xff] }
0x255d   :  { %10179 = vmatprep.mubr.bf16.mxu0 %v20543_v48 }
0x255f   :  { %10150 = vmatpush1.bf16.msra.mxu0 %v21650_v52  ;;  %10294 = vmatpush1.bf16.msra.mxu1 %v21651_v24  ;;  %v21688_v52 = vld [vmem:[#allocation93_spill] sm:$0xff]  ;;  %v21690_v24 = vld [vmem:[#allocation90_spill] sm:$0xff] }
0x2560   :  { %10151 = vmatprep.subr.bf16.mxu0 %v21652_v4  ;;  %10295 = vmatprep.subr.bf16.mxu1 %v21653_v30 }
0x2563   :  { %10152 = vmatpush1.bf16.msra.mxu0 %v21654_v25  ;;  %10296 = vmatpush1.bf16.msra.mxu1 %v21655_v62 }
0x2564   :  { %10153 = vmatprep.subr.bf16.mxu0 %v21656_v49  ;;  %10297 = vmatprep.subr.bf16.mxu1 %v21657_v34 }
0x2567   :  { %10154 = vmatpush1.bf16.msra.mxu0 %v21658_v29  ;;  %10298 = vmatpush1.bf16.msra.mxu1 %v21659_v1 }
0x2568   :  { %10155 = vmatprep.subr.bf16.mxu0 %v21660_v55  ;;  %10299 = vmatprep.subr.bf16.mxu1 %v21661_v51 }
0x256b   :  { %10156 = vmatpush1.bf16.msra.mxu0 %v21662_v7  ;;  %10300 = vmatpush1.bf16.msra.mxu1 %v21663_v41 }
0x256c   :  { %10157 = vmatprep.subr.bf16.mxu0 %v21664_v57  ;;  %10301 = vmatprep.subr.bf16.mxu1 %v21665_v60 }
0x256f   :  { %10158 = vmatpush1.bf16.msra.mxu0 %v21666_v47  ;;  %10302 = vmatpush1.bf16.msra.mxu1 %v21667_v35 }
0x2570   :  { %10159 = vmatprep.subr.bf16.mxu0 %v21668_v9  ;;  %12320 = vmatprep.subr.msk.bf16.mxu1 %vm21670_vm10, %v21669_v17  ;;  %vm21704_vm10 = vcmask 261120  }
0x2573   :  { %10160 = vmatpush1.bf16.msra.mxu0 %v21671_v53  ;;  %10304 = vmatpush1.bf16.msra.mxu1 %v21672_v43 }
0x2574   :  { %12314 = vmatprep.subr.msk.bf16.mxu0 %vm21637_vm2, %v21673_v27  ;;  %13684 = vmatprep.subr.bf16.mxu1 %v20571_v44 }
0x2576   :  { %12321 = vmatmul.mubr.msk.bf16.vlgmr.msra.gmra.mrb[12].mxu1 %vm21642_vm12, %v10285_v39 }
0x2577   :  { %10162 = vmatpush1.bf16.msra.mxu0 %v21674_v33  ;;  %13686 = vmatpush1.bf16.msk.msra.mxu1 %vm20574_vm8, %v20573_v5  ;;  %vm21693_vm8 = vmmov %vm21642_vm12  ;;  %vm14367_vm12 = vmmov 0  }
0x2578   :  { %10242 = vmatprep.subr.bf16.mxu0 %v21675_v20  ;;  %13687 = vmatprep.subr.bf16.mxu1 %v20571_v44 }
0x257a   :  { %12315 = vmatmul.mubr.msk.bf16.vlgmr.msra.gmra.mrb[8].mxu0 %vm21676_vm13, %v10093_v8  ;;  %v21681_v8 = vld [vmem:[#allocation84_spill] sm:$0xff]  ;;  %vm2145_vm13 = vcmask 654336  }
0x257b   :  { %10243 = vmatpush1.bf16.msra.mxu0 %v21677_v59  ;;  %10274 = vmatprep.mubr.bf16.mxu0 %v20543_v48  ;;  %v21682_v48 = vld [vmem:[#allocation85_spill] sm:$0xff] }
0x257c   :  { %10244 = vmatprep.subr.bf16.mxu0 %v21678_v56  ;;  %13689 = vmatpush1.bf16.msk.msra.mxu1 %vm20578_vm9, %v20573_v5  ;;  %vm21691_vm9 = vmmov %vm21637_vm2  ;;  %v14065_v56 = vld [vmem:[%s19965_s5 + $0x20] sm:$0xff]  }
0x257d   :  { %13690 = vmatprep.subr.bf16.mxu1 %v20571_v44  ;;  %vm21705_vm2 = vmmov %vm21704_vm10 }
0x257f   :  { %10245 = vmatpush1.bf16.msra.mxu0 %v21679_v0  ;;  %v14066_v0 = vld [vmem:[%s19965_s5 + $0x88] sm:$0xff]  }
0x2580   :  { %10246 = vmatprep.subr.bf16.mxu0 %v21680_v63  ;;  %13692 = vmatpush1.bf16.msk.msra.mxu1 %vm20735_vm15, %v20573_v5  ;;  %vm21696_vm15 = vnez %v20441_v11  ;;  %v14067_v63 = vld [vmem:[%s19965_s5 + $0x68] sm:$0xff]  }
0x2581   :  { %13693 = vmatprep.subr.bf16.mxu1 %v20571_v44 }
0x2583   :  { %10247 = vmatpush1.bf16.msra.mxu0 %v21681_v8  ;;  %v14068_v8 = vld [vmem:[%s19965_s5 + $0x28] sm:$0xff]  }
0x2584   :  { %10248 = vmatprep.subr.bf16.mxu0 %v21682_v48  ;;  %13695 = vmatpush1.bf16.msk.msra.mxu1 %vm20629_vm7, %v20573_v5  ;;  %vm21694_vm7 = vcmask 64512   ;;  %v14069_v48 = vld [vmem:[%s19965_s5 + $0x90] sm:$0xff]  }
0x2585   :  { %13696 = vmatprep.subr.bf16.mxu1 %v20571_v44 }
0x2587   :  { %10249 = vmatpush1.bf16.msra.mxu0 %v21683_v10  ;;  %v14070_v10 = vld [vmem:[%s19965_s5 + $0x70] sm:$0xff]  }
0x2588   :  { %10250 = vmatprep.subr.bf16.mxu0 %v21684_v46  ;;  %13698 = vmatpush1.bf16.msk.msra.mxu1 %vm20630_vm6, %v20573_v5  ;;  %vm21695_vm6 = vmmov %vm21694_vm7 }
0x2589   :  { %13699 = vmatprep.subr.bf16.mxu1 %v20571_v44 }
0x258b   :  { %10251 = vmatpush1.bf16.msra.mxu0 %v21685_v14 }
0x258c   :  { %10252 = vmatprep.subr.bf16.mxu0 %v21686_v54  ;;  %13701 = vmatpush1.bf16.msk.msra.mxu1 %vm20785_vm1, %v20573_v5  ;;  %vm21697_vm1 = vnez %v20445_v15  ;;  %v14071_v54 = vld [vmem:[%s19965_s5 + $0x30] sm:$0xff]  }
0x258d   :  { %13702 = vmatprep.subr.bf16.mxu1 %v20571_v44 }
0x258f   :  { %10253 = vmatpush1.bf16.msra.mxu0 %v21687_v18 }
0x2590   :  { %10254 = vmatprep.subr.bf16.mxu0 %v21688_v52  ;;  %13704 = vmatpush1.bf16.msk.msra.mxu1 %vm20786_vm3, %v20573_v5  ;;  %vm21700_vm3 = vnez %v20457_v28 }
0x2591   :  { %13705 = vmatprep.subr.bf16.mxu1 %v20571_v44 }
0x2593   :  { %10255 = vmatpush1.bf16.msra.mxu0 %v21689_v22 }
0x2594   :  { %12318 = vmatprep.subr.msk.bf16.mxu0 %vm21691_vm9, %v21690_v24  ;;  %13707 = vmatpush1.bf16.msk.msra.mxu1 %vm20909_vm11, %v20573_v5  ;;  %vm21701_vm11 = vnez %v20461_v32  ;;  %v14055_v32 = vld [vmem:[%s19965_s5 + $0x40] sm:$0xff]   ;;  %v14072_v24 = vld [vmem:[%s19965_s5 + $0x98] sm:$0xff]   ;;  %vm21707_vm9 = vmmov %vm21705_vm2 }
0x2595   :  { %13708 = vmatprep.subr.bf16.mxu1 %v20571_v44 }
0x2597   :  { %10257 = vmatpush1.bf16.msra.mxu0 %v21692_v26  ;;  %v9416_v26 = vrot.slane %v19509_v38, 2 }
0x2598   :  { %13710 = vmatpush1.bf16.msk.msra.mxu1 %vm20911_vm4, %v20573_v5  ;;  %vm21702_vm4 = vnez %v20465_v37  ;;  %v14056_v37 = vld [vmem:[%s19965_s5] sm:$0xff]  }
0x2599   :  { %13711 = vmatprep.subr.bf16.mxu1 %v20571_v44 }
0x259a   :  { %12319 = vmatmul.mubr.msk.bf16.vlgmr.msra.gmra.mrb[12].mxu0 %vm21693_vm8, %v10238_v13  ;;  %vm10696_vm8 = vcmask 1040384  }
0x259b   :  { %10400 = vmatprep.mubr.f32.mxu0 %v20601_v58 }
0x259c   :  { %13713 = vmatpush1.bf16.msk.msra.mxu1 %vm21070_vm0, %v20573_v5  ;;  %vm21703_vm0 = vnez %v20469_v42  ;;  %v14057_v42 = vld [vmem:[%s19965_s5 + $0x48] sm:$0xff]  }
0x259d   :  { %12426 = vmatprep.subr.bf16.mxu1 %v20601_v58 }
0x2629   :  { %v10227_v31 = vpop.f32.mrb[8].mxu1 }
0x262a   :  { %v10229_v36 = vpop.f32.mrb[9].mxu1 }
0x262b   :  { %v10231_v4 = vpop.f32.mrb[10].mxu1 }
0x262c   :  { %v10232_v40 = vpop.f32.mrb[11].mxu1 }
0x262d   :  { %v10138_v30 = vpop.f32.mrb[4].mxu0  ;;  %v14073_v40 = vld [vmem:[%s19965_s5 + $0x78] sm:$0xff]  }
0x262e   :  { %v10140_v25 = vpop.f32.mrb[5].mxu0 }
0x262f   :  { %v10142_v62 = vpop.f32.mrb[6].mxu0 }
0x2630   :  { %v10143_v49 = vpop.f32.mrb[7].mxu0 }
0x2649   :  { %v10323_v34 = vpop.f32.mrb[12].mxu1 }
0x264a   :  { %v10325_v3 = vpop.f32.mrb[13].mxu1 }
0x264b   :  { %v10327_v45 = vpop.f32.mrb[14].mxu1 }
0x264c   :  { %v10328_v13 = vpop.f32.mrb[15].mxu1  ;;  %v13852_v45 = vpop.permute.xlu0 %13851 }
0x264d   :  { %v10181_v29 = vpop.f32.mrb[8].mxu0  ;;  %v13862_v13 = vpop.permute.xlu1 %13861 }
0x264e   :  { %v10182_v1 = vadd.f32 %v10181_v29, %v10138_v30  ;;  %v10183_v55 = vpop.f32.mrb[9].mxu0  ;;  %v14074_v30 = vld [vmem:[%s19965_s5 + $0x38] sm:$0xff]  }
0x264f   :  { %v10184_v51 = vadd.f32 %v10183_v55, %v10140_v25  ;;  %v10185_v50 = vpop.f32.mrb[10].mxu0 }
0x2650   :  { %v10186_v7 = vpop.f32.mrb[11].mxu0  ;;  %v10234_v41 = vadd.f32 %v10227_v31, %v10182_v1  ;;  %v13857_v29 = vpop.permute.xlu0 %13856 }
0x2651   :  { %v10235_v57 = vadd.f32 %v10229_v36, %v10184_v51  ;;  %v9412_v36 = vrot.slane %v19509_v38, 1  ;;  %v13867_v1 = vpop.permute.xlu1 %13866  ;;  %v13853_v51 = vunpack.i.l.bf16 %v13852_v45  ;;  %v13858_v50 = vunpack.i.l.bf16 %v13857_v29 }
0x2652   :  { %v13854_v7 = vunpack.i.h.bf16 %v13852_v45 }
0x2654   :  { %v13872_v55 = vpop.permute.xlu0 %13871 }
0x266d   :  { %v10276_v60 = vpop.f32.mrb[12].mxu0 }
0x266e   :  { %v10283_v47 = vadd.f32 %v10276_v60, %v10234_v41  ;;  %v10278_v35 = vpop.f32.mrb[13].mxu0  ;;  %v13868_v41 = vunpack.i.l.bf16 %v13867_v1  ;;  %v13882_v60 = vpop.permute.xlu0 %13881 }
0x266f   :  { %v10284_v9 = vadd.f32 %v10278_v35, %v10235_v57  ;;  %v10280_v17 = vpop.f32.mrb[14].mxu0  ;;  %v13859_v57 = vunpack.i.h.bf16 %v13857_v29  ;;  %v21706_v35 = vld [vmem:[#allocation20_spill] sm:$0xff] }
0x2670   :  { %v10330_v53 = vadd.f32 %v10323_v34, %v10283_v47  ;;  %v10281_v43 = vpop.f32.mrb[15].mxu0  ;;  %v9420_v34 = vrot.slane %v19509_v38, 3  ;;  %v13863_v47 = vunpack.i.l.bf16 %v13862_v13  ;;  %v3360_v17 = vsel %vm21707_vm9, %v13853_v51, %v13858_v50 }
0x2671   :  { %v10331_v39 = vadd.f32 %v10325_v3, %v10284_v9  ;;  %v3359_v9 = vsel %vm2145_vm13, %v21706_v35, %v13853_v51  ;;  %v13877_v43 = vpop.permute.xlu1 %13876  ;;  %vm10711_vm9 = vcmask 1044480  }
0x2672   :  { %v10332_v27 = vadd.f32 %v10330_v53, %v15486_v21  ;;  %v14062_v21 = vld [vmem:[%s19965_s5 + $0x18] sm:$0xff]   ;;  %v13869_v53 = vunpack.i.h.bf16 %v13867_v1 }
0x2673   :  { %v10333_v33 = vadd.f32 %v10331_v39, %v15490_v2  ;;  %v14064_v2 = vld [vmem:[%s19965_s5 + $0x60] sm:$0xff]   ;;  %v13864_v39 = vunpack.i.h.bf16 %v13862_v13 }
0x2674   :  { %v10334_v59 = vmax.f32 %v10332_v27, 0.0  ;;  %v21708_v27 = vld [vmem:[#allocation98_spill] sm:$0xff] }
0x2675   :  { %v10335_v20 = vmax.f32 %v10333_v33, 0.0  ;;  %v4572_v33 = vsel %vm2145_vm13, %v21708_v27, %v13854_v7 }
0x2677   :  { %10336 = vmatprep.subr.mxu0 %v10335_v20 }
0x2678   :  { %10337 = vmatpush1.msra.mxu0 %v10334_v59 }
0x2679   :  { %12322 = vmatmul.mubr.msk.f32.vlgmr.msra.gmra.mrb[254].mxu0 %vm21694_vm7, %v14807_v12  ;;  %10407 = vmatprep.subr.mxu0 %v10335_v20  ;;  %v14058_v12 = vld [vmem:[%s19965_s5 + $0x8] sm:$0xff]   ;;  %v13873_v20 = vunpack.i.l.bf16 %v13872_v55  ;;  %vm21710_vm7 = vcmask 916480  }
0x267a   :  { %10408 = vmatpush1.msra.mxu0 %v10334_v59  ;;  %10471 = vmatprep.mubr.f32.mxu0 %v20601_v58  ;;  %v21709_v59 = vld [vmem:[#allocation99_spill] sm:$0xff] }
0x267b   :  { %13654 = vmatprep.subr.bf16.mxu0 %v20571_v44 }
0x267d   :  { %12323 = vmatmul.mubr.msk.f32.vlgmr.msra.gmra.mrb[16].mxu0 %vm21695_vm6, %v14826_v16  ;;  %v14059_v16 = vld [vmem:[%s19965_s5 + $0x50] sm:$0xff]   ;;  %vm21711_vm6 = vmmov %vm21705_vm2 }
0x267e   :  { %13656 = vmatpush1.bf16.msk.msra.mxu0 %vm14828_vm5, %v20573_v5  ;;  %vm21698_vm5 = vnez %v20449_v19 }
0x267f   :  { %13657 = vmatprep.subr.bf16.mxu0 %v20571_v44 }
0x2682   :  { %13659 = vmatpush1.bf16.msk.msra.mxu0 %vm14593_vm14, %v20573_v5  ;;  %vm21699_vm14 = vnez %v20453_v23 }
0x2683   :  { %13660 = vmatprep.subr.bf16.mxu0 %v20571_v44 }
0x2686   :  { %13662 = vmatpush1.bf16.msk.msra.mxu0 %vm21696_vm15, %v20573_v5  ;;  %vm10700_vm15 = vcmask 1041408  }
0x2687   :  { %13663 = vmatprep.subr.bf16.mxu0 %v20571_v44 }
0x268a   :  { %13665 = vmatpush1.bf16.msk.msra.mxu0 %vm21697_vm1, %v20573_v5  ;;  %vm21713_vm1 = vmmov %vm21710_vm7 }
0x268b   :  { %13666 = vmatprep.subr.bf16.mxu0 %v20571_v44 }
0x268e   :  { %13668 = vmatpush1.bf16.msk.msra.mxu0 %vm21698_vm5, %v20573_v5  ;;  %vm21714_vm5 = vmmov %vm21705_vm2 }
0x268f   :  { %13669 = vmatprep.subr.bf16.mxu0 %v20571_v44 }
0x2692   :  { %13671 = vmatpush1.bf16.msk.msra.mxu0 %vm21699_vm14, %v20573_v5  ;;  %vm10704_vm14 = vcmask 1042432  }
0x2693   :  { %13672 = vmatprep.subr.bf16.mxu0 %v20571_v44 }
0x2696   :  { %13674 = vmatpush1.bf16.msk.msra.mxu0 %vm21700_vm3, %v20573_v5  ;;  %vm21715_vm3 = vmmov %vm21713_vm1 }
0x2697   :  { %13675 = vmatprep.subr.bf16.mxu0 %v20571_v44 }
0x269a   :  { %13677 = vmatpush1.bf16.msk.msra.mxu0 %vm21701_vm11, %v20573_v5  ;;  %vm21716_vm11 = vmmov %vm21705_vm2 }
0x269b   :  { %13678 = vmatprep.subr.bf16.mxu0 %v20571_v44 }
0x269e   :  { %13680 = vmatpush1.bf16.msk.msra.mxu0 %vm21702_vm4, %v20573_v5  ;;  %vm21718_vm4 = vmmov %vm21713_vm1 }
0x269f   :  { %13681 = vmatprep.subr.bf16.mxu0 %v20571_v44  ;;  %v14061_v44 = vld [vmem:[%s19965_s5 + $0x58] sm:$0xff]  }
0x26a2   :  { %13683 = vmatpush1.bf16.msk.msra.mxu0 %vm21703_vm0, %v20573_v5  ;;  %v14063_v5 = vld [vmem:[%s19965_s5 + $0x80] sm:$0xff]   ;;  %vm21720_vm0 = vmmov %vm21705_vm2 }
0x26a3   :  { %12394 = vmatprep.subr.bf16.mxu0 %v14055_v32  ;;  %v13874_v32 = vunpack.i.h.bf16 %v13872_v55 }
0x274c   :  { %v10402_v6 = vpop.f32.mrb[254].mxu0 }
0x274d   :  { %v10404_v11 = vpop.f32.mrb[255].mxu0 }
0x2750   :  { %v10473_v15 = vpop.f32.mrb[16].mxu0 }
0x2751   :  { %v10478_v19 = vmax.f32 %v10402_v6, %v10473_v15  ;;  %v10475_v23 = vpop.f32.mrb[17].mxu0  ;;  %v2146_v6 = vsel %vm2145_vm13, %v21709_v59, %v13868_v41  ;;  %v3361_v15 = vsel %vm21710_vm7, %v3360_v17, %v13863_v47  ;;  %vm21723_vm7 = vmmov %vm21713_vm1 }
0x2752   :  { %v10479_v28 = vmax.f32 %v10404_v11, %v10475_v23  ;;  %v10642_v11 = vrot.slane %v3359_v9, 7  ;;  %v13878_v23 = vunpack.i.l.bf16 %v13877_v43 }
0x2754   :  { %12344 = vmatprep.mubr.msk.f32.mxu0 %vm21704_vm10, %v10479_v28  ;;  %12365 = vmatprep.mubr.msk.f32.mxu1 %vm21705_vm2, %v10479_v28  ;;  %v10644_v28 = vrot.slane %v13863_v47, 7  ;;  %vm21721_vm10 = vmmov %vm21713_vm1 }
0x2755   :  { %10548 = vmatmul.mubr.f32.vlgmr.msra.gmra.mrb[18].mxu0 %v10478_v19  ;;  %10618 = vmatmul.mubr.f32.vlgmr.msra.gmra.mrb[6].mxu1 %v10478_v19  ;;  %v4573_v19 = vsel %vm21711_vm6, %v13854_v7, %v13859_v57  ;;  %vm21722_vm2 = vmmov %vm21720_vm0  ;;  %vm21724_vm6 = vcmask 1043456  }
0x2756   :  { %12395 = vmatpush3.bf16.msra.mxu0 %v14056_v37  ;;  %12427 = vmatpush3.bf16.msra.mxu1 %v14063_v5  ;;  %v21712_v37 = vld [vmem:[#allocation21_spill] sm:$0xff]  ;;  %v13879_v5 = vunpack.i.h.bf16 %v13877_v43 }
0x2757   :  { %12396 = vmatprep.subr.bf16.mxu0 %v14057_v42  ;;  %12428 = vmatprep.subr.bf16.mxu1 %v20601_v58  ;;  %v5785_v42 = vsel %vm2145_vm13, %v21712_v37, %v13869_v53 }
0x2758   :  { %12434 = vmatprep.mubr.msk.bf16.mxu1 %vm14367_vm12, %v20601_v58  ;;  %v10660_v45 = vrot.slane %v13879_v5, 5 }
0x275a   :  { %12397 = vmatpush3.bf16.msra.mxu0 %v14058_v12  ;;  %12429 = vmatpush3.bf16.msra.mxu1 %v14066_v0  ;;  %v13887_v12 = vpop.permute.xlu1 %13886  ;;  %v2147_v0 = vsel %vm21714_vm5, %v13868_v41, %v13873_v20  ;;  %vm21727_vm5 = vmmov %vm21720_vm0 }
0x275b   :  { %12398 = vmatprep.subr.bf16.mxu0 %v14059_v16  ;;  %12430 = vmatprep.subr.bf16.mxu1 %v20601_v58  ;;  %v13883_v16 = vunpack.i.l.bf16 %v13882_v60 }
0x275e   :  { %12399 = vmatpush3.bf16.msra.mxu0 %v14060_v61  ;;  %12431 = vmatpush3.bf16.msra.mxu1 %v14069_v48  ;;  %v10650_v61 = vrot.slane %v4572_v33, 6  ;;  %v2148_v48 = vsel %vm21715_vm3, %v2147_v0, %v13878_v23  ;;  %vm21728_vm3 = vmmov %vm21724_vm6 }
0x275f   :  { %12400 = vmatprep.subr.bf16.mxu0 %v14061_v44  ;;  %12432 = vmatprep.subr.bf16.mxu1 %v20601_v58  ;;  %v10697_v44 = vsel %vm10696_vm8, %v2146_v6, %v10642_v11 }
0x2762   :  { %12401 = vmatpush3.bf16.msra.mxu0 %v14062_v21  ;;  %12433 = vmatpush3.bf16.msra.mxu1 %v14072_v24  ;;  %v13892_v21 = vpop.permute.xlu0 %13891 }
0x2763   :  { %12402 = vmatprep.subr.bf16.mxu0 %v14064_v2  ;;  %12438 = vmatprep.subr.bf16.mxu1 %v20601_v58  ;;  %v4574_v2 = vsel %vm21713_vm1, %v4573_v19, %v13864_v39  ;;  %vm21726_vm1 = vmmov %vm21720_vm0 }
0x2766   :  { %12403 = vmatpush3.bf16.msra.mxu0 %v14065_v56  ;;  %v10643_v56 = vrot.slane %v3361_v15, 7 }
0x2767   :  { %12404 = vmatprep.subr.bf16.mxu0 %v14067_v63  ;;  %v13884_v63 = vunpack.i.h.bf16 %v13882_v60 }
0x276a   :  { %12405 = vmatpush3.bf16.msra.mxu0 %v14068_v8  ;;  %v10658_v8 = vrot.slane %v5785_v42, 5 }
0x276b   :  { %12406 = vmatprep.subr.bf16.mxu0 %v14070_v10  ;;  %v13888_v10 = vunpack.i.l.bf16 %v13887_v12 }
0x276e   :  { %12407 = vmatpush3.bf16.msra.mxu0 %v14071_v54  ;;  %v21717_v54 = vld [vmem:[#allocation101_spill] sm:$0xff] }
0x276f   :  { %12408 = vmatprep.subr.bf16.mxu0 %v14073_v40  ;;  %v21719_v40 = vld [vmem:[#allocation22_spill] sm:$0xff] }
0x2772   :  { %12409 = vmatpush3.bf16.msra.mxu0 %v14074_v30  ;;  %v8211_v30 = vsel %vm2145_vm13, %v21719_v40, %v13884_v63 }
0x2773   :  { %v10674_v50 = vrot.slane %v8211_v30, 3 }
0x2828   :  { %v10549_v46 = vpop.f32.mrb[18].mxu0  ;;  %v10619_v14 = vpop.f32.mrb[6].mxu1 }
0x2829   :  { %v19853_v18 = vmax.f32 %v10549_v46, %v10619_v14  ;;  %v10551_v52 = vpop.f32.mrb[19].mxu0  ;;  %v10621_v22 = vpop.f32.mrb[7].mxu1  ;;  %v5786_v46 = vsel %vm21716_vm11, %v13869_v53, %v13874_v32  ;;  %v10701_v14 = vsel %vm10700_vm15, %v10697_v44, %v10650_v61  ;;  %vm21731_vm11 = vmmov %vm21718_vm4 }
0x282a   :  { %v6998_v52 = vsel %vm2145_vm13, %v21717_v54, %v13883_v16  ;;  %v13893_v22 = vunpack.i.l.bf16 %v13892_v21  ;;  %v5787_v24 = vsel %vm21718_vm4, %v5786_v46, %v13879_v5 }
0x282b   :  { %v10629_v31 = vrot.slane %v19853_v18, 2  ;;  %v10625_v4 = vrot.slane %v19853_v18, 1  ;;  %v10633_v49 = vrot.slane %v19853_v18, 3  ;;  %v10659_v13 = vrot.slane %v5787_v24, 5  ;;  %v14076_v24 = vld [vmem:[%s19966_s7 + $0x8] sm:$0xff]  }
0x282c   :  { %v10668_v60 = vrot.slane %v13893_v22, 4 }
0x282d   :  { %v13900_v25 = vpack.i.bf16 %v10629_v31, %v9416_v26  ;;  %v13895_v62 = vpack.i.bf16 %v10625_v4, %v9412_v36  ;;  %v13905_v3 = vpack.i.bf16 %v10633_v49, %v9420_v34  ;;  %v10699_v26 = vsel %vm10696_vm8, %v13878_v23, %v10644_v28 }
0x282e   :  { %v13889_v31 = vunpack.i.h.bf16 %v13887_v12  ;;  %v10652_v36 = vrot.slane %v13864_v39, 6  ;;  %v10698_v4 = vsel %vm10696_vm8, %v2148_v48, %v10643_v56  ;;  %v10705_v49 = vsel %vm10704_vm14, %v10701_v14, %v10658_v8  ;;  %v14075_v14 = vld [vmem:[%s19966_s7] sm:$0xff]  }
0x282f   :  { %13901 = vrot.lane.b32.xlu0 %v13900_v25, %s14366_s11  ;;  %13896 = vrot.lane.b32.xlu1 %v13895_v62, %s14365_s10  ;;  %v13894_v25 = vunpack.i.h.bf16 %v13892_v21  ;;  %v10651_v62 = vrot.slane %v4574_v2, 6  ;;  %v6999_v34 = vsel %vm21720_vm0, %v13883_v16, %v13888_v10 }
0x2830   :  { %v10703_v29 = vsel %vm10700_vm15, %v10699_v26, %v10652_v36  ;;  %v7000_v1 = vsel %vm21721_vm10, %v6999_v34, %v13893_v22  ;;  %v8212_v51 = vsel %vm21722_vm2, %v13884_v63, %v13889_v31  ;;  %v14077_v26 = vld [vmem:[%s19966_s7 + $0x10] sm:$0xff]   ;;  %v14078_v31 = vld [vmem:[%s19966_s7 + $0x18] ss:$0 sps:$4 sm:$0x11]  }
0x2831   :  { %v10702_v55 = vsel %vm10700_vm15, %v10698_v4, %v10651_v62  ;;  %v8213_v57 = vsel %vm21723_vm7, %v8212_v51, %v13894_v25  ;;  %v10667_v17 = vrot.slane %v7000_v1, 4  ;;  %v10707_v39 = vsel %vm10704_vm14, %v10703_v29, %v10660_v45  ;;  %vm21725_vm15 = vmmov %vm21724_vm6  ;;  %v12366_v62 = vld [vmem:[%s19967_s6] ss:$0 sm:$0xff] }
0x2832   :  { %v10706_v20 = vsel %vm10704_vm14, %v10702_v55, %v10659_v13  ;;  %v10676_v59 = vrot.slane %v13894_v25, 3  ;;  %v10675_v6 = vrot.slane %v8213_v57, 3  ;;  %v10710_v19 = vsel %vm21725_vm15, %v10707_v39, %v10668_v60  ;;  %vm21730_vm14 = vmmov %vm21718_vm4  ;;  %v12388_v51 = vld [vmem:[%s19968_s8] ss:$0 sm:$0xff] }
0x2833   :  { %13906 = vrot.lane.b32.xlu1 %v13905_v3, %s14364_s30  ;;  %v10666_v3 = vrot.slane %v6998_v52, 4  ;;  %v10709_v12 = vsel %vm21728_vm3, %v10706_v20, %v10667_v17  ;;  %vm21732_vm4 = vcmask 1046528   ;;  %vm10892_vm7 = vcmask 523264  }
0x2834   :  { %v10714_v56 = vsel %vm10711_vm9, %v10710_v19, %v10676_v59  ;;  %v10713_v0 = vsel %vm10711_vm9, %v10709_v12, %v10675_v6  ;;  %vm21735_vm2 = vmmov %vm21732_vm4  ;;  %v11018_v36 = vsel %vm10696_vm8, %v14078_v31, 0  ;;  %vm11060_vm8 = vcmask 80896  }
0x2835   :  { %v10708_v9 = vsel %vm21724_vm6, %v10705_v49, %v10666_v3  ;;  %vm21736_vm6 = vmmov %vm21735_vm2 }
0x2836   :  { %v10712_v23 = vsel %vm10711_vm9, %v10708_v9, %v10674_v50 }
0x28a1   :  { %v13902_v7 = vpop.permute.xlu0 %13901  ;;  %v13897_v41 = vpop.permute.xlu1 %13896 }
0x28a2   :  { %v13899_v47 = vunpack.i.h.bf16 %v13897_v41  ;;  %v13898_v35 = vunpack.i.l.bf16 %v13897_v41  ;;  %v13904_v53 = vunpack.i.h.bf16 %v13902_v7  ;;  %v13903_v43 = vunpack.i.l.bf16 %v13902_v7 }
0x28a4   :  { %v10637_v27 = vsel %vm2145_vm13, %v19853_v18, %v13899_v47  ;;  %v9424_v33 = vsel %vm2145_vm13, %v19509_v38, %v13898_v35  ;;  %v10638_v37 = vsel %vm21726_vm1, %v13899_v47, %v13904_v53  ;;  %v9425_v18 = vsel %vm21727_vm5, %v13898_v35, %v13903_v43 }
0x28a5   :  { %v10682_v11 = vrot.slane %v9424_v33, 2  ;;  %v13907_v15 = vpop.permute.xlu1 %13906  ;;  %v10690_v42 = vrot.slane %v10637_v27, 1  ;;  %vm21729_vm13 = vcmask 1045504  }
0x28a6   :  { %v13909_v28 = vunpack.i.h.bf16 %v13907_v15  ;;  %v13908_v32 = vunpack.i.l.bf16 %v13907_v15  ;;  %vm21733_vm0 = vmmov %vm21729_vm13 }
0x28a7   :  { %v10715_v38 = vsel %vm21729_vm13, %v10712_v23, %v10682_v11  ;;  %vm21734_vm10 = vmmov %vm21733_vm0 }
0x28a8   :  { %v10692_v16 = vrot.slane %v13909_v28, 1  ;;  %v9426_v61 = vsel %vm21730_vm14, %v9425_v18, %v13908_v32  ;;  %v10639_v44 = vsel %vm21731_vm11, %v10638_v37, %v13909_v28  ;;  %v10684_v21 = vrot.slane %v13908_v32, 2 }
0x28a9   :  { %v10683_v5 = vrot.slane %v9426_v61, 2  ;;  %v10691_v2 = vrot.slane %v10639_v44, 1  ;;  %v10719_v63 = vsel %vm21732_vm4, %v10715_v38, %v10690_v42 }
0x28aa   :  { %v10717_v8 = vsel %vm21733_vm0, %v10714_v56, %v10684_v21  ;;  %v10722_v22 = vpack.c.bf16 %v10719_v63, %v10719_v63 }
0x28ab   :  { %v10716_v48 = vsel %vm21734_vm10, %v10713_v0, %v10683_v5  ;;  %v10721_v10 = vsel %vm21735_vm2, %v10717_v8, %v10692_v16 }
0x28ac   :  { %v10720_v46 = vsel %vm21736_vm6, %v10716_v48, %v10691_v2  ;;  %v10724_v54 = vpack.c.bf16 %v10721_v10, %v10721_v10 }
0x28ad   :  { %v10723_v52 = vpack.c.bf16 %v10720_v46, %v10720_v46 }
0x28ae   :  { %12435 = vmatmul.mubr.msk.bf16.vlgmr.msra.gmra.mrb[16].mxu1 %vm10892_vm7, %v10724_v54 }
0x28af   :  { %10928 = vmatprep.mubr.bf16.mxu0 %v10723_v52  ;;  %12439 = vmatpush3.bf16.msra.mxu1 %v14075_v14 }
0x28b0   :  { %10929 = vmatmul.mubr.bf16.vlgmr.msra.gmra.mrb[0].mxu0 %v10722_v22  ;;  %12440 = vmatprep.subr.bf16.mxu1 %v20601_v58 }
0x28b1   :  { %12446 = vmatprep.mubr.msk.bf16.mxu1 %vm14367_vm12, %v20601_v58  ;;  %vm11013_vm12 = vcmask 408576  }
0x28b3   :  { %12441 = vmatpush3.bf16.msra.mxu1 %v14076_v24 }
0x28b4   :  { %12442 = vmatprep.subr.bf16.mxu1 %v20601_v58 }
0x28b7   :  { %12443 = vmatpush3.bf16.msra.mxu1 %v14077_v26 }
0x28b8   :  { %12444 = vmatprep.subr.bf16.mxu1 %v20601_v58 }
0x28bb   :  { %12445 = vmatpush3.bf16.msra.mxu1 %v11018_v36 }
0x2981   :  { %v10970_v4 = vpop.f32.mrb[16].mxu1 }
0x2982   :  { %v12436_v40 = vpop.f32.mrb[17].mxu1 }
0x2983   :  { %v12410_v30 = vpop.f32.mrb[0].mxu0  ;;  %v10973_v25 = vpop.f32.mrb[18].mxu1 }
0x2984   :  { %v12411_v49 = vpop.f32.mrb[1].mxu0  ;;  %v12437_v3 = vpop.f32.mrb[19].mxu1 }
0x2985   :  { %v12412_v34 = vadd.f32 %v12411_v49, %v12410_v30  ;;  %v12413_v45 = vpop.f32.mrb[2].mxu0 }
0x2986   :  { %v12414_v58 = vpop.f32.mrb[3].mxu0 }
0x2987   :  { %v10931_v13 = vadd.f32 %v12412_v34, %v12366_v62 }
0x2989   :  { %v10971_v29 = vadd.f32 %v10970_v4, %v10931_v13 }
0x298b   :  { %v10976_v1 = vmax.f32 %v10971_v29, 0.0 }
0x298d   :  { %v10977_v55 = vpack.c.bf16 %v10976_v1, %v10976_v1 }
0x298f   :  { %12447 = vmatmul.mubr.msk.bf16.vlgmr.msra.gmra.mrb[20].mxu1 %vm11013_vm12, %v10977_v55 }
0x2a62   :  { %v11054_v50 = vpop.f32.mrb[20].mxu1 }
0x2a63   :  { %v11055_v7 = vadd.f32 %v12388_v51, %v11054_v50  ;;  %v12448_v41 = vpop.f32.mrb[21].mxu1 }
0x2a64   :  { %v11057_v57 = vpop.f32.mrb[22].mxu1 }
0x2a65   :  { %v12449_v60 = vpop.f32.mrb[23].mxu1  ;;  %v11061_v47 = vsel %vm11060_vm8, %v11055_v7, -inf }
0x2a66   :  { %11062 = vmax.xlane.f32.xlu0 %v11061_v47 }
0x2af3   :  { %v11063_v35 = vpop.xlane.xlu0 %11062 }
0x2af4   :  { %v11064_v9 = vsub.f32 %v11055_v7, %v11063_v35 }
0x2af6   :  { %v11065_v17 = vmul.f32 1.442695, %v11064_v9 }
0x2af8   :  { %14079 = vpow2.f32 %v11065_v17 }
0x2b02   :  { %v14080_v53 = vpop.eup %14079 }
0x2b03   :  { %v11067_v43 = vsel %vm11060_vm8, %v14080_v53, 0.0 }
0x2b04   :  { %11068 = vadd.xlane.f32.xlu1 %v11067_v43 }
0x2b91   :  { %v11069_v39 = vpop.xlane.xlu1 %11068 }
0x2b92   :  { %14081 = vlog2.f32 %v11069_v39 }
0x2b9c   :  { %v14082_v27 = vpop.eup %14081 }
0x2b9d   :  { %v11071_v33 = vmul.f32 0.6931472, %v14082_v27 }
0x2b9f   :  { %v11072_v20 = vsub.f32 %v11064_v9, %v11071_v33 }
0x2ba1   :  { %11073 = vst.msk [vmem:[%s19969_s9] sm:$0xff] %vm11060_vm8, %v11072_v20 }

</bundles_post_ra>
